<compile_context>
chip_gen: v7x
topology: tpu7x:2x2x1
jax: 0.10.0
libtpu: 0.0.40
codegen_flags: <defaults>
</compile_context>

<pallas_src>
import math

import numpy as np

import jax
import jax.numpy as jnp
from jax.experimental import pallas as pl
from jax.experimental.pallas import tpu as pltpu

# -----------------------------------------------------------------------------
# Scaled-down config (same layer stack / strides / padding / chunking as the
# PyTorch module): channels 128/256 -> 16/32, latent 256 -> 16, images
# 3x64x64 -> 3x16x16, batch 32 -> 2.
# -----------------------------------------------------------------------------
BATCH_SIZE = 2
INPUT_SHAPE = (3, 16, 16)
C1, C2 = 16, 32
LATENT = 16

# [in_channels, out_channels, kernel, stride, relu?]
ENCODER_CONV_UNITS = [
    [3,  C1, (4, 4), (1, 1), True],
    [C1, C1, (4, 4), (2, 2), True],
    [C1, C2, (4, 4), (2, 2), True],
    [C2, C2, (4, 4), (2, 2), True],
    [C2, C2, (4, 4), (1, 1), True],
]
DECODER_CONV_UNITS = [
    [C2, C2,    (4, 4), (1, 1), True],
    [C2, C2,    (4, 4), (2, 2), True],
    [C2, C2,    (4, 4), (2, 2), True],
    [C2, C1,    (4, 4), (2, 2), True],
    [C1, 3 * 2, (4, 4), (1, 1), False],
]


# -----------------------------------------------------------------------------
# Static per-layer geometry (PyTorch pad_inputs convention: pad = (K - S)/2,
# ceil on left/top, floor on right/bottom; decoder resize-convs pad with the
# CONV stride (1,1) and nearest-neighbour upsample by the unit stride).
# -----------------------------------------------------------------------------
def _conv_geometry(h_in, w_in, cin, cout, kernel, conv_stride, upsample, relu):
    kh, kw = kernel
    sh, sw = conv_stride
    uh, uw = int(upsample[0]), int(upsample[1])
    assert kh == kw and sh == sw and uh == uw
    pad = (kh - sh) / 2.0
    p_lo, p_hi = int(math.ceil(pad)), int(math.floor(pad))
    h_up, w_up = h_in * uh, w_in * uw
    h_out = (h_up + p_lo + p_hi - kh) // sh + 1
    w_out = (w_up + p_lo + p_hi - kw) // sw + 1
    return dict(h_in=h_in, w_in=w_in, cin=cin, cout=cout, kh=kh, kw=kw,
                sh=sh, sw=sw, uh=uh, uw=uw, p_lo=p_lo, p_hi=p_hi,
                h_out=h_out, w_out=w_out, relu=bool(relu))


def _build_plans():
    assert INPUT_SHAPE[1] == INPUT_SHAPE[2]
    enc_plan = []
    h = w = INPUT_SHAPE[1]
    for cin, cout, ks, st, act in ENCODER_CONV_UNITS:
        g = _conv_geometry(h, w, cin, cout, ks, conv_stride=st,
                           upsample=(1, 1), relu=act)
        enc_plan.append(g)
        h, w = g['h_out'], g['w_out']
    feat_h, feat_w = h, w
    dec_plan = []
    for cin, cout, ks, st, act in DECODER_CONV_UNITS:
        g = _conv_geometry(h, w, cin, cout, ks, conv_stride=(1, 1),
                           upsample=st, relu=act)
        dec_plan.append(g)
        h, w = g['h_out'], g['w_out']
    return enc_plan, dec_plan, (feat_h, feat_w)


ENC_PLAN, DEC_PLAN, (FEAT_H, FEAT_W) = _build_plans()
FLAT_FEAT = C2 * FEAT_H * FEAT_W   # encoder-dense input / decoder-dense output
DEC_OUT = DEC_PLAN[-1]


# -----------------------------------------------------------------------------
# Init-time folding of the conv into MXU-friendly matrices.
# Activation layout inside the kernel: rows = (b * H + h), lanes = (w * C + c).
# -----------------------------------------------------------------------------
def _build_row_select(g, batch):
    """A[di]: (B*Hout, B*Hin) 0/1 matrix.  A[di] @ X gathers, per image, the
    source row feeding vertical tap `di` of each output row; vertical padding
    (all-zero row), vertical stride and vertical NN-upsample are folded in."""
    a = np.zeros((g['kh'], batch * g['h_out'], batch * g['h_in']), np.float32)
    for di in range(g['kh']):
        for ho in range(g['h_out']):
            r = ho * g['sh'] + di - g['p_lo']
            if 0 <= r < g['uh'] * g['h_in']:
                hs = r // g['uh']
                for b in range(batch):
                    a[di, b * g['h_out'] + ho, b * g['h_in'] + hs] = 1.0
    return a


def _fold_weight(w, g):
    """W[di]: (Win*Cin, Wout*Cout).  Folds the KW horizontal taps, horizontal
    padding, horizontal stride and horizontal NN-upsample into one dense
    matrix over the (w, c) lane axis."""
    cout, cin, kh, kw = w.shape
    wf = np.zeros((kh, g['w_in'] * cin, g['w_out'] * cout), np.float32)
    for di in range(kh):
        for dj in range(kw):
            wt = np.ascontiguousarray(w[:, :, di, dj].T)      # (cin, cout)
            for wo in range(g['w_out']):
                q = wo * g['sw'] + dj - g['p_lo']
                if 0 <= q < g['uw'] * g['w_in']:
                    ws = q // g['uw']
                    wf[di, ws * cin:(ws + 1) * cin,
                       wo * cout:(wo + 1) * cout] += wt
    return wf


def init_params(seed=0):
    """Returns (kernel_params, ref_params).

    kernel_params: flat list of pre-folded arrays in the exact order the fused
    Pallas kernel consumes them.  ref_params: raw (PyTorch-layout) weights used
    only by the pure-JAX reference check in __main__."""
    rng = np.random.default_rng(seed)
    kernel_params = []
    ref_params = {'enc_conv': [], 'dec_conv': []}

    def conv_layer(g):
        fan_in = g['cin'] * g['kh'] * g['kw']
        w = rng.standard_normal(
            (g['cout'], g['cin'], g['kh'], g['kw'])).astype(np.float32)
        w /= math.sqrt(fan_in)
        b = 0.01 * rng.standard_normal((g['cout'],)).astype(np.float32)
        a_sel = _build_row_select(g, BATCH_SIZE)
        w_fold = _fold_weight(w, g)
        b_row = np.tile(b, g['w_out'])[None, :]        # bias over (w*C + c) lanes
        kernel_params.extend([
            jnp.asarray(a_sel, jnp.bfloat16),
            jnp.asarray(w_fold, jnp.bfloat16),
            jnp.asarray(b_row, jnp.float32),
        ])
        return jnp.asarray(w, jnp.float32), jnp.asarray(b, jnp.float32)

    def dense(fin, fout):
        w = rng.standard_normal((fin, fout)).astype(np.float32) / math.sqrt(fin)
        b = 0.01 * rng.standard_normal((fout,)).astype(np.float32)
        return w, b

    for g in ENC_PLAN:
        ref_params['enc_conv'].append(conv_layer(g))

    # Encoder dense 0 (FLAT_FEAT -> LATENT, ReLU): rows permuted from PyTorch
    # (c, h, w) flatten order into this kernel's (h-row, w*C + c) layout, so no
    # NHWC<->NCHW transpose is needed at the conv->dense boundary.
    w0, b0 = dense(FLAT_FEAT, LATENT)
    wd0 = np.zeros((FEAT_H, FEAT_W * C2, LATENT), np.float32)
    s_sel = np.zeros((FEAT_H, BATCH_SIZE, BATCH_SIZE * FEAT_H), np.float32)
    for h in range(FEAT_H):
        for b in range(BATCH_SIZE):
            s_sel[h, b, b * FEAT_H + h] = 1.0
        for wc in range(FEAT_W):
            for c in range(C2):
                wd0[h, wc * C2 + c, :] = w0[c * (FEAT_H * FEAT_W) + h * FEAT_W + wc, :]

    # Encoder dense 1 (LATENT -> 2*LATENT), pre-split == torch.chunk(x, 2, 1).
    w1, b1 = dense(LATENT, 2 * LATENT)
    # Decoder dense 0 (LATENT -> LATENT, ReLU).
    wdd0, bdd0 = dense(LATENT, LATENT)
    # Decoder dense 1 (LATENT -> FLAT_FEAT, ReLU): columns permuted from the
    # PyTorch (c, h, w) unflatten order into the (h-row, w*C + c) layout; P
    # interleaves the per-h row blocks back into (b*FEAT_H + h) rows.
    w2, b2 = dense(LATENT, FLAT_FEAT)
    wdd1 = np.zeros((FEAT_H, LATENT, FEAT_W * C2), np.float32)
    bdd1 = np.zeros((FEAT_H, 1, FEAT_W * C2), np.float32)
    p_sel = np.zeros((FEAT_H, BATCH_SIZE * FEAT_H, BATCH_SIZE), np.float32)
    for h in range(FEAT_H):
        for b in range(BATCH_SIZE):
            p_sel[h, b * FEAT_H + h, b] = 1.0
        for wc in range(FEAT_W):
            for c in range(C2):
                f = c * (FEAT_H * FEAT_W) + h * FEAT_W + wc
                wdd1[h, :, wc * C2 + c] = w2[:, f]
                bdd1[h, 0, wc * C2 + c] = b2[f]

    kernel_params.extend([
        jnp.asarray(s_sel, jnp.bfloat16),
        jnp.asarray(wd0, jnp.bfloat16),
        jnp.asarray(b0[None, :], jnp.float32),
        jnp.asarray(w1[:, :LATENT], jnp.bfloat16),
        jnp.asarray(b1[None, :LATENT], jnp.float32),
        jnp.asarray(w1[:, LATENT:], jnp.bfloat16),
        jnp.asarray(b1[None, LATENT:], jnp.float32),
        jnp.asarray(wdd0, jnp.bfloat16),
        jnp.asarray(bdd0[None, :], jnp.float32),
        jnp.asarray(wdd1, jnp.bfloat16),
        jnp.asarray(bdd1, jnp.float32),
        jnp.asarray(p_sel, jnp.bfloat16),
    ])

    for g in DEC_PLAN:
        ref_params['dec_conv'].append(conv_layer(g))

    ref_params['enc_dense0'] = (jnp.asarray(w0), jnp.asarray(b0))
    ref_params['enc_dense1'] = (jnp.asarray(w1), jnp.asarray(b1))
    ref_params['dec_dense0'] = (jnp.asarray(wdd0), jnp.asarray(bdd0))
    ref_params['dec_dense1'] = (jnp.asarray(w2), jnp.asarray(b2))
    return kernel_params, ref_params


# -----------------------------------------------------------------------------
# The single fused Pallas kernel (no grid; everything is VMEM-resident).
# -----------------------------------------------------------------------------
def _make_vae_kernel(enc_plan, dec_plan):
    n_enc, n_dec = len(enc_plan), len(dec_plan)

    def kernel(*refs):
        it = iter(refs)
        x_ref, eps_ref = next(it), next(it)
        enc_refs = [(next(it), next(it), next(it)) for _ in range(n_enc)]
        (s_ref, wd0_ref, bd0_ref, wm_ref, bm_ref, wl_ref, bl_ref,
         wdd0_ref, bdd0_ref, wdd1_ref, bdd1_ref, p_ref) = (
            next(it) for _ in range(12))
        dec_refs = [(next(it), next(it), next(it)) for _ in range(n_dec)]
        mean_ref, logstd_ref, ydec_ref = next(it), next(it), next(it)

        def conv(x, a_ref, w_ref, b_ref, relu):
            """x: (B*Hin, Win*Cin) bf16  ->  (B*Hout, Wout*Cout) f32."""
            rows, lout = a_ref.shape[1], w_ref.shape[2]
            acc = jnp.zeros((rows, lout), jnp.float32)
            for di in range(a_ref.shape[0]):
                # Exact 0/1 row-gather matmul (vertical tap/pad/stride/upsample),
                # then one big lane-dense matmul over K = Win*Cin.
                gath = jnp.dot(a_ref[di], x, preferred_element_type=jnp.float32)
                acc = acc + jnp.dot(gath.astype(jnp.bfloat16), w_ref[di],
                                    preferred_element_type=jnp.float32)
            acc = acc + b_ref[...]
            if relu:
                acc = jnp.maximum(acc, 0.0)
            return acc

        # ---- encoder convs (bf16 activations stay in VMEM) ----
        x = x_ref[...]
        for (a_ref, w_ref, b_ref), g in zip(enc_refs, enc_plan):
            x = conv(x, a_ref, w_ref, b_ref, g['relu']).astype(jnp.bfloat16)

        # ---- encoder dense 0: fold FEAT_H row blocks into features ----
        fh = s_ref.shape[0]
        batch = eps_ref.shape[0]
        t = jnp.zeros((batch, wd0_ref.shape[2]), jnp.float32)
        for h in range(fh):
            sel = jnp.dot(s_ref[h], x, preferred_element_type=jnp.float32)
            t = t + jnp.dot(sel.astype(jnp.bfloat16), wd0_ref[h],
                            preferred_element_type=jnp.float32)
        t = jnp.maximum(t + bd0_ref[...], 0.0).astype(jnp.bfloat16)

        # ---- encoder dense 1 (pre-split == torch.chunk(x, 2, 1)) ----
        mean = jnp.dot(t, wm_ref[...], preferred_element_type=jnp.float32) + bm_ref[...]
        logstd = jnp.dot(t, wl_ref[...], preferred_element_type=jnp.float32) + bl_ref[...]
        mean_ref[...] = mean
        logstd_ref[...] = logstd

        # ---- reparameterization (epsilon passed in as an input) ----
        z = (eps_ref[...] * jnp.exp(logstd) + mean).astype(jnp.bfloat16)

        # ---- decoder dense 0 ----
        u = jnp.dot(z, wdd0_ref[...], preferred_element_type=jnp.float32) + bdd0_ref[...]
        u = jnp.maximum(u, 0.0).astype(jnp.bfloat16)

        # ---- decoder dense 1 + unflatten into (b*FEAT_H + h, w*C + c) rows ----
        xd = jnp.zeros((p_ref.shape[1], wdd1_ref.shape[2]), jnp.float32)
        for h in range(fh):
            blk = jnp.dot(u, wdd1_ref[h], preferred_element_type=jnp.float32) + bdd1_ref[h]
            blk = jnp.maximum(blk, 0.0).astype(jnp.bfloat16)
            xd = xd + jnp.dot(p_ref[h], blk, preferred_element_type=jnp.float32)
        x = xd.astype(jnp.bfloat16)

        # ---- decoder resize-convs (NN upsample folded into A / W at init) ----
        y = None
        for (a_ref, w_ref, b_ref), g in zip(dec_refs, dec_plan):
            y = conv(x, a_ref, w_ref, b_ref, g['relu'])
            x = y.astype(jnp.bfloat16)
        ydec_ref[...] = y

    return kernel


_VAE_KERNEL = _make_vae_kernel(ENC_PLAN, DEC_PLAN)
_VMEM = pl.BlockSpec(memory_space=pltpu.MemorySpace.VMEM)


@jax.jit
def vae_forward(kernel_params, x, eps):
    """x: (B, 3, H, W) NCHW f32 (PyTorch layout); eps: (B, LATENT) f32."""
    b = x.shape[0]
    cin, hin, win = INPUT_SHAPE
    # Boundary-only layout change: NCHW -> NHWC -> (B*H, W*C) bf16 rows.
    x_rows = x.astype(jnp.float32).transpose(0, 2, 3, 1)
    x_rows = x_rows.reshape(b * hin, win * cin).astype(jnp.bfloat16)

    h_out, w_out, c_out = DEC_OUT['h_out'], DEC_OUT['w_out'], DEC_OUT['cout']
    enc_mean, enc_logstd, ydec = pl.pallas_call(
        _VAE_KERNEL,
        out_shape=(
            jax.ShapeDtypeStruct((b, LATENT), jnp.float32),
            jax.ShapeDtypeStruct((b, LATENT), jnp.float32),
            jax.ShapeDtypeStruct((b * h_out, w_out * c_out), jnp.float32),
        ),
        in_specs=[_VMEM] * (2 + len(kernel_params)),
        out_specs=(_VMEM, _VMEM, _VMEM),
    )(x_rows, eps, *kernel_params)

    # Boundary-only layout change back to NCHW; torch.chunk over channels.
    y = ydec.reshape(b, h_out, w_out, c_out).transpose(0, 3, 1, 2)
    dec_mean = y[:, : c_out // 2]
    dec_logstd = y[:, c_out // 2:]
    return enc_mean, enc_logstd, dec_mean, dec_logstd


# -----------------------------------------------------------------------------
# Pure-JAX f32 reference (no Pallas) of the same forward, for a loose check.
# -----------------------------------------------------------------------------
def _ref_conv(x, w, b, g):
    y = jax.lax.conv_general_dilated(
        x, w, window_strides=(g['sh'], g['sw']),
        padding=((g['p_lo'], g['p_hi']), (g['p_lo'], g['p_hi'])),
        dimension_numbers=('NCHW', 'OIHW', 'NCHW'))
    return y + b[None, :, None, None]


def reference_forward(ref_params, x, eps):
    h = x.astype(jnp.float32)
    for (w, b), g in zip(ref_params['enc_conv'], ENC_PLAN):
        h = _ref_conv(h, w, b, g)
        if g['relu']:
            h = jax.nn.relu(h)
    h = h.reshape(h.shape[0], -1)
    w, b = ref_params['enc_dense0']
    h = jax.nn.relu(h @ w + b)
    w, b = ref_params['enc_dense1']
    h = h @ w + b
    enc_mean, enc_logstd = h[:, :LATENT], h[:, LATENT:]
    z = eps * jnp.exp(enc_logstd) + enc_mean
    w, b = ref_params['dec_dense0']
    h = jax.nn.relu(z @ w + b)
    w, b = ref_params['dec_dense1']
    h = jax.nn.relu(h @ w + b)
    h = h.reshape(BATCH_SIZE, C2, FEAT_H, FEAT_W)
    for (w, b), g in zip(ref_params['dec_conv'], DEC_PLAN):
        if g['uh'] > 1:
            h = jnp.repeat(jnp.repeat(h, g['uh'], axis=2), g['uw'], axis=3)
        h = _ref_conv(h, w, b, g)
        if g['relu']:
            h = jax.nn.relu(h)
    dec_mean, dec_logstd = jnp.split(h, 2, axis=1)
    return enc_mean, enc_logstd, dec_mean, dec_logstd


if __name__ == "__main__":
    kernel_params, ref_params = init_params(seed=0)

    key = jax.random.PRNGKey(0)
    xkey, ekey = jax.random.split(key)
    x = jax.random.normal(xkey, (BATCH_SIZE,) + INPUT_SHAPE, jnp.float32)
    eps = jax.random.normal(ekey, (BATCH_SIZE, LATENT), jnp.float32)

    outs = vae_forward(kernel_params, x, eps)
    outs = jax.block_until_ready(outs)
    enc_mean, enc_logstd, dec_mean, dec_logstd = outs

    assert enc_mean.shape == (BATCH_SIZE, LATENT)
    assert enc_logstd.shape == (BATCH_SIZE, LATENT)
    assert dec_mean.shape == (BATCH_SIZE, 3, INPUT_SHAPE[1], INPUT_SHAPE[2])
    assert dec_logstd.shape == (BATCH_SIZE, 3, INPUT_SHAPE[1], INPUT_SHAPE[2])
    for o in outs:
        assert bool(jnp.all(jnp.isfinite(o)))

    # Loose-tolerance check against the pure-JAX f32 reference (the kernel runs
    # bf16 x bf16 -> f32 MXU matmuls, so it will not bit-match).
    refs = reference_forward(ref_params, x, eps)
    for got, ref in zip(outs, refs):
        scale = float(jnp.max(jnp.abs(ref))) + 1e-6
        err = float(jnp.max(jnp.abs(got - ref)))
        assert err <= 0.2 * scale + 0.02, (err, scale)

    print("KERNEL_OK")
</pallas_src>

<mosaic_0001>
module attributes {stable_mosaic.version = 11 : i64} {
  func.func @kernel(%arg0: memref<32x48xbf16, #tpu.memory_space<vmem>>, %arg1: memref<2x16xf32, #tpu.memory_space<vmem>>, %arg2: memref<4x32x32xbf16, #tpu.memory_space<vmem>>, %arg3: memref<4x48x256xbf16, #tpu.memory_space<vmem>>, %arg4: memref<1x256xf32, #tpu.memory_space<vmem>>, %arg5: memref<4x16x32xbf16, #tpu.memory_space<vmem>>, %arg6: memref<4x256x128xbf16, #tpu.memory_space<vmem>>, %arg7: memref<1x128xf32, #tpu.memory_space<vmem>>, %arg8: memref<4x8x16xbf16, #tpu.memory_space<vmem>>, %arg9: memref<4x128x128xbf16, #tpu.memory_space<vmem>>, %arg10: memref<1x128xf32, #tpu.memory_space<vmem>>, %arg11: memref<4x4x8xbf16, #tpu.memory_space<vmem>>, %arg12: memref<4x128x64xbf16, #tpu.memory_space<vmem>>, %arg13: memref<1x64xf32, #tpu.memory_space<vmem>>, %arg14: memref<4x4x4xbf16, #tpu.memory_space<vmem>>, %arg15: memref<4x64x64xbf16, #tpu.memory_space<vmem>>, %arg16: memref<1x64xf32, #tpu.memory_space<vmem>>, %arg17: memref<2x2x4xbf16, #tpu.memory_space<vmem>>, %arg18: memref<2x64x16xbf16, #tpu.memory_space<vmem>>, %arg19: memref<1x16xf32, #tpu.memory_space<vmem>>, %arg20: memref<16x16xbf16, #tpu.memory_space<vmem>>, %arg21: memref<1x16xf32, #tpu.memory_space<vmem>>, %arg22: memref<16x16xbf16, #tpu.memory_space<vmem>>, %arg23: memref<1x16xf32, #tpu.memory_space<vmem>>, %arg24: memref<16x16xbf16, #tpu.memory_space<vmem>>, %arg25: memref<1x16xf32, #tpu.memory_space<vmem>>, %arg26: memref<2x16x64xbf16, #tpu.memory_space<vmem>>, %arg27: memref<2x1x64xf32, #tpu.memory_space<vmem>>, %arg28: memref<2x4x2xbf16, #tpu.memory_space<vmem>>, %arg29: memref<4x4x4xbf16, #tpu.memory_space<vmem>>, %arg30: memref<4x64x64xbf16, #tpu.memory_space<vmem>>, %arg31: memref<1x64xf32, #tpu.memory_space<vmem>>, %arg32: memref<4x8x4xbf16, #tpu.memory_space<vmem>>, %arg33: memref<4x64x128xbf16, #tpu.memory_space<vmem>>, %arg34: memref<1x128xf32, #tpu.memory_space<vmem>>, %arg35: memref<4x16x8xbf16, #tpu.memory_space<vmem>>, %arg36: memref<4x128x256xbf16, #tpu.memory_space<vmem>>, %arg37: memref<1x256xf32, #tpu.memory_space<vmem>>, %arg38: memref<4x32x16xbf16, #tpu.memory_space<vmem>>, %arg39: memref<4x256x256xbf16, #tpu.memory_space<vmem>>, %arg40: memref<1x256xf32, #tpu.memory_space<vmem>>, %arg41: memref<4x32x32xbf16, #tpu.memory_space<vmem>>, %arg42: memref<4x256x96xbf16, #tpu.memory_space<vmem>>, %arg43: memref<1x96xf32, #tpu.memory_space<vmem>>, %arg44: memref<2x16xf32, #tpu.memory_space<vmem>>, %arg45: memref<2x16xf32, #tpu.memory_space<vmem>>, %arg46: memref<32x96xf32, #tpu.memory_space<vmem>>) attributes {dimension_semantics = [], scalar_prefetch = 0 : i64, scratch_operands = 0 : i64, tpu.core_type = #tpu.core_type<tc>} {
    %c0 = arith.constant 0 : index
    %c0_0 = arith.constant 0 : index
    %0 = vector.load %arg0[%c0, %c0_0] : memref<32x48xbf16, #tpu.memory_space<vmem>>, vector<32x48xbf16>
    %cst = arith.constant 0.000000e+00 : f32
    %1 = vector.broadcast %cst : f32 to vector<32x256xf32>
    %c0_1 = arith.constant 0 : index
    %c0_2 = arith.constant 0 : index
    %c0_3 = arith.constant 0 : index
    %2 = vector.load %arg2[%c0_1, %c0_2, %c0_3] : memref<4x32x32xbf16, #tpu.memory_space<vmem>>, vector<1x32x32xbf16>
    %3 = vector.shape_cast %2 : vector<1x32x32xbf16> to vector<32x32xbf16>
    %cst_4 = arith.constant dense<0.000000e+00> : vector<32x48xf32>
    %4 = tpu.matmul %3, %0, %cst_4 {dimension_numbers = #tpu.dot_dimension_numbers<[1], [0], [0], [1], [0, 0, 1, 1], [], []>} : vector<32x32xbf16>, vector<32x48xbf16>, vector<32x48xf32> -> vector<32x48xf32>
    %5 = arith.truncf %4 : vector<32x48xf32> to vector<32x48xbf16>
    %c0_5 = arith.constant 0 : index
    %c0_6 = arith.constant 0 : index
    %c0_7 = arith.constant 0 : index
    %6 = vector.load %arg3[%c0_5, %c0_6, %c0_7] : memref<4x48x256xbf16, #tpu.memory_space<vmem>>, vector<1x48x256xbf16>
    %7 = vector.shape_cast %6 : vector<1x48x256xbf16> to vector<48x256xbf16>
    %cst_8 = arith.constant dense<0.000000e+00> : vector<32x256xf32>
    %8 = tpu.matmul %5, %7, %cst_8 {dimension_numbers = #tpu.dot_dimension_numbers<[1], [0], [0], [1], [0, 0, 1, 1], [], []>} : vector<32x48xbf16>, vector<48x256xbf16>, vector<32x256xf32> -> vector<32x256xf32>
    %9 = arith.addf %1, %8 : vector<32x256xf32>
    %c1 = arith.constant 1 : index
    %c0_9 = arith.constant 0 : index
    %c0_10 = arith.constant 0 : index
    %10 = vector.load %arg2[%c1, %c0_9, %c0_10] : memref<4x32x32xbf16, #tpu.memory_space<vmem>>, vector<1x32x32xbf16>
    %11 = vector.shape_cast %10 : vector<1x32x32xbf16> to vector<32x32xbf16>
    %cst_11 = arith.constant dense<0.000000e+00> : vector<32x48xf32>
    %12 = tpu.matmul %11, %0, %cst_11 {dimension_numbers = #tpu.dot_dimension_numbers<[1], [0], [0], [1], [0, 0, 1, 1], [], []>} : vector<32x32xbf16>, vector<32x48xbf16>, vector<32x48xf32> -> vector<32x48xf32>
    %13 = arith.truncf %12 : vector<32x48xf32> to vector<32x48xbf16>
    %c1_12 = arith.constant 1 : index
    %c0_13 = arith.constant 0 : index
    %c0_14 = arith.constant 0 : index
    %14 = vector.load %arg3[%c1_12, %c0_13, %c0_14] : memref<4x48x256xbf16, #tpu.memory_space<vmem>>, vector<1x48x256xbf16>
    %15 = vector.shape_cast %14 : vector<1x48x256xbf16> to vector<48x256xbf16>
    %cst_15 = arith.constant dense<0.000000e+00> : vector<32x256xf32>
    %16 = tpu.matmul %13, %15, %cst_15 {dimension_numbers = #tpu.dot_dimension_numbers<[1], [0], [0], [1], [0, 0, 1, 1], [], []>} : vector<32x48xbf16>, vector<48x256xbf16>, vector<32x256xf32> -> vector<32x256xf32>
    %17 = arith.addf %9, %16 : vector<32x256xf32>
    %c2 = arith.constant 2 : index
    %c0_16 = arith.constant 0 : index
    %c0_17 = arith.constant 0 : index
    %18 = vector.load %arg2[%c2, %c0_16, %c0_17] : memref<4x32x32xbf16, #tpu.memory_space<vmem>>, vector<1x32x32xbf16>
    %19 = vector.shape_cast %18 : vector<1x32x32xbf16> to vector<32x32xbf16>
    %cst_18 = arith.constant dense<0.000000e+00> : vector<32x48xf32>
    %20 = tpu.matmul %19, %0, %cst_18 {dimension_numbers = #tpu.dot_dimension_numbers<[1], [0], [0], [1], [0, 0, 1, 1], [], []>} : vector<32x32xbf16>, vector<32x48xbf16>, vector<32x48xf32> -> vector<32x48xf32>
    %21 = arith.truncf %20 : vector<32x48xf32> to vector<32x48xbf16>
    %c2_19 = arith.constant 2 : index
    %c0_20 = arith.constant 0 : index
    %c0_21 = arith.constant 0 : index
    %22 = vector.load %arg3[%c2_19, %c0_20, %c0_21] : memref<4x48x256xbf16, #tpu.memory_space<vmem>>, vector<1x48x256xbf16>
    %23 = vector.shape_cast %22 : vector<1x48x256xbf16> to vector<48x256xbf16>
    %cst_22 = arith.constant dense<0.000000e+00> : vector<32x256xf32>
    %24 = tpu.matmul %21, %23, %cst_22 {dimension_numbers = #tpu.dot_dimension_numbers<[1], [0], [0], [1], [0, 0, 1, 1], [], []>} : vector<32x48xbf16>, vector<48x256xbf16>, vector<32x256xf32> -> vector<32x256xf32>
    %25 = arith.addf %17, %24 : vector<32x256xf32>
    %c3 = arith.constant 3 : index
    %c0_23 = arith.constant 0 : index
    %c0_24 = arith.constant 0 : index
    %26 = vector.load %arg2[%c3, %c0_23, %c0_24] : memref<4x32x32xbf16, #tpu.memory_space<vmem>>, vector<1x32x32xbf16>
    %27 = vector.shape_cast %26 : vector<1x32x32xbf16> to vector<32x32xbf16>
    %cst_25 = arith.constant dense<0.000000e+00> : vector<32x48xf32>
    %28 = tpu.matmul %27, %0, %cst_25 {dimension_numbers = #tpu.dot_dimension_numbers<[1], [0], [0], [1], [0, 0, 1, 1], [], []>} : vector<32x32xbf16>, vector<32x48xbf16>, vector<32x48xf32> -> vector<32x48xf32>
    %29 = arith.truncf %28 : vector<32x48xf32> to vector<32x48xbf16>
    %c3_26 = arith.constant 3 : index
    %c0_27 = arith.constant 0 : index
    %c0_28 = arith.constant 0 : index
    %30 = vector.load %arg3[%c3_26, %c0_27, %c0_28] : memref<4x48x256xbf16, #tpu.memory_space<vmem>>, vector<1x48x256xbf16>
    %31 = vector.shape_cast %30 : vector<1x48x256xbf16> to vector<48x256xbf16>
    %cst_29 = arith.constant dense<0.000000e+00> : vector<32x256xf32>
    %32 = tpu.matmul %29, %31, %cst_29 {dimension_numbers = #tpu.dot_dimension_numbers<[1], [0], [0], [1], [0, 0, 1, 1], [], []>} : vector<32x48xbf16>, vector<48x256xbf16>, vector<32x256xf32> -> vector<32x256xf32>
    %33 = arith.addf %25, %32 : vector<32x256xf32>
    %c0_30 = arith.constant 0 : index
    %c0_31 = arith.constant 0 : index
    %34 = vector.load %arg4[%c0_30, %c0_31] : memref<1x256xf32, #tpu.memory_space<vmem>>, vector<1x256xf32>
    %35 = vector.broadcast %34 : vector<1x256xf32> to vector<32x256xf32>
    %36 = arith.addf %33, %35 : vector<32x256xf32>
    %cst_32 = arith.constant 0.000000e+00 : f32
    %37 = vector.broadcast %cst_32 : f32 to vector<32x256xf32>
    %38 = arith.maximumf %36, %37 : vector<32x256xf32>
    %39 = arith.truncf %38 : vector<32x256xf32> to vector<32x256xbf16>
    %cst_33 = arith.constant 0.000000e+00 : f32
    %40 = vector.broadcast %cst_33 : f32 to vector<16x128xf32>
    %c0_34 = arith.constant 0 : index
    %c0_35 = arith.constant 0 : index
    %c0_36 = arith.constant 0 : index
    %41 = vector.load %arg5[%c0_34, %c0_35, %c0_36] : memref<4x16x32xbf16, #tpu.memory_space<vmem>>, vector<1x16x32xbf16>
    %42 = vector.shape_cast %41 : vector<1x16x32xbf16> to vector<16x32xbf16>
    %cst_37 = arith.constant dense<0.000000e+00> : vector<16x256xf32>
    %43 = tpu.matmul %42, %39, %cst_37 {dimension_numbers = #tpu.dot_dimension_numbers<[1], [0], [0], [1], [0, 0, 1, 1], [], []>} : vector<16x32xbf16>, vector<32x256xbf16>, vector<16x256xf32> -> vector<16x256xf32>
    %44 = arith.truncf %43 : vector<16x256xf32> to vector<16x256xbf16>
    %c0_38 = arith.constant 0 : index
    %c0_39 = arith.constant 0 : index
    %c0_40 = arith.constant 0 : index
    %45 = vector.load %arg6[%c0_38, %c0_39, %c0_40] : memref<4x256x128xbf16, #tpu.memory_space<vmem>>, vector<1x256x128xbf16>
    %46 = vector.shape_cast %45 : vector<1x256x128xbf16> to vector<256x128xbf16>
    %cst_41 = arith.constant dense<0.000000e+00> : vector<16x128xf32>
    %47 = tpu.matmul %44, %46, %cst_41 {dimension_numbers = #tpu.dot_dimension_numbers<[1], [0], [0], [1], [0, 0, 1, 1], [], []>} : vector<16x256xbf16>, vector<256x128xbf16>, vector<16x128xf32> -> vector<16x128xf32>
    %48 = arith.addf %40, %47 : vector<16x128xf32>
    %c1_42 = arith.constant 1 : index
    %c0_43 = arith.constant 0 : index
    %c0_44 = arith.constant 0 : index
    %49 = vector.load %arg5[%c1_42, %c0_43, %c0_44] : memref<4x16x32xbf16, #tpu.memory_space<vmem>>, vector<1x16x32xbf16>
    %50 = vector.shape_cast %49 : vector<1x16x32xbf16> to vector<16x32xbf16>
    %cst_45 = arith.constant dense<0.000000e+00> : vector<16x256xf32>
    %51 = tpu.matmul %50, %39, %cst_45 {dimension_numbers = #tpu.dot_dimension_numbers<[1], [0], [0], [1], [0, 0, 1, 1], [], []>} : vector<16x32xbf16>, vector<32x256xbf16>, vector<16x256xf32> -> vector<16x256xf32>
    %52 = arith.truncf %51 : vector<16x256xf32> to vector<16x256xbf16>
    %c1_46 = arith.constant 1 : index
    %c0_47 = arith.constant 0 : index
    %c0_48 = arith.constant 0 : index
    %53 = vector.load %arg6[%c1_46, %c0_47, %c0_48] : memref<4x256x128xbf16, #tpu.memory_space<vmem>>, vector<1x256x128xbf16>
    %54 = vector.shape_cast %53 : vector<1x256x128xbf16> to vector<256x128xbf16>
    %cst_49 = arith.constant dense<0.000000e+00> : vector<16x128xf32>
    %55 = tpu.matmul %52, %54, %cst_49 {dimension_numbers = #tpu.dot_dimension_numbers<[1], [0], [0], [1], [0, 0, 1, 1], [], []>} : vector<16x256xbf16>, vector<256x128xbf16>, vector<16x128xf32> -> vector<16x128xf32>
    %56 = arith.addf %48, %55 : vector<16x128xf32>
    %c2_50 = arith.constant 2 : index
    %c0_51 = arith.constant 0 : index
    %c0_52 = arith.constant 0 : index
    %57 = vector.load %arg5[%c2_50, %c0_51, %c0_52] : memref<4x16x32xbf16, #tpu.memory_space<vmem>>, vector<1x16x32xbf16>
    %58 = vector.shape_cast %57 : vector<1x16x32xbf16> to vector<16x32xbf16>
    %cst_53 = arith.constant dense<0.000000e+00> : vector<16x256xf32>
    %59 = tpu.matmul %58, %39, %cst_53 {dimension_numbers = #tpu.dot_dimension_numbers<[1], [0], [0], [1], [0, 0, 1, 1], [], []>} : vector<16x32xbf16>, vector<32x256xbf16>, vector<16x256xf32> -> vector<16x256xf32>
    %60 = arith.truncf %59 : vector<16x256xf32> to vector<16x256xbf16>
    %c2_54 = arith.constant 2 : index
    %c0_55 = arith.constant 0 : index
    %c0_56 = arith.constant 0 : index
    %61 = vector.load %arg6[%c2_54, %c0_55, %c0_56] : memref<4x256x128xbf16, #tpu.memory_space<vmem>>, vector<1x256x128xbf16>
    %62 = vector.shape_cast %61 : vector<1x256x128xbf16> to vector<256x128xbf16>
    %cst_57 = arith.constant dense<0.000000e+00> : vector<16x128xf32>
    %63 = tpu.matmul %60, %62, %cst_57 {dimension_numbers = #tpu.dot_dimension_numbers<[1], [0], [0], [1], [0, 0, 1, 1], [], []>} : vector<16x256xbf16>, vector<256x128xbf16>, vector<16x128xf32> -> vector<16x128xf32>
    %64 = arith.addf %56, %63 : vector<16x128xf32>
    %c3_58 = arith.constant 3 : index
    %c0_59 = arith.constant 0 : index
    %c0_60 = arith.constant 0 : index
    %65 = vector.load %arg5[%c3_58, %c0_59, %c0_60] : memref<4x16x32xbf16, #tpu.memory_space<vmem>>, vector<1x16x32xbf16>
    %66 = vector.shape_cast %65 : vector<1x16x32xbf16> to vector<16x32xbf16>
    %cst_61 = arith.constant dense<0.000000e+00> : vector<16x256xf32>
    %67 = tpu.matmul %66, %39, %cst_61 {dimension_numbers = #tpu.dot_dimension_numbers<[1], [0], [0], [1], [0, 0, 1, 1], [], []>} : vector<16x32xbf16>, vector<32x256xbf16>, vector<16x256xf32> -> vector<16x256xf32>
    %68 = arith.truncf %67 : vector<16x256xf32> to vector<16x256xbf16>
    %c3_62 = arith.constant 3 : index
    %c0_63 = arith.constant 0 : index
    %c0_64 = arith.constant 0 : index
    %69 = vector.load %arg6[%c3_62, %c0_63, %c0_64] : memref<4x256x128xbf16, #tpu.memory_space<vmem>>, vector<1x256x128xbf16>
    %70 = vector.shape_cast %69 : vector<1x256x128xbf16> to vector<256x128xbf16>
    %cst_65 = arith.constant dense<0.000000e+00> : vector<16x128xf32>
    %71 = tpu.matmul %68, %70, %cst_65 {dimension_numbers = #tpu.dot_dimension_numbers<[1], [0], [0], [1], [0, 0, 1, 1], [], []>} : vector<16x256xbf16>, vector<256x128xbf16>, vector<16x128xf32> -> vector<16x128xf32>
    %72 = arith.addf %64, %71 : vector<16x128xf32>
    %c0_66 = arith.constant 0 : index
    %c0_67 = arith.constant 0 : index
    %73 = vector.load %arg7[%c0_66, %c0_67] : memref<1x128xf32, #tpu.memory_space<vmem>>, vector<1x128xf32>
    %74 = vector.broadcast %73 : vector<1x128xf32> to vector<16x128xf32>
    %75 = arith.addf %72, %74 : vector<16x128xf32>
    %cst_68 = arith.constant 0.000000e+00 : f32
    %76 = vector.broadcast %cst_68 : f32 to vector<16x128xf32>
    %77 = arith.maximumf %75, %76 : vector<16x128xf32>
    %78 = arith.truncf %77 : vector<16x128xf32> to vector<16x128xbf16>
    %cst_69 = arith.constant 0.000000e+00 : f32
    %79 = vector.broadcast %cst_69 : f32 to vector<8x128xf32>
    %c0_70 = arith.constant 0 : index
    %c0_71 = arith.constant 0 : index
    %c0_72 = arith.constant 0 : index
    %80 = vector.load %arg8[%c0_70, %c0_71, %c0_72] : memref<4x8x16xbf16, #tpu.memory_space<vmem>>, vector<1x8x16xbf16>
    %81 = vector.shape_cast %80 : vector<1x8x16xbf16> to vector<8x16xbf16>
    %cst_73 = arith.constant dense<0.000000e+00> : vector<8x128xf32>
    %82 = tpu.matmul %81, %78, %cst_73 {dimension_numbers = #tpu.dot_dimension_numbers<[1], [0], [0], [1], [0, 0, 1, 1], [], []>} : vector<8x16xbf16>, vector<16x128xbf16>, vector<8x128xf32> -> vector<8x128xf32>
    %83 = arith.truncf %82 : vector<8x128xf32> to vector<8x128xbf16>
    %c0_74 = arith.constant 0 : index
    %c0_75 = arith.constant 0 : index
    %c0_76 = arith.constant 0 : index
    %84 = vector.load %arg9[%c0_74, %c0_75, %c0_76] : memref<4x128x128xbf16, #tpu.memory_space<vmem>>, vector<1x128x128xbf16>
    %85 = vector.shape_cast %84 : vector<1x128x128xbf16> to vector<128x128xbf16>
    %cst_77 = arith.constant dense<0.000000e+00> : vector<8x128xf32>
    %86 = tpu.matmul %83, %85, %cst_77 {dimension_numbers = #tpu.dot_dimension_numbers<[1], [0], [0], [1], [0, 0, 1, 1], [], []>} : vector<8x128xbf16>, vector<128x128xbf16>, vector<8x128xf32> -> vector<8x128xf32>
    %87 = arith.addf %79, %86 : vector<8x128xf32>
    %c1_78 = arith.constant 1 : index
    %c0_79 = arith.constant 0 : index
    %c0_80 = arith.constant 0 : index
    %88 = vector.load %arg8[%c1_78, %c0_79, %c0_80] : memref<4x8x16xbf16, #tpu.memory_space<vmem>>, vector<1x8x16xbf16>
    %89 = vector.shape_cast %88 : vector<1x8x16xbf16> to vector<8x16xbf16>
    %cst_81 = arith.constant dense<0.000000e+00> : vector<8x128xf32>
    %90 = tpu.matmul %89, %78, %cst_81 {dimension_numbers = #tpu.dot_dimension_numbers<[1], [0], [0], [1], [0, 0, 1, 1], [], []>} : vector<8x16xbf16>, vector<16x128xbf16>, vector<8x128xf32> -> vector<8x128xf32>
    %91 = arith.truncf %90 : vector<8x128xf32> to vector<8x128xbf16>
    %c1_82 = arith.constant 1 : index
    %c0_83 = arith.constant 0 : index
    %c0_84 = arith.constant 0 : index
    %92 = vector.load %arg9[%c1_82, %c0_83, %c0_84] : memref<4x128x128xbf16, #tpu.memory_space<vmem>>, vector<1x128x128xbf16>
    %93 = vector.shape_cast %92 : vector<1x128x128xbf16> to vector<128x128xbf16>
    %cst_85 = arith.constant dense<0.000000e+00> : vector<8x128xf32>
    %94 = tpu.matmul %91, %93, %cst_85 {dimension_numbers = #tpu.dot_dimension_numbers<[1], [0], [0], [1], [0, 0, 1, 1], [], []>} : vector<8x128xbf16>, vector<128x128xbf16>, vector<8x128xf32> -> vector<8x128xf32>
    %95 = arith.addf %87, %94 : vector<8x128xf32>
    %c2_86 = arith.constant 2 : index
    %c0_87 = arith.constant 0 : index
    %c0_88 = arith.constant 0 : index
    %96 = vector.load %arg8[%c2_86, %c0_87, %c0_88] : memref<4x8x16xbf16, #tpu.memory_space<vmem>>, vector<1x8x16xbf16>
    %97 = vector.shape_cast %96 : vector<1x8x16xbf16> to vector<8x16xbf16>
    %cst_89 = arith.constant dense<0.000000e+00> : vector<8x128xf32>
    %98 = tpu.matmul %97, %78, %cst_89 {dimension_numbers = #tpu.dot_dimension_numbers<[1], [0], [0], [1], [0, 0, 1, 1], [], []>} : vector<8x16xbf16>, vector<16x128xbf16>, vector<8x128xf32> -> vector<8x128xf32>
    %99 = arith.truncf %98 : vector<8x128xf32> to vector<8x128xbf16>
    %c2_90 = arith.constant 2 : index
    %c0_91 = arith.constant 0 : index
    %c0_92 = arith.constant 0 : index
    %100 = vector.load %arg9[%c2_90, %c0_91, %c0_92] : memref<4x128x128xbf16, #tpu.memory_space<vmem>>, vector<1x128x128xbf16>
    %101 = vector.shape_cast %100 : vector<1x128x128xbf16> to vector<128x128xbf16>
    %cst_93 = arith.constant dense<0.000000e+00> : vector<8x128xf32>
    %102 = tpu.matmul %99, %101, %cst_93 {dimension_numbers = #tpu.dot_dimension_numbers<[1], [0], [0], [1], [0, 0, 1, 1], [], []>} : vector<8x128xbf16>, vector<128x128xbf16>, vector<8x128xf32> -> vector<8x128xf32>
    %103 = arith.addf %95, %102 : vector<8x128xf32>
    %c3_94 = arith.constant 3 : index
    %c0_95 = arith.constant 0 : index
    %c0_96 = arith.constant 0 : index
    %104 = vector.load %arg8[%c3_94, %c0_95, %c0_96] : memref<4x8x16xbf16, #tpu.memory_space<vmem>>, vector<1x8x16xbf16>
    %105 = vector.shape_cast %104 : vector<1x8x16xbf16> to vector<8x16xbf16>
    %cst_97 = arith.constant dense<0.000000e+00> : vector<8x128xf32>
    %106 = tpu.matmul %105, %78, %cst_97 {dimension_numbers = #tpu.dot_dimension_numbers<[1], [0], [0], [1], [0, 0, 1, 1], [], []>} : vector<8x16xbf16>, vector<16x128xbf16>, vector<8x128xf32> -> vector<8x128xf32>
    %107 = arith.truncf %106 : vector<8x128xf32> to vector<8x128xbf16>
    %c3_98 = arith.constant 3 : index
    %c0_99 = arith.constant 0 : index
    %c0_100 = arith.constant 0 : index
    %108 = vector.load %arg9[%c3_98, %c0_99, %c0_100] : memref<4x128x128xbf16, #tpu.memory_space<vmem>>, vector<1x128x128xbf16>
    %109 = vector.shape_cast %108 : vector<1x128x128xbf16> to vector<128x128xbf16>
    %cst_101 = arith.constant dense<0.000000e+00> : vector<8x128xf32>
    %110 = tpu.matmul %107, %109, %cst_101 {dimension_numbers = #tpu.dot_dimension_numbers<[1], [0], [0], [1], [0, 0, 1, 1], [], []>} : vector<8x128xbf16>, vector<128x128xbf16>, vector<8x128xf32> -> vector<8x128xf32>
    %111 = arith.addf %103, %110 : vector<8x128xf32>
    %c0_102 = arith.constant 0 : index
    %c0_103 = arith.constant 0 : index
    %112 = vector.load %arg10[%c0_102, %c0_103] : memref<1x128xf32, #tpu.memory_space<vmem>>, vector<1x128xf32>
    %113 = vector.broadcast %112 : vector<1x128xf32> to vector<8x128xf32>
    %114 = arith.addf %111, %113 : vector<8x128xf32>
    %cst_104 = arith.constant 0.000000e+00 : f32
    %115 = vector.broadcast %cst_104 : f32 to vector<8x128xf32>
    %116 = arith.maximumf %114, %115 : vector<8x128xf32>
    %117 = arith.truncf %116 : vector<8x128xf32> to vector<8x128xbf16>
    %cst_105 = arith.constant 0.000000e+00 : f32
    %118 = vector.broadcast %cst_105 : f32 to vector<4x64xf32>
    %c0_106 = arith.constant 0 : index
    %c0_107 = arith.constant 0 : index
    %c0_108 = arith.constant 0 : index
    %119 = vector.load %arg11[%c0_106, %c0_107, %c0_108] : memref<4x4x8xbf16, #tpu.memory_space<vmem>>, vector<1x4x8xbf16>
    %120 = vector.shape_cast %119 : vector<1x4x8xbf16> to vector<4x8xbf16>
    %cst_109 = arith.constant dense<0.000000e+00> : vector<4x128xf32>
    %121 = tpu.matmul %120, %117, %cst_109 {dimension_numbers = #tpu.dot_dimension_numbers<[1], [0], [0], [1], [0, 0, 1, 1], [], []>} : vector<4x8xbf16>, vector<8x128xbf16>, vector<4x128xf32> -> vector<4x128xf32>
    %122 = arith.truncf %121 : vector<4x128xf32> to vector<4x128xbf16>
    %c0_110 = arith.constant 0 : index
    %c0_111 = arith.constant 0 : index
    %c0_112 = arith.constant 0 : index
    %123 = vector.load %arg12[%c0_110, %c0_111, %c0_112] : memref<4x128x64xbf16, #tpu.memory_space<vmem>>, vector<1x128x64xbf16>
    %124 = vector.shape_cast %123 : vector<1x128x64xbf16> to vector<128x64xbf16>
    %cst_113 = arith.constant dense<0.000000e+00> : vector<4x64xf32>
    %125 = tpu.matmul %122, %124, %cst_113 {dimension_numbers = #tpu.dot_dimension_numbers<[1], [0], [0], [1], [0, 0, 1, 1], [], []>} : vector<4x128xbf16>, vector<128x64xbf16>, vector<4x64xf32> -> vector<4x64xf32>
    %126 = arith.addf %118, %125 : vector<4x64xf32>
    %c1_114 = arith.constant 1 : index
    %c0_115 = arith.constant 0 : index
    %c0_116 = arith.constant 0 : index
    %127 = vector.load %arg11[%c1_114, %c0_115, %c0_116] : memref<4x4x8xbf16, #tpu.memory_space<vmem>>, vector<1x4x8xbf16>
    %128 = vector.shape_cast %127 : vector<1x4x8xbf16> to vector<4x8xbf16>
    %cst_117 = arith.constant dense<0.000000e+00> : vector<4x128xf32>
    %129 = tpu.matmul %128, %117, %cst_117 {dimension_numbers = #tpu.dot_dimension_numbers<[1], [0], [0], [1], [0, 0, 1, 1], [], []>} : vector<4x8xbf16>, vector<8x128xbf16>, vector<4x128xf32> -> vector<4x128xf32>
    %130 = arith.truncf %129 : vector<4x128xf32> to vector<4x128xbf16>
    %c1_118 = arith.constant 1 : index
    %c0_119 = arith.constant 0 : index
    %c0_120 = arith.constant 0 : index
    %131 = vector.load %arg12[%c1_118, %c0_119, %c0_120] : memref<4x128x64xbf16, #tpu.memory_space<vmem>>, vector<1x128x64xbf16>
    %132 = vector.shape_cast %131 : vector<1x128x64xbf16> to vector<128x64xbf16>
    %cst_121 = arith.constant dense<0.000000e+00> : vector<4x64xf32>
    %133 = tpu.matmul %130, %132, %cst_121 {dimension_numbers = #tpu.dot_dimension_numbers<[1], [0], [0], [1], [0, 0, 1, 1], [], []>} : vector<4x128xbf16>, vector<128x64xbf16>, vector<4x64xf32> -> vector<4x64xf32>
    %134 = arith.addf %126, %133 : vector<4x64xf32>
    %c2_122 = arith.constant 2 : index
    %c0_123 = arith.constant 0 : index
    %c0_124 = arith.constant 0 : index
    %135 = vector.load %arg11[%c2_122, %c0_123, %c0_124] : memref<4x4x8xbf16, #tpu.memory_space<vmem>>, vector<1x4x8xbf16>
    %136 = vector.shape_cast %135 : vector<1x4x8xbf16> to vector<4x8xbf16>
    %cst_125 = arith.constant dense<0.000000e+00> : vector<4x128xf32>
    %137 = tpu.matmul %136, %117, %cst_125 {dimension_numbers = #tpu.dot_dimension_numbers<[1], [0], [0], [1], [0, 0, 1, 1], [], []>} : vector<4x8xbf16>, vector<8x128xbf16>, vector<4x128xf32> -> vector<4x128xf32>
    %138 = arith.truncf %137 : vector<4x128xf32> to vector<4x128xbf16>
    %c2_126 = arith.constant 2 : index
    %c0_127 = arith.constant 0 : index
    %c0_128 = arith.constant 0 : index
    %139 = vector.load %arg12[%c2_126, %c0_127, %c0_128] : memref<4x128x64xbf16, #tpu.memory_space<vmem>>, vector<1x128x64xbf16>
    %140 = vector.shape_cast %139 : vector<1x128x64xbf16> to vector<128x64xbf16>
    %cst_129 = arith.constant dense<0.000000e+00> : vector<4x64xf32>
    %141 = tpu.matmul %138, %140, %cst_129 {dimension_numbers = #tpu.dot_dimension_numbers<[1], [0], [0], [1], [0, 0, 1, 1], [], []>} : vector<4x128xbf16>, vector<128x64xbf16>, vector<4x64xf32> -> vector<4x64xf32>
    %142 = arith.addf %134, %141 : vector<4x64xf32>
    %c3_130 = arith.constant 3 : index
    %c0_131 = arith.constant 0 : index
    %c0_132 = arith.constant 0 : index
    %143 = vector.load %arg11[%c3_130, %c0_131, %c0_132] : memref<4x4x8xbf16, #tpu.memory_space<vmem>>, vector<1x4x8xbf16>
    %144 = vector.shape_cast %143 : vector<1x4x8xbf16> to vector<4x8xbf16>
    %cst_133 = arith.constant dense<0.000000e+00> : vector<4x128xf32>
    %145 = tpu.matmul %144, %117, %cst_133 {dimension_numbers = #tpu.dot_dimension_numbers<[1], [0], [0], [1], [0, 0, 1, 1], [], []>} : vector<4x8xbf16>, vector<8x128xbf16>, vector<4x128xf32> -> vector<4x128xf32>
    %146 = arith.truncf %145 : vector<4x128xf32> to vector<4x128xbf16>
    %c3_134 = arith.constant 3 : index
    %c0_135 = arith.constant 0 : index
    %c0_136 = arith.constant 0 : index
    %147 = vector.load %arg12[%c3_134, %c0_135, %c0_136] : memref<4x128x64xbf16, #tpu.memory_space<vmem>>, vector<1x128x64xbf16>
    %148 = vector.shape_cast %147 : vector<1x128x64xbf16> to vector<128x64xbf16>
    %cst_137 = arith.constant dense<0.000000e+00> : vector<4x64xf32>
    %149 = tpu.matmul %146, %148, %cst_137 {dimension_numbers = #tpu.dot_dimension_numbers<[1], [0], [0], [1], [0, 0, 1, 1], [], []>} : vector<4x128xbf16>, vector<128x64xbf16>, vector<4x64xf32> -> vector<4x64xf32>
    %150 = arith.addf %142, %149 : vector<4x64xf32>
    %c0_138 = arith.constant 0 : index
    %c0_139 = arith.constant 0 : index
    %151 = vector.load %arg13[%c0_138, %c0_139] : memref<1x64xf32, #tpu.memory_space<vmem>>, vector<1x64xf32>
    %152 = vector.broadcast %151 : vector<1x64xf32> to vector<4x64xf32>
    %153 = arith.addf %150, %152 : vector<4x64xf32>
    %cst_140 = arith.constant 0.000000e+00 : f32
    %154 = vector.broadcast %cst_140 : f32 to vector<4x64xf32>
    %155 = arith.maximumf %153, %154 : vector<4x64xf32>
    %156 = arith.truncf %155 : vector<4x64xf32> to vector<4x64xbf16>
    %cst_141 = arith.constant 0.000000e+00 : f32
    %157 = vector.broadcast %cst_141 : f32 to vector<4x64xf32>
    %c0_142 = arith.constant 0 : index
    %c0_143 = arith.constant 0 : index
    %c0_144 = arith.constant 0 : index
    %158 = vector.load %arg14[%c0_142, %c0_143, %c0_144] : memref<4x4x4xbf16, #tpu.memory_space<vmem>>, vector<1x4x4xbf16>
    %159 = vector.shape_cast %158 : vector<1x4x4xbf16> to vector<4x4xbf16>
    %cst_145 = arith.constant dense<0.000000e+00> : vector<4x64xf32>
    %160 = tpu.matmul %159, %156, %cst_145 {dimension_numbers = #tpu.dot_dimension_numbers<[1], [0], [0], [1], [0, 0, 1, 1], [], []>} : vector<4x4xbf16>, vector<4x64xbf16>, vector<4x64xf32> -> vector<4x64xf32>
    %161 = arith.truncf %160 : vector<4x64xf32> to vector<4x64xbf16>
    %c0_146 = arith.constant 0 : index
    %c0_147 = arith.constant 0 : index
    %c0_148 = arith.constant 0 : index
    %162 = vector.load %arg15[%c0_146, %c0_147, %c0_148] : memref<4x64x64xbf16, #tpu.memory_space<vmem>>, vector<1x64x64xbf16>
    %163 = vector.shape_cast %162 : vector<1x64x64xbf16> to vector<64x64xbf16>
    %cst_149 = arith.constant dense<0.000000e+00> : vector<4x64xf32>
    %164 = tpu.matmul %161, %163, %cst_149 {dimension_numbers = #tpu.dot_dimension_numbers<[1], [0], [0], [1], [0, 0, 1, 1], [], []>} : vector<4x64xbf16>, vector<64x64xbf16>, vector<4x64xf32> -> vector<4x64xf32>
    %165 = arith.addf %157, %164 : vector<4x64xf32>
    %c1_150 = arith.constant 1 : index
    %c0_151 = arith.constant 0 : index
    %c0_152 = arith.constant 0 : index
    %166 = vector.load %arg14[%c1_150, %c0_151, %c0_152] : memref<4x4x4xbf16, #tpu.memory_space<vmem>>, vector<1x4x4xbf16>
    %167 = vector.shape_cast %166 : vector<1x4x4xbf16> to vector<4x4xbf16>
    %cst_153 = arith.constant dense<0.000000e+00> : vector<4x64xf32>
    %168 = tpu.matmul %167, %156, %cst_153 {dimension_numbers = #tpu.dot_dimension_numbers<[1], [0], [0], [1], [0, 0, 1, 1], [], []>} : vector<4x4xbf16>, vector<4x64xbf16>, vector<4x64xf32> -> vector<4x64xf32>
    %169 = arith.truncf %168 : vector<4x64xf32> to vector<4x64xbf16>
    %c1_154 = arith.constant 1 : index
    %c0_155 = arith.constant 0 : index
    %c0_156 = arith.constant 0 : index
    %170 = vector.load %arg15[%c1_154, %c0_155, %c0_156] : memref<4x64x64xbf16, #tpu.memory_space<vmem>>, vector<1x64x64xbf16>
    %171 = vector.shape_cast %170 : vector<1x64x64xbf16> to vector<64x64xbf16>
    %cst_157 = arith.constant dense<0.000000e+00> : vector<4x64xf32>
    %172 = tpu.matmul %169, %171, %cst_157 {dimension_numbers = #tpu.dot_dimension_numbers<[1], [0], [0], [1], [0, 0, 1, 1], [], []>} : vector<4x64xbf16>, vector<64x64xbf16>, vector<4x64xf32> -> vector<4x64xf32>
    %173 = arith.addf %165, %172 : vector<4x64xf32>
    %c2_158 = arith.constant 2 : index
    %c0_159 = arith.constant 0 : index
    %c0_160 = arith.constant 0 : index
    %174 = vector.load %arg14[%c2_158, %c0_159, %c0_160] : memref<4x4x4xbf16, #tpu.memory_space<vmem>>, vector<1x4x4xbf16>
    %175 = vector.shape_cast %174 : vector<1x4x4xbf16> to vector<4x4xbf16>
    %cst_161 = arith.constant dense<0.000000e+00> : vector<4x64xf32>
    %176 = tpu.matmul %175, %156, %cst_161 {dimension_numbers = #tpu.dot_dimension_numbers<[1], [0], [0], [1], [0, 0, 1, 1], [], []>} : vector<4x4xbf16>, vector<4x64xbf16>, vector<4x64xf32> -> vector<4x64xf32>
    %177 = arith.truncf %176 : vector<4x64xf32> to vector<4x64xbf16>
    %c2_162 = arith.constant 2 : index
    %c0_163 = arith.constant 0 : index
    %c0_164 = arith.constant 0 : index
    %178 = vector.load %arg15[%c2_162, %c0_163, %c0_164] : memref<4x64x64xbf16, #tpu.memory_space<vmem>>, vector<1x64x64xbf16>
    %179 = vector.shape_cast %178 : vector<1x64x64xbf16> to vector<64x64xbf16>
    %cst_165 = arith.constant dense<0.000000e+00> : vector<4x64xf32>
    %180 = tpu.matmul %177, %179, %cst_165 {dimension_numbers = #tpu.dot_dimension_numbers<[1], [0], [0], [1], [0, 0, 1, 1], [], []>} : vector<4x64xbf16>, vector<64x64xbf16>, vector<4x64xf32> -> vector<4x64xf32>
    %181 = arith.addf %173, %180 : vector<4x64xf32>
    %c3_166 = arith.constant 3 : index
    %c0_167 = arith.constant 0 : index
    %c0_168 = arith.constant 0 : index
    %182 = vector.load %arg14[%c3_166, %c0_167, %c0_168] : memref<4x4x4xbf16, #tpu.memory_space<vmem>>, vector<1x4x4xbf16>
    %183 = vector.shape_cast %182 : vector<1x4x4xbf16> to vector<4x4xbf16>
    %cst_169 = arith.constant dense<0.000000e+00> : vector<4x64xf32>
    %184 = tpu.matmul %183, %156, %cst_169 {dimension_numbers = #tpu.dot_dimension_numbers<[1], [0], [0], [1], [0, 0, 1, 1], [], []>} : vector<4x4xbf16>, vector<4x64xbf16>, vector<4x64xf32> -> vector<4x64xf32>
    %185 = arith.truncf %184 : vector<4x64xf32> to vector<4x64xbf16>
    %c3_170 = arith.constant 3 : index
    %c0_171 = arith.constant 0 : index
    %c0_172 = arith.constant 0 : index
    %186 = vector.load %arg15[%c3_170, %c0_171, %c0_172] : memref<4x64x64xbf16, #tpu.memory_space<vmem>>, vector<1x64x64xbf16>
    %187 = vector.shape_cast %186 : vector<1x64x64xbf16> to vector<64x64xbf16>
    %cst_173 = arith.constant dense<0.000000e+00> : vector<4x64xf32>
    %188 = tpu.matmul %185, %187, %cst_173 {dimension_numbers = #tpu.dot_dimension_numbers<[1], [0], [0], [1], [0, 0, 1, 1], [], []>} : vector<4x64xbf16>, vector<64x64xbf16>, vector<4x64xf32> -> vector<4x64xf32>
    %189 = arith.addf %181, %188 : vector<4x64xf32>
    %c0_174 = arith.constant 0 : index
    %c0_175 = arith.constant 0 : index
    %190 = vector.load %arg16[%c0_174, %c0_175] : memref<1x64xf32, #tpu.memory_space<vmem>>, vector<1x64xf32>
    %191 = vector.broadcast %190 : vector<1x64xf32> to vector<4x64xf32>
    %192 = arith.addf %189, %191 : vector<4x64xf32>
    %cst_176 = arith.constant 0.000000e+00 : f32
    %193 = vector.broadcast %cst_176 : f32 to vector<4x64xf32>
    %194 = arith.maximumf %192, %193 : vector<4x64xf32>
    %195 = arith.truncf %194 : vector<4x64xf32> to vector<4x64xbf16>
    %cst_177 = arith.constant 0.000000e+00 : f32
    %196 = vector.broadcast %cst_177 : f32 to vector<2x16xf32>
    %c0_178 = arith.constant 0 : index
    %c0_179 = arith.constant 0 : index
    %c0_180 = arith.constant 0 : index
    %197 = vector.load %arg17[%c0_178, %c0_179, %c0_180] : memref<2x2x4xbf16, #tpu.memory_space<vmem>>, vector<1x2x4xbf16>
    %198 = vector.shape_cast %197 : vector<1x2x4xbf16> to vector<2x4xbf16>
    %cst_181 = arith.constant dense<0.000000e+00> : vector<2x64xf32>
    %199 = tpu.matmul %198, %195, %cst_181 {dimension_numbers = #tpu.dot_dimension_numbers<[1], [0], [0], [1], [0, 0, 1, 1], [], []>} : vector<2x4xbf16>, vector<4x64xbf16>, vector<2x64xf32> -> vector<2x64xf32>
    %200 = arith.truncf %199 : vector<2x64xf32> to vector<2x64xbf16>
    %c0_182 = arith.constant 0 : index
    %c0_183 = arith.constant 0 : index
    %c0_184 = arith.constant 0 : index
    %201 = vector.load %arg18[%c0_182, %c0_183, %c0_184] : memref<2x64x16xbf16, #tpu.memory_space<vmem>>, vector<1x64x16xbf16>
    %202 = vector.shape_cast %201 : vector<1x64x16xbf16> to vector<64x16xbf16>
    %cst_185 = arith.constant dense<0.000000e+00> : vector<2x16xf32>
    %203 = tpu.matmul %200, %202, %cst_185 {dimension_numbers = #tpu.dot_dimension_numbers<[1], [0], [0], [1], [0, 0, 1, 1], [], []>} : vector<2x64xbf16>, vector<64x16xbf16>, vector<2x16xf32> -> vector<2x16xf32>
    %204 = arith.addf %196, %203 : vector<2x16xf32>
    %c1_186 = arith.constant 1 : index
    %c0_187 = arith.constant 0 : index
    %c0_188 = arith.constant 0 : index
    %205 = vector.load %arg17[%c1_186, %c0_187, %c0_188] : memref<2x2x4xbf16, #tpu.memory_space<vmem>>, vector<1x2x4xbf16>
    %206 = vector.shape_cast %205 : vector<1x2x4xbf16> to vector<2x4xbf16>
    %cst_189 = arith.constant dense<0.000000e+00> : vector<2x64xf32>
    %207 = tpu.matmul %206, %195, %cst_189 {dimension_numbers = #tpu.dot_dimension_numbers<[1], [0], [0], [1], [0, 0, 1, 1], [], []>} : vector<2x4xbf16>, vector<4x64xbf16>, vector<2x64xf32> -> vector<2x64xf32>
    %208 = arith.truncf %207 : vector<2x64xf32> to vector<2x64xbf16>
    %c1_190 = arith.constant 1 : index
    %c0_191 = arith.constant 0 : index
    %c0_192 = arith.constant 0 : index
    %209 = vector.load %arg18[%c1_190, %c0_191, %c0_192] : memref<2x64x16xbf16, #tpu.memory_space<vmem>>, vector<1x64x16xbf16>
    %210 = vector.shape_cast %209 : vector<1x64x16xbf16> to vector<64x16xbf16>
    %cst_193 = arith.constant dense<0.000000e+00> : vector<2x16xf32>
    %211 = tpu.matmul %208, %210, %cst_193 {dimension_numbers = #tpu.dot_dimension_numbers<[1], [0], [0], [1], [0, 0, 1, 1], [], []>} : vector<2x64xbf16>, vector<64x16xbf16>, vector<2x16xf32> -> vector<2x16xf32>
    %212 = arith.addf %204, %211 : vector<2x16xf32>
    %c0_194 = arith.constant 0 : index
    %c0_195 = arith.constant 0 : index
    %213 = vector.load %arg19[%c0_194, %c0_195] : memref<1x16xf32, #tpu.memory_space<vmem>>, vector<1x16xf32>
    %214 = vector.broadcast %213 : vector<1x16xf32> to vector<2x16xf32>
    %215 = arith.addf %212, %214 : vector<2x16xf32>
    %cst_196 = arith.constant 0.000000e+00 : f32
    %216 = vector.broadcast %cst_196 : f32 to vector<2x16xf32>
    %217 = arith.maximumf %215, %216 : vector<2x16xf32>
    %218 = arith.truncf %217 : vector<2x16xf32> to vector<2x16xbf16>
    %c0_197 = arith.constant 0 : index
    %c0_198 = arith.constant 0 : index
    %219 = vector.load %arg20[%c0_197, %c0_198] : memref<16x16xbf16, #tpu.memory_space<vmem>>, vector<16x16xbf16>
    %cst_199 = arith.constant dense<0.000000e+00> : vector<2x16xf32>
    %220 = tpu.matmul %218, %219, %cst_199 {dimension_numbers = #tpu.dot_dimension_numbers<[1], [0], [0], [1], [0, 0, 1, 1], [], []>} : vector<2x16xbf16>, vector<16x16xbf16>, vector<2x16xf32> -> vector<2x16xf32>
    %c0_200 = arith.constant 0 : index
    %c0_201 = arith.constant 0 : index
    %221 = vector.load %arg21[%c0_200, %c0_201] : memref<1x16xf32, #tpu.memory_space<vmem>>, vector<1x16xf32>
    %222 = vector.broadcast %221 : vector<1x16xf32> to vector<2x16xf32>
    %223 = arith.addf %220, %222 : vector<2x16xf32>
    %c0_202 = arith.constant 0 : index
    %c0_203 = arith.constant 0 : index
    %224 = vector.load %arg22[%c0_202, %c0_203] : memref<16x16xbf16, #tpu.memory_space<vmem>>, vector<16x16xbf16>
    %cst_204 = arith.constant dense<0.000000e+00> : vector<2x16xf32>
    %225 = tpu.matmul %218, %224, %cst_204 {dimension_numbers = #tpu.dot_dimension_numbers<[1], [0], [0], [1], [0, 0, 1, 1], [], []>} : vector<2x16xbf16>, vector<16x16xbf16>, vector<2x16xf32> -> vector<2x16xf32>
    %c0_205 = arith.constant 0 : index
    %c0_206 = arith.constant 0 : index
    %226 = vector.load %arg23[%c0_205, %c0_206] : memref<1x16xf32, #tpu.memory_space<vmem>>, vector<1x16xf32>
    %227 = vector.broadcast %226 : vector<1x16xf32> to vector<2x16xf32>
    %228 = arith.addf %225, %227 : vector<2x16xf32>
    %c0_207 = arith.constant 0 : index
    %c0_208 = arith.constant 0 : index
    %229 = vector.load %arg44[%c0_207, %c0_208] : memref<2x16xf32, #tpu.memory_space<vmem>>, vector<2x16xf32>
    tpu.vector_store %arg44[%c0_207, %c0_208], %223 {strides = array<i32>} : memref<2x16xf32, #tpu.memory_space<vmem>>, vector<2x16xf32>,
    %c0_209 = arith.constant 0 : index
    %c0_210 = arith.constant 0 : index
    %230 = vector.load %arg45[%c0_209, %c0_210] : memref<2x16xf32, #tpu.memory_space<vmem>>, vector<2x16xf32>
    tpu.vector_store %arg45[%c0_209, %c0_210], %228 {strides = array<i32>} : memref<2x16xf32, #tpu.memory_space<vmem>>, vector<2x16xf32>,
    %c0_211 = arith.constant 0 : index
    %c0_212 = arith.constant 0 : index
    %231 = vector.load %arg1[%c0_211, %c0_212] : memref<2x16xf32, #tpu.memory_space<vmem>>, vector<2x16xf32>
    %232 = math.exp %228 : vector<2x16xf32>
    %233 = arith.mulf %231, %232 : vector<2x16xf32>
    %234 = arith.addf %233, %223 : vector<2x16xf32>
    %235 = arith.truncf %234 : vector<2x16xf32> to vector<2x16xbf16>
    %c0_213 = arith.constant 0 : index
    %c0_214 = arith.constant 0 : index
    %236 = vector.load %arg24[%c0_213, %c0_214] : memref<16x16xbf16, #tpu.memory_space<vmem>>, vector<16x16xbf16>
    %cst_215 = arith.constant dense<0.000000e+00> : vector<2x16xf32>
    %237 = tpu.matmul %235, %236, %cst_215 {dimension_numbers = #tpu.dot_dimension_numbers<[1], [0], [0], [1], [0, 0, 1, 1], [], []>} : vector<2x16xbf16>, vector<16x16xbf16>, vector<2x16xf32> -> vector<2x16xf32>
    %c0_216 = arith.constant 0 : index
    %c0_217 = arith.constant 0 : index
    %238 = vector.load %arg25[%c0_216, %c0_217] : memref<1x16xf32, #tpu.memory_space<vmem>>, vector<1x16xf32>
    %239 = vector.broadcast %238 : vector<1x16xf32> to vector<2x16xf32>
    %240 = arith.addf %237, %239 : vector<2x16xf32>
    %cst_218 = arith.constant 0.000000e+00 : f32
    %241 = vector.broadcast %cst_218 : f32 to vector<2x16xf32>
    %242 = arith.maximumf %240, %241 : vector<2x16xf32>
    %243 = arith.truncf %242 : vector<2x16xf32> to vector<2x16xbf16>
    %cst_219 = arith.constant 0.000000e+00 : f32
    %244 = vector.broadcast %cst_219 : f32 to vector<4x64xf32>
    %c0_220 = arith.constant 0 : index
    %c0_221 = arith.constant 0 : index
    %c0_222 = arith.constant 0 : index
    %245 = vector.load %arg26[%c0_220, %c0_221, %c0_222] : memref<2x16x64xbf16, #tpu.memory_space<vmem>>, vector<1x16x64xbf16>
    %246 = vector.shape_cast %245 : vector<1x16x64xbf16> to vector<16x64xbf16>
    %cst_223 = arith.constant dense<0.000000e+00> : vector<2x64xf32>
    %247 = tpu.matmul %243, %246, %cst_223 {dimension_numbers = #tpu.dot_dimension_numbers<[1], [0], [0], [1], [0, 0, 1, 1], [], []>} : vector<2x16xbf16>, vector<16x64xbf16>, vector<2x64xf32> -> vector<2x64xf32>
    %c0_224 = arith.constant 0 : index
    %c0_225 = arith.constant 0 : index
    %c0_226 = arith.constant 0 : index
    %248 = vector.load %arg27[%c0_224, %c0_225, %c0_226] : memref<2x1x64xf32, #tpu.memory_space<vmem>>, vector<1x1x64xf32>
    %249 = vector.shape_cast %248 : vector<1x1x64xf32> to vector<1x64xf32>
    %250 = vector.broadcast %249 : vector<1x64xf32> to vector<2x64xf32>
    %251 = arith.addf %247, %250 : vector<2x64xf32>
    %cst_227 = arith.constant 0.000000e+00 : f32
    %252 = vector.broadcast %cst_227 : f32 to vector<2x64xf32>
    %253 = arith.maximumf %251, %252 : vector<2x64xf32>
    %254 = arith.truncf %253 : vector<2x64xf32> to vector<2x64xbf16>
    %c0_228 = arith.constant 0 : index
    %c0_229 = arith.constant 0 : index
    %c0_230 = arith.constant 0 : index
    %255 = vector.load %arg28[%c0_228, %c0_229, %c0_230] : memref<2x4x2xbf16, #tpu.memory_space<vmem>>, vector<1x4x2xbf16>
    %256 = vector.shape_cast %255 : vector<1x4x2xbf16> to vector<4x2xbf16>
    %cst_231 = arith.constant dense<0.000000e+00> : vector<4x64xf32>
    %257 = tpu.matmul %256, %254, %cst_231 {dimension_numbers = #tpu.dot_dimension_numbers<[1], [0], [0], [1], [0, 0, 1, 1], [], []>} : vector<4x2xbf16>, vector<2x64xbf16>, vector<4x64xf32> -> vector<4x64xf32>
    %258 = arith.addf %244, %257 : vector<4x64xf32>
    %c1_232 = arith.constant 1 : index
    %c0_233 = arith.constant 0 : index
    %c0_234 = arith.constant 0 : index
    %259 = vector.load %arg26[%c1_232, %c0_233, %c0_234] : memref<2x16x64xbf16, #tpu.memory_space<vmem>>, vector<1x16x64xbf16>
    %260 = vector.shape_cast %259 : vector<1x16x64xbf16> to vector<16x64xbf16>
    %cst_235 = arith.constant dense<0.000000e+00> : vector<2x64xf32>
    %261 = tpu.matmul %243, %260, %cst_235 {dimension_numbers = #tpu.dot_dimension_numbers<[1], [0], [0], [1], [0, 0, 1, 1], [], []>} : vector<2x16xbf16>, vector<16x64xbf16>, vector<2x64xf32> -> vector<2x64xf32>
    %c1_236 = arith.constant 1 : index
    %c0_237 = arith.constant 0 : index
    %c0_238 = arith.constant 0 : index
    %262 = vector.load %arg27[%c1_236, %c0_237, %c0_238] : memref<2x1x64xf32, #tpu.memory_space<vmem>>, vector<1x1x64xf32>
    %263 = vector.shape_cast %262 : vector<1x1x64xf32> to vector<1x64xf32>
    %264 = vector.broadcast %263 : vector<1x64xf32> to vector<2x64xf32>
    %265 = arith.addf %261, %264 : vector<2x64xf32>
    %cst_239 = arith.constant 0.000000e+00 : f32
    %266 = vector.broadcast %cst_239 : f32 to vector<2x64xf32>
    %267 = arith.maximumf %265, %266 : vector<2x64xf32>
    %268 = arith.truncf %267 : vector<2x64xf32> to vector<2x64xbf16>
    %c1_240 = arith.constant 1 : index
    %c0_241 = arith.constant 0 : index
    %c0_242 = arith.constant 0 : index
    %269 = vector.load %arg28[%c1_240, %c0_241, %c0_242] : memref<2x4x2xbf16, #tpu.memory_space<vmem>>, vector<1x4x2xbf16>
    %270 = vector.shape_cast %269 : vector<1x4x2xbf16> to vector<4x2xbf16>
    %cst_243 = arith.constant dense<0.000000e+00> : vector<4x64xf32>
    %271 = tpu.matmul %270, %268, %cst_243 {dimension_numbers = #tpu.dot_dimension_numbers<[1], [0], [0], [1], [0, 0, 1, 1], [], []>} : vector<4x2xbf16>, vector<2x64xbf16>, vector<4x64xf32> -> vector<4x64xf32>
    %272 = arith.addf %258, %271 : vector<4x64xf32>
    %273 = arith.truncf %272 : vector<4x64xf32> to vector<4x64xbf16>
    %cst_244 = arith.constant 0.000000e+00 : f32
    %274 = vector.broadcast %cst_244 : f32 to vector<4x64xf32>
    %c0_245 = arith.constant 0 : index
    %c0_246 = arith.constant 0 : index
    %c0_247 = arith.constant 0 : index
    %275 = vector.load %arg29[%c0_245, %c0_246, %c0_247] : memref<4x4x4xbf16, #tpu.memory_space<vmem>>, vector<1x4x4xbf16>
    %276 = vector.shape_cast %275 : vector<1x4x4xbf16> to vector<4x4xbf16>
    %cst_248 = arith.constant dense<0.000000e+00> : vector<4x64xf32>
    %277 = tpu.matmul %276, %273, %cst_248 {dimension_numbers = #tpu.dot_dimension_numbers<[1], [0], [0], [1], [0, 0, 1, 1], [], []>} : vector<4x4xbf16>, vector<4x64xbf16>, vector<4x64xf32> -> vector<4x64xf32>
    %278 = arith.truncf %277 : vector<4x64xf32> to vector<4x64xbf16>
    %c0_249 = arith.constant 0 : index
    %c0_250 = arith.constant 0 : index
    %c0_251 = arith.constant 0 : index
    %279 = vector.load %arg30[%c0_249, %c0_250, %c0_251] : memref<4x64x64xbf16, #tpu.memory_space<vmem>>, vector<1x64x64xbf16>
    %280 = vector.shape_cast %279 : vector<1x64x64xbf16> to vector<64x64xbf16>
    %cst_252 = arith.constant dense<0.000000e+00> : vector<4x64xf32>
    %281 = tpu.matmul %278, %280, %cst_252 {dimension_numbers = #tpu.dot_dimension_numbers<[1], [0], [0], [1], [0, 0, 1, 1], [], []>} : vector<4x64xbf16>, vector<64x64xbf16>, vector<4x64xf32> -> vector<4x64xf32>
    %282 = arith.addf %274, %281 : vector<4x64xf32>
    %c1_253 = arith.constant 1 : index
    %c0_254 = arith.constant 0 : index
    %c0_255 = arith.constant 0 : index
    %283 = vector.load %arg29[%c1_253, %c0_254, %c0_255] : memref<4x4x4xbf16, #tpu.memory_space<vmem>>, vector<1x4x4xbf16>
    %284 = vector.shape_cast %283 : vector<1x4x4xbf16> to vector<4x4xbf16>
    %cst_256 = arith.constant dense<0.000000e+00> : vector<4x64xf32>
    %285 = tpu.matmul %284, %273, %cst_256 {dimension_numbers = #tpu.dot_dimension_numbers<[1], [0], [0], [1], [0, 0, 1, 1], [], []>} : vector<4x4xbf16>, vector<4x64xbf16>, vector<4x64xf32> -> vector<4x64xf32>
    %286 = arith.truncf %285 : vector<4x64xf32> to vector<4x64xbf16>
    %c1_257 = arith.constant 1 : index
    %c0_258 = arith.constant 0 : index
    %c0_259 = arith.constant 0 : index
    %287 = vector.load %arg30[%c1_257, %c0_258, %c0_259] : memref<4x64x64xbf16, #tpu.memory_space<vmem>>, vector<1x64x64xbf16>
    %288 = vector.shape_cast %287 : vector<1x64x64xbf16> to vector<64x64xbf16>
    %cst_260 = arith.constant dense<0.000000e+00> : vector<4x64xf32>
    %289 = tpu.matmul %286, %288, %cst_260 {dimension_numbers = #tpu.dot_dimension_numbers<[1], [0], [0], [1], [0, 0, 1, 1], [], []>} : vector<4x64xbf16>, vector<64x64xbf16>, vector<4x64xf32> -> vector<4x64xf32>
    %290 = arith.addf %282, %289 : vector<4x64xf32>
    %c2_261 = arith.constant 2 : index
    %c0_262 = arith.constant 0 : index
    %c0_263 = arith.constant 0 : index
    %291 = vector.load %arg29[%c2_261, %c0_262, %c0_263] : memref<4x4x4xbf16, #tpu.memory_space<vmem>>, vector<1x4x4xbf16>
    %292 = vector.shape_cast %291 : vector<1x4x4xbf16> to vector<4x4xbf16>
    %cst_264 = arith.constant dense<0.000000e+00> : vector<4x64xf32>
    %293 = tpu.matmul %292, %273, %cst_264 {dimension_numbers = #tpu.dot_dimension_numbers<[1], [0], [0], [1], [0, 0, 1, 1], [], []>} : vector<4x4xbf16>, vector<4x64xbf16>, vector<4x64xf32> -> vector<4x64xf32>
    %294 = arith.truncf %293 : vector<4x64xf32> to vector<4x64xbf16>
    %c2_265 = arith.constant 2 : index
    %c0_266 = arith.constant 0 : index
    %c0_267 = arith.constant 0 : index
    %295 = vector.load %arg30[%c2_265, %c0_266, %c0_267] : memref<4x64x64xbf16, #tpu.memory_space<vmem>>, vector<1x64x64xbf16>
    %296 = vector.shape_cast %295 : vector<1x64x64xbf16> to vector<64x64xbf16>
    %cst_268 = arith.constant dense<0.000000e+00> : vector<4x64xf32>
    %297 = tpu.matmul %294, %296, %cst_268 {dimension_numbers = #tpu.dot_dimension_numbers<[1], [0], [0], [1], [0, 0, 1, 1], [], []>} : vector<4x64xbf16>, vector<64x64xbf16>, vector<4x64xf32> -> vector<4x64xf32>
    %298 = arith.addf %290, %297 : vector<4x64xf32>
    %c3_269 = arith.constant 3 : index
    %c0_270 = arith.constant 0 : index
    %c0_271 = arith.constant 0 : index
    %299 = vector.load %arg29[%c3_269, %c0_270, %c0_271] : memref<4x4x4xbf16, #tpu.memory_space<vmem>>, vector<1x4x4xbf16>
    %300 = vector.shape_cast %299 : vector<1x4x4xbf16> to vector<4x4xbf16>
    %cst_272 = arith.constant dense<0.000000e+00> : vector<4x64xf32>
    %301 = tpu.matmul %300, %273, %cst_272 {dimension_numbers = #tpu.dot_dimension_numbers<[1], [0], [0], [1], [0, 0, 1, 1], [], []>} : vector<4x4xbf16>, vector<4x64xbf16>, vector<4x64xf32> -> vector<4x64xf32>
    %302 = arith.truncf %301 : vector<4x64xf32> to vector<4x64xbf16>
    %c3_273 = arith.constant 3 : index
    %c0_274 = arith.constant 0 : index
    %c0_275 = arith.constant 0 : index
    %303 = vector.load %arg30[%c3_273, %c0_274, %c0_275] : memref<4x64x64xbf16, #tpu.memory_space<vmem>>, vector<1x64x64xbf16>
    %304 = vector.shape_cast %303 : vector<1x64x64xbf16> to vector<64x64xbf16>
    %cst_276 = arith.constant dense<0.000000e+00> : vector<4x64xf32>
    %305 = tpu.matmul %302, %304, %cst_276 {dimension_numbers = #tpu.dot_dimension_numbers<[1], [0], [0], [1], [0, 0, 1, 1], [], []>} : vector<4x64xbf16>, vector<64x64xbf16>, vector<4x64xf32> -> vector<4x64xf32>
    %306 = arith.addf %298, %305 : vector<4x64xf32>
    %c0_277 = arith.constant 0 : index
    %c0_278 = arith.constant 0 : index
    %307 = vector.load %arg31[%c0_277, %c0_278] : memref<1x64xf32, #tpu.memory_space<vmem>>, vector<1x64xf32>
    %308 = vector.broadcast %307 : vector<1x64xf32> to vector<4x64xf32>
    %309 = arith.addf %306, %308 : vector<4x64xf32>
    %cst_279 = arith.constant 0.000000e+00 : f32
    %310 = vector.broadcast %cst_279 : f32 to vector<4x64xf32>
    %311 = arith.maximumf %309, %310 : vector<4x64xf32>
    %312 = arith.truncf %311 : vector<4x64xf32> to vector<4x64xbf16>
    %cst_280 = arith.constant 0.000000e+00 : f32
    %313 = vector.broadcast %cst_280 : f32 to vector<8x128xf32>
    %c0_281 = arith.constant 0 : index
    %c0_282 = arith.constant 0 : index
    %c0_283 = arith.constant 0 : index
    %314 = vector.load %arg32[%c0_281, %c0_282, %c0_283] : memref<4x8x4xbf16, #tpu.memory_space<vmem>>, vector<1x8x4xbf16>
    %315 = vector.shape_cast %314 : vector<1x8x4xbf16> to vector<8x4xbf16>
    %cst_284 = arith.constant dense<0.000000e+00> : vector<8x64xf32>
    %316 = tpu.matmul %315, %312, %cst_284 {dimension_numbers = #tpu.dot_dimension_numbers<[1], [0], [0], [1], [0, 0, 1, 1], [], []>} : vector<8x4xbf16>, vector<4x64xbf16>, vector<8x64xf32> -> vector<8x64xf32>
    %317 = arith.truncf %316 : vector<8x64xf32> to vector<8x64xbf16>
    %c0_285 = arith.constant 0 : index
    %c0_286 = arith.constant 0 : index
    %c0_287 = arith.constant 0 : index
    %318 = vector.load %arg33[%c0_285, %c0_286, %c0_287] : memref<4x64x128xbf16, #tpu.memory_space<vmem>>, vector<1x64x128xbf16>
    %319 = vector.shape_cast %318 : vector<1x64x128xbf16> to vector<64x128xbf16>
    %cst_288 = arith.constant dense<0.000000e+00> : vector<8x128xf32>
    %320 = tpu.matmul %317, %319, %cst_288 {dimension_numbers = #tpu.dot_dimension_numbers<[1], [0], [0], [1], [0, 0, 1, 1], [], []>} : vector<8x64xbf16>, vector<64x128xbf16>, vector<8x128xf32> -> vector<8x128xf32>
    %321 = arith.addf %313, %320 : vector<8x128xf32>
    %c1_289 = arith.constant 1 : index
    %c0_290 = arith.constant 0 : index
    %c0_291 = arith.constant 0 : index
    %322 = vector.load %arg32[%c1_289, %c0_290, %c0_291] : memref<4x8x4xbf16, #tpu.memory_space<vmem>>, vector<1x8x4xbf16>
    %323 = vector.shape_cast %322 : vector<1x8x4xbf16> to vector<8x4xbf16>
    %cst_292 = arith.constant dense<0.000000e+00> : vector<8x64xf32>
    %324 = tpu.matmul %323, %312, %cst_292 {dimension_numbers = #tpu.dot_dimension_numbers<[1], [0], [0], [1], [0, 0, 1, 1], [], []>} : vector<8x4xbf16>, vector<4x64xbf16>, vector<8x64xf32> -> vector<8x64xf32>
    %325 = arith.truncf %324 : vector<8x64xf32> to vector<8x64xbf16>
    %c1_293 = arith.constant 1 : index
    %c0_294 = arith.constant 0 : index
    %c0_295 = arith.constant 0 : index
    %326 = vector.load %arg33[%c1_293, %c0_294, %c0_295] : memref<4x64x128xbf16, #tpu.memory_space<vmem>>, vector<1x64x128xbf16>
    %327 = vector.shape_cast %326 : vector<1x64x128xbf16> to vector<64x128xbf16>
    %cst_296 = arith.constant dense<0.000000e+00> : vector<8x128xf32>
    %328 = tpu.matmul %325, %327, %cst_296 {dimension_numbers = #tpu.dot_dimension_numbers<[1], [0], [0], [1], [0, 0, 1, 1], [], []>} : vector<8x64xbf16>, vector<64x128xbf16>, vector<8x128xf32> -> vector<8x128xf32>
    %329 = arith.addf %321, %328 : vector<8x128xf32>
    %c2_297 = arith.constant 2 : index
    %c0_298 = arith.constant 0 : index
    %c0_299 = arith.constant 0 : index
    %330 = vector.load %arg32[%c2_297, %c0_298, %c0_299] : memref<4x8x4xbf16, #tpu.memory_space<vmem>>, vector<1x8x4xbf16>
    %331 = vector.shape_cast %330 : vector<1x8x4xbf16> to vector<8x4xbf16>
    %cst_300 = arith.constant dense<0.000000e+00> : vector<8x64xf32>
    %332 = tpu.matmul %331, %312, %cst_300 {dimension_numbers = #tpu.dot_dimension_numbers<[1], [0], [0], [1], [0, 0, 1, 1], [], []>} : vector<8x4xbf16>, vector<4x64xbf16>, vector<8x64xf32> -> vector<8x64xf32>
    %333 = arith.truncf %332 : vector<8x64xf32> to vector<8x64xbf16>
    %c2_301 = arith.constant 2 : index
    %c0_302 = arith.constant 0 : index
    %c0_303 = arith.constant 0 : index
    %334 = vector.load %arg33[%c2_301, %c0_302, %c0_303] : memref<4x64x128xbf16, #tpu.memory_space<vmem>>, vector<1x64x128xbf16>
    %335 = vector.shape_cast %334 : vector<1x64x128xbf16> to vector<64x128xbf16>
    %cst_304 = arith.constant dense<0.000000e+00> : vector<8x128xf32>
    %336 = tpu.matmul %333, %335, %cst_304 {dimension_numbers = #tpu.dot_dimension_numbers<[1], [0], [0], [1], [0, 0, 1, 1], [], []>} : vector<8x64xbf16>, vector<64x128xbf16>, vector<8x128xf32> -> vector<8x128xf32>
    %337 = arith.addf %329, %336 : vector<8x128xf32>
    %c3_305 = arith.constant 3 : index
    %c0_306 = arith.constant 0 : index
    %c0_307 = arith.constant 0 : index
    %338 = vector.load %arg32[%c3_305, %c0_306, %c0_307] : memref<4x8x4xbf16, #tpu.memory_space<vmem>>, vector<1x8x4xbf16>
    %339 = vector.shape_cast %338 : vector<1x8x4xbf16> to vector<8x4xbf16>
    %cst_308 = arith.constant dense<0.000000e+00> : vector<8x64xf32>
    %340 = tpu.matmul %339, %312, %cst_308 {dimension_numbers = #tpu.dot_dimension_numbers<[1], [0], [0], [1], [0, 0, 1, 1], [], []>} : vector<8x4xbf16>, vector<4x64xbf16>, vector<8x64xf32> -> vector<8x64xf32>
    %341 = arith.truncf %340 : vector<8x64xf32> to vector<8x64xbf16>
    %c3_309 = arith.constant 3 : index
    %c0_310 = arith.constant 0 : index
    %c0_311 = arith.constant 0 : index
    %342 = vector.load %arg33[%c3_309, %c0_310, %c0_311] : memref<4x64x128xbf16, #tpu.memory_space<vmem>>, vector<1x64x128xbf16>
    %343 = vector.shape_cast %342 : vector<1x64x128xbf16> to vector<64x128xbf16>
    %cst_312 = arith.constant dense<0.000000e+00> : vector<8x128xf32>
    %344 = tpu.matmul %341, %343, %cst_312 {dimension_numbers = #tpu.dot_dimension_numbers<[1], [0], [0], [1], [0, 0, 1, 1], [], []>} : vector<8x64xbf16>, vector<64x128xbf16>, vector<8x128xf32> -> vector<8x128xf32>
    %345 = arith.addf %337, %344 : vector<8x128xf32>
    %c0_313 = arith.constant 0 : index
    %c0_314 = arith.constant 0 : index
    %346 = vector.load %arg34[%c0_313, %c0_314] : memref<1x128xf32, #tpu.memory_space<vmem>>, vector<1x128xf32>
    %347 = vector.broadcast %346 : vector<1x128xf32> to vector<8x128xf32>
    %348 = arith.addf %345, %347 : vector<8x128xf32>
    %cst_315 = arith.constant 0.000000e+00 : f32
    %349 = vector.broadcast %cst_315 : f32 to vector<8x128xf32>
    %350 = arith.maximumf %348, %349 : vector<8x128xf32>
    %351 = arith.truncf %350 : vector<8x128xf32> to vector<8x128xbf16>
    %cst_316 = arith.constant 0.000000e+00 : f32
    %352 = vector.broadcast %cst_316 : f32 to vector<16x256xf32>
    %c0_317 = arith.constant 0 : index
    %c0_318 = arith.constant 0 : index
    %c0_319 = arith.constant 0 : index
    %353 = vector.load %arg35[%c0_317, %c0_318, %c0_319] : memref<4x16x8xbf16, #tpu.memory_space<vmem>>, vector<1x16x8xbf16>
    %354 = vector.shape_cast %353 : vector<1x16x8xbf16> to vector<16x8xbf16>
    %cst_320 = arith.constant dense<0.000000e+00> : vector<16x128xf32>
    %355 = tpu.matmul %354, %351, %cst_320 {dimension_numbers = #tpu.dot_dimension_numbers<[1], [0], [0], [1], [0, 0, 1, 1], [], []>} : vector<16x8xbf16>, vector<8x128xbf16>, vector<16x128xf32> -> vector<16x128xf32>
    %356 = arith.truncf %355 : vector<16x128xf32> to vector<16x128xbf16>
    %c0_321 = arith.constant 0 : index
    %c0_322 = arith.constant 0 : index
    %c0_323 = arith.constant 0 : index
    %357 = vector.load %arg36[%c0_321, %c0_322, %c0_323] : memref<4x128x256xbf16, #tpu.memory_space<vmem>>, vector<1x128x256xbf16>
    %358 = vector.shape_cast %357 : vector<1x128x256xbf16> to vector<128x256xbf16>
    %cst_324 = arith.constant dense<0.000000e+00> : vector<16x256xf32>
    %359 = tpu.matmul %356, %358, %cst_324 {dimension_numbers = #tpu.dot_dimension_numbers<[1], [0], [0], [1], [0, 0, 1, 1], [], []>} : vector<16x128xbf16>, vector<128x256xbf16>, vector<16x256xf32> -> vector<16x256xf32>
    %360 = arith.addf %352, %359 : vector<16x256xf32>
    %c1_325 = arith.constant 1 : index
    %c0_326 = arith.constant 0 : index
    %c0_327 = arith.constant 0 : index
    %361 = vector.load %arg35[%c1_325, %c0_326, %c0_327] : memref<4x16x8xbf16, #tpu.memory_space<vmem>>, vector<1x16x8xbf16>
    %362 = vector.shape_cast %361 : vector<1x16x8xbf16> to vector<16x8xbf16>
    %cst_328 = arith.constant dense<0.000000e+00> : vector<16x128xf32>
    %363 = tpu.matmul %362, %351, %cst_328 {dimension_numbers = #tpu.dot_dimension_numbers<[1], [0], [0], [1], [0, 0, 1, 1], [], []>} : vector<16x8xbf16>, vector<8x128xbf16>, vector<16x128xf32> -> vector<16x128xf32>
    %364 = arith.truncf %363 : vector<16x128xf32> to vector<16x128xbf16>
    %c1_329 = arith.constant 1 : index
    %c0_330 = arith.constant 0 : index
    %c0_331 = arith.constant 0 : index
    %365 = vector.load %arg36[%c1_329, %c0_330, %c0_331] : memref<4x128x256xbf16, #tpu.memory_space<vmem>>, vector<1x128x256xbf16>
    %366 = vector.shape_cast %365 : vector<1x128x256xbf16> to vector<128x256xbf16>
    %cst_332 = arith.constant dense<0.000000e+00> : vector<16x256xf32>
    %367 = tpu.matmul %364, %366, %cst_332 {dimension_numbers = #tpu.dot_dimension_numbers<[1], [0], [0], [1], [0, 0, 1, 1], [], []>} : vector<16x128xbf16>, vector<128x256xbf16>, vector<16x256xf32> -> vector<16x256xf32>
    %368 = arith.addf %360, %367 : vector<16x256xf32>
    %c2_333 = arith.constant 2 : index
    %c0_334 = arith.constant 0 : index
    %c0_335 = arith.constant 0 : index
    %369 = vector.load %arg35[%c2_333, %c0_334, %c0_335] : memref<4x16x8xbf16, #tpu.memory_space<vmem>>, vector<1x16x8xbf16>
    %370 = vector.shape_cast %369 : vector<1x16x8xbf16> to vector<16x8xbf16>
    %cst_336 = arith.constant dense<0.000000e+00> : vector<16x128xf32>
    %371 = tpu.matmul %370, %351, %cst_336 {dimension_numbers = #tpu.dot_dimension_numbers<[1], [0], [0], [1], [0, 0, 1, 1], [], []>} : vector<16x8xbf16>, vector<8x128xbf16>, vector<16x128xf32> -> vector<16x128xf32>
    %372 = arith.truncf %371 : vector<16x128xf32> to vector<16x128xbf16>
    %c2_337 = arith.constant 2 : index
    %c0_338 = arith.constant 0 : index
    %c0_339 = arith.constant 0 : index
    %373 = vector.load %arg36[%c2_337, %c0_338, %c0_339] : memref<4x128x256xbf16, #tpu.memory_space<vmem>>, vector<1x128x256xbf16>
    %374 = vector.shape_cast %373 : vector<1x128x256xbf16> to vector<128x256xbf16>
    %cst_340 = arith.constant dense<0.000000e+00> : vector<16x256xf32>
    %375 = tpu.matmul %372, %374, %cst_340 {dimension_numbers = #tpu.dot_dimension_numbers<[1], [0], [0], [1], [0, 0, 1, 1], [], []>} : vector<16x128xbf16>, vector<128x256xbf16>, vector<16x256xf32> -> vector<16x256xf32>
    %376 = arith.addf %368, %375 : vector<16x256xf32>
    %c3_341 = arith.constant 3 : index
    %c0_342 = arith.constant 0 : index
    %c0_343 = arith.constant 0 : index
    %377 = vector.load %arg35[%c3_341, %c0_342, %c0_343] : memref<4x16x8xbf16, #tpu.memory_space<vmem>>, vector<1x16x8xbf16>
    %378 = vector.shape_cast %377 : vector<1x16x8xbf16> to vector<16x8xbf16>
    %cst_344 = arith.constant dense<0.000000e+00> : vector<16x128xf32>
    %379 = tpu.matmul %378, %351, %cst_344 {dimension_numbers = #tpu.dot_dimension_numbers<[1], [0], [0], [1], [0, 0, 1, 1], [], []>} : vector<16x8xbf16>, vector<8x128xbf16>, vector<16x128xf32> -> vector<16x128xf32>
    %380 = arith.truncf %379 : vector<16x128xf32> to vector<16x128xbf16>
    %c3_345 = arith.constant 3 : index
    %c0_346 = arith.constant 0 : index
    %c0_347 = arith.constant 0 : index
    %381 = vector.load %arg36[%c3_345, %c0_346, %c0_347] : memref<4x128x256xbf16, #tpu.memory_space<vmem>>, vector<1x128x256xbf16>
    %382 = vector.shape_cast %381 : vector<1x128x256xbf16> to vector<128x256xbf16>
    %cst_348 = arith.constant dense<0.000000e+00> : vector<16x256xf32>
    %383 = tpu.matmul %380, %382, %cst_348 {dimension_numbers = #tpu.dot_dimension_numbers<[1], [0], [0], [1], [0, 0, 1, 1], [], []>} : vector<16x128xbf16>, vector<128x256xbf16>, vector<16x256xf32> -> vector<16x256xf32>
    %384 = arith.addf %376, %383 : vector<16x256xf32>
    %c0_349 = arith.constant 0 : index
    %c0_350 = arith.constant 0 : index
    %385 = vector.load %arg37[%c0_349, %c0_350] : memref<1x256xf32, #tpu.memory_space<vmem>>, vector<1x256xf32>
    %386 = vector.broadcast %385 : vector<1x256xf32> to vector<16x256xf32>
    %387 = arith.addf %384, %386 : vector<16x256xf32>
    %cst_351 = arith.constant 0.000000e+00 : f32
    %388 = vector.broadcast %cst_351 : f32 to vector<16x256xf32>
    %389 = arith.maximumf %387, %388 : vector<16x256xf32>
    %390 = arith.truncf %389 : vector<16x256xf32> to vector<16x256xbf16>
    %cst_352 = arith.constant 0.000000e+00 : f32
    %391 = vector.broadcast %cst_352 : f32 to vector<32x256xf32>
    %c0_353 = arith.constant 0 : index
    %c0_354 = arith.constant 0 : index
    %c0_355 = arith.constant 0 : index
    %392 = vector.load %arg38[%c0_353, %c0_354, %c0_355] : memref<4x32x16xbf16, #tpu.memory_space<vmem>>, vector<1x32x16xbf16>
    %393 = vector.shape_cast %392 : vector<1x32x16xbf16> to vector<32x16xbf16>
    %cst_356 = arith.constant dense<0.000000e+00> : vector<32x256xf32>
    %394 = tpu.matmul %393, %390, %cst_356 {dimension_numbers = #tpu.dot_dimension_numbers<[1], [0], [0], [1], [0, 0, 1, 1], [], []>} : vector<32x16xbf16>, vector<16x256xbf16>, vector<32x256xf32> -> vector<32x256xf32>
    %395 = arith.truncf %394 : vector<32x256xf32> to vector<32x256xbf16>
    %c0_357 = arith.constant 0 : index
    %c0_358 = arith.constant 0 : index
    %c0_359 = arith.constant 0 : index
    %396 = vector.load %arg39[%c0_357, %c0_358, %c0_359] : memref<4x256x256xbf16, #tpu.memory_space<vmem>>, vector<1x256x256xbf16>
    %397 = vector.shape_cast %396 : vector<1x256x256xbf16> to vector<256x256xbf16>
    %cst_360 = arith.constant dense<0.000000e+00> : vector<32x256xf32>
    %398 = tpu.matmul %395, %397, %cst_360 {dimension_numbers = #tpu.dot_dimension_numbers<[1], [0], [0], [1], [0, 0, 1, 1], [], []>} : vector<32x256xbf16>, vector<256x256xbf16>, vector<32x256xf32> -> vector<32x256xf32>
    %399 = arith.addf %391, %398 : vector<32x256xf32>
    %c1_361 = arith.constant 1 : index
    %c0_362 = arith.constant 0 : index
    %c0_363 = arith.constant 0 : index
    %400 = vector.load %arg38[%c1_361, %c0_362, %c0_363] : memref<4x32x16xbf16, #tpu.memory_space<vmem>>, vector<1x32x16xbf16>
    %401 = vector.shape_cast %400 : vector<1x32x16xbf16> to vector<32x16xbf16>
    %cst_364 = arith.constant dense<0.000000e+00> : vector<32x256xf32>
    %402 = tpu.matmul %401, %390, %cst_364 {dimension_numbers = #tpu.dot_dimension_numbers<[1], [0], [0], [1], [0, 0, 1, 1], [], []>} : vector<32x16xbf16>, vector<16x256xbf16>, vector<32x256xf32> -> vector<32x256xf32>
    %403 = arith.truncf %402 : vector<32x256xf32> to vector<32x256xbf16>
    %c1_365 = arith.constant 1 : index
    %c0_366 = arith.constant 0 : index
    %c0_367 = arith.constant 0 : index
    %404 = vector.load %arg39[%c1_365, %c0_366, %c0_367] : memref<4x256x256xbf16, #tpu.memory_space<vmem>>, vector<1x256x256xbf16>
    %405 = vector.shape_cast %404 : vector<1x256x256xbf16> to vector<256x256xbf16>
    %cst_368 = arith.constant dense<0.000000e+00> : vector<32x256xf32>
    %406 = tpu.matmul %403, %405, %cst_368 {dimension_numbers = #tpu.dot_dimension_numbers<[1], [0], [0], [1], [0, 0, 1, 1], [], []>} : vector<32x256xbf16>, vector<256x256xbf16>, vector<32x256xf32> -> vector<32x256xf32>
    %407 = arith.addf %399, %406 : vector<32x256xf32>
    %c2_369 = arith.constant 2 : index
    %c0_370 = arith.constant 0 : index
    %c0_371 = arith.constant 0 : index
    %408 = vector.load %arg38[%c2_369, %c0_370, %c0_371] : memref<4x32x16xbf16, #tpu.memory_space<vmem>>, vector<1x32x16xbf16>
    %409 = vector.shape_cast %408 : vector<1x32x16xbf16> to vector<32x16xbf16>
    %cst_372 = arith.constant dense<0.000000e+00> : vector<32x256xf32>
    %410 = tpu.matmul %409, %390, %cst_372 {dimension_numbers = #tpu.dot_dimension_numbers<[1], [0], [0], [1], [0, 0, 1, 1], [], []>} : vector<32x16xbf16>, vector<16x256xbf16>, vector<32x256xf32> -> vector<32x256xf32>
    %411 = arith.truncf %410 : vector<32x256xf32> to vector<32x256xbf16>
    %c2_373 = arith.constant 2 : index
    %c0_374 = arith.constant 0 : index
    %c0_375 = arith.constant 0 : index
    %412 = vector.load %arg39[%c2_373, %c0_374, %c0_375] : memref<4x256x256xbf16, #tpu.memory_space<vmem>>, vector<1x256x256xbf16>
    %413 = vector.shape_cast %412 : vector<1x256x256xbf16> to vector<256x256xbf16>
    %cst_376 = arith.constant dense<0.000000e+00> : vector<32x256xf32>
    %414 = tpu.matmul %411, %413, %cst_376 {dimension_numbers = #tpu.dot_dimension_numbers<[1], [0], [0], [1], [0, 0, 1, 1], [], []>} : vector<32x256xbf16>, vector<256x256xbf16>, vector<32x256xf32> -> vector<32x256xf32>
    %415 = arith.addf %407, %414 : vector<32x256xf32>
    %c3_377 = arith.constant 3 : index
    %c0_378 = arith.constant 0 : index
    %c0_379 = arith.constant 0 : index
    %416 = vector.load %arg38[%c3_377, %c0_378, %c0_379] : memref<4x32x16xbf16, #tpu.memory_space<vmem>>, vector<1x32x16xbf16>
    %417 = vector.shape_cast %416 : vector<1x32x16xbf16> to vector<32x16xbf16>
    %cst_380 = arith.constant dense<0.000000e+00> : vector<32x256xf32>
    %418 = tpu.matmul %417, %390, %cst_380 {dimension_numbers = #tpu.dot_dimension_numbers<[1], [0], [0], [1], [0, 0, 1, 1], [], []>} : vector<32x16xbf16>, vector<16x256xbf16>, vector<32x256xf32> -> vector<32x256xf32>
    %419 = arith.truncf %418 : vector<32x256xf32> to vector<32x256xbf16>
    %c3_381 = arith.constant 3 : index
    %c0_382 = arith.constant 0 : index
    %c0_383 = arith.constant 0 : index
    %420 = vector.load %arg39[%c3_381, %c0_382, %c0_383] : memref<4x256x256xbf16, #tpu.memory_space<vmem>>, vector<1x256x256xbf16>
    %421 = vector.shape_cast %420 : vector<1x256x256xbf16> to vector<256x256xbf16>
    %cst_384 = arith.constant dense<0.000000e+00> : vector<32x256xf32>
    %422 = tpu.matmul %419, %421, %cst_384 {dimension_numbers = #tpu.dot_dimension_numbers<[1], [0], [0], [1], [0, 0, 1, 1], [], []>} : vector<32x256xbf16>, vector<256x256xbf16>, vector<32x256xf32> -> vector<32x256xf32>
    %423 = arith.addf %415, %422 : vector<32x256xf32>
    %c0_385 = arith.constant 0 : index
    %c0_386 = arith.constant 0 : index
    %424 = vector.load %arg40[%c0_385, %c0_386] : memref<1x256xf32, #tpu.memory_space<vmem>>, vector<1x256xf32>
    %425 = vector.broadcast %424 : vector<1x256xf32> to vector<32x256xf32>
    %426 = arith.addf %423, %425 : vector<32x256xf32>
    %cst_387 = arith.constant 0.000000e+00 : f32
    %427 = vector.broadcast %cst_387 : f32 to vector<32x256xf32>
    %428 = arith.maximumf %426, %427 : vector<32x256xf32>
    %429 = arith.truncf %428 : vector<32x256xf32> to vector<32x256xbf16>
    %cst_388 = arith.constant 0.000000e+00 : f32
    %430 = vector.broadcast %cst_388 : f32 to vector<32x96xf32>
    %c0_389 = arith.constant 0 : index
    %c0_390 = arith.constant 0 : index
    %c0_391 = arith.constant 0 : index
    %431 = vector.load %arg41[%c0_389, %c0_390, %c0_391] : memref<4x32x32xbf16, #tpu.memory_space<vmem>>, vector<1x32x32xbf16>
    %432 = vector.shape_cast %431 : vector<1x32x32xbf16> to vector<32x32xbf16>
    %cst_392 = arith.constant dense<0.000000e+00> : vector<32x256xf32>
    %433 = tpu.matmul %432, %429, %cst_392 {dimension_numbers = #tpu.dot_dimension_numbers<[1], [0], [0], [1], [0, 0, 1, 1], [], []>} : vector<32x32xbf16>, vector<32x256xbf16>, vector<32x256xf32> -> vector<32x256xf32>
    %434 = arith.truncf %433 : vector<32x256xf32> to vector<32x256xbf16>
    %c0_393 = arith.constant 0 : index
    %c0_394 = arith.constant 0 : index
    %c0_395 = arith.constant 0 : index
    %435 = vector.load %arg42[%c0_393, %c0_394, %c0_395] : memref<4x256x96xbf16, #tpu.memory_space<vmem>>, vector<1x256x96xbf16>
    %436 = vector.shape_cast %435 : vector<1x256x96xbf16> to vector<256x96xbf16>
    %cst_396 = arith.constant dense<0.000000e+00> : vector<32x96xf32>
    %437 = tpu.matmul %434, %436, %cst_396 {dimension_numbers = #tpu.dot_dimension_numbers<[1], [0], [0], [1], [0, 0, 1, 1], [], []>} : vector<32x256xbf16>, vector<256x96xbf16>, vector<32x96xf32> -> vector<32x96xf32>
    %438 = arith.addf %430, %437 : vector<32x96xf32>
    %c1_397 = arith.constant 1 : index
    %c0_398 = arith.constant 0 : index
    %c0_399 = arith.constant 0 : index
    %439 = vector.load %arg41[%c1_397, %c0_398, %c0_399] : memref<4x32x32xbf16, #tpu.memory_space<vmem>>, vector<1x32x32xbf16>
    %440 = vector.shape_cast %439 : vector<1x32x32xbf16> to vector<32x32xbf16>
    %cst_400 = arith.constant dense<0.000000e+00> : vector<32x256xf32>
    %441 = tpu.matmul %440, %429, %cst_400 {dimension_numbers = #tpu.dot_dimension_numbers<[1], [0], [0], [1], [0, 0, 1, 1], [], []>} : vector<32x32xbf16>, vector<32x256xbf16>, vector<32x256xf32> -> vector<32x256xf32>
    %442 = arith.truncf %441 : vector<32x256xf32> to vector<32x256xbf16>
    %c1_401 = arith.constant 1 : index
    %c0_402 = arith.constant 0 : index
    %c0_403 = arith.constant 0 : index
    %443 = vector.load %arg42[%c1_401, %c0_402, %c0_403] : memref<4x256x96xbf16, #tpu.memory_space<vmem>>, vector<1x256x96xbf16>
    %444 = vector.shape_cast %443 : vector<1x256x96xbf16> to vector<256x96xbf16>
    %cst_404 = arith.constant dense<0.000000e+00> : vector<32x96xf32>
    %445 = tpu.matmul %442, %444, %cst_404 {dimension_numbers = #tpu.dot_dimension_numbers<[1], [0], [0], [1], [0, 0, 1, 1], [], []>} : vector<32x256xbf16>, vector<256x96xbf16>, vector<32x96xf32> -> vector<32x96xf32>
    %446 = arith.addf %438, %445 : vector<32x96xf32>
    %c2_405 = arith.constant 2 : index
    %c0_406 = arith.constant 0 : index
    %c0_407 = arith.constant 0 : index
    %447 = vector.load %arg41[%c2_405, %c0_406, %c0_407] : memref<4x32x32xbf16, #tpu.memory_space<vmem>>, vector<1x32x32xbf16>
    %448 = vector.shape_cast %447 : vector<1x32x32xbf16> to vector<32x32xbf16>
    %cst_408 = arith.constant dense<0.000000e+00> : vector<32x256xf32>
    %449 = tpu.matmul %448, %429, %cst_408 {dimension_numbers = #tpu.dot_dimension_numbers<[1], [0], [0], [1], [0, 0, 1, 1], [], []>} : vector<32x32xbf16>, vector<32x256xbf16>, vector<32x256xf32> -> vector<32x256xf32>
    %450 = arith.truncf %449 : vector<32x256xf32> to vector<32x256xbf16>
    %c2_409 = arith.constant 2 : index
    %c0_410 = arith.constant 0 : index
    %c0_411 = arith.constant 0 : index
    %451 = vector.load %arg42[%c2_409, %c0_410, %c0_411] : memref<4x256x96xbf16, #tpu.memory_space<vmem>>, vector<1x256x96xbf16>
    %452 = vector.shape_cast %451 : vector<1x256x96xbf16> to vector<256x96xbf16>
    %cst_412 = arith.constant dense<0.000000e+00> : vector<32x96xf32>
    %453 = tpu.matmul %450, %452, %cst_412 {dimension_numbers = #tpu.dot_dimension_numbers<[1], [0], [0], [1], [0, 0, 1, 1], [], []>} : vector<32x256xbf16>, vector<256x96xbf16>, vector<32x96xf32> -> vector<32x96xf32>
    %454 = arith.addf %446, %453 : vector<32x96xf32>
    %c3_413 = arith.constant 3 : index
    %c0_414 = arith.constant 0 : index
    %c0_415 = arith.constant 0 : index
    %455 = vector.load %arg41[%c3_413, %c0_414, %c0_415] : memref<4x32x32xbf16, #tpu.memory_space<vmem>>, vector<1x32x32xbf16>
    %456 = vector.shape_cast %455 : vector<1x32x32xbf16> to vector<32x32xbf16>
    %cst_416 = arith.constant dense<0.000000e+00> : vector<32x256xf32>
    %457 = tpu.matmul %456, %429, %cst_416 {dimension_numbers = #tpu.dot_dimension_numbers<[1], [0], [0], [1], [0, 0, 1, 1], [], []>} : vector<32x32xbf16>, vector<32x256xbf16>, vector<32x256xf32> -> vector<32x256xf32>
    %458 = arith.truncf %457 : vector<32x256xf32> to vector<32x256xbf16>
    %c3_417 = arith.constant 3 : index
    %c0_418 = arith.constant 0 : index
    %c0_419 = arith.constant 0 : index
    %459 = vector.load %arg42[%c3_417, %c0_418, %c0_419] : memref<4x256x96xbf16, #tpu.memory_space<vmem>>, vector<1x256x96xbf16>
    %460 = vector.shape_cast %459 : vector<1x256x96xbf16> to vector<256x96xbf16>
    %cst_420 = arith.constant dense<0.000000e+00> : vector<32x96xf32>
    %461 = tpu.matmul %458, %460, %cst_420 {dimension_numbers = #tpu.dot_dimension_numbers<[1], [0], [0], [1], [0, 0, 1, 1], [], []>} : vector<32x256xbf16>, vector<256x96xbf16>, vector<32x96xf32> -> vector<32x96xf32>
    %462 = arith.addf %454, %461 : vector<32x96xf32>
    %c0_421 = arith.constant 0 : index
    %c0_422 = arith.constant 0 : index
    %463 = vector.load %arg43[%c0_421, %c0_422] : memref<1x96xf32, #tpu.memory_space<vmem>>, vector<1x96xf32>
    %464 = vector.broadcast %463 : vector<1x96xf32> to vector<32x96xf32>
    %465 = arith.addf %462, %464 : vector<32x96xf32>
    %c0_423 = arith.constant 0 : index
    %c0_424 = arith.constant 0 : index
    %466 = vector.load %arg46[%c0_423, %c0_424] : memref<32x96xf32, #tpu.memory_space<vmem>>, vector<32x96xf32>
    tpu.vector_store %arg46[%c0_423, %c0_424], %465 {strides = array<i32>} : memref<32x96xf32, #tpu.memory_space<vmem>>, vector<32x96xf32>,
    return
  }
}

</mosaic_0001>

<bundles_post_ra>
// kernel: vae_forward.1
= control target key start
LH: loop header
LB: loop body
LE: loop exit
PB: predicated region body
PF: predicated region fallthrough
CT: control target
= control target key end

     0   :  { %s12355_s6 = smov 1   ;;  %s12356_s10 = smov 2   ;;  %s13822_s0 = inlined_call_operand.smem [shape: u32[47], index: -1, kind: input, shape index: {}] }
   0x1   :  { %s12450_s5 = sld [smem:[%s13822_s0]]   ;;  %s12357_s14 = smov 3  }
   0x2   :  { %s12455_s9 = sld [smem:[%s13822_s0 + %s12355_s6]]   ;;  %s12358_s18 = smov 4  }
   0x3   :  { %s12460_s13 = sld [smem:[%s13822_s0 + %s12356_s10]]   ;;  %s12359_s22 = smov 5  }
   0x4   :  { %s12465_s17 = sld [smem:[%s13822_s0 + %s12357_s14]]   ;;  %s12360_s26 = smov 6  }
   0x5   :  { %s12470_s21 = sld [smem:[%s13822_s0 + %s12358_s18]]   ;;  %s12361_s30 = smov 7  }
   0x6   :  { %s12475_s25 = sld [smem:[%s13822_s0 + %s12359_s22]]   ;;  %s12362_s4 = smov 8  }
   0x7   :  { %13851 = sst [smem:[#allocation66_spill]] %s12450_s5  ;;  %s12363_s10 = smov 9  }
   0x8   :  { %13852 = sst [smem:[#allocation67_spill]] %s12455_s9  ;;  %s12364_s15 = smov 10  }
   0x9   :  { %s12480_s29 = sld [smem:[%s13822_s0 + %s12360_s26]]   ;;  %s12365_s20 = smov 11  }
   0xa   :  { %13853 = sst [smem:[#allocation68_spill]] %s12465_s17  ;;  %s12366_s26 = smov 12  }
   0xb   :  { %s12485_s3 = sld [smem:[%s13822_s0 + %s12361_s30]]   ;;  %s12367_s1 = smov 13  }
   0xc   :  { %13854 = sst [smem:[#allocation69_spill]] %s12475_s25  ;;  %s12368_s7 = smov 14  }
   0xd   :  { %s12490_s8 = sld [smem:[%s13822_s0 + %s12362_s4]]   ;;  %s12370_s22 = smov 16  }
   0xe   :  { %s12495_s14 = sld [smem:[%s13822_s0 + %s12363_s10]]   ;;  %s12371_s28 = smov 17  }
   0xf   :  { %13855 = sst [smem:[#allocation70_spill]] %s12480_s29 }
  0x10   :  { %s12500_s19 = sld [smem:[%s13822_s0 + %s12364_s15]]   ;;  %s12369_s15 = smov 15  }
  0x11   :  { %13856 = sst [smem:[#allocation71_spill]] %s12485_s3 }
  0x12   :  { %s12505_s24 = sld [smem:[%s13822_s0 + %s12365_s20]]  }
  0x13   :  { %s12510_s30 = sld [smem:[%s13822_s0 + %s12366_s26]]  }
  0x14   :  { %13857 = sst [smem:[#allocation72_spill]] %s12495_s14 }
  0x15   :  { %s12515_s6 = sld [smem:[%s13822_s0 + %s12367_s1]]  }
  0x16   :  { %13858 = sst [smem:[#allocation73_spill]] %s12500_s19 }
  0x17   :  { %s12520_s12 = sld [smem:[%s13822_s0 + %s12368_s7]]   ;;  %s12372_s7 = smov 18  }
  0x18   :  { %13859 = sst [smem:[#allocation74_spill]] %s12505_s24 }
  0x19   :  { %13860 = sst [smem:[#allocation75_spill]] %s12510_s30 }
  0x1a   :  { %s12525_s20 = sld [smem:[%s13822_s0 + %s12369_s15]]   ;;  %s12373_s15 = smov 19  }
  0x1b   :  { %s12530_s27 = sld [smem:[%s13822_s0 + %s12370_s22]]   ;;  %s12374_s22 = smov 20  }
  0x1c   :  { %s12535_s4 = sld [smem:[%s13822_s0 + %s12371_s28]]   ;;  %s12375_s28 = smov 21  }
  0x1d   :  { %13861 = sst [smem:[#allocation76_spill]] %s12520_s12 }
  0x1e   :  { %s12540_s9 = sld [smem:[%s13822_s0 + %s12372_s7]]   ;;  %s12376_s7 = smov 22  }
  0x1f   :  { %s12545_s24 = sld [smem:[%s13822_s0 + %s12373_s15]]   ;;  %s12377_s15 = smov 23  }
  0x20   :  { %s12550_s30 = sld [smem:[%s13822_s0 + %s12374_s22]]   ;;  %s12378_s22 = smov 24  }
  0x21   :  { %13862 = sst [smem:[#allocation77_spill]] %s12530_s27 }
  0x22   :  { %s12555_s14 = sld [smem:[%s13822_s0 + %s12375_s28]]   ;;  %s12379_s28 = smov 25  }
  0x23   :  { %s12565_s25 = sld [smem:[%s13822_s0 + %s12377_s15]]   ;;  %s12381_s15 = smov 27  }
  0x24   :  { %13863 = sst [smem:[#allocation78_spill]] %s12540_s9 }
  0x25   :  { %13864 = sst [smem:[#allocation79_spill]] %s12545_s24 }
  0x26   :  { %s12560_s9 = sld [smem:[%s13822_s0 + %s12376_s7]]   ;;  %s12380_s7 = smov 26  }
  0x27   :  { %s12570_s29 = sld [smem:[%s13822_s0 + %s12378_s22]]   ;;  %s12382_s22 = smov 28  }
  0x28   :  { %13865 = sst [smem:[#allocation80_spill]] %s12555_s14 }
  0x29   :  { %13866 = sst [smem:[#allocation81_spill]] %s12565_s25 }
  0x2a   :  { %s12575_s17 = sld [smem:[%s13822_s0 + %s12379_s28]]   ;;  %s12383_s28 = smov 29  }
  0x2b   :  { %s12580_s5 = sld [smem:[%s13822_s0 + %s12380_s7]]   ;;  %s12384_s7 = smov 30  }
  0x2c   :  { %s12585_s25 = sld [smem:[%s13822_s0 + %s12381_s15]]   ;;  %s12385_s15 = smov 31  }
  0x2d   :  { %s12590_s14 = sld [smem:[%s13822_s0 + %s12382_s22]]   ;;  %s12386_s22 = smov 32  }
  0x2e   :  { %s12600_s24 = sld [smem:[%s13822_s0 + %s12384_s7]]   ;;  %s12388_s7 = smov 34  }
  0x30   :  { %13867 = sst [smem:[#allocation82_spill]] %s12575_s17 }
  0x31   :  { %s12595_s17 = sld [smem:[%s13822_s0 + %s12383_s28]]   ;;  %s12387_s28 = smov 33  }
  0x32   :  { %13868 = sst [smem:[#allocation83_spill]] %s12585_s25 }
  0x33   :  { %13869 = sst [smem:[#allocation84_spill]] %s12590_s14 }
  0x34   :  { %13870 = sst [smem:[#allocation85_spill]] %s12600_s24 }
  0x35   :  { %s12605_s25 = sld [smem:[%s13822_s0 + %s12385_s15]]   ;;  %s12389_s15 = smov 35  }
  0x36   :  { %s12610_s14 = sld [smem:[%s13822_s0 + %s12386_s22]]   ;;  %s12390_s22 = smov 36  }
  0x37   :  { %s12615_s27 = sld [smem:[%s13822_s0 + %s12387_s28]]   ;;  %s12391_s28 = smov 37  }
  0x38   :  { %s12620_s24 = sld [smem:[%s13822_s0 + %s12388_s7]]   ;;  %s12392_s7 = smov 38  }
  0x39   :  { %s12625_s12 = sld [smem:[%s13822_s0 + %s12389_s15]]   ;;  %s12393_s15 = smov 39  }
  0x3a   :  { %s12640_s19 = sld [smem:[%s13822_s0 + %s12392_s7]]   ;;  %s12396_s7 = smov 42  }
  0x3c   :  { %13871 = sst [smem:[#allocation86_spill]] %s12610_s14 }
  0x3d   :  { %13872 = sst [smem:[#allocation87_spill]] %s12615_s27 }
  0x3e   :  { %s12630_s14 = sld [smem:[%s13822_s0 + %s12390_s22]]   ;;  %s12394_s22 = smov 40  }
  0x3f   :  { %13873 = sst [smem:[#allocation88_spill]] %s12625_s12 }
  0x40   :  { %s12635_s27 = sld [smem:[%s13822_s0 + %s12391_s28]]   ;;  %s12395_s28 = smov 41  }
  0x41   :  { %13875 = sst [smem:[#allocation90_spill]] %s12640_s19 }
  0x42   :  { %s12645_s12 = sld [smem:[%s13822_s0 + %s12393_s15]]   ;;  %s12397_s15 = smov 43  }
  0x43   :  { %s12655_s3 = sld [smem:[%s13822_s0 + %s12395_s28]]   ;;  %s12399_s28 = smov 45  }
  0x44   :  { %13874 = sst [smem:[#allocation89_spill]] %s12630_s14 }
  0x45   :  { %s12650_s14 = sld [smem:[%s13822_s0 + %s12394_s22]]   ;;  %s12398_s22 = smov 44  }
  0x46   :  { %s12660_s19 = sld [smem:[%s13822_s0 + %s12396_s7]]   ;;  %s12400_s7 = smov 46  }
  0x48   :  { %13876 = sst [smem:[#allocation91_spill]] %s12645_s12 }
  0x49   :  { %13878 = sst [smem:[#allocation93_spill]] %s12655_s3 }
  0x4a   :  { %s12665_s12 = sld [smem:[%s13822_s0 + %s12397_s15]]  }
  0x4b   :  { %13877 = sst [smem:[#allocation92_spill]] %s12650_s14 }
  0x4c   :  { %13879 = sst [smem:[#allocation94_spill]] %s12660_s19 }
  0x4d   :  { %s12670_s14 = sld [smem:[%s13822_s0 + %s12398_s22]]  }
  0x4e   :  { %s12675_s3 = sld [smem:[%s13822_s0 + %s12399_s28]]  }
  0x4f   :  { %s12680_s19 = sld [smem:[%s13822_s0 + %s12400_s7]]  }
  0x50   :  { %99 = vsyncpa [#allocation3], 0 }
  0x51   :  { %100 = vsyncpa [#allocation6], 0 }
  0x52   :  { %101 = vsyncpa [#allocation9], 0 }
  0x53   :  { %102 = vsyncpa [#allocation12], 0 }
  0x54   :  { %103 = vsyncpa [#allocation15], 0 }
  0x55   :  { %104 = vsyncpa [#allocation18], 0 }
  0x56   :  { %105 = vsyncpa [#allocation21], 0 }
  0x57   :  { %106 = vsyncpa [#allocation24], 0 }
  0x58   :  { %107 = vsyncpa [#allocation27], 0 }
  0x59   :  { %108 = vsyncpa [#allocation30], 0 }
  0x5a   :  { %109 = vsyncpa [#allocation33], 0 }
  0x5b   :  { %110 = vsyncpa [#allocation36], 0 }
  0x5c   :  { %111 = vsyncpa [#allocation39], 0 }
  0x5d   :  { %112 = vsyncpa [#allocation42], 0 }
  0x5e   :  { %113 = vsyncpa [#allocation45], 0 }
  0x5f   :  { %114 = vsyncpa [#allocation4], 0 }
  0x60   :  { %115 = vsyncpa [#allocation48], 0  ;;  %s12401_s0 = smov [#allocation5]   ;;  %s11661_s16 = scalar_lea.hbm %s12470_s21, 32 }
  0x61   :  { %s140_s15 = sshll.u32 %s12401_s0, 4  ;;  %p11662_p0 = scmp.ne.s32.totalorder %s12470_s21, %s11661_s16  ;;  %s141_s15 = int_to_ptr.vmem [resolvable:$true] %s140_s15 }
  0x62   :  { %p11665_p1 = scmp.lt.u32.totalorder %s11661_s16, %s12470_s21 }
  0x64   :  { %p11667_p2 = pnand %p11665_p1, %p11662_p0 }
  0x66   :  { %11670 = shalt.err (!%p11667_p2)
}
  0x67   :  { %s11671_s18 = scalar_lea.vmem %s141_s15, 32  ;;  %p11676_p4 = scmp.lt.s32.totalorder %s141_s15, %s141_s15 }
  0x68   :  { %p11672_p3 = scmp.ne.s32.totalorder %s141_s15, %s11671_s18  ;;  %p11677_p5 = scmp.lt.s32.totalorder %s11671_s18, %s11671_s18 }
  0x6a   :  { %p11678_p6 = por %p11677_p5, %p11676_p4 }
  0x6c   :  { %p11679_p7 = pnand %p11678_p6, %p11672_p3 }
  0x6e   :  { %11682 = shalt.err (!%p11679_p7)
}
  0x6f   :  { %143 = dma.hbm_to_vmem [thread:$0]  %s12470_s21, 32, %s141_s15, [#allocation6]  }
  0x70   :  { %s12402_s22 = smov [#allocation8]   ;;  %s12403_s26 = smov [#allocation11]  }
  0x71   :  { %s163_s23 = sshll.u32 %s12402_s22, 4  ;;  %s192_s28 = sshll.u32 %s12403_s26, 4  ;;  %s164_s23 = int_to_ptr.vmem [resolvable:$true] %s163_s23  ;;  %s193_s28 = int_to_ptr.vmem [resolvable:$true] %s192_s28 }
  0x72   :  { %s11683_s1 = scalar_lea.hbm %s12490_s8, 256 }
  0x73   :  { %p11684_p8 = scmp.ne.s32.totalorder %s12490_s8, %s11683_s1  ;;  %p11687_p9 = scmp.lt.u32.totalorder %s11683_s1, %s12490_s8 }
  0x75   :  { %p11689_p10 = pnand %p11687_p9, %p11684_p8 }
  0x77   :  { %11692 = shalt.err (!%p11689_p10)
}
  0x78   :  { %s11693_s2 = scalar_lea.vmem %s164_s23, 256  ;;  %p11698_p12 = scmp.lt.s32.totalorder %s164_s23, %s164_s23 }
  0x79   :  { %p11694_p11 = scmp.ne.s32.totalorder %s164_s23, %s11693_s2  ;;  %p11699_p13 = scmp.lt.s32.totalorder %s11693_s2, %s11693_s2 }
  0x7b   :  { %p11700_p0 = por %p11699_p13, %p11698_p12 }
  0x7d   :  { %p11701_p1 = pnand %p11700_p0, %p11694_p11 }
  0x7f   :  { %11704 = shalt.err (!%p11701_p1)
}
  0x80   :  { %s12404_s7 = smov 64   ;;  %s12405_s21 = smov 4  }
  0x81   :  { %169 = dma.hbm_to_vmem [thread:$0]  %s12490_s8, 256, %s164_s23, [#allocation9], %s12404_s7, %s12404_s7, %s12405_s21  }
  0x82   :  { %s11705_s10 = scalar_lea.hbm %s12515_s6, 16 }
  0x83   :  { %p11706_p2 = scmp.ne.s32.totalorder %s12515_s6, %s11705_s10  ;;  %p11709_p3 = scmp.lt.u32.totalorder %s11705_s10, %s12515_s6 }
  0x85   :  { %p11711_p4 = pnand %p11709_p3, %p11706_p2 }
  0x87   :  { %11714 = shalt.err (!%p11711_p4)
}
  0x88   :  { %s11715_s11 = scalar_lea.vmem %s193_s28, 16  ;;  %s11719_s0 = scalar_lea.vmem %s193_s28, 32 }
  0x89   :  { %p11716_p5 = scmp.ne.s32.totalorder %s193_s28, %s11715_s11  ;;  %p11720_p6 = scmp.lt.s32.totalorder %s193_s28, %s193_s28 }
  0x8a   :  { %p11721_p7 = scmp.lt.s32.totalorder %s11719_s0, %s11715_s11 }
  0x8c   :  { %p11722_p8 = por %p11721_p7, %p11720_p6 }
  0x8e   :  { %p11723_p9 = pnand %p11722_p8, %p11716_p5 }
  0x90   :  { %11726 = shalt.err (!%p11723_p9)
}
  0x91   :  { %195 = dma.hbm_to_vmem [thread:$0]  %s12515_s6, 16, %s193_s28, [#allocation12]  }
  0x92   :  { %s12406_s8 = smov [#allocation14]   ;;  %s12407_s16 = smov [#allocation17]  }
  0x93   :  { %s213_s15 = sshll.u32 %s12406_s8, 4  ;;  %s235_s18 = sshll.u32 %s12407_s16, 4  ;;  %s214_s15 = int_to_ptr.vmem [resolvable:$true] %s213_s15  ;;  %s236_s18 = int_to_ptr.vmem [resolvable:$true] %s235_s18 }
  0x94   :  { %s11727_s22 = scalar_lea.hbm %s12525_s20, 2048 }
  0x95   :  { %p11728_p10 = scmp.ne.s32.totalorder %s12525_s20, %s11727_s22  ;;  %p11731_p11 = scmp.lt.u32.totalorder %s11727_s22, %s12525_s20 }
  0x97   :  { %p11733_p12 = pnand %p11731_p11, %p11728_p10 }
  0x99   :  { %11736 = shalt.err (!%p11733_p12)
}
  0x9a   :  { %s11737_s23 = scalar_lea.vmem %s214_s15, 2048  ;;  %p11742_p0 = scmp.lt.s32.totalorder %s214_s15, %s214_s15 }
  0x9b   :  { %p11738_p13 = scmp.ne.s32.totalorder %s214_s15, %s11737_s23  ;;  %p11743_p1 = scmp.lt.s32.totalorder %s11737_s23, %s11737_s23 }
  0x9d   :  { %p11744_p2 = por %p11743_p1, %p11742_p0 }
  0x9f   :  { %p11745_p3 = pnand %p11744_p2, %p11738_p13 }
  0xa1   :  { %11748 = shalt.err (!%p11745_p3)
}
  0xa2   :  { %219 = dma.hbm_to_vmem [thread:$0]  %s12525_s20, 2048, %s214_s15, [#allocation15], %s12404_s7, %s12404_s7, %s12405_s21  }
  0xa3   :  { %s11749_s6 = scalar_lea.hbm %s12535_s4, 32 }
  0xa4   :  { %p11750_p4 = scmp.ne.s32.totalorder %s12535_s4, %s11749_s6  ;;  %p11753_p5 = scmp.lt.u32.totalorder %s11749_s6, %s12535_s4 }
  0xa6   :  { %p11755_p6 = pnand %p11753_p5, %p11750_p4 }
  0xa8   :  { %11758 = shalt.err (!%p11755_p6)
}
  0xa9   :  { %s11759_s26 = scalar_lea.vmem %s236_s18, 32  ;;  %p11764_p8 = scmp.lt.s32.totalorder %s236_s18, %s236_s18 }
  0xaa   :  { %p11760_p7 = scmp.ne.s32.totalorder %s236_s18, %s11759_s26  ;;  %p11765_p9 = scmp.lt.s32.totalorder %s11759_s26, %s11759_s26 }
  0xac   :  { %p11766_p10 = por %p11765_p9, %p11764_p8 }
  0xae   :  { %p11767_p11 = pnand %p11766_p10, %p11760_p7 }
  0xb0   :  { %11770 = shalt.err (!%p11767_p11)
}
  0xb1   :  { %s12408_s28 = smov 16   ;;  %s12409_s1 = smov 1  }
  0xb2   :  { %241 = dma.hbm_to_vmem [thread:$0]  %s12535_s4, 32, %s236_s18, [#allocation18], %s12408_s28, %s12408_s28, %s12409_s1  }
  0xb3   :  { %s12410_s20 = smov [#allocation20]   ;;  %s12411_s10 = smov [#allocation23]  }
  0xb4   :  { %s259_s2 = sshll.u32 %s12410_s20, 4  ;;  %s281_s11 = sshll.u32 %s12411_s10, 4  ;;  %s260_s2 = int_to_ptr.vmem [resolvable:$true] %s259_s2  ;;  %s282_s11 = int_to_ptr.vmem [resolvable:$true] %s281_s11 }
  0xb5   :  { %s11771_s0 = scalar_lea.hbm %s12550_s30, 128 }
  0xb6   :  { %p11772_p12 = scmp.ne.s32.totalorder %s12550_s30, %s11771_s0  ;;  %p11775_p13 = scmp.lt.u32.totalorder %s11771_s0, %s12550_s30 }
  0xb8   :  { %p11777_p0 = pnand %p11775_p13, %p11772_p12 }
  0xba   :  { %11780 = shalt.err (!%p11777_p0)
}
  0xbb   :  { %s11781_s8 = scalar_lea.vmem %s260_s2, 128  ;;  %p11786_p2 = scmp.lt.s32.totalorder %s260_s2, %s260_s2 }
  0xbc   :  { %p11782_p1 = scmp.ne.s32.totalorder %s260_s2, %s11781_s8  ;;  %p11787_p3 = scmp.lt.s32.totalorder %s11781_s8, %s11781_s8 }
  0xbe   :  { %p11788_p4 = por %p11787_p3, %p11786_p2 }
  0xc0   :  { %p11789_p5 = pnand %p11788_p4, %p11782_p1 }
  0xc2   :  { %11792 = shalt.err (!%p11789_p5)
}
  0xc3   :  { %265 = dma.hbm_to_vmem [thread:$0]  %s12550_s30, 128, %s260_s2, [#allocation21], %s12404_s7, %s12404_s7, %s12405_s21  }
  0xc4   :  { %s11793_s4 = scalar_lea.hbm %s12560_s9, 128 }
  0xc5   :  { %p11794_p6 = scmp.ne.s32.totalorder %s12560_s9, %s11793_s4  ;;  %p11797_p7 = scmp.lt.u32.totalorder %s11793_s4, %s12560_s9 }
  0xc7   :  { %p11799_p8 = pnand %p11797_p7, %p11794_p6 }
  0xc9   :  { %11802 = shalt.err (!%p11799_p8)
}
  0xca   :  { %s11803_s15 = scalar_lea.vmem %s282_s11, 128  ;;  %p11808_p10 = scmp.lt.s32.totalorder %s282_s11, %s282_s11 }
  0xcb   :  { %p11804_p9 = scmp.ne.s32.totalorder %s282_s11, %s11803_s15  ;;  %p11809_p11 = scmp.lt.s32.totalorder %s11803_s15, %s11803_s15 }
  0xcd   :  { %p11810_p12 = por %p11809_p11, %p11808_p10 }
  0xcf   :  { %p11811_p13 = pnand %p11810_p12, %p11804_p9 }
  0xd1   :  { %11814 = shalt.err (!%p11811_p13)
}
  0xd2   :  { %287 = dma.hbm_to_vmem [thread:$0]  %s12560_s9, 128, %s282_s11, [#allocation24], %s12404_s7, %s12404_s7, %s12405_s21  }
  0xd3   :  { %s12412_s30 = smov [#allocation26]   ;;  %s12413_s18 = smov [#allocation29]  }
  0xd4   :  { %s303_s16 = sshll.u32 %s12412_s30, 4  ;;  %s325_s22 = sshll.u32 %s12413_s18, 4  ;;  %s304_s16 = int_to_ptr.vmem [resolvable:$true] %s303_s16  ;;  %s326_s22 = int_to_ptr.vmem [resolvable:$true] %s325_s22 }
  0xd5   :  { %s11815_s23 = scalar_lea.hbm %s12570_s29, 128 }
  0xd6   :  { %p11816_p0 = scmp.ne.s32.totalorder %s12570_s29, %s11815_s23  ;;  %p11819_p1 = scmp.lt.u32.totalorder %s11815_s23, %s12570_s29 }
  0xd8   :  { %p11821_p2 = pnand %p11819_p1, %p11816_p0 }
  0xda   :  { %11824 = shalt.err (!%p11821_p2)
}
  0xdb   :  { %s11825_s6 = scalar_lea.vmem %s304_s16, 128  ;;  %p11830_p4 = scmp.lt.s32.totalorder %s304_s16, %s304_s16 }
  0xdc   :  { %p11826_p3 = scmp.ne.s32.totalorder %s304_s16, %s11825_s6  ;;  %p11831_p5 = scmp.lt.s32.totalorder %s11825_s6, %s11825_s6 }
  0xde   :  { %p11832_p6 = por %p11831_p5, %p11830_p4 }
  0xe0   :  { %p11833_p7 = pnand %p11832_p6, %p11826_p3 }
  0xe2   :  { %11836 = shalt.err (!%p11833_p7)
}
  0xe3   :  { %309 = dma.hbm_to_vmem [thread:$0]  %s12570_s29, 128, %s304_s16, [#allocation27], %s12404_s7, %s12404_s7, %s12405_s21  }
  0xe4   :  { %s11837_s9 = scalar_lea.hbm %s12580_s5, 256 }
  0xe5   :  { %p11838_p8 = scmp.ne.s32.totalorder %s12580_s5, %s11837_s9  ;;  %p11841_p9 = scmp.lt.u32.totalorder %s11837_s9, %s12580_s5 }
  0xe7   :  { %p11843_p10 = pnand %p11841_p9, %p11838_p8 }
  0xe9   :  { %11846 = shalt.err (!%p11843_p10)
}
  0xea   :  { %s11847_s26 = scalar_lea.vmem %s326_s22, 256  ;;  %p11852_p12 = scmp.lt.s32.totalorder %s326_s22, %s326_s22 }
  0xeb   :  { %p11848_p11 = scmp.ne.s32.totalorder %s326_s22, %s11847_s26  ;;  %p11853_p13 = scmp.lt.s32.totalorder %s11847_s26, %s11847_s26 }
  0xed   :  { %p11854_p0 = por %p11853_p13, %p11852_p12 }
  0xef   :  { %p11855_p1 = pnand %p11854_p0, %p11848_p11 }
  0xf1   :  { %11858 = shalt.err (!%p11855_p1)
}
  0xf2   :  { %331 = dma.hbm_to_vmem [thread:$0]  %s12580_s5, 256, %s326_s22, [#allocation30], %s12404_s7, %s12404_s7, %s12405_s21  }
  0xf3   :  { %s12414_s29 = smov [#allocation32]   ;;  %s12415_s2 = smov [#allocation35]  }
  0xf4   :  { %s351_s20 = sshll.u32 %s12414_s29, 4  ;;  %s376_s10 = sshll.u32 %s12415_s2, 4  ;;  %s352_s20 = int_to_ptr.vmem [resolvable:$true] %s351_s20  ;;  %s377_s10 = int_to_ptr.vmem [resolvable:$true] %s376_s10 }
  0xf5   :  { %s11859_s11 = scalar_lea.hbm %s12595_s17, 128 }
  0xf6   :  { %p11860_p2 = scmp.ne.s32.totalorder %s12595_s17, %s11859_s11  ;;  %p11863_p3 = scmp.lt.u32.totalorder %s11859_s11, %s12595_s17 }
  0xf8   :  { %p11865_p4 = pnand %p11863_p3, %p11860_p2 }
  0xfa   :  { %11868 = shalt.err (!%p11865_p4)
}
  0xfb   :  { %s11869_s0 = scalar_lea.vmem %s352_s20, 128  ;;  %p11874_p6 = scmp.lt.s32.totalorder %s352_s20, %s352_s20 }
  0xfc   :  { %p11870_p5 = scmp.ne.s32.totalorder %s352_s20, %s11869_s0  ;;  %p11875_p7 = scmp.lt.s32.totalorder %s11869_s0, %s11869_s0 }
  0xfe   :  { %p11876_p8 = por %p11875_p7, %p11874_p6 }
 0x100   :  { %p11877_p9 = pnand %p11876_p8, %p11870_p5 }
 0x102   :  { %11880 = shalt.err (!%p11877_p9)
}
 0x103   :  { %s12416_s8 = smov 32   ;;  %s12417_s5 = smov 2  }
 0x104   :  { %357 = dma.hbm_to_vmem [thread:$0]  %s12595_s17, 128, %s352_s20, [#allocation33], %s12416_s8, %s12416_s8, %s12417_s5  }
 0x105   :  { %s11881_s4 = scalar_lea.hbm %s12605_s25, 16 }
 0x106   :  { %p11882_p10 = scmp.ne.s32.totalorder %s12605_s25, %s11881_s4  ;;  %p11885_p11 = scmp.lt.u32.totalorder %s11881_s4, %s12605_s25 }
 0x108   :  { %p11887_p12 = pnand %p11885_p11, %p11882_p10 }
 0x10a   :  { %11890 = shalt.err (!%p11887_p12)
}
 0x10b   :  { %s11891_s15 = scalar_lea.vmem %s377_s10, 16  ;;  %s11895_s30 = scalar_lea.vmem %s377_s10, 32 }
 0x10c   :  { %p11892_p13 = scmp.ne.s32.totalorder %s377_s10, %s11891_s15  ;;  %p11896_p0 = scmp.lt.s32.totalorder %s377_s10, %s377_s10 }
 0x10d   :  { %p11897_p1 = scmp.lt.s32.totalorder %s11895_s30, %s11891_s15 }
 0x10f   :  { %p11898_p2 = por %p11897_p1, %p11896_p0 }
 0x111   :  { %p11899_p3 = pnand %p11898_p2, %p11892_p13 }
 0x113   :  { %11902 = shalt.err (!%p11899_p3)
}
 0x114   :  { %379 = dma.hbm_to_vmem [thread:$0]  %s12605_s25, 16, %s377_s10, [#allocation36]  }
 0x115   :  { %s12418_s17 = smov [#allocation38]   ;;  %s12419_s18 = smov [#allocation41]  }
 0x116   :  { %s400_s16 = sshll.u32 %s12418_s17, 4  ;;  %s424_s22 = sshll.u32 %s12419_s18, 4  ;;  %s401_s16 = int_to_ptr.vmem [resolvable:$true] %s400_s16  ;;  %s425_s22 = int_to_ptr.vmem [resolvable:$true] %s424_s22 }
 0x117   :  { %s11903_s23 = scalar_lea.hbm %s12620_s24, 16 }
 0x118   :  { %p11904_p4 = scmp.ne.s32.totalorder %s12620_s24, %s11903_s23  ;;  %p11907_p5 = scmp.lt.u32.totalorder %s11903_s23, %s12620_s24 }
 0x11a   :  { %p11909_p6 = pnand %p11907_p5, %p11904_p4 }
 0x11c   :  { %11912 = shalt.err (!%p11909_p6)
}
 0x11d   :  { %s11913_s6 = scalar_lea.vmem %s401_s16, 16  ;;  %s11917_s9 = scalar_lea.vmem %s401_s16, 32 }
 0x11e   :  { %p11914_p7 = scmp.ne.s32.totalorder %s401_s16, %s11913_s6  ;;  %p11918_p8 = scmp.lt.s32.totalorder %s401_s16, %s401_s16 }
 0x11f   :  { %p11919_p9 = scmp.lt.s32.totalorder %s11917_s9, %s11913_s6 }
 0x121   :  { %p11920_p10 = por %p11919_p9, %p11918_p8 }
 0x123   :  { %p11921_p11 = pnand %p11920_p10, %p11914_p7 }
 0x125   :  { %11924 = shalt.err (!%p11921_p11)
}
 0x126   :  { %403 = dma.hbm_to_vmem [thread:$0]  %s12620_s24, 16, %s401_s16, [#allocation39]  }
 0x127   :  { %s11925_s25 = scalar_lea.hbm %s12635_s27, 32 }
 0x128   :  { %p11926_p12 = scmp.ne.s32.totalorder %s12635_s27, %s11925_s25  ;;  %p11929_p13 = scmp.lt.u32.totalorder %s11925_s25, %s12635_s27 }
 0x12a   :  { %p11931_p0 = pnand %p11929_p13, %p11926_p12 }
 0x12c   :  { %11934 = shalt.err (!%p11931_p0)
}
 0x12d   :  { %s11935_s26 = scalar_lea.vmem %s425_s22, 32  ;;  %p11940_p2 = scmp.lt.s32.totalorder %s425_s22, %s425_s22 }
 0x12e   :  { %p11936_p1 = scmp.ne.s32.totalorder %s425_s22, %s11935_s26  ;;  %p11941_p3 = scmp.lt.s32.totalorder %s11935_s26, %s11935_s26 }
 0x130   :  { %p11942_p4 = por %p11941_p3, %p11940_p2 }
 0x132   :  { %p11943_p5 = pnand %p11942_p4, %p11936_p1 }
 0x134   :  { %11946 = shalt.err (!%p11943_p5)
}
 0x135   :  { %427 = dma.hbm_to_vmem [thread:$0]  %s12635_s27, 32, %s425_s22, [#allocation42]  }
 0x136   :  { %s12420_s29 = smov [#allocation2]   ;;  %s12421_s20 = smov [#allocation7]  }
 0x137   :  { %s125_s24 = sshll.u32 %s12420_s29, 4  ;;  %s154_s2 = sshll.u32 %s12421_s20, 4  ;;  %s126_s24 = int_to_ptr.vmem [resolvable:$true] %s125_s24  ;;  %s155_s2 = int_to_ptr.vmem [resolvable:$true] %s154_s2 }
 0x138   :  { %s11947_s10 = scalar_lea.hbm %s12460_s13, 1024 }
 0x139   :  { %p11948_p6 = scmp.ne.s32.totalorder %s12460_s13, %s11947_s10  ;;  %p11951_p7 = scmp.lt.u32.totalorder %s11947_s10, %s12460_s13 }
 0x13b   :  { %p11953_p8 = pnand %p11951_p7, %p11948_p6 }
 0x13d   :  { %11956 = shalt.err (!%p11953_p8)
}
 0x13e   :  { %s11957_s11 = scalar_lea.vmem %s126_s24, 1024  ;;  %p11962_p10 = scmp.lt.s32.totalorder %s126_s24, %s126_s24 }
 0x13f   :  { %p11958_p9 = scmp.ne.s32.totalorder %s126_s24, %s11957_s11  ;;  %p11963_p11 = scmp.lt.s32.totalorder %s11957_s11, %s11957_s11 }
 0x141   :  { %p11964_p12 = por %p11963_p11, %p11962_p10 }
 0x143   :  { %p11965_p13 = pnand %p11964_p12, %p11958_p9 }
 0x145   :  { %11968 = shalt.err (!%p11965_p13)
}
 0x146   :  { %s13880_s27 = sld [smem:[#allocation71_spill]] }
 0x147   :  { %131 = dma.hbm_to_vmem [thread:$0]  %s12460_s13, 1024, %s126_s24, [#allocation3], %s12404_s7, %s12404_s7, %s12405_s21  }
 0x14c   :  { %s11969_s0 = scalar_lea.hbm %s13880_s27, 16 }
 0x14d   :  { %p11970_p0 = scmp.ne.s32.totalorder %s13880_s27, %s11969_s0  ;;  %p11973_p1 = scmp.lt.u32.totalorder %s11969_s0, %s13880_s27 }
 0x14f   :  { %p11975_p2 = pnand %p11973_p1, %p11970_p0 }
 0x151   :  { %11978 = shalt.err (!%p11975_p2)
}
 0x152   :  { %s11979_s4 = scalar_lea.vmem %s155_s2, 16  ;;  %s11983_s15 = scalar_lea.vmem %s155_s2, 32 }
 0x153   :  { %p11980_p3 = scmp.ne.s32.totalorder %s155_s2, %s11979_s4  ;;  %p11984_p4 = scmp.lt.s32.totalorder %s155_s2, %s155_s2 }
 0x154   :  { %p11985_p5 = scmp.lt.s32.totalorder %s11983_s15, %s11979_s4 }
 0x156   :  { %p11986_p6 = por %p11985_p5, %p11984_p4 }
 0x158   :  { %p11987_p7 = pnand %p11986_p6, %p11980_p3 }
 0x15a   :  { %11990 = shalt.err (!%p11987_p7)
}
 0x15b   :  { %s13881_s30 = sld [smem:[#allocation73_spill]]  ;;  %s12422_s13 = smov [#allocation10]  }
 0x15c   :  { %157 = dma.hbm_to_vmem [thread:$0]  %s13880_s27, 16, %s155_s2, [#allocation6]  }
 0x15d   :  { %s178_s17 = sshll.u32 %s12422_s13, 4  ;;  %s12423_s16 = smov [#allocation13]   ;;  %s179_s17 = int_to_ptr.vmem [resolvable:$true] %s178_s17 }
 0x15e   :  { %s201_s18 = sshll.u32 %s12423_s16, 4  ;;  %s202_s18 = int_to_ptr.vmem [resolvable:$true] %s201_s18 }
 0x161   :  { %s11991_s22 = scalar_lea.hbm %s13881_s30, 16 }
 0x162   :  { %p11992_p8 = scmp.ne.s32.totalorder %s13881_s30, %s11991_s22  ;;  %p11995_p9 = scmp.lt.u32.totalorder %s11991_s22, %s13881_s30 }
 0x164   :  { %p11997_p10 = pnand %p11995_p9, %p11992_p8 }
 0x166   :  { %12000 = shalt.err (!%p11997_p10)
}
 0x167   :  { %s12001_s23 = scalar_lea.vmem %s179_s17, 16  ;;  %s12005_s6 = scalar_lea.vmem %s179_s17, 32 }
 0x168   :  { %p12002_p11 = scmp.ne.s32.totalorder %s179_s17, %s12001_s23  ;;  %p12006_p12 = scmp.lt.s32.totalorder %s179_s17, %s179_s17 }
 0x169   :  { %p12007_p13 = scmp.lt.s32.totalorder %s12005_s6, %s12001_s23 }
 0x16b   :  { %p12008_p0 = por %p12007_p13, %p12006_p12 }
 0x16d   :  { %p12009_p1 = pnand %p12008_p0, %p12002_p11 }
 0x16f   :  { %12012 = shalt.err (!%p12009_p1)
}
 0x170   :  { %s13882_s9 = sld [smem:[#allocation76_spill]] }
 0x171   :  { %181 = dma.hbm_to_vmem [thread:$0]  %s13881_s30, 16, %s179_s17, [#allocation9]  }
 0x176   :  { %s12013_s25 = scalar_lea.hbm %s13882_s9, 128 }
 0x177   :  { %p12014_p2 = scmp.ne.s32.totalorder %s13882_s9, %s12013_s25  ;;  %p12017_p3 = scmp.lt.u32.totalorder %s12013_s25, %s13882_s9 }
 0x179   :  { %p12019_p4 = pnand %p12017_p3, %p12014_p2 }
 0x17b   :  { %12022 = shalt.err (!%p12019_p4)
}
 0x17c   :  { %s12023_s26 = scalar_lea.vmem %s202_s18, 128  ;;  %p12028_p6 = scmp.lt.s32.totalorder %s202_s18, %s202_s18 }
 0x17d   :  { %p12024_p5 = scmp.ne.s32.totalorder %s202_s18, %s12023_s26  ;;  %p12029_p7 = scmp.lt.s32.totalorder %s12023_s26, %s12023_s26 }
 0x17f   :  { %p12030_p8 = por %p12029_p7, %p12028_p6 }
 0x181   :  { %p12031_p9 = pnand %p12030_p8, %p12024_p5 }
 0x183   :  { %12034 = shalt.err (!%p12031_p9)
}
 0x184   :  { %s13883_s29 = sld [smem:[#allocation77_spill]]  ;;  %s12424_s24 = smov [#allocation16]  }
 0x185   :  { %207 = dma.hbm_to_vmem [thread:$0]  %s13882_s9, 128, %s202_s18, [#allocation12], %s12416_s8, %s12416_s8, %s12417_s5  }
 0x186   :  { %s226_s20 = sshll.u32 %s12424_s24, 4  ;;  %s12425_s2 = smov [#allocation19]   ;;  %s227_s20 = int_to_ptr.vmem [resolvable:$true] %s226_s20 }
 0x187   :  { %s250_s10 = sshll.u32 %s12425_s2, 4  ;;  %s251_s10 = int_to_ptr.vmem [resolvable:$true] %s250_s10 }
 0x18a   :  { %s12035_s11 = scalar_lea.hbm %s13883_s29, 16 }
 0x18b   :  { %p12036_p10 = scmp.ne.s32.totalorder %s13883_s29, %s12035_s11  ;;  %p12039_p11 = scmp.lt.u32.totalorder %s12035_s11, %s13883_s29 }
 0x18d   :  { %p12041_p12 = pnand %p12039_p11, %p12036_p10 }
 0x18f   :  { %12044 = shalt.err (!%p12041_p12)
}
 0x190   :  { %s12045_s27 = scalar_lea.vmem %s227_s20, 16  ;;  %s12049_s0 = scalar_lea.vmem %s227_s20, 32 }
 0x191   :  { %p12046_p13 = scmp.ne.s32.totalorder %s227_s20, %s12045_s27  ;;  %p12050_p0 = scmp.lt.s32.totalorder %s227_s20, %s227_s20 }
 0x192   :  { %p12051_p1 = scmp.lt.s32.totalorder %s12049_s0, %s12045_s27 }
 0x194   :  { %p12052_p2 = por %p12051_p1, %p12050_p0 }
 0x196   :  { %p12053_p3 = pnand %p12052_p2, %p12046_p13 }
 0x198   :  { %12056 = shalt.err (!%p12053_p3)
}
 0x199   :  { %s13884_s8 = sld [smem:[#allocation79_spill]] }
 0x19a   :  { %229 = dma.hbm_to_vmem [thread:$0]  %s13883_s29, 16, %s227_s20, [#allocation15]  }
 0x19f   :  { %s12057_s5 = scalar_lea.hbm %s13884_s8, 16 }
 0x1a0   :  { %p12058_p4 = scmp.ne.s32.totalorder %s13884_s8, %s12057_s5  ;;  %p12061_p5 = scmp.lt.u32.totalorder %s12057_s5, %s13884_s8 }
 0x1a2   :  { %p12063_p6 = pnand %p12061_p5, %p12058_p4 }
 0x1a4   :  { %12066 = shalt.err (!%p12063_p6)
}
 0x1a5   :  { %s12067_s4 = scalar_lea.vmem %s251_s10, 16  ;;  %s12071_s15 = scalar_lea.vmem %s251_s10, 32 }
 0x1a6   :  { %p12068_p7 = scmp.ne.s32.totalorder %s251_s10, %s12067_s4  ;;  %p12072_p8 = scmp.lt.s32.totalorder %s251_s10, %s251_s10 }
 0x1a7   :  { %p12073_p9 = scmp.lt.s32.totalorder %s12071_s15, %s12067_s4 }
 0x1a9   :  { %p12074_p10 = por %p12073_p9, %p12072_p8 }
 0x1ab   :  { %p12075_p11 = pnand %p12074_p10, %p12068_p7 }
 0x1ad   :  { %12078 = shalt.err (!%p12075_p11)
}
 0x1ae   :  { %s13885_s30 = sld [smem:[#allocation80_spill]]  ;;  %s12426_s13 = smov [#allocation22]  }
 0x1af   :  { %253 = dma.hbm_to_vmem [thread:$0]  %s13884_s8, 16, %s251_s10, [#allocation18]  }
 0x1b0   :  { %s272_s17 = sshll.u32 %s12426_s13, 4  ;;  %s12427_s16 = smov [#allocation25]   ;;  %s273_s17 = int_to_ptr.vmem [resolvable:$true] %s272_s17 }
 0x1b1   :  { %s294_s18 = sshll.u32 %s12427_s16, 4  ;;  %s295_s18 = int_to_ptr.vmem [resolvable:$true] %s294_s18 }
 0x1b4   :  { %s12079_s22 = scalar_lea.hbm %s13885_s30, 16 }
 0x1b5   :  { %p12080_p12 = scmp.ne.s32.totalorder %s13885_s30, %s12079_s22  ;;  %p12083_p13 = scmp.lt.u32.totalorder %s12079_s22, %s13885_s30 }
 0x1b7   :  { %p12085_p0 = pnand %p12083_p13, %p12080_p12 }
 0x1b9   :  { %12088 = shalt.err (!%p12085_p0)
}
 0x1ba   :  { %s12089_s23 = scalar_lea.vmem %s273_s17, 16  ;;  %s12093_s6 = scalar_lea.vmem %s273_s17, 32 }
 0x1bb   :  { %p12090_p1 = scmp.ne.s32.totalorder %s273_s17, %s12089_s23  ;;  %p12094_p2 = scmp.lt.s32.totalorder %s273_s17, %s273_s17 }
 0x1bc   :  { %p12095_p3 = scmp.lt.s32.totalorder %s12093_s6, %s12089_s23 }
 0x1be   :  { %p12096_p4 = por %p12095_p3, %p12094_p2 }
 0x1c0   :  { %p12097_p5 = pnand %p12096_p4, %p12090_p1 }
 0x1c2   :  { %12100 = shalt.err (!%p12097_p5)
}
 0x1c3   :  { %s13886_s9 = sld [smem:[#allocation81_spill]] }
 0x1c4   :  { %275 = dma.hbm_to_vmem [thread:$0]  %s13885_s30, 16, %s273_s17, [#allocation21]  }
 0x1c9   :  { %s12101_s25 = scalar_lea.hbm %s13886_s9, 16 }
 0x1ca   :  { %p12102_p6 = scmp.ne.s32.totalorder %s13886_s9, %s12101_s25  ;;  %p12105_p7 = scmp.lt.u32.totalorder %s12101_s25, %s13886_s9 }
 0x1cc   :  { %p12107_p8 = pnand %p12105_p7, %p12102_p6 }
 0x1ce   :  { %12110 = shalt.err (!%p12107_p8)
}
 0x1cf   :  { %s12111_s26 = scalar_lea.vmem %s295_s18, 16  ;;  %s12115_s29 = scalar_lea.vmem %s295_s18, 32 }
 0x1d0   :  { %p12112_p9 = scmp.ne.s32.totalorder %s295_s18, %s12111_s26  ;;  %p12116_p10 = scmp.lt.s32.totalorder %s295_s18, %s295_s18 }
 0x1d1   :  { %p12117_p11 = scmp.lt.s32.totalorder %s12115_s29, %s12111_s26 }
 0x1d3   :  { %p12118_p12 = por %p12117_p11, %p12116_p10 }
 0x1d5   :  { %p12119_p13 = pnand %p12118_p12, %p12112_p9 }
 0x1d7   :  { %12122 = shalt.err (!%p12119_p13)
}
 0x1d8   :  { %s13887_s24 = sld [smem:[#allocation82_spill]]  ;;  %s12428_s20 = smov [#allocation28]  }
 0x1d9   :  { %297 = dma.hbm_to_vmem [thread:$0]  %s13886_s9, 16, %s295_s18, [#allocation24]  }
 0x1da   :  { %s316_s2 = sshll.u32 %s12428_s20, 4  ;;  %s12429_s10 = smov [#allocation31]   ;;  %s317_s2 = int_to_ptr.vmem [resolvable:$true] %s316_s2 }
 0x1db   :  { %s337_s11 = sshll.u32 %s12429_s10, 4  ;;  %s338_s11 = int_to_ptr.vmem [resolvable:$true] %s337_s11 }
 0x1de   :  { %s12123_s27 = scalar_lea.hbm %s13887_s24, 16 }
 0x1df   :  { %p12124_p0 = scmp.ne.s32.totalorder %s13887_s24, %s12123_s27  ;;  %p12127_p1 = scmp.lt.u32.totalorder %s12123_s27, %s13887_s24 }
 0x1e1   :  { %p12129_p2 = pnand %p12127_p1, %p12124_p0 }
 0x1e3   :  { %12132 = shalt.err (!%p12129_p2)
}
 0x1e4   :  { %s12133_s0 = scalar_lea.vmem %s317_s2, 16  ;;  %s12137_s8 = scalar_lea.vmem %s317_s2, 32 }
 0x1e5   :  { %p12134_p3 = scmp.ne.s32.totalorder %s317_s2, %s12133_s0  ;;  %p12138_p4 = scmp.lt.s32.totalorder %s317_s2, %s317_s2 }
 0x1e6   :  { %p12139_p5 = scmp.lt.s32.totalorder %s12137_s8, %s12133_s0 }
 0x1e8   :  { %p12140_p6 = por %p12139_p5, %p12138_p4 }
 0x1ea   :  { %p12141_p7 = pnand %p12140_p6, %p12134_p3 }
 0x1ec   :  { %12144 = shalt.err (!%p12141_p7)
}
 0x1ed   :  { %s13888_s5 = sld [smem:[#allocation83_spill]] }
 0x1ee   :  { %319 = dma.hbm_to_vmem [thread:$0]  %s13887_s24, 16, %s317_s2, [#allocation27]  }
 0x1f3   :  { %s12145_s4 = scalar_lea.hbm %s13888_s5, 32 }
 0x1f4   :  { %p12146_p8 = scmp.ne.s32.totalorder %s13888_s5, %s12145_s4  ;;  %p12149_p9 = scmp.lt.u32.totalorder %s12145_s4, %s13888_s5 }
 0x1f6   :  { %p12151_p10 = pnand %p12149_p9, %p12146_p8 }
 0x1f8   :  { %12154 = shalt.err (!%p12151_p10)
}
 0x1f9   :  { %s12155_s15 = scalar_lea.vmem %s338_s11, 32  ;;  %p12160_p12 = scmp.lt.s32.totalorder %s338_s11, %s338_s11 }
 0x1fa   :  { %p12156_p11 = scmp.ne.s32.totalorder %s338_s11, %s12155_s15  ;;  %p12161_p13 = scmp.lt.s32.totalorder %s12155_s15, %s12155_s15 }
 0x1fc   :  { %p12162_p0 = por %p12161_p13, %p12160_p12 }
 0x1fe   :  { %p12163_p1 = pnand %p12162_p0, %p12156_p11 }
 0x200   :  { %12166 = shalt.err (!%p12163_p1)
}
 0x201   :  { %s13889_s30 = sld [smem:[#allocation85_spill]]  ;;  %s12430_s13 = smov [#allocation34]  }
 0x202   :  { %343 = dma.hbm_to_vmem [thread:$0]  %s13888_s5, 32, %s338_s11, [#allocation30], %s12408_s28, %s12408_s28, %s12409_s1  }
 0x203   :  { %s363_s17 = sshll.u32 %s12430_s13, 4  ;;  %s12431_s16 = smov [#allocation37]   ;;  %s364_s17 = int_to_ptr.vmem [resolvable:$true] %s363_s17 }
 0x204   :  { %s387_s18 = sshll.u32 %s12431_s16, 4  ;;  %s388_s18 = int_to_ptr.vmem [resolvable:$true] %s387_s18 }
 0x207   :  { %s12167_s22 = scalar_lea.hbm %s13889_s30, 2048 }
 0x208   :  { %p12168_p2 = scmp.ne.s32.totalorder %s13889_s30, %s12167_s22  ;;  %p12171_p3 = scmp.lt.u32.totalorder %s12167_s22, %s13889_s30 }
 0x20a   :  { %p12173_p4 = pnand %p12171_p3, %p12168_p2 }
 0x20c   :  { %12176 = shalt.err (!%p12173_p4)
}
 0x20d   :  { %s12177_s23 = scalar_lea.vmem %s364_s17, 2048  ;;  %p12182_p6 = scmp.lt.s32.totalorder %s364_s17, %s364_s17 }
 0x20e   :  { %p12178_p5 = scmp.ne.s32.totalorder %s364_s17, %s12177_s23  ;;  %p12183_p7 = scmp.lt.s32.totalorder %s12177_s23, %s12177_s23 }
 0x210   :  { %p12184_p8 = por %p12183_p7, %p12182_p6 }
 0x212   :  { %p12185_p9 = pnand %p12184_p8, %p12178_p5 }
 0x214   :  { %12188 = shalt.err (!%p12185_p9)
}
 0x215   :  { %s13890_s28 = sld [smem:[#allocation87_spill]] }
 0x216   :  { %369 = dma.hbm_to_vmem [thread:$0]  %s13889_s30, 2048, %s364_s17, [#allocation33], %s12404_s7, %s12404_s7, %s12405_s21  }
 0x21b   :  { %s12189_s1 = scalar_lea.hbm %s13890_s28, 2048 }
 0x21c   :  { %p12190_p10 = scmp.ne.s32.totalorder %s13890_s28, %s12189_s1  ;;  %p12193_p11 = scmp.lt.u32.totalorder %s12189_s1, %s13890_s28 }
 0x21e   :  { %p12195_p12 = pnand %p12193_p11, %p12190_p10 }
 0x220   :  { %12198 = shalt.err (!%p12195_p12)
}
 0x221   :  { %s12199_s6 = scalar_lea.vmem %s388_s18, 2048  ;;  %p12204_p0 = scmp.lt.s32.totalorder %s388_s18, %s388_s18 }
 0x222   :  { %p12200_p13 = scmp.ne.s32.totalorder %s388_s18, %s12199_s6  ;;  %p12205_p1 = scmp.lt.s32.totalorder %s12199_s6, %s12199_s6 }
 0x224   :  { %p12206_p2 = por %p12205_p1, %p12204_p0 }
 0x226   :  { %p12207_p3 = pnand %p12206_p2, %p12200_p13 }
 0x228   :  { %12210 = shalt.err (!%p12207_p3)
}
 0x229   :  { %s13891_s9 = sld [smem:[#allocation89_spill]]  ;;  %s12432_s25 = smov [#allocation40]  }
 0x22a   :  { %393 = dma.hbm_to_vmem [thread:$0]  %s13890_s28, 2048, %s388_s18, [#allocation36], %s12404_s7, %s12404_s7, %s12405_s21  }
 0x22b   :  { %s411_s26 = sshll.u32 %s12432_s25, 4  ;;  %s412_s26 = int_to_ptr.vmem [resolvable:$true] %s411_s26 }
 0x22f   :  { %s12211_s29 = scalar_lea.hbm %s13891_s9, 8192 }
 0x230   :  { %p12212_p4 = scmp.ne.s32.totalorder %s13891_s9, %s12211_s29  ;;  %p12215_p5 = scmp.lt.u32.totalorder %s12211_s29, %s13891_s9 }
 0x232   :  { %p12217_p6 = pnand %p12215_p5, %p12212_p4 }
 0x234   :  { %12220 = shalt.err (!%p12217_p6)
}
 0x235   :  { %s12221_s24 = scalar_lea.vmem %s412_s26, 8192  ;;  %p12226_p8 = scmp.lt.s32.totalorder %s412_s26, %s412_s26 }
 0x236   :  { %p12222_p7 = scmp.ne.s32.totalorder %s412_s26, %s12221_s24  ;;  %p12227_p9 = scmp.lt.s32.totalorder %s12221_s24, %s12221_s24 }
 0x238   :  { %p12228_p10 = por %p12227_p9, %p12226_p8 }
 0x23a   :  { %p12229_p11 = pnand %p12228_p10, %p12222_p7 }
 0x23c   :  { %12232 = shalt.err (!%p12229_p11)
}
 0x23d   :  { %s12433_s20 = smov 128   ;;  %s13892_s2 = sld [smem:[#allocation92_spill]] }
 0x23e   :  { %s12434_s10 = smov 8   ;;  %s12435_s11 = smov [#allocation43]  }
 0x23f   :  { %417 = dma.hbm_to_vmem [thread:$0]  %s13891_s9, 8192, %s412_s26, [#allocation39], %s12433_s20, %s12433_s20, %s12434_s10  }
 0x240   :  { %s438_s27 = sshll.u32 %s12435_s11, 4  ;;  %s12436_s0 = smov [#allocation44]   ;;  %s439_s27 = int_to_ptr.vmem [resolvable:$true] %s438_s27 }
 0x241   :  { %s447_s8 = sshll.u32 %s12436_s0, 4  ;;  %s12825_s8 = int_to_ptr.vmem [resolvable:$true] %s447_s8 }
 0x243   :  { %s12233_s5 = scalar_lea.hbm %s13892_s2, 32 }
 0x244   :  { %p12234_p12 = scmp.ne.s32.totalorder %s13892_s2, %s12233_s5  ;;  %p12237_p13 = scmp.lt.u32.totalorder %s12233_s5, %s13892_s2 }
 0x246   :  { %p12239_p0 = pnand %p12237_p13, %p12234_p12 }
 0x248   :  { %12242 = shalt.err (!%p12239_p0)
}
 0x249   :  { %s12243_s4 = scalar_lea.vmem %s439_s27, 32  ;;  %p12248_p2 = scmp.lt.s32.totalorder %s439_s27, %s439_s27 }
 0x24a   :  { %p12244_p1 = scmp.ne.s32.totalorder %s439_s27, %s12243_s4  ;;  %p12249_p3 = scmp.lt.s32.totalorder %s12243_s4, %s12243_s4 }
 0x24c   :  { %p12250_p4 = por %p12249_p3, %p12248_p2 }
 0x24e   :  { %p12251_p5 = pnand %p12250_p4, %p12244_p1 }
 0x250   :  { %12254 = shalt.err (!%p12251_p5)
}
 0x251   :  { %s13893_s15 = sld [smem:[#allocation93_spill]] }
 0x252   :  { %441 = dma.hbm_to_vmem [thread:$0]  %s13892_s2, 32, %s439_s27, [#allocation42]  }
 0x257   :  { %s12255_s30 = scalar_lea.hbm %s13893_s15, 1024 }
 0x258   :  { %p12256_p6 = scmp.ne.s32.totalorder %s13893_s15, %s12255_s30  ;;  %p12259_p7 = scmp.lt.u32.totalorder %s12255_s30, %s13893_s15 }
 0x25a   :  { %p12261_p8 = pnand %p12259_p7, %p12256_p6 }
 0x25c   :  { %12264 = shalt.err (!%p12261_p8)
}
 0x25d   :  { %s12265_s13 = scalar_lea.vmem %s12825_s8, 1024  ;;  %p12270_p10 = scmp.lt.s32.totalorder %s12825_s8, %s12825_s8 }
 0x25e   :  { %p12266_p9 = scmp.ne.s32.totalorder %s12825_s8, %s12265_s13  ;;  %p12271_p11 = scmp.lt.s32.totalorder %s12265_s13, %s12265_s13 }
 0x260   :  { %p12272_p12 = por %p12271_p11, %p12270_p10 }
 0x262   :  { %p12273_p13 = pnand %p12272_p12, %p12266_p9 }
 0x264   :  { %12276 = shalt.err (!%p12273_p13)
}
 0x265   :  { %453 = dma.hbm_to_vmem [thread:$0]  %s13893_s15, 1024, %s12825_s8, [#allocation45], %s12404_s7, %s12404_s7, %s12405_s21  }
 0x266   :  { %12321 = dma.done.wait [#allocation3], 1024  }
 0x267   :  { %12322 = vsyncadd [#allocation3], 4294966272 }
 0x268   :  { %12323 = dma.done.wait [#allocation6], 48  }
 0x269   :  { %12324 = vsyncadd [#allocation6], 4294967248 }
 0x26a   :  { %12325 = dma.done.wait [#allocation9], 272  }
 0x26b   :  { %12326 = vsyncadd [#allocation9], 4294967024 }
 0x26c   :  { %12327 = dma.done.wait [#allocation12], 144  }
 0x26d   :  { %12328 = vsyncadd [#allocation12], 4294967152 }
 0x26e   :  { %12329 = dma.done.wait [#allocation15], 2064  }
 0x26f   :  { %12330 = vsyncadd [#allocation15], 4294965232 }
 0x270   :  { %12331 = dma.done.wait [#allocation18], 48  }
 0x271   :  { %12332 = vsyncadd [#allocation18], 4294967248 }
 0x272   :  { %12333 = dma.done.wait [#allocation21], 144  }
 0x273   :  { %12334 = vsyncadd [#allocation21], 4294967152 }
 0x274   :  { %12335 = dma.done.wait [#allocation24], 144  }
 0x275   :  { %12336 = vsyncadd [#allocation24], 4294967152 }
 0x276   :  { %12337 = dma.done.wait [#allocation27], 144  }
 0x277   :  { %12338 = vsyncadd [#allocation27], 4294967152 }
 0x278   :  { %12339 = dma.done.wait [#allocation30], 288  }
 0x279   :  { %12340 = vsyncadd [#allocation30], 4294967008 }
 0x27a   :  { %12341 = dma.done.wait [#allocation33], 2176  }
 0x27b   :  { %12342 = vsyncadd [#allocation33], 4294965120 }
 0x27c   :  { %12343 = dma.done.wait [#allocation36], 2064  }
 0x27d   :  { %12344 = vsyncadd [#allocation36], 4294965232 }
 0x27e   :  { %12345 = dma.done.wait [#allocation39], 8208  }
 0x27f   :  { %12346 = vsyncadd [#allocation39], 4294959088 }
 0x280   :  { %12347 = dma.done.wait [#allocation42], 64  }
 0x281   :  { %12348 = vsyncadd [#allocation42], 4294967232 }
 0x282   :  { %12349 = dma.done.wait [#allocation45], 1024  }
 0x283   :  { %12350 = vsyncadd [#allocation45], 4294966272  ;;  %s13894_s7 = sld [smem:[#allocation66_spill]]  ;;  %vm573_vm0 = vcmask 261120   ;;  %v11050_v2 = vld [vmem:[#allocation2] sm:$0xff]   ;;  %v11051_v3 = vld [vmem:[#allocation2 + $0x8] sm:$0xff]  }
 0x284   :  { %10343 = vmatprep.mubr.msk.bf16.mxu1 %vm573_vm0, %v11050_v2  ;;  %v11052_v4 = vld [vmem:[#allocation2 + $0x10] sm:$0xff]   ;;  %v11053_v5 = vld [vmem:[#allocation2 + $0x18] sm:$0xff]   ;;  %v11054_v6 = vld [vmem:[#allocation2 + $0x20] sm:$0xff]   ;;  %s13895_s21 = sld [smem:[#allocation68_spill]]  ;;  %v12437_v16 = vmov 0   ;;  %vm746_vm1 = vcmask 392192  }
 0x285   :  { %v11055_v7 = vld [vmem:[#allocation2 + $0x28] sm:$0xff]   ;;  %v11056_v8 = vld [vmem:[#allocation2 + $0x30] sm:$0xff]   ;;  %v11057_v9 = vld [vmem:[#allocation2 + $0x38] sm:$0xff]   ;;  %785 = vmatprep.mubr.bf16.mxu0 %v12437_v16  ;;  %s13896_s17 = sld [smem:[#allocation70_spill]]  ;;  %s13897_s16 = sld [smem:[#allocation69_spill]]  ;;  %vm12439_vm2 = vmmov 0  }
 0x286   :  { %s13898_s18 = sld [smem:[#allocation72_spill]]  ;;  %vm2198_vm3 = vcmask 130048   ;;  %s13899_s22 = sld [smem:[#allocation75_spill]]  ;;  %vm2817_vm4 = vcmask 1043456   ;;  %vm2813_vm5 = vcmask 64512   ;;  %vm3436_vm6 = vcmask 1041408  }
 0x287   :  { %s13900_s23 = sld [smem:[#allocation74_spill]]  ;;  %vm3432_vm7 = vcmask 31744   ;;  %vm3568_vm8 = vcmask 523264   ;;  %s13901_s28 = sld [smem:[#allocation78_spill]]  ;;  %vm4303_vm9 = vcmask 123904   ;;  %vm4498_vm10 = vcmask 1040384  }
 0x288   :  { %s13902_s1 = sld [smem:[#allocation67_spill]]  ;;  %s13903_s6 = sld [smem:[#allocation84_spill]]  ;;  %vm4494_vm11 = vcmask 15360  }
 0x289   :  { %v11048_v0 = vld [vmem:[%s13894_s7] sm:$0xff]   ;;  %v11049_v1 = vld [vmem:[%s13894_s7 + $0x8] sm:$0xff]   ;;  %s13904_s9 = sld [smem:[#allocation86_spill]]  ;;  %s13905_s25 = sld [smem:[#allocation88_spill]] }
 0x28a   :  { %10339 = vmatprep.subr.bf16.mxu1 %v11048_v0  ;;  %v11058_v10 = vld [vmem:[%s13895_s21 + $0x34] ss:$8 sps:$4 sm:$0xff]   ;;  %v11060_v11 = vld [vmem:[%s13895_s21 + $0x30] ss:$8 sps:$4 sm:$0xff]   ;;  %v11061_v12 = vld [vmem:[%s13895_s21 + $0x44] ss:$8 sps:$4 sm:$0xff]  }
 0x28b   :  { %10340 = vmatpush3.bf16.msra.mxu1 %v11048_v0  ;;  %753 = vmatprep.subr.bf16.mxu0 %v11058_v10  ;;  %v11063_v13 = vld [vmem:[%s13895_s21 + $0x40] ss:$8 sps:$4 sm:$0xff]   ;;  %v11064_v14 = vld [vmem:[%s13895_s21 + $0x54] ss:$8 sps:$4 sm:$0xff]   ;;  %v11066_v15 = vld [vmem:[%s13895_s21 + $0x50] ss:$8 sps:$4 sm:$0xff]  }
 0x28c   :  { %10341 = vmatprep.subr.bf16.mxu1 %v11049_v1  ;;  %754 = vmatpush1.bf16.msra.mxu0 %v11060_v11  ;;  %v11069_v17 = vld [vmem:[%s13895_s21 + $0x4] ss:$8 sps:$4 sm:$0xff]   ;;  %v11067_v26 = vld [vmem:[%s13895_s21] ss:$8 sps:$4 sm:$0xff]   ;;  %v11072_v28 = vld [vmem:[%s13895_s21 + $0x14] ss:$8 sps:$4 sm:$0xff]   ;;  %v1249_v11 = vlaneseq }
 0x28d   :  { %755 = vmatprep.subr.bf16.mxu0 %v11061_v12  ;;  %v11070_v32 = vld [vmem:[%s13895_s21 + $0x10] ss:$8 sps:$4 sm:$0xff]   ;;  %v11075_v33 = vld [vmem:[%s13895_s21 + $0x24] ss:$8 sps:$4 sm:$0xff]   ;;  %v11073_v35 = vld [vmem:[%s13895_s21 + $0x20] ss:$8 sps:$4 sm:$0xff]  }
 0x28e   :  { %v11078_v37 = vld [vmem:[%s13895_s21 + $0x64] ss:$8 sps:$4 sm:$0xff]   ;;  %v11076_v43 = vld [vmem:[%s13895_s21 + $0x60] ss:$8 sps:$4 sm:$0xff]   ;;  %v11081_v45 = vld [vmem:[%s13895_s21 + $0x74] ss:$8 sps:$4 sm:$0xff]  }
 0x28f   :  { %10342 = vmatpush3.bf16.msra.mxu1 %v11049_v1  ;;  %v11079_v50 = vld [vmem:[%s13895_s21 + $0x70] ss:$8 sps:$4 sm:$0xff]   ;;  %v11084_v51 = vld [vmem:[%s13895_s21 + $0x84] ss:$8 sps:$4 sm:$0xff]   ;;  %v11082_v52 = vld [vmem:[%s13895_s21 + $0x80] ss:$8 sps:$4 sm:$0xff]  }
 0x290   :  { %10347 = vmatprep.subr.bf16.mxu1 %v11048_v0  ;;  %756 = vmatpush1.bf16.msra.mxu0 %v11063_v13  ;;  %v11087_v53 = vld [vmem:[%s13895_s21 + $0x94] ss:$8 sps:$4 sm:$0xff]   ;;  %v11085_v54 = vld [vmem:[%s13895_s21 + $0x90] ss:$8 sps:$4 sm:$0xff]   ;;  %v11090_v55 = vld [vmem:[%s13895_s21 + $0xa4] ss:$8 sps:$4 sm:$0xff]  }
 0x291   :  { %757 = vmatprep.subr.bf16.mxu0 %v11064_v14  ;;  %v11088_v56 = vld [vmem:[%s13895_s21 + $0xa0] ss:$8 sps:$4 sm:$0xff]   ;;  %v11093_v57 = vld [vmem:[%s13895_s21 + $0xb4] ss:$8 sps:$4 sm:$0xff]   ;;  %v11091_v58 = vld [vmem:[%s13895_s21 + $0xb0] ss:$8 sps:$4 sm:$0xff]  }
 0x292   :  { %10344 = vmatmul.mubr.msk.bf16.vlgmr.msra.gmra.mrb[0].mxu1 %vm573_vm0, %v11051_v3  ;;  %v11094_v59 = vld [vmem:[%s13896_s17 + $0x40] sm:$0xff]   ;;  %v11096_v61 = vld [vmem:[%s13896_s17 + $0x48] sm:$0xff]   ;;  %v11098_v63 = vld [vmem:[%s13896_s17 + $0x50] sm:$0xff]   ;;  %v1250_v12 = vshrl.u32 %v1249_v11, 7  ;;  %s13906_s26 = sld [smem:[#allocation90_spill]]  ;;  %s13907_s29 = sld [smem:[#allocation91_spill]] }
 0x293   :  { %10348 = vmatpush3.bf16.msra.mxu1 %v11048_v0  ;;  %10351 = vmatprep.mubr.msk.bf16.mxu1 %vm573_vm0, %v11052_v4  ;;  %v11095_v60 = vld [vmem:[%s13896_s17] sm:$0xff]   ;;  %v11097_v62 = vld [vmem:[%s13896_s17 + $0x8] sm:$0xff]   ;;  %v11101_v2 = vld [vmem:[%s13896_s17 + $0x18] sm:$0xff]   ;;  %s13908_s24 = sld [smem:[#allocation94_spill]]  ;;  %s12440_s20 = smov [#allocation46]  }
 0x294   :  { %10349 = vmatprep.subr.bf16.mxu1 %v11049_v1  ;;  %758 = vmatpush1.bf16.msra.mxu0 %v11066_v15  ;;  %v11102_v3 = vld [vmem:[%s13896_s17 + $0x60] sm:$0xff]   ;;  %v11109_v10 = vld [vmem:[%s13896_s17 + $0x38] sm:$0xff]   ;;  %v12910_v13 = vsub.s32 0, %v1250_v12  ;;  %v12912_v15 = vsub.s32 1, %v1250_v12  ;;  %s8788_s2 = sshll.u32 %s12440_s20, 4  ;;  %s12441_s10 = smov [#allocation47]   ;;  %s8789_s2 = int_to_ptr.vmem [resolvable:$true] %s8788_s2 }
 0x295   :  { %842 = vmatprep.subr.bf16.mxu0 %v11069_v17  ;;  %v11103_v4 = vld [vmem:[%s13896_s17 + $0x20] sm:$0xff]   ;;  %s8798_s11 = sshll.u32 %s12441_s10, 4  ;;  %s12277_s27 = scalar_lea.vmem %s8789_s2, 32  ;;  %s8799_s11 = int_to_ptr.vmem [resolvable:$true] %s8798_s11 }
 0x296   :  { %v1247_v14 = vld [vmem:[#allocation5] sm:$0x3]  ;;  %p12278_p0 = scmp.ne.s32.totalorder %s8789_s2, %s12277_s27  ;;  %p12282_p1 = scmp.lt.s32.totalorder %s8789_s2, %s8789_s2 }
 0x297   :  { %10350 = vmatpush3.bf16.msra.mxu1 %v11049_v1  ;;  %v1252_v17 = vrot.slane %v1247_v14, %v12910_v13  ;;  %p12283_p2 = scmp.lt.s32.totalorder %s12277_s27, %s12277_s27 }
 0x298   :  { %10355 = vmatprep.subr.bf16.mxu1 %v11048_v0 }
 0x299   :  { %p12284_p3 = por %p12283_p2, %p12282_p1 }
 0x29a   :  { %10352 = vmatmul.mubr.msk.bf16.vlgmr.msra.gmra.mrb[4].mxu1 %vm573_vm0, %v11053_v5  ;;  %v11104_v5 = vld [vmem:[%s13896_s17 + $0x68] sm:$0xff]  }
 0x29b   :  { %10356 = vmatpush3.bf16.msra.mxu1 %v11048_v0  ;;  %10359 = vmatprep.mubr.msk.bf16.mxu1 %vm573_vm0, %v11054_v6  ;;  %v11105_v6 = vld [vmem:[%s13896_s17 + $0x28] sm:$0xff]   ;;  %p12285_p4 = pnand %p12284_p3, %p12278_p0 }
 0x29c   :  { %10357 = vmatprep.subr.bf16.mxu1 %v11049_v1 }
 0x29f   :  { %10358 = vmatpush3.bf16.msra.mxu1 %v11049_v1 }
 0x2a0   :  { %10363 = vmatprep.subr.bf16.mxu1 %v11048_v0 }
 0x2a2   :  { %10360 = vmatmul.mubr.msk.bf16.vlgmr.msra.gmra.mrb[8].mxu1 %vm573_vm0, %v11055_v7  ;;  %v11106_v7 = vld [vmem:[%s13896_s17 + $0x70] sm:$0xff]  }
 0x2a3   :  { %10364 = vmatpush3.bf16.msra.mxu1 %v11048_v0  ;;  %10367 = vmatprep.mubr.msk.bf16.mxu1 %vm573_vm0, %v11056_v8  ;;  %v11099_v0 = vld [vmem:[%s13896_s17 + $0x10] sm:$0xff]  }
 0x2a4   :  { %10365 = vmatprep.subr.bf16.mxu1 %v11049_v1  ;;  %v11107_v8 = vld [vmem:[%s13896_s17 + $0x30] sm:$0xff]  }
 0x2a7   :  { %10366 = vmatpush3.bf16.msra.mxu1 %v11049_v1  ;;  %v11100_v1 = vld [vmem:[%s13896_s17 + $0x58] sm:$0xff]  }
 0x2aa   :  { %10368 = vmatmul.mubr.msk.bf16.vlgmr.msra.gmra.mrb[12].mxu1 %vm573_vm0, %v11057_v9  ;;  %v11108_v9 = vld [vmem:[%s13896_s17 + $0x78] sm:$0xff]  }
 0x2ab   :  { %1321 = vmatprep.mubr.bf16.mxu1 %v12437_v16 }
 0x365   :  { %v10345_v18 = vpop.f32.mrb[0].mxu1 }
 0x366   :  { %v614_v19 = vpop.f32.mrb[1].mxu1 }
 0x367   :  { %v10346_v20 = vpop.f32.mrb[2].mxu1 }
 0x368   :  { %v630_v21 = vpack.c.bf16 %v10346_v20, %v10345_v18  ;;  %v617_v22 = vpop.f32.mrb[3].mxu1  ;;  %v1256_v18 = vrot.slane %v1247_v14, %v12912_v15  ;;  %v11128_v14 = vld [vmem:[%s13897_s16 + $0x18] sm:$0xff]  }
 0x369   :  { %v629_v23 = vpack.c.bf16 %v617_v22, %v614_v19 }
 0x36d   :  { %v10353_v24 = vpop.f32.mrb[4].mxu1 }
 0x36e   :  { %v692_v25 = vpop.f32.mrb[5].mxu1 }
 0x36f   :  { %v10354_v27 = vpop.f32.mrb[6].mxu1 }
 0x370   :  { %v708_v29 = vpack.c.bf16 %v10354_v27, %v10353_v24  ;;  %v695_v30 = vpop.f32.mrb[7].mxu1 }
 0x371   :  { %v707_v31 = vpack.c.bf16 %v695_v30, %v692_v25 }
 0x373   :  { %8897 = vmatmul.mubr.msk.bf16.vlgmr.msra.gmra.mrb[0].mxu0 %vm746_vm1, %v707_v31 }
 0x374   :  { %843 = vmatpush1.bf16.msra.mxu0 %v11067_v26  ;;  %795 = vmatprep.mubr.bf16.mxu0 %v12437_v16 }
 0x375   :  { %844 = vmatprep.subr.bf16.mxu0 %v11072_v28  ;;  %v10361_v34 = vpop.f32.mrb[8].mxu1 }
 0x376   :  { %v950_v36 = vpop.f32.mrb[9].mxu1 }
 0x377   :  { %v10362_v38 = vpop.f32.mrb[10].mxu1 }
 0x378   :  { %845 = vmatpush1.bf16.msra.mxu0 %v11070_v32  ;;  %v966_v39 = vpack.c.bf16 %v10362_v38, %v10361_v34  ;;  %v953_v40 = vpop.f32.mrb[11].mxu1 }
 0x379   :  { %846 = vmatprep.subr.bf16.mxu0 %v11075_v33  ;;  %v965_v41 = vpack.c.bf16 %v953_v40, %v950_v36 }
 0x37b   :  { %8898 = vmatmul.mubr.msk.bf16.gmra.mrb[4].mxu0 %vm746_vm1, %v708_v29 }
 0x37c   :  { %847 = vmatpush1.bf16.msra.mxu0 %v11073_v35  ;;  %874 = vmatprep.mubr.bf16.mxu0 %v12437_v16 }
 0x37d   :  { %1010 = vmatprep.subr.bf16.mxu0 %v11078_v37  ;;  %v10369_v42 = vpop.f32.mrb[12].mxu1 }
 0x37e   :  { %v1126_v44 = vpop.f32.mrb[13].mxu1 }
 0x37f   :  { %v10370_v46 = vpop.f32.mrb[14].mxu1 }
 0x380   :  { %v1142_v47 = vpack.c.bf16 %v10370_v46, %v10369_v42  ;;  %v1129_v48 = vpop.f32.mrb[15].mxu1 }
 0x381   :  { %v1141_v49 = vpack.c.bf16 %v1129_v48, %v1126_v44  ;;  %v11112_v48 = vld [vmem:[%s13896_s17 + $0xc0] sm:$0xff]  }
 0x383   :  { %8905 = vmatmul.mubr.msk.bf16.vlgmr.msra.gmra.mrb[0].mxu0 %vm746_vm1, %v629_v23 }
 0x384   :  { %1011 = vmatpush1.bf16.msra.mxu0 %v11076_v43  ;;  %884 = vmatprep.mubr.bf16.mxu0 %v12437_v16 }
 0x385   :  { %1012 = vmatprep.subr.bf16.mxu0 %v11081_v45 }
 0x388   :  { %1013 = vmatpush1.bf16.msra.mxu0 %v11079_v50  ;;  %v11113_v50 = vld [vmem:[%s13896_s17 + $0x80] sm:$0xff]  }
 0x389   :  { %1014 = vmatprep.subr.bf16.mxu0 %v11084_v51  ;;  %v11114_v51 = vld [vmem:[%s13896_s17 + $0xc8] sm:$0xff]  }
 0x38b   :  { %8906 = vmatmul.mubr.msk.bf16.gmra.mrb[4].mxu0 %vm746_vm1, %v630_v21 }
 0x38c   :  { %1015 = vmatpush1.bf16.msra.mxu0 %v11082_v52  ;;  %1042 = vmatprep.mubr.bf16.mxu0 %v12437_v16  ;;  %v11115_v52 = vld [vmem:[%s13896_s17 + $0x88] sm:$0xff]  }
 0x38d   :  { %1186 = vmatprep.subr.bf16.mxu0 %v11087_v53  ;;  %v11116_v53 = vld [vmem:[%s13896_s17 + $0xd0] sm:$0xff]  }
 0x393   :  { %8923 = vmatmul.mubr.msk.bf16.vlgmr.msra.gmra.mrb[0].mxu0 %vm746_vm1, %v965_v41 }
 0x394   :  { %1187 = vmatpush1.bf16.msra.mxu0 %v11085_v54  ;;  %1052 = vmatprep.mubr.bf16.mxu0 %v12437_v16  ;;  %v11117_v54 = vld [vmem:[%s13896_s17 + $0x90] sm:$0xff]  }
 0x395   :  { %1188 = vmatprep.subr.bf16.mxu0 %v11090_v55  ;;  %v11118_v55 = vld [vmem:[%s13896_s17 + $0xd8] sm:$0xff]  }
 0x398   :  { %1189 = vmatpush1.bf16.msra.mxu0 %v11088_v56  ;;  %v11119_v56 = vld [vmem:[%s13896_s17 + $0x98] sm:$0xff]  }
 0x399   :  { %1190 = vmatprep.subr.bf16.mxu0 %v11093_v57  ;;  %v11120_v57 = vld [vmem:[%s13896_s17 + $0xe0] sm:$0xff]  }
 0x39b   :  { %8924 = vmatmul.mubr.msk.bf16.gmra.mrb[4].mxu0 %vm746_vm1, %v966_v39 }
 0x39c   :  { %1191 = vmatpush1.bf16.msra.mxu0 %v11091_v58  ;;  %1218 = vmatprep.mubr.bf16.mxu0 %v12437_v16  ;;  %v11121_v58 = vld [vmem:[%s13896_s17 + $0xa0] sm:$0xff]  }
 0x39d   :  { %9953 = vmatprep.subr.bf16.mxu0 %v11094_v59  ;;  %v11122_v59 = vld [vmem:[%s13896_s17 + $0xe8] sm:$0xff]  }
 0x3a3   :  { %8941 = vmatmul.mubr.msk.bf16.vlgmr.msra.gmra.mrb[0].mxu0 %vm746_vm1, %v1141_v49  ;;  %v11111_v49 = vld [vmem:[%s13897_s16 + $0x8] sm:$0xff]  }
 0x3a4   :  { %1228 = vmatprep.mubr.bf16.mxu0 %v12437_v16  ;;  %9954 = vmatpush3.bf16.msra.mxu0 %v11095_v60  ;;  %v11123_v60 = vld [vmem:[%s13896_s17 + $0xa8] sm:$0xff]  }
 0x3a5   :  { %9955 = vmatprep.subr.bf16.mxu0 %v11096_v61  ;;  %v11124_v61 = vld [vmem:[%s13896_s17 + $0xf0] sm:$0xff]  }
 0x3a8   :  { %9956 = vmatpush3.bf16.msra.mxu0 %v11097_v62  ;;  %v11125_v62 = vld [vmem:[%s13896_s17 + $0xb0] sm:$0xff]  }
 0x3a9   :  { %9957 = vmatprep.subr.bf16.mxu0 %v11098_v63  ;;  %v11126_v63 = vld [vmem:[%s13896_s17 + $0xf8] sm:$0xff]  }
 0x3ab   :  { %8942 = vmatmul.mubr.msk.bf16.gmra.mrb[4].mxu0 %vm746_vm1, %v1142_v47  ;;  %v11110_v47 = vld [vmem:[%s13897_s16] sm:$0xff]  }
 0x3ac   :  { %9958 = vmatpush3.bf16.msra.mxu0 %v11099_v0  ;;  %v11127_v0 = vld [vmem:[%s13896_s17 + $0xb8] sm:$0xff]  }
 0x3ad   :  { %9959 = vmatprep.subr.bf16.mxu0 %v11100_v1 }
 0x3b0   :  { %9960 = vmatpush3.bf16.msra.mxu0 %v11101_v2 }
 0x3b1   :  { %9961 = vmatprep.subr.bf16.mxu0 %v11102_v3 }
 0x3b4   :  { %9962 = vmatpush3.bf16.msra.mxu0 %v11103_v4 }
 0x3b5   :  { %9963 = vmatprep.subr.bf16.mxu0 %v11104_v5 }
 0x3b8   :  { %9964 = vmatpush3.bf16.msra.mxu0 %v11105_v6 }
 0x3b9   :  { %9965 = vmatprep.subr.bf16.mxu0 %v11106_v7 }
 0x3bc   :  { %9966 = vmatpush3.bf16.msra.mxu0 %v11107_v8 }
 0x3bd   :  { %9967 = vmatprep.subr.bf16.mxu0 %v11108_v9  ;;  %v11130_v9 = vld [vmem:[%s13896_s17 + $0x1c0] sm:$0xff]  }
 0x3c0   :  { %9968 = vmatpush3.bf16.msra.mxu0 %v11109_v10 }
 0x476   :  { %v1220_v19 = vpop.f32.mrb[0].mxu0 }
 0x477   :  { %v1259_v20 = vadd.f32 %v1252_v17, %v1220_v19  ;;  %v1222_v21 = vpop.f32.mrb[1].mxu0  ;;  %v11132_v19 = vld [vmem:[%s13896_s17 + $0x1c8] sm:$0xff]  }
 0x478   :  { %v1260_v22 = vadd.f32 %v1256_v18, %v1222_v21  ;;  %v1224_v23 = vpop.f32.mrb[2].mxu0  ;;  %v11134_v21 = vld [vmem:[%s13896_s17 + $0x188] sm:$0xff]  }
 0x479   :  { %v1261_v24 = vadd.f32 %v1252_v17, %v1224_v23  ;;  %v1226_v25 = vpop.f32.mrb[3].mxu0  ;;  %v1267_v27 = vmax.f32 %v1259_v20, 0.0  ;;  %v11133_v20 = vld [vmem:[%s13896_s17 + $0x140] sm:$0xff]   ;;  %v11129_v23 = vld [vmem:[%s13897_s16 + $0x10] sm:$0xff]  }
 0x47a   :  { %v1262_v26 = vadd.f32 %v1256_v18, %v1226_v25  ;;  %v1268_v29 = vmax.f32 %v1260_v22, 0.0  ;;  %v11136_v22 = vld [vmem:[%s13896_s17 + $0x1d0] sm:$0xff]   ;;  %v11137_v25 = vld [vmem:[%s13896_s17 + $0x148] sm:$0xff]  }
 0x47b   :  { %v1269_v28 = vmax.f32 %v1261_v24, 0.0  ;;  %v11135_v24 = vld [vmem:[%s13896_s17 + $0x100] sm:$0xff]  }
 0x47c   :  { %v1270_v30 = vmax.f32 %v1262_v26, 0.0  ;;  %v11138_v26 = vld [vmem:[%s13896_s17 + $0x190] sm:$0xff]  }
 0x47d   :  { %v12916_v31 = vpack.c.bf16 %v1269_v28, %v1267_v27  ;;  %v11140_v27 = vld [vmem:[%s13896_s17 + $0x1d8] sm:$0xff]   ;;  %v11139_v28 = vld [vmem:[%s13896_s17 + $0x108] sm:$0xff]  }
 0x47e   :  { %v1276_v32 = vpack.c.bf16 %v1270_v30, %v1268_v29  ;;  %v1230_v33 = vpop.f32.mrb[4].mxu0  ;;  %v11141_v29 = vld [vmem:[%s13896_s17 + $0x150] sm:$0xff]   ;;  %v11142_v30 = vld [vmem:[%s13896_s17 + $0x198] sm:$0xff]  }
 0x47f   :  { %v1263_v34 = vadd.f32 %v1252_v17, %v1230_v33  ;;  %v1232_v35 = vpop.f32.mrb[5].mxu0  ;;  %v11145_v33 = vld [vmem:[%s13896_s17 + $0x158] sm:$0xff]  }
 0x480   :  { %v1264_v36 = vadd.f32 %v1256_v18, %v1232_v35  ;;  %v1234_v37 = vpop.f32.mrb[6].mxu0  ;;  %1289 = vmatprep.subr.bf16.mxu1 %v1276_v32  ;;  %1968 = vmatprep.subr.bf16.mxu0 %v1276_v32  ;;  %v11147_v35 = vld [vmem:[%s13896_s17 + $0x118] sm:$0xff]  }
 0x481   :  { %v1265_v38 = vadd.f32 %v1252_v17, %v1234_v37  ;;  %v1236_v39 = vpop.f32.mrb[7].mxu0  ;;  %1290 = vmatpush1.bf16.msra.mxu1 %v12916_v31  ;;  %v1271_v41 = vmax.f32 %v1263_v34, 0.0  ;;  %v11146_v34 = vld [vmem:[%s13896_s17 + $0x1a0] sm:$0xff]  }
 0x482   :  { %v1266_v40 = vadd.f32 %v1256_v18, %v1236_v39  ;;  %v1272_v43 = vmax.f32 %v1264_v36, 0.0  ;;  %v11131_v18 = vld [vmem:[%s13896_s17 + $0x180] sm:$0xff]   ;;  %v11148_v36 = vld [vmem:[%s13896_s17 + $0x1e8] sm:$0xff]  }
 0x483   :  { %v1273_v42 = vmax.f32 %v1265_v38, 0.0  ;;  %v11149_v37 = vld [vmem:[%s13896_s17 + $0x160] sm:$0xff]   ;;  %v11150_v38 = vld [vmem:[%s13896_s17 + $0x1a8] sm:$0xff]  }
 0x484   :  { %v1274_v44 = vmax.f32 %v1266_v40, 0.0  ;;  %v11151_v39 = vld [vmem:[%s13896_s17 + $0x120] sm:$0xff]   ;;  %v11152_v40 = vld [vmem:[%s13896_s17 + $0x1f0] sm:$0xff]  }
 0x485   :  { %v12919_v45 = vpack.c.bf16 %v1273_v42, %v1271_v41  ;;  %v11153_v41 = vld [vmem:[%s13896_s17 + $0x168] sm:$0xff]   ;;  %v11154_v42 = vld [vmem:[%s13896_s17 + $0x1b0] sm:$0xff]  }
 0x486   :  { %v12921_v46 = vpack.c.bf16 %v1274_v44, %v1272_v43  ;;  %v11155_v43 = vld [vmem:[%s13896_s17 + $0x128] sm:$0xff]   ;;  %v11156_v44 = vld [vmem:[%s13896_s17 + $0x1f8] sm:$0xff]  }
 0x488   :  { %1291 = vmatprep.subr.bf16.mxu1 %v12921_v46 }
 0x489   :  { %1292 = vmatpush1.bf16.msra.mxu1 %v12919_v45 }
 0x48a   :  { %1377 = vmatprep.subr.bf16.mxu1 %v1276_v32 }
 0x48c   :  { %8944 = vmatmul.mubr.msk.bf16.vlgmr.msra.gmra.mrb[16].mxu1 %vm573_vm0, %v11110_v47  ;;  %v11159_v47 = vld [vmem:[%s13896_s17 + $0x130] sm:$0xff]  }
 0x48d   :  { %1378 = vmatpush1.bf16.msra.mxu1 %v12916_v31  ;;  %1409 = vmatprep.mubr.bf16.mxu1 %v12437_v16 }
 0x48e   :  { %1379 = vmatprep.subr.bf16.mxu1 %v12921_v46 }
 0x491   :  { %1380 = vmatpush1.bf16.msra.mxu1 %v12919_v45 }
 0x492   :  { %9931 = vmatprep.subr.bf16.mxu1 %v11112_v48  ;;  %v11160_v48 = vld [vmem:[%s13896_s17 + $0x178] sm:$0xff]  }
 0x494   :  { %8948 = vmatmul.mubr.msk.bf16.vlgmr.msra.gmra.mrb[20].mxu1 %vm573_vm0, %v11111_v49  ;;  %v11161_v49 = vld [vmem:[%s13896_s17 + $0x138] sm:$0xff]  }
 0x495   :  { %9932 = vmatpush3.bf16.msra.mxu1 %v11113_v50 }
 0x496   :  { %9933 = vmatprep.subr.bf16.mxu1 %v11114_v51 }
 0x499   :  { %9934 = vmatpush3.bf16.msra.mxu1 %v11115_v52 }
 0x49a   :  { %9935 = vmatprep.subr.bf16.mxu1 %v11116_v53 }
 0x49d   :  { %9936 = vmatpush3.bf16.msra.mxu1 %v11117_v54 }
 0x49e   :  { %9937 = vmatprep.subr.bf16.mxu1 %v11118_v55 }
 0x4a1   :  { %9938 = vmatpush3.bf16.msra.mxu1 %v11119_v56 }
 0x4a2   :  { %9939 = vmatprep.subr.bf16.mxu1 %v11120_v57 }
 0x4a5   :  { %9940 = vmatpush3.bf16.msra.mxu1 %v11121_v58 }
 0x4a6   :  { %9941 = vmatprep.subr.bf16.mxu1 %v11122_v59 }
 0x4a9   :  { %9942 = vmatpush3.bf16.msra.mxu1 %v11123_v60 }
 0x4aa   :  { %9943 = vmatprep.subr.bf16.mxu1 %v11124_v61 }
 0x4ad   :  { %9944 = vmatpush3.bf16.msra.mxu1 %v11125_v62 }
 0x4ae   :  { %9945 = vmatprep.subr.bf16.mxu1 %v11126_v63 }
 0x4b1   :  { %9946 = vmatpush3.bf16.msra.mxu1 %v11127_v0 }
 0x4b2   :  { %1740 = vmatprep.subr.bf16.mxu1 %v1276_v32  ;;  %v11144_v32 = vld [vmem:[%s13896_s17 + $0x1e0] sm:$0xff]  }
 0x55f   :  { %v1323_v1 = vpop.f32.mrb[16].mxu1 }
 0x560   :  { %v1325_v2 = vpop.f32.mrb[17].mxu1 }
 0x561   :  { %v1327_v3 = vpop.f32.mrb[18].mxu1 }
 0x562   :  { %v1332_v4 = vpack.c.bf16 %v1327_v3, %v1323_v1  ;;  %v1329_v5 = vpop.f32.mrb[19].mxu1 }
 0x563   :  { %v1333_v6 = vpack.c.bf16 %v1329_v5, %v1325_v2 }
 0x565   :  { %1720 = vmatprep.mubr.bf16.mxu0 %v1333_v6 }
 0x566   :  { %1721 = vmatmul.mubr.bf16.vlgmr.msra.gmra.mrb[8].mxu0 %v1332_v4 }
 0x567   :  { %1969 = vmatpush1.bf16.msra.mxu0 %v12916_v31  ;;  %v1411_v7 = vpop.f32.mrb[20].mxu1  ;;  %2000 = vmatprep.mubr.bf16.mxu0 %v12437_v16 }
 0x568   :  { %1970 = vmatprep.subr.bf16.mxu0 %v12921_v46  ;;  %v1413_v8 = vpop.f32.mrb[21].mxu1 }
 0x569   :  { %v1415_v10 = vpop.f32.mrb[22].mxu1 }
 0x56a   :  { %v1420_v11 = vpack.c.bf16 %v1415_v10, %v1411_v7  ;;  %v1417_v12 = vpop.f32.mrb[23].mxu1 }
 0x56b   :  { %v1421_v17 = vpack.c.bf16 %v1417_v12, %v1413_v8  ;;  %1971 = vmatpush1.bf16.msra.mxu0 %v12919_v45  ;;  %v12438_v12 = vmov 0.0  }
 0x56c   :  { %9997 = vmatprep.subr.bf16.mxu0 %v11130_v9 }
 0x56d   :  { %1583 = vmatprep.mubr.bf16.mxu1 %v1421_v17  ;;  %v11163_v17 = vld [vmem:[%s13898_s18 + $0x8] sm:$0xff]  }
 0x56e   :  { %1584 = vmatmul.mubr.bf16.vlgmr.msra.gmra.mrb[24].mxu1 %v1420_v11  ;;  %9068 = vmatmul.mubr.msk.bf16.vlgmr.msra.gmra.mrb[12].mxu0 %vm573_vm0, %v11128_v14  ;;  %v11162_v14 = vld [vmem:[%s13898_s18] sm:$0xff]  }
 0x56f   :  { %1741 = vmatpush1.bf16.msra.mxu1 %v12916_v31  ;;  %1772 = vmatprep.mubr.bf16.mxu1 %v12437_v16  ;;  %v11143_v31 = vld [vmem:[%s13896_s17 + $0x110] sm:$0xff]  }
 0x570   :  { %1742 = vmatprep.subr.bf16.mxu1 %v12921_v46  ;;  %9998 = vmatpush3.bf16.msra.mxu0 %v11131_v18  ;;  %v11158_v46 = vld [vmem:[%s13896_s17 + $0x1b8] sm:$0xff]   ;;  %v11165_v18 = vld [vmem:[%s13898_s18 + $0x10] sm:$0xff]  }
 0x571   :  { %9999 = vmatprep.subr.bf16.mxu0 %v11132_v19  ;;  %v11167_v19 = vld [vmem:[%s13898_s18 + $0x18] sm:$0xff]  }
 0x573   :  { %1743 = vmatpush1.bf16.msra.mxu1 %v12919_v45  ;;  %v11157_v45 = vld [vmem:[%s13896_s17 + $0x170] sm:$0xff]  }
 0x574   :  { %9975 = vmatprep.subr.bf16.mxu1 %v11133_v20  ;;  %10000 = vmatpush3.bf16.msra.mxu0 %v11134_v21  ;;  %v11169_v20 = vld [vmem:[%s13898_s18 + $0x20] sm:$0xff]   ;;  %v11171_v21 = vld [vmem:[%s13898_s18 + $0x28] sm:$0xff]  }
 0x575   :  { %10001 = vmatprep.subr.bf16.mxu0 %v11136_v22  ;;  %v11173_v22 = vld [vmem:[%s13898_s18 + $0x30] sm:$0xff]  }
 0x576   :  { %9016 = vmatmul.mubr.msk.bf16.vlgmr.msra.gmra.mrb[28].mxu1 %vm573_vm0, %v11129_v23  ;;  %v11175_v23 = vld [vmem:[%s13898_s18 + $0x38] sm:$0xff]  }
 0x577   :  { %9976 = vmatpush3.bf16.msra.mxu1 %v11135_v24 }
 0x578   :  { %9977 = vmatprep.subr.bf16.mxu1 %v11137_v25  ;;  %10002 = vmatpush3.bf16.msra.mxu0 %v11138_v26 }
 0x579   :  { %10003 = vmatprep.subr.bf16.mxu0 %v11140_v27 }
 0x57b   :  { %9978 = vmatpush3.bf16.msra.mxu1 %v11139_v28 }
 0x57c   :  { %9979 = vmatprep.subr.bf16.mxu1 %v11141_v29  ;;  %10004 = vmatpush3.bf16.msra.mxu0 %v11142_v30 }
 0x57d   :  { %10005 = vmatprep.subr.bf16.mxu0 %v11144_v32 }
 0x57f   :  { %9980 = vmatpush3.bf16.msra.mxu1 %v11143_v31 }
 0x580   :  { %9981 = vmatprep.subr.bf16.mxu1 %v11145_v33  ;;  %10006 = vmatpush3.bf16.msra.mxu0 %v11146_v34 }
 0x581   :  { %10007 = vmatprep.subr.bf16.mxu0 %v11148_v36 }
 0x583   :  { %9982 = vmatpush3.bf16.msra.mxu1 %v11147_v35 }
 0x584   :  { %9983 = vmatprep.subr.bf16.mxu1 %v11149_v37  ;;  %10008 = vmatpush3.bf16.msra.mxu0 %v11150_v38  ;;  %v9117_v37 = vld [vmem:[#allocation7] ss:$0 sm:$0xff] }
 0x585   :  { %10009 = vmatprep.subr.bf16.mxu0 %v11152_v40 }
 0x587   :  { %9984 = vmatpush3.bf16.msra.mxu1 %v11151_v39 }
 0x588   :  { %9985 = vmatprep.subr.bf16.mxu1 %v11153_v41  ;;  %10010 = vmatpush3.bf16.msra.mxu0 %v11154_v42 }
 0x589   :  { %10011 = vmatprep.subr.bf16.mxu0 %v11156_v44 }
 0x58b   :  { %9986 = vmatpush3.bf16.msra.mxu1 %v11155_v43 }
 0x58c   :  { %9987 = vmatprep.subr.bf16.mxu1 %v11157_v45  ;;  %10012 = vmatpush3.bf16.msra.mxu0 %v11158_v46  ;;  %v2197_v46 = vld [vmem:[#allocation8] sm:$0xf] }
 0x58d   :  { %10403 = vmatprep.subr.bf16.mxu0 %v12438_v12 }
 0x58f   :  { %9988 = vmatpush3.bf16.msra.mxu1 %v11159_v47  ;;  %v2260_v47 = vld [vmem:[#allocation8 + $0x4] sm:$0xf] }
 0x590   :  { %9989 = vmatprep.subr.bf16.mxu1 %v11160_v48  ;;  %v11164_v48 = vld [vmem:[%s13898_s18 + $0x40] sm:$0xff]  }
 0x593   :  { %9990 = vmatpush3.bf16.msra.mxu1 %v11161_v49  ;;  %v11166_v49 = vld [vmem:[%s13898_s18 + $0x48] sm:$0xff]  }
 0x594   :  { %10371 = vmatprep.subr.bf16.mxu1 %v12438_v12 }
 0x639   :  { %v9969_v50 = vpop.f32.mrb[8].mxu0 }
 0x63a   :  { %v9970_v51 = vpop.f32.mrb[9].mxu0 }
 0x63b   :  { %v9971_v52 = vadd.f32 %v9970_v51, %v9969_v50  ;;  %v9972_v53 = vpop.f32.mrb[10].mxu0  ;;  %v11168_v50 = vld [vmem:[%s13898_s18 + $0x50] sm:$0xff]   ;;  %v11170_v51 = vld [vmem:[%s13898_s18 + $0x58] sm:$0xff]  }
 0x63c   :  { %v9973_v54 = vpop.f32.mrb[11].mxu0 }
 0x63d   :  { %v9974_v55 = vadd.f32 %v9973_v54, %v9972_v53  ;;  %v11174_v53 = vld [vmem:[%s13898_s18 + $0x68] sm:$0xff]   ;;  %v11176_v54 = vld [vmem:[%s13898_s18 + $0x70] sm:$0xff]  }
 0x641   :  { %v9947_v56 = vpop.f32.mrb[24].mxu1  ;;  %v2002_v57 = vpop.f32.mrb[12].mxu0 }
 0x642   :  { %v9948_v58 = vpop.f32.mrb[25].mxu1  ;;  %v2004_v59 = vpop.f32.mrb[13].mxu0 }
 0x643   :  { %v9949_v60 = vadd.f32 %v9948_v58, %v9947_v56  ;;  %v9950_v61 = vpop.f32.mrb[26].mxu1  ;;  %v2006_v62 = vpop.f32.mrb[14].mxu0 }
 0x644   :  { %v9951_v63 = vpop.f32.mrb[27].mxu1  ;;  %v2011_v0 = vpack.c.bf16 %v2006_v62, %v2002_v57  ;;  %v2008_v1 = vpop.f32.mrb[15].mxu0  ;;  %v2651_v62 = vld [vmem:[#allocation8 + $0xc] sm:$0xf] }
 0x645   :  { %v1723_v2 = vadd.f32 %v9971_v52, %v9949_v60  ;;  %v9952_v3 = vadd.f32 %v9951_v63, %v9950_v61  ;;  %v2012_v4 = vpack.c.bf16 %v2008_v1, %v2004_v59  ;;  %v11172_v52 = vld [vmem:[%s13898_s18 + $0x60] sm:$0xff]  }
 0x646   :  { %v11178_v1 = vld [vmem:[%s13898_s18 + $0xc0] sm:$0xff]  }
 0x647   :  { %v1726_v5 = vadd.f32 %v9974_v55, %v9952_v3  ;;  %2174 = vmatprep.mubr.bf16.mxu0 %v2012_v4  ;;  %v11177_v55 = vld [vmem:[%s13898_s18 + $0x78] sm:$0xff]   ;;  %v11180_v4 = vld [vmem:[%s13898_s18 + $0xc8] sm:$0xff]  }
 0x648   :  { %2175 = vmatmul.mubr.bf16.vlgmr.msra.gmra.mrb[16].mxu0 %v2011_v0 }
 0x649   :  { %v1774_v6 = vpop.f32.mrb[28].mxu1  ;;  %10419 = vmatprep.mubr.msk.bf16.mxu0 %vm12439_vm2, %v12438_v12  ;;  %10404 = vmatpush3.bf16.msra.mxu0 %v11162_v14  ;;  %v11186_v14 = vld [vmem:[%s13898_s18 + $0xe0] sm:$0xff]  }
 0x64a   :  { %v1776_v7 = vpop.f32.mrb[29].mxu1  ;;  %10405 = vmatprep.subr.bf16.mxu0 %v12438_v12 }
 0x64b   :  { %v1778_v8 = vpop.f32.mrb[30].mxu1 }
 0x64c   :  { %v1783_v9 = vpack.c.bf16 %v1778_v8, %v1774_v6  ;;  %v1780_v10 = vpop.f32.mrb[31].mxu1  ;;  %v11179_v6 = vld [vmem:[%s13898_s18 + $0x80] sm:$0xff]   ;;  %v11181_v8 = vld [vmem:[%s13898_s18 + $0x88] sm:$0xff]  }
 0x64d   :  { %v1784_v11 = vpack.c.bf16 %v1780_v10, %v1776_v7  ;;  %10406 = vmatpush3.bf16.msra.mxu0 %v11163_v17  ;;  %v11182_v7 = vld [vmem:[%s13898_s18 + $0xd0] sm:$0xff]   ;;  %v11187_v17 = vld [vmem:[%s13898_s18 + $0xa0] sm:$0xff]  }
 0x64e   :  { %10407 = vmatprep.subr.bf16.mxu0 %v12438_v12  ;;  %v11183_v10 = vld [vmem:[%s13898_s18 + $0x90] sm:$0xff]  }
 0x64f   :  { %1946 = vmatprep.mubr.bf16.mxu1 %v1784_v11  ;;  %v11185_v11 = vld [vmem:[%s13898_s18 + $0x98] sm:$0xff]  }
 0x650   :  { %1947 = vmatmul.mubr.bf16.vlgmr.msra.gmra.mrb[32].mxu1 %v1783_v9  ;;  %v11184_v9 = vld [vmem:[%s13898_s18 + $0xd8] sm:$0xff]  }
 0x651   :  { %10373 = vmatprep.mubr.msk.bf16.mxu1 %vm12439_vm2, %v12438_v12  ;;  %10408 = vmatpush3.bf16.msra.mxu0 %v11165_v18  ;;  %v11188_v18 = vld [vmem:[%s13898_s18 + $0xe8] sm:$0xff]  }
 0x652   :  { %10409 = vmatprep.subr.bf16.mxu0 %v12438_v12 }
 0x655   :  { %10410 = vmatpush3.bf16.msra.mxu0 %v11167_v19  ;;  %v11189_v19 = vld [vmem:[%s13898_s18 + $0xa8] sm:$0xff]  }
 0x656   :  { %10411 = vmatprep.subr.bf16.mxu0 %v12438_v12 }
 0x659   :  { %10412 = vmatpush3.bf16.msra.mxu0 %v11169_v20  ;;  %v11190_v20 = vld [vmem:[%s13898_s18 + $0xf0] sm:$0xff]  }
 0x65a   :  { %10413 = vmatprep.subr.bf16.mxu0 %v12438_v12 }
 0x65d   :  { %10414 = vmatpush3.bf16.msra.mxu0 %v11171_v21  ;;  %v11191_v21 = vld [vmem:[%s13898_s18 + $0xb0] sm:$0xff]  }
 0x65e   :  { %10415 = vmatprep.subr.bf16.mxu0 %v12438_v12 }
 0x661   :  { %10416 = vmatpush3.bf16.msra.mxu0 %v11173_v22  ;;  %v11192_v22 = vld [vmem:[%s13898_s18 + $0xf8] sm:$0xff]  }
 0x662   :  { %10417 = vmatprep.subr.bf16.mxu0 %v12438_v12 }
 0x665   :  { %10418 = vmatpush3.bf16.msra.mxu0 %v11175_v23  ;;  %v11193_v23 = vld [vmem:[%s13898_s18 + $0xb8] sm:$0xff]  }
 0x666   :  { %10449 = vmatprep.subr.bf16.mxu0 %v12438_v12 }
 0x71b   :  { %v10013_v24 = vpop.f32.mrb[16].mxu0 }
 0x71c   :  { %v10014_v25 = vpop.f32.mrb[17].mxu0 }
 0x71d   :  { %v10015_v26 = vadd.f32 %v10014_v25, %v10013_v24  ;;  %v10016_v27 = vpop.f32.mrb[18].mxu0 }
 0x71e   :  { %v10017_v28 = vpop.f32.mrb[19].mxu0 }
 0x71f   :  { %v10018_v29 = vadd.f32 %v10017_v28, %v10016_v27 }
 0x723   :  { %v9991_v30 = vpop.f32.mrb[32].mxu1 }
 0x724   :  { %v9992_v31 = vpop.f32.mrb[33].mxu1 }
 0x725   :  { %v9993_v32 = vadd.f32 %v9992_v31, %v9991_v30  ;;  %v9994_v33 = vpop.f32.mrb[34].mxu1 }
 0x726   :  { %v9995_v34 = vpop.f32.mrb[35].mxu1 }
 0x727   :  { %v1955_v35 = vadd.f32 %v9993_v32, %v1723_v2  ;;  %v9996_v36 = vadd.f32 %v9995_v34, %v9994_v33 }
 0x729   :  { %v2183_v38 = vadd.f32 %v10015_v26, %v1955_v35  ;;  %v1956_v39 = vadd.f32 %v9996_v36, %v1726_v5  ;;  %v2499_v5 = vld [vmem:[#allocation8 + $0x8] sm:$0xf] }
 0x72b   :  { %v2192_v40 = vadd.f32 %v9117_v37, %v2183_v38  ;;  %v2184_v41 = vadd.f32 %v10018_v29, %v1956_v39 }
 0x72d   :  { %v2193_v42 = vadd.f32 %v9117_v37, %v2184_v41  ;;  %v2194_v43 = vmax.f32 %v2192_v40, 0.0 }
 0x72f   :  { %v2195_v44 = vmax.f32 %v2193_v42, 0.0 }
 0x731   :  { %v2196_v45 = vpack.c.bf16 %v2195_v44, %v2194_v43  ;;  %v11196_v43 = vld [vmem:[%s13899_s22 + $0x40] sm:$0xff]   ;;  %v11198_v44 = vld [vmem:[%s13899_s22 + $0x48] sm:$0xff]  }
 0x733   :  { %10372 = vmatpush3.bf16.msra.mxu1 %v2196_v45 }
 0x734   :  { %10377 = vmatprep.subr.bf16.mxu1 %v12438_v12 }
 0x736   :  { %10374 = vmatmul.mubr.msk.bf16.vlgmr.msra.gmra.mrb[36].mxu1 %vm2198_vm3, %v2197_v46  ;;  %v11202_v46 = vld [vmem:[%s13899_s22 + $0x58] sm:$0xff]  }
 0x737   :  { %10378 = vmatpush3.bf16.msra.mxu1 %v2196_v45  ;;  %10379 = vmatprep.mubr.msk.bf16.mxu1 %vm12439_vm2, %v12438_v12 }
 0x738   :  { %10383 = vmatprep.subr.bf16.mxu1 %v12438_v12 }
 0x73e   :  { %10380 = vmatmul.mubr.msk.bf16.vlgmr.msra.gmra.mrb[40].mxu1 %vm2198_vm3, %v2260_v47  ;;  %v11204_v47 = vld [vmem:[%s13899_s22 + $0x60] sm:$0xff]  }
 0x73f   :  { %10384 = vmatpush3.bf16.msra.mxu1 %v11164_v48  ;;  %10399 = vmatprep.mubr.msk.bf16.mxu1 %vm12439_vm2, %v12438_v12  ;;  %v11206_v48 = vld [vmem:[%s13899_s22 + $0x68] sm:$0xff]  }
 0x740   :  { %10385 = vmatprep.subr.bf16.mxu1 %v12438_v12 }
 0x743   :  { %10386 = vmatpush3.bf16.msra.mxu1 %v11166_v49 }
 0x744   :  { %10387 = vmatprep.subr.bf16.mxu1 %v12438_v12 }
 0x747   :  { %10388 = vmatpush3.bf16.msra.mxu1 %v11168_v50 }
 0x748   :  { %10389 = vmatprep.subr.bf16.mxu1 %v12438_v12 }
 0x74b   :  { %10390 = vmatpush3.bf16.msra.mxu1 %v11170_v51 }
 0x74c   :  { %10391 = vmatprep.subr.bf16.mxu1 %v12438_v12 }
 0x74f   :  { %10392 = vmatpush3.bf16.msra.mxu1 %v11172_v52 }
 0x750   :  { %10393 = vmatprep.subr.bf16.mxu1 %v12438_v12 }
 0x753   :  { %10394 = vmatpush3.bf16.msra.mxu1 %v11174_v53 }
 0x754   :  { %10395 = vmatprep.subr.bf16.mxu1 %v12438_v12 }
 0x757   :  { %10396 = vmatpush3.bf16.msra.mxu1 %v11176_v54 }
 0x758   :  { %10397 = vmatprep.subr.bf16.mxu1 %v12438_v12 }
 0x75b   :  { %10398 = vmatpush3.bf16.msra.mxu1 %v11177_v55 }
 0x75c   :  { %10423 = vmatprep.subr.bf16.mxu1 %v12438_v12 }
 0x809   :  { %v2236_v56 = vpop.f32.mrb[36].mxu1 }
 0x80a   :  { %v2242_v57 = vpack.c.bf16 %v2236_v56, %v2236_v56  ;;  %v10375_v58 = vpop.f32.mrb[37].mxu1  ;;  %v9202_v56 = vld [vmem:[#allocation10] ss:$0 sm:$0xff] }
 0x80b   :  { %v2239_v59 = vpop.f32.mrb[38].mxu1 }
 0x80c   :  { %v10376_v60 = vpop.f32.mrb[39].mxu1  ;;  %10420 = vmatmul.mubr.bf16.vlgmr.msra.gmra.mrb[20].mxu0 %v2242_v57 }
 0x80d   :  { %10450 = vmatpush3.bf16.msra.mxu0 %v2196_v45  ;;  %10451 = vmatprep.mubr.msk.bf16.mxu0 %vm12439_vm2, %v12438_v12 }
 0x80e   :  { %10455 = vmatprep.subr.bf16.mxu0 %v12438_v12 }
 0x811   :  { %v2298_v61 = vpop.f32.mrb[40].mxu1 }
 0x812   :  { %v2304_v63 = vpack.c.bf16 %v2298_v61, %v2298_v61  ;;  %v10381_v0 = vpop.f32.mrb[41].mxu1 }
 0x813   :  { %v2301_v2 = vpop.f32.mrb[42].mxu1  ;;  %v2812_v0 = vld [vmem:[%s13900_s23] sm:$0x3] }
 0x814   :  { %v10382_v3 = vpop.f32.mrb[43].mxu1  ;;  %10400 = vmatmul.mubr.bf16.vlgmr.msra.gmra.mrb[44].mxu1 %v2304_v63  ;;  %10452 = vmatmul.mubr.msk.bf16.vlgmr.msra.gmra.mrb[24].mxu0 %vm2198_vm3, %v2651_v62  ;;  %v11194_v2 = vld [vmem:[%s13899_s22] sm:$0xff]  }
 0x815   :  { %10424 = vmatpush3.bf16.msra.mxu1 %v2196_v45  ;;  %10425 = vmatprep.mubr.msk.bf16.mxu1 %vm12439_vm2, %v12438_v12  ;;  %v11200_v45 = vld [vmem:[%s13899_s22 + $0x50] sm:$0xff]   ;;  %v11195_v3 = vld [vmem:[%s13899_s22 + $0x8] sm:$0xff]  }
 0x816   :  { %10429 = vmatprep.subr.bf16.mxu1 %v12438_v12  ;;  %10456 = vmatpush3.bf16.msra.mxu0 %v11178_v1  ;;  %v9204_v1 = vld [vmem:[%s13900_s23 + $0x2] sm:$0x3] }
 0x817   :  { %10457 = vmatprep.subr.bf16.mxu0 %v12438_v12  ;;  %10471 = vmatprep.mubr.msk.bf16.mxu0 %vm12439_vm2, %v12438_v12 }
 0x81a   :  { %10458 = vmatpush3.bf16.msra.mxu0 %v11180_v4  ;;  %v11197_v4 = vld [vmem:[%s13899_s22 + $0x10] sm:$0xff]  }
 0x81b   :  { %10459 = vmatprep.subr.bf16.mxu0 %v12438_v12 }
 0x81c   :  { %10426 = vmatmul.mubr.msk.bf16.vlgmr.msra.gmra.mrb[48].mxu1 %vm2198_vm3, %v2499_v5  ;;  %v11199_v5 = vld [vmem:[%s13899_s22 + $0x18] sm:$0xff]  }
 0x81d   :  { %10430 = vmatpush3.bf16.msra.mxu1 %v11179_v6  ;;  %10445 = vmatprep.mubr.msk.bf16.mxu1 %vm12439_vm2, %v12438_v12  ;;  %v11201_v6 = vld [vmem:[%s13899_s22 + $0x20] sm:$0xff]  }
 0x81e   :  { %10431 = vmatprep.subr.bf16.mxu1 %v12438_v12  ;;  %10460 = vmatpush3.bf16.msra.mxu0 %v11182_v7  ;;  %v11203_v7 = vld [vmem:[%s13899_s22 + $0x28] sm:$0xff]  }
 0x81f   :  { %10461 = vmatprep.subr.bf16.mxu0 %v12438_v12 }
 0x821   :  { %10432 = vmatpush3.bf16.msra.mxu1 %v11181_v8  ;;  %v11205_v8 = vld [vmem:[%s13899_s22 + $0x30] sm:$0xff]  }
 0x822   :  { %10433 = vmatprep.subr.bf16.mxu1 %v12438_v12  ;;  %10462 = vmatpush3.bf16.msra.mxu0 %v11184_v9  ;;  %v11207_v9 = vld [vmem:[%s13899_s22 + $0x38] sm:$0xff]  }
 0x823   :  { %10463 = vmatprep.subr.bf16.mxu0 %v12438_v12 }
 0x825   :  { %10434 = vmatpush3.bf16.msra.mxu1 %v11183_v10  ;;  %v11208_v10 = vld [vmem:[%s13899_s22 + $0x70] sm:$0xff]  }
 0x826   :  { %10435 = vmatprep.subr.bf16.mxu1 %v12438_v12  ;;  %10464 = vmatpush3.bf16.msra.mxu0 %v11186_v14 }
 0x827   :  { %10465 = vmatprep.subr.bf16.mxu0 %v12438_v12 }
 0x829   :  { %10436 = vmatpush3.bf16.msra.mxu1 %v11185_v11  ;;  %v11209_v11 = vld [vmem:[%s13899_s22 + $0x78] sm:$0xff]  }
 0x82a   :  { %10437 = vmatprep.subr.bf16.mxu1 %v12438_v12  ;;  %10466 = vmatpush3.bf16.msra.mxu0 %v11188_v18 }
 0x82b   :  { %10467 = vmatprep.subr.bf16.mxu0 %v12438_v12 }
 0x82d   :  { %10438 = vmatpush3.bf16.msra.mxu1 %v11187_v17  ;;  %v11210_v17 = vld [vmem:[%s13899_s22 + $0x80] sm:$0xff]  }
 0x82e   :  { %10439 = vmatprep.subr.bf16.mxu1 %v12438_v12  ;;  %10468 = vmatpush3.bf16.msra.mxu0 %v11190_v20 }
 0x82f   :  { %10469 = vmatprep.subr.bf16.mxu0 %v12438_v12 }
 0x831   :  { %10440 = vmatpush3.bf16.msra.mxu1 %v11189_v19 }
 0x832   :  { %10441 = vmatprep.subr.bf16.mxu1 %v12438_v12  ;;  %10470 = vmatpush3.bf16.msra.mxu0 %v11192_v22  ;;  %v11211_v22 = vld [vmem:[%s13899_s22 + $0x88] sm:$0xff]  }
 0x833   :  { %10487 = vmatprep.subr.bf16.mxu0 %v12438_v12 }
 0x835   :  { %10442 = vmatpush3.bf16.msra.mxu1 %v11191_v21 }
 0x836   :  { %10443 = vmatprep.subr.bf16.mxu1 %v12438_v12 }
 0x839   :  { %10444 = vmatpush3.bf16.msra.mxu1 %v11193_v23 }
 0x83a   :  { %10475 = vmatprep.subr.bf16.mxu1 %v12438_v12 }
 0x8df   :  { %v2492_v24 = vpop.f32.mrb[20].mxu0 }
 0x8e0   :  { %v10421_v25 = vpop.f32.mrb[21].mxu0 }
 0x8e1   :  { %v2495_v26 = vpop.f32.mrb[22].mxu0 }
 0x8e2   :  { %v10422_v27 = vpop.f32.mrb[23].mxu0  ;;  %v11212_v26 = vld [vmem:[%s13899_s22 + $0x90] sm:$0xff]  }
 0x8e7   :  { %v2404_v28 = vpop.f32.mrb[44].mxu1  ;;  %v2689_v29 = vpop.f32.mrb[24].mxu0 }
 0x8e8   :  { %v2493_v30 = vadd.f32 %v2492_v24, %v2404_v28  ;;  %v10401_v31 = vpop.f32.mrb[45].mxu1  ;;  %v2695_v32 = vpack.c.bf16 %v2689_v29, %v2689_v29  ;;  %v10453_v33 = vpop.f32.mrb[25].mxu0  ;;  %v9238_v29 = vld [vmem:[%s13900_s23 + $0x4] sm:$0x3] }
 0x8e9   :  { %v2407_v34 = vpop.f32.mrb[46].mxu1  ;;  %v2692_v35 = vpop.f32.mrb[26].mxu0  ;;  %v11213_v31 = vld [vmem:[%s13899_s22 + $0xc0] sm:$0xff]   ;;  %v11215_v33 = vld [vmem:[%s13899_s22 + $0xc8] sm:$0xff]  }
 0x8ea   :  { %v10402_v36 = vpop.f32.mrb[47].mxu1  ;;  %v10454_v37 = vpop.f32.mrb[27].mxu0  ;;  %10472 = vmatmul.mubr.bf16.vlgmr.msra.gmra.mrb[28].mxu0 %v2695_v32  ;;  %v11214_v32 = vld [vmem:[%s13899_s22 + $0x98] sm:$0xff]   ;;  %v11216_v34 = vld [vmem:[%s13899_s22 + $0xa0] sm:$0xff]   ;;  %v11217_v35 = vld [vmem:[%s13899_s22 + $0xd0] sm:$0xff]  }
 0x8eb   :  { %10503 = vmatprep.mubr.msk.bf16.mxu0 %vm12439_vm2, %v12438_v12  ;;  %10488 = vmatpush3.bf16.msra.mxu0 %v11196_v43  ;;  %v11218_v36 = vld [vmem:[%s13899_s22 + $0xa8] sm:$0xff]   ;;  %v11219_v37 = vld [vmem:[%s13899_s22 + $0xd8] sm:$0xff]  }
 0x8ec   :  { %10489 = vmatprep.subr.bf16.mxu0 %v12438_v12  ;;  %v11225_v43 = vld [vmem:[%s13899_s22 + $0xf8] sm:$0xff]  }
 0x8ef   :  { %v2537_v38 = vpop.f32.mrb[48].mxu1  ;;  %10490 = vmatpush3.bf16.msra.mxu0 %v11198_v44 }
 0x8f0   :  { %v2543_v39 = vpack.c.bf16 %v2537_v38, %v2537_v38  ;;  %v10427_v40 = vpop.f32.mrb[49].mxu1  ;;  %10491 = vmatprep.subr.bf16.mxu0 %v12438_v12  ;;  %v11220_v38 = vld [vmem:[%s13899_s22 + $0xb0] sm:$0xff]  }
 0x8f1   :  { %v2540_v41 = vpop.f32.mrb[50].mxu1  ;;  %v11222_v40 = vld [vmem:[%s13899_s22 + $0xb8] sm:$0xff]  }
 0x8f2   :  { %v10428_v42 = vpop.f32.mrb[51].mxu1  ;;  %10446 = vmatmul.mubr.bf16.vlgmr.msra.gmra.mrb[52].mxu1 %v2543_v39  ;;  %v11221_v39 = vld [vmem:[%s13899_s22 + $0xe0] sm:$0xff]   ;;  %v11223_v41 = vld [vmem:[%s13899_s22 + $0xe8] sm:$0xff]  }
 0x8f3   :  { %10477 = vmatprep.mubr.msk.bf16.mxu1 %vm12439_vm2, %v12438_v12  ;;  %10492 = vmatpush3.bf16.msra.mxu0 %v11200_v45  ;;  %v11224_v42 = vld [vmem:[%s13899_s22 + $0xf0] sm:$0xff]  }
 0x8f4   :  { %10493 = vmatprep.subr.bf16.mxu0 %v12438_v12 }
 0x8f7   :  { %10494 = vmatpush3.bf16.msra.mxu0 %v11202_v46 }
 0x8f8   :  { %10495 = vmatprep.subr.bf16.mxu0 %v12438_v12 }
 0x8fb   :  { %10496 = vmatpush3.bf16.msra.mxu0 %v11204_v47 }
 0x8fc   :  { %10497 = vmatprep.subr.bf16.mxu0 %v12438_v12 }
 0x8ff   :  { %10498 = vmatpush3.bf16.msra.mxu0 %v11206_v48 }
 0x900   :  { %10499 = vmatprep.subr.bf16.mxu0 %v12438_v12 }
 0x903   :  { %10500 = vmatpush3.bf16.msra.mxu0 %v11208_v10 }
 0x904   :  { %10501 = vmatprep.subr.bf16.mxu0 %v12438_v12 }
 0x907   :  { %10502 = vmatpush3.bf16.msra.mxu0 %v11209_v11 }
 0x908   :  { %10527 = vmatprep.subr.bf16.mxu0 %v12438_v12 }
 0x9bd   :  { %v2795_v49 = vpop.f32.mrb[28].mxu0 }
 0x9be   :  { %v10473_v50 = vpop.f32.mrb[29].mxu0 }
 0x9bf   :  { %v2798_v51 = vpop.f32.mrb[30].mxu0 }
 0x9c0   :  { %v10474_v52 = vpop.f32.mrb[31].mxu0 }
 0x9c5   :  { %v2643_v53 = vpop.f32.mrb[52].mxu1 }
 0x9c6   :  { %v2649_v54 = vadd.f32 %v2643_v53, %v2493_v30  ;;  %v10447_v55 = vpop.f32.mrb[53].mxu1  ;;  %v9264_v30 = vld [vmem:[%s13900_s23 + $0x6] sm:$0x3] }
 0x9c7   :  { %v2646_v57 = vpop.f32.mrb[54].mxu1 }
 0x9c8   :  { %v2801_v58 = vadd.f32 %v2795_v49, %v2649_v54  ;;  %v10448_v59 = vpop.f32.mrb[55].mxu1 }
 0x9ca   :  { %v2809_v60 = vadd.f32 %v9202_v56, %v2801_v58 }
 0x9cc   :  { %v2810_v61 = vmax.f32 %v2809_v60, 0.0 }
 0x9ce   :  { %v2811_v62 = vpack.c.bf16 %v2810_v61, %v2810_v61 }
 0x9d0   :  { %v13100_v63 = vsel %vm2817_vm4, %v2811_v62, 0 }
 0x9d1   :  { %10476 = vmatpush3.bf16.msra.mxu1 %v13100_v63 }
 0x9d2   :  { %10481 = vmatprep.subr.bf16.mxu1 %v12438_v12 }
 0x9d4   :  { %10478 = vmatmul.mubr.msk.bf16.vlgmr.msra.gmra.mrb[56].mxu1 %vm2813_vm5, %v2812_v0  ;;  %v11230_v0 = vld [vmem:[#allocation14 + $0x28] sm:$0xff]  }
 0x9d5   :  { %10482 = vmatpush3.bf16.msra.mxu1 %v13100_v63  ;;  %10483 = vmatprep.mubr.msk.bf16.mxu1 %vm12439_vm2, %v12438_v12 }
 0x9d6   :  { %10507 = vmatprep.subr.bf16.mxu1 %v12438_v12 }
 0x9dc   :  { %10484 = vmatmul.mubr.msk.bf16.vlgmr.msra.gmra.mrb[60].mxu1 %vm2813_vm5, %v9204_v1 }
 0x9dd   :  { %10508 = vmatpush3.bf16.msra.mxu1 %v11194_v2  ;;  %10523 = vmatprep.mubr.msk.bf16.mxu1 %vm12439_vm2, %v12438_v12 }
 0x9de   :  { %10509 = vmatprep.subr.bf16.mxu1 %v12438_v12 }
 0x9e1   :  { %10510 = vmatpush3.bf16.msra.mxu1 %v11195_v3 }
 0x9e2   :  { %10511 = vmatprep.subr.bf16.mxu1 %v12438_v12 }
 0x9e5   :  { %10512 = vmatpush3.bf16.msra.mxu1 %v11197_v4 }
 0x9e6   :  { %10513 = vmatprep.subr.bf16.mxu1 %v12438_v12 }
 0x9e9   :  { %10514 = vmatpush3.bf16.msra.mxu1 %v11199_v5 }
 0x9ea   :  { %10515 = vmatprep.subr.bf16.mxu1 %v12438_v12 }
 0x9ed   :  { %10516 = vmatpush3.bf16.msra.mxu1 %v11201_v6 }
 0x9ee   :  { %10517 = vmatprep.subr.bf16.mxu1 %v12438_v12 }
 0x9f1   :  { %10518 = vmatpush3.bf16.msra.mxu1 %v11203_v7  ;;  %v9290_v7 = vld [vmem:[#allocation11] ss:$0 sm:$0xff] }
 0x9f2   :  { %10519 = vmatprep.subr.bf16.mxu1 %v12438_v12 }
 0x9f5   :  { %10520 = vmatpush3.bf16.msra.mxu1 %v11205_v8 }
 0x9f6   :  { %10521 = vmatprep.subr.bf16.mxu1 %v12438_v12 }
 0x9f9   :  { %10522 = vmatpush3.bf16.msra.mxu1 %v11207_v9 }
 0x9fa   :  { %10533 = vmatprep.subr.bf16.mxu1 %v12438_v12 }
 0xaa7   :  { %v2855_v14 = vpop.f32.mrb[56].mxu1 }
 0xaa8   :  { %v2861_v18 = vpack.c.bf16 %v2855_v14, %v2855_v14  ;;  %v10479_v19 = vpop.f32.mrb[57].mxu1 }
 0xaa9   :  { %v2858_v20 = vpop.f32.mrb[58].mxu1 }
 0xaaa   :  { %v10480_v21 = vpop.f32.mrb[59].mxu1  ;;  %10524 = vmatmul.mubr.bf16.vlgmr.msra.gmra.mrb[64].mxu1 %v2861_v18  ;;  %v3431_v20 = vld [vmem:[#allocation13] sm:$0x3] }
 0xaab   :  { %10534 = vmatpush3.bf16.msra.mxu1 %v11210_v17  ;;  %10549 = vmatprep.mubr.msk.bf16.mxu1 %vm12439_vm2, %v12438_v12  ;;  %v3490_v21 = vld [vmem:[#allocation13 + $0x2] sm:$0x3] }
 0xaac   :  { %10535 = vmatprep.subr.bf16.mxu1 %v12438_v12 }
 0xaaf   :  { %v2917_v23 = vpop.f32.mrb[60].mxu1  ;;  %10536 = vmatpush3.bf16.msra.mxu1 %v11211_v22  ;;  %v11226_v22 = vld [vmem:[#allocation14] sm:$0xff]  }
 0xab0   :  { %v2923_v24 = vpack.c.bf16 %v2917_v23, %v2917_v23  ;;  %v10485_v25 = vpop.f32.mrb[61].mxu1  ;;  %10537 = vmatprep.subr.bf16.mxu1 %v12438_v12  ;;  %v11227_v23 = vld [vmem:[#allocation14 + $0x8] sm:$0xff]  }
 0xab1   :  { %v2920_v27 = vpop.f32.mrb[62].mxu1  ;;  %v11231_v25 = vld [vmem:[#allocation14 + $0x18] sm:$0xff]  }
 0xab2   :  { %v10486_v28 = vpop.f32.mrb[63].mxu1  ;;  %10504 = vmatmul.mubr.bf16.vlgmr.msra.gmra.mrb[32].mxu0 %v2923_v24  ;;  %v11229_v24 = vld [vmem:[#allocation14 + $0x10] sm:$0xff]   ;;  %v11233_v27 = vld [vmem:[#allocation14 + $0x38] sm:$0xff]  }
 0xab3   :  { %10528 = vmatpush3.bf16.msra.mxu0 %v13100_v63  ;;  %10529 = vmatprep.mubr.msk.bf16.mxu0 %vm12439_vm2, %v12438_v12 }
 0xab4   :  { %10553 = vmatprep.subr.bf16.mxu0 %v12438_v12  ;;  %10538 = vmatpush3.bf16.msra.mxu1 %v11212_v26  ;;  %v11232_v26 = vld [vmem:[#allocation14 + $0x30] sm:$0xff]  }
 0xab5   :  { %10539 = vmatprep.subr.bf16.mxu1 %v12438_v12 }
 0xab8   :  { %10540 = vmatpush3.bf16.msra.mxu1 %v11214_v32 }
 0xab9   :  { %10541 = vmatprep.subr.bf16.mxu1 %v12438_v12 }
 0xaba   :  { %10530 = vmatmul.mubr.msk.bf16.vlgmr.msra.gmra.mrb[36].mxu0 %vm2813_vm5, %v9238_v29 }
 0xabb   :  { %10554 = vmatpush3.bf16.msra.mxu0 %v13100_v63  ;;  %10555 = vmatprep.mubr.msk.bf16.mxu0 %vm12439_vm2, %v12438_v12  ;;  %v11228_v63 = vld [vmem:[#allocation14 + $0x20] sm:$0xff]  }
 0xabc   :  { %10559 = vmatprep.subr.bf16.mxu0 %v12438_v12  ;;  %10542 = vmatpush3.bf16.msra.mxu1 %v11216_v34 }
 0xabd   :  { %10543 = vmatprep.subr.bf16.mxu1 %v12438_v12 }
 0xac0   :  { %10544 = vmatpush3.bf16.msra.mxu1 %v11218_v36 }
 0xac1   :  { %10545 = vmatprep.subr.bf16.mxu1 %v12438_v12 }
 0xac2   :  { %10556 = vmatmul.mubr.msk.bf16.vlgmr.msra.gmra.mrb[40].mxu0 %vm2813_vm5, %v9264_v30 }
 0xac3   :  { %10560 = vmatpush3.bf16.msra.mxu0 %v11213_v31  ;;  %10575 = vmatprep.mubr.msk.bf16.mxu0 %vm12439_vm2, %v12438_v12 }
 0xac4   :  { %10561 = vmatprep.subr.bf16.mxu0 %v12438_v12  ;;  %10546 = vmatpush3.bf16.msra.mxu1 %v11220_v38  ;;  %v3680_v38 = vld [vmem:[#allocation13 + $0x4] sm:$0x3] }
 0xac5   :  { %10547 = vmatprep.subr.bf16.mxu1 %v12438_v12 }
 0xac7   :  { %10562 = vmatpush3.bf16.msra.mxu0 %v11215_v33 }
 0xac8   :  { %10563 = vmatprep.subr.bf16.mxu0 %v12438_v12  ;;  %10548 = vmatpush3.bf16.msra.mxu1 %v11222_v40  ;;  %v11234_v40 = vld [vmem:[#allocation14 + $0x40] sm:$0xff]  }
 0xac9   :  { %10579 = vmatprep.subr.bf16.mxu1 %v12438_v12 }
 0xacb   :  { %10564 = vmatpush3.bf16.msra.mxu0 %v11217_v35 }
 0xacc   :  { %10565 = vmatprep.subr.bf16.mxu0 %v12438_v12 }
 0xacf   :  { %10566 = vmatpush3.bf16.msra.mxu0 %v11219_v37 }
 0xad0   :  { %10567 = vmatprep.subr.bf16.mxu0 %v12438_v12 }
 0xad3   :  { %10568 = vmatpush3.bf16.msra.mxu0 %v11221_v39  ;;  %v3803_v39 = vld [vmem:[#allocation13 + $0x6] sm:$0x3] }
 0xad4   :  { %10569 = vmatprep.subr.bf16.mxu0 %v12438_v12 }
 0xad7   :  { %10570 = vmatpush3.bf16.msra.mxu0 %v11223_v41  ;;  %v11235_v41 = vld [vmem:[#allocation14 + $0x48] sm:$0xff]  }
 0xad8   :  { %10571 = vmatprep.subr.bf16.mxu0 %v12438_v12 }
 0xadb   :  { %10572 = vmatpush3.bf16.msra.mxu0 %v11224_v42  ;;  %v11236_v42 = vld [vmem:[#allocation14 + $0x50] sm:$0xff]  }
 0xadc   :  { %10573 = vmatprep.subr.bf16.mxu0 %v12438_v12 }
 0xadf   :  { %10574 = vmatpush3.bf16.msra.mxu0 %v11225_v43  ;;  %v11237_v43 = vld [vmem:[#allocation14 + $0x60] sm:$0xff]  }
 0xae0   :  { %10591 = vmatprep.subr.bf16.mxu0 %v12438_v12 }
 0xb7d   :  { %v3111_v44 = vpop.f32.mrb[64].mxu1 }
 0xb7e   :  { %v10525_v45 = vpop.f32.mrb[65].mxu1 }
 0xb7f   :  { %v3114_v46 = vpop.f32.mrb[66].mxu1  ;;  %v11239_v45 = vld [vmem:[#allocation14 + $0x68] sm:$0xff]  }
 0xb80   :  { %v10526_v47 = vpop.f32.mrb[67].mxu1  ;;  %v11240_v46 = vld [vmem:[#allocation14 + $0x70] sm:$0xff]  }
 0xb81   :  { %v11241_v47 = vld [vmem:[#allocation14 + $0x78] sm:$0xff]  }
 0xb85   :  { %v3023_v48 = vpop.f32.mrb[32].mxu0 }
 0xb86   :  { %v3112_v49 = vadd.f32 %v3111_v44, %v3023_v48  ;;  %v10505_v50 = vpop.f32.mrb[33].mxu0  ;;  %v11238_v44 = vld [vmem:[#allocation14 + $0x58] sm:$0xff]  }
 0xb87   :  { %v3026_v51 = vpop.f32.mrb[34].mxu0 }
 0xb88   :  { %v10506_v52 = vpop.f32.mrb[35].mxu0 }
 0xb8d   :  { %v3156_v53 = vpop.f32.mrb[36].mxu0 }
 0xb8e   :  { %v3162_v54 = vpack.c.bf16 %v3156_v53, %v3156_v53  ;;  %v10531_v55 = vpop.f32.mrb[37].mxu0 }
 0xb8f   :  { %v3159_v56 = vpop.f32.mrb[38].mxu0 }
 0xb90   :  { %v10532_v57 = vpop.f32.mrb[39].mxu0  ;;  %10550 = vmatmul.mubr.bf16.vlgmr.msra.gmra.mrb[68].mxu1 %v3162_v54 }
 0xb91   :  { %10581 = vmatprep.mubr.msk.bf16.mxu1 %vm12439_vm2, %v12438_v12 }
 0xb95   :  { %v3308_v58 = vpop.f32.mrb[40].mxu0 }
 0xb96   :  { %v3314_v59 = vpack.c.bf16 %v3308_v58, %v3308_v58  ;;  %v10557_v60 = vpop.f32.mrb[41].mxu0 }
 0xb97   :  { %v3311_v61 = vpop.f32.mrb[42].mxu0 }
 0xb98   :  { %v10558_v62 = vpop.f32.mrb[43].mxu0  ;;  %10576 = vmatmul.mubr.bf16.vlgmr.msra.gmra.mrb[44].mxu0 %v3314_v59 }
 0xb99   :  { %10599 = vmatprep.mubr.msk.bf16.mxu0 %vm12439_vm2, %v12438_v12  ;;  %10592 = vmatpush3.bf16.msra.mxu0 %v11228_v63 }
 0xb9a   :  { %10593 = vmatprep.subr.bf16.mxu0 %v12438_v12 }
 0xb9d   :  { %10594 = vmatpush3.bf16.msra.mxu0 %v11230_v0 }
 0xb9e   :  { %10595 = vmatprep.subr.bf16.mxu0 %v12438_v12 }
 0xba1   :  { %10596 = vmatpush3.bf16.msra.mxu0 %v11232_v26  ;;  %v11243_v26 = vld [vmem:[%s13901_s28 + $0x8] sm:$0xff]  }
 0xba2   :  { %10597 = vmatprep.subr.bf16.mxu0 %v12438_v12 }
 0xba5   :  { %10598 = vmatpush3.bf16.msra.mxu0 %v11233_v27  ;;  %v11245_v27 = vld [vmem:[%s13901_s28 + $0x10] sm:$0xff]  }
 0xba6   :  { %10615 = vmatprep.subr.bf16.mxu0 %v12438_v12 }
 0xc63   :  { %v3262_v1 = vpop.f32.mrb[68].mxu1 }
 0xc64   :  { %v3268_v2 = vadd.f32 %v3262_v1, %v3112_v49  ;;  %v10551_v3 = vpop.f32.mrb[69].mxu1 }
 0xc65   :  { %v3265_v4 = vpop.f32.mrb[70].mxu1  ;;  %v11244_v3 = vld [vmem:[%s13901_s28 + $0x20] sm:$0xff]  }
 0xc66   :  { %v10552_v5 = vpop.f32.mrb[71].mxu1 }
 0xc6b   :  { %v3414_v6 = vpop.f32.mrb[44].mxu0 }
 0xc6c   :  { %v3420_v8 = vadd.f32 %v3414_v6, %v3268_v2  ;;  %v10577_v9 = vpop.f32.mrb[45].mxu0 }
 0xc6d   :  { %v3417_v10 = vpop.f32.mrb[46].mxu0 }
 0xc6e   :  { %v3428_v11 = vadd.f32 %v9290_v7, %v3420_v8  ;;  %v10578_v14 = vpop.f32.mrb[47].mxu0  ;;  %v9315_v10 = vld [vmem:[#allocation16] ss:$0 sm:$0xff] }
 0xc70   :  { %v3429_v17 = vmax.f32 %v3428_v11, 0.0 }
 0xc72   :  { %v3430_v18 = vpack.c.bf16 %v3429_v17, %v3429_v17 }
 0xc74   :  { %v3438_v19 = vsel %vm3436_vm6, %v3430_v18, 0 }
 0xc75   :  { %10580 = vmatpush3.bf16.msra.mxu1 %v3438_v19 }
 0xc76   :  { %10585 = vmatprep.subr.bf16.mxu1 %v12438_v12 }
 0xc78   :  { %10582 = vmatmul.mubr.msk.bf16.vlgmr.msra.gmra.mrb[72].mxu1 %vm3432_vm7, %v3431_v20 }
 0xc79   :  { %10586 = vmatpush3.bf16.msra.mxu1 %v3438_v19  ;;  %10587 = vmatprep.mubr.msk.bf16.mxu1 %vm12439_vm2, %v12438_v12 }
 0xc7a   :  { %10603 = vmatprep.subr.bf16.mxu1 %v12438_v12 }
 0xc80   :  { %10588 = vmatmul.mubr.msk.bf16.vlgmr.msra.gmra.mrb[76].mxu1 %vm3432_vm7, %v3490_v21 }
 0xc81   :  { %10604 = vmatpush3.bf16.msra.mxu1 %v11226_v22  ;;  %10611 = vmatprep.mubr.msk.bf16.mxu1 %vm12439_vm2, %v12438_v12 }
 0xc82   :  { %10605 = vmatprep.subr.bf16.mxu1 %v12438_v12 }
 0xc85   :  { %10606 = vmatpush3.bf16.msra.mxu1 %v11227_v23  ;;  %v3935_v23 = vld [vmem:[#allocation17] sm:$0x1] }
 0xc86   :  { %10607 = vmatprep.subr.bf16.mxu1 %v12438_v12 }
 0xc89   :  { %10608 = vmatpush3.bf16.msra.mxu1 %v11229_v24  ;;  %v3992_v24 = vld [vmem:[#allocation17 + $0x1] sm:$0x1] }
 0xc8a   :  { %10609 = vmatprep.subr.bf16.mxu1 %v12438_v12 }
 0xc8d   :  { %10610 = vmatpush3.bf16.msra.mxu1 %v11231_v25  ;;  %v11242_v25 = vld [vmem:[%s13901_s28] sm:$0xff]  }
 0xc8e   :  { %10621 = vmatprep.subr.bf16.mxu1 %v12438_v12 }
 0xd4b   :  { %v3474_v28 = vpop.f32.mrb[72].mxu1 }
 0xd4c   :  { %v3480_v29 = vpack.c.bf16 %v3474_v28, %v3474_v28  ;;  %v10583_v30 = vpop.f32.mrb[73].mxu1  ;;  %v11246_v28 = vld [vmem:[%s13901_s28 + $0x28] sm:$0xff]  }
 0xd4d   :  { %v3477_v31 = vpop.f32.mrb[74].mxu1  ;;  %v11248_v30 = vld [vmem:[%s13901_s28 + $0x30] sm:$0xff]  }
 0xd4e   :  { %v10584_v32 = vpop.f32.mrb[75].mxu1  ;;  %10612 = vmatmul.mubr.msk.bf16.vlgmr.msra.gmra.mrb[80].mxu1 %vm3568_vm8, %v3480_v29  ;;  %v11247_v29 = vld [vmem:[%s13901_s28 + $0x18] sm:$0xff]  }
 0xd4f   :  { %10629 = vmatprep.mubr.msk.bf16.mxu1 %vm12439_vm2, %v12438_v12  ;;  %10622 = vmatpush3.bf16.msra.mxu1 %v11234_v40  ;;  %v11249_v31 = vld [vmem:[%s13901_s28 + $0x38] sm:$0xff]  }
 0xd50   :  { %10623 = vmatprep.subr.bf16.mxu1 %v12438_v12 }
 0xd53   :  { %v3528_v33 = vpop.f32.mrb[76].mxu1  ;;  %10624 = vmatpush3.bf16.msra.mxu1 %v11235_v41 }
 0xd54   :  { %v3534_v34 = vpack.c.bf16 %v3528_v33, %v3528_v33  ;;  %v10589_v35 = vpop.f32.mrb[77].mxu1  ;;  %10625 = vmatprep.subr.bf16.mxu1 %v12438_v12 }
 0xd55   :  { %v3531_v36 = vpop.f32.mrb[78].mxu1 }
 0xd56   :  { %v10590_v37 = vpop.f32.mrb[79].mxu1  ;;  %10600 = vmatmul.mubr.msk.bf16.vlgmr.msra.gmra.mrb[48].mxu0 %vm3568_vm8, %v3534_v34 }
 0xd57   :  { %10616 = vmatpush3.bf16.msra.mxu0 %v3438_v19  ;;  %10617 = vmatprep.mubr.msk.bf16.mxu0 %vm12439_vm2, %v12438_v12 }
 0xd58   :  { %10633 = vmatprep.subr.bf16.mxu0 %v12438_v12  ;;  %10626 = vmatpush3.bf16.msra.mxu1 %v11236_v42  ;;  %v11250_v42 = vld [vmem:[#allocation20] sm:$0xff]  }
 0xd59   :  { %10627 = vmatprep.subr.bf16.mxu1 %v12438_v12 }
 0xd5c   :  { %10628 = vmatpush3.bf16.msra.mxu1 %v11238_v44 }
 0xd5d   :  { %10651 = vmatprep.subr.bf16.mxu1 %v12438_v12 }
 0xd5e   :  { %10618 = vmatmul.mubr.msk.bf16.vlgmr.msra.gmra.mrb[52].mxu0 %vm3432_vm7, %v3680_v38 }
 0xd5f   :  { %10634 = vmatpush3.bf16.msra.mxu0 %v3438_v19  ;;  %10635 = vmatprep.mubr.msk.bf16.mxu0 %vm12439_vm2, %v12438_v12 }
 0xd60   :  { %10639 = vmatprep.subr.bf16.mxu0 %v12438_v12 }
 0xd66   :  { %10636 = vmatmul.mubr.msk.bf16.vlgmr.msra.gmra.mrb[56].mxu0 %vm3432_vm7, %v3803_v39 }
 0xd67   :  { %10647 = vmatprep.mubr.msk.bf16.mxu0 %vm12439_vm2, %v12438_v12  ;;  %10640 = vmatpush3.bf16.msra.mxu0 %v11237_v43  ;;  %v11251_v43 = vld [vmem:[#allocation23] sm:$0xff]  }
 0xd68   :  { %10641 = vmatprep.subr.bf16.mxu0 %v12438_v12 }
 0xd6b   :  { %10642 = vmatpush3.bf16.msra.mxu0 %v11239_v45 }
 0xd6c   :  { %10643 = vmatprep.subr.bf16.mxu0 %v12438_v12 }
 0xd6f   :  { %10644 = vmatpush3.bf16.msra.mxu0 %v11240_v46 }
 0xd70   :  { %10645 = vmatprep.subr.bf16.mxu0 %v12438_v12 }
 0xd73   :  { %10646 = vmatpush3.bf16.msra.mxu0 %v11241_v47 }
 0xd74   :  { %10663 = vmatprep.subr.bf16.mxu0 %v12438_v12 }
 0xe21   :  { %v3673_v48 = vpop.f32.mrb[80].mxu1 }
 0xe22   :  { %v10613_v49 = vpop.f32.mrb[81].mxu1 }
 0xe23   :  { %v3676_v50 = vpop.f32.mrb[82].mxu1  ;;  %v9336_v49 = vld [vmem:[#allocation19] ss:$0 sm:$0xff] }
 0xe24   :  { %v10614_v51 = vpop.f32.mrb[83].mxu1 }
 0xe29   :  { %v3606_v52 = vpop.f32.mrb[48].mxu0 }
 0xe2a   :  { %v3674_v53 = vadd.f32 %v3673_v48, %v3606_v52  ;;  %v10601_v54 = vpop.f32.mrb[49].mxu0 }
 0xe2b   :  { %v3609_v55 = vpop.f32.mrb[50].mxu0 }
 0xe2c   :  { %v10602_v56 = vpop.f32.mrb[51].mxu0 }
 0xe31   :  { %v3718_v57 = vpop.f32.mrb[52].mxu0 }
 0xe32   :  { %v3724_v58 = vpack.c.bf16 %v3718_v57, %v3718_v57  ;;  %v10619_v59 = vpop.f32.mrb[53].mxu0  ;;  %v11252_v57 = vld [vmem:[#allocation26] sm:$0xff]  }
 0xe33   :  { %v3721_v60 = vpop.f32.mrb[54].mxu0  ;;  %v9340_v59 = vld [vmem:[#allocation25] ss:$0 sm:$0xff] }
 0xe34   :  { %v10620_v61 = vpop.f32.mrb[55].mxu0  ;;  %10630 = vmatmul.mubr.msk.bf16.vlgmr.msra.gmra.mrb[84].mxu1 %vm3568_vm8, %v3724_v58  ;;  %v9337_v58 = vld [vmem:[#allocation22] ss:$0 sm:$0xff] }
 0xe35   :  { %10653 = vmatprep.mubr.msk.bf16.mxu1 %vm12439_vm2, %v12438_v12 }
 0xe39   :  { %v3841_v62 = vpop.f32.mrb[56].mxu0 }
 0xe3a   :  { %v3847_v63 = vpack.c.bf16 %v3841_v62, %v3841_v62  ;;  %v10637_v0 = vpop.f32.mrb[57].mxu0 }
 0xe3b   :  { %v3844_v1 = vpop.f32.mrb[58].mxu0 }
 0xe3c   :  { %v10638_v2 = vpop.f32.mrb[59].mxu0  ;;  %10648 = vmatmul.mubr.msk.bf16.vlgmr.msra.gmra.mrb[60].mxu0 %vm3568_vm8, %v3847_v63 }
 0xe3d   :  { %10671 = vmatprep.mubr.msk.bf16.mxu0 %vm12439_vm2, %v12438_v12  ;;  %10664 = vmatpush3.bf16.msra.mxu0 %v11244_v3 }
 0xe3e   :  { %10665 = vmatprep.subr.bf16.mxu0 %v12438_v12 }
 0xe41   :  { %10666 = vmatpush3.bf16.msra.mxu0 %v11246_v28 }
 0xe42   :  { %10667 = vmatprep.subr.bf16.mxu0 %v12438_v12 }
 0xe45   :  { %10668 = vmatpush3.bf16.msra.mxu0 %v11248_v30 }
 0xe46   :  { %10669 = vmatprep.subr.bf16.mxu0 %v12438_v12 }
 0xe49   :  { %10670 = vmatpush3.bf16.msra.mxu0 %v11249_v31 }
 0xe4a   :  { %10687 = vmatprep.subr.bf16.mxu0 %v12438_v12 }
 0xf07   :  { %v3795_v4 = vpop.f32.mrb[84].mxu1 }
 0xf08   :  { %v3801_v5 = vadd.f32 %v3795_v4, %v3674_v53  ;;  %v10631_v6 = vpop.f32.mrb[85].mxu1 }
 0xf09   :  { %v3798_v7 = vpop.f32.mrb[86].mxu1 }
 0xf0a   :  { %v10632_v8 = vpop.f32.mrb[87].mxu1  ;;  %v4306_v7 = vld [vmem:[%s13902_s1] sm:$0x3] }
 0xf0f   :  { %v3918_v9 = vpop.f32.mrb[60].mxu0 }
 0xf10   :  { %v3924_v11 = vadd.f32 %v3918_v9, %v3801_v5  ;;  %v10649_v14 = vpop.f32.mrb[61].mxu0 }
 0xf11   :  { %v3921_v17 = vpop.f32.mrb[62].mxu0  ;;  %v11253_v14 = vld [vmem:[#allocation29] sm:$0xff]  }
 0xf12   :  { %v3932_v18 = vadd.f32 %v9315_v10, %v3924_v11  ;;  %v10650_v19 = vpop.f32.mrb[63].mxu0  ;;  %v11254_v17 = vld [vmem:[#allocation29 + $0x8] sm:$0xff]  }
 0xf14   :  { %v3933_v20 = vmax.f32 %v3932_v18, 0.0  ;;  %v9343_v18 = vld [vmem:[#allocation28] ss:$0 sm:$0xff] }
 0xf16   :  { %v3934_v21 = vpack.c.bf16 %v3933_v20, %v3933_v20 }
 0xf18   :  { %v3940_v22 = vsel %vm3436_vm6, %v3934_v21, 0 }
 0xf19   :  { %10652 = vmatpush3.bf16.msra.mxu1 %v3940_v22 }
 0xf1a   :  { %10657 = vmatprep.subr.bf16.mxu1 %v12438_v12 }
 0xf1c   :  { %10654 = vmatmul.mubr.msk.bf16.vlgmr.msra.gmra.mrb[88].mxu1 %vm3432_vm7, %v3935_v23 }
 0xf1d   :  { %10658 = vmatpush3.bf16.msra.mxu1 %v3940_v22  ;;  %10659 = vmatprep.mubr.msk.bf16.mxu1 %vm12439_vm2, %v12438_v12 }
 0xf1e   :  { %10675 = vmatprep.subr.bf16.mxu1 %v12438_v12 }
 0xf24   :  { %10660 = vmatmul.mubr.msk.bf16.vlgmr.msra.gmra.mrb[92].mxu1 %vm3432_vm7, %v3992_v24 }
 0xf25   :  { %10676 = vmatpush3.bf16.msra.mxu1 %v11242_v25  ;;  %10683 = vmatprep.mubr.msk.bf16.mxu1 %vm12439_vm2, %v12438_v12 }
 0xf26   :  { %10677 = vmatprep.subr.bf16.mxu1 %v12438_v12 }
 0xf29   :  { %10678 = vmatpush3.bf16.msra.mxu1 %v11243_v26  ;;  %v9346_v26 = vld [vmem:[#allocation31] ss:$0 sm:$0xff] }
 0xf2a   :  { %10679 = vmatprep.subr.bf16.mxu1 %v12438_v12 }
 0xf2d   :  { %10680 = vmatpush3.bf16.msra.mxu1 %v11245_v27  ;;  %v9349_v27 = vld [vmem:[#allocation31 + $0x1] ss:$0 sm:$0xff] }
 0xf2e   :  { %10681 = vmatprep.subr.bf16.mxu1 %v12438_v12 }
 0xf31   :  { %10682 = vmatpush3.bf16.msra.mxu1 %v11247_v29 }
 0xf32   :  { %10693 = vmatprep.subr.bf16.mxu1 %v12438_v12 }
 0xfef   :  { %v3976_v32 = vpop.f32.mrb[88].mxu1 }
 0xff0   :  { %v3982_v33 = vpack.c.bf16 %v3976_v32, %v3976_v32  ;;  %v10655_v34 = vpop.f32.mrb[89].mxu1 }
 0xff1   :  { %v3979_v35 = vpop.f32.mrb[90].mxu1 }
 0xff2   :  { %v10656_v36 = vpop.f32.mrb[91].mxu1  ;;  %10684 = vmatmul.mubr.msk.bf16.vlgmr.msra.gmra.mrb[96].mxu1 %vm3568_vm8, %v3982_v33 }
 0xff3   :  { %10695 = vmatprep.mubr.msk.bf16.mxu1 %vm12439_vm2, %v12438_v12  ;;  %10694 = vmatpush3.bf16.msra.mxu1 %v11251_v43  ;;  %v9352_v43 = vld [vmem:[%s13903_s6 + $0x2] sm:$0x3] }
 0xff4   :  { %10705 = vmatprep.subr.bf16.mxu1 %v12438_v12 }
 0xff7   :  { %v4030_v37 = vpop.f32.mrb[92].mxu1 }
 0xff8   :  { %v4036_v38 = vpack.c.bf16 %v4030_v37, %v4030_v37  ;;  %v10661_v39 = vpop.f32.mrb[93].mxu1 }
 0xff9   :  { %v4033_v40 = vpop.f32.mrb[94].mxu1 }
 0xffa   :  { %v10662_v41 = vpop.f32.mrb[95].mxu1  ;;  %10672 = vmatmul.mubr.msk.bf16.vlgmr.msra.gmra.mrb[64].mxu0 %vm3568_vm8, %v4036_v38 }
 0xffb   :  { %10689 = vmatprep.mubr.msk.bf16.mxu0 %vm12439_vm2, %v12438_v12  ;;  %10688 = vmatpush3.bf16.msra.mxu0 %v11250_v42 }
 0xffc   :  { %10699 = vmatprep.subr.bf16.mxu0 %v12438_v12 }
0x10c5   :  { %v4174_v44 = vpop.f32.mrb[96].mxu1 }
0x10c6   :  { %v10685_v45 = vpop.f32.mrb[97].mxu1 }
0x10c7   :  { %v4177_v46 = vpop.f32.mrb[98].mxu1  ;;  %v4432_v45 = vld [vmem:[%s13903_s6] sm:$0x3] }
0x10c8   :  { %v10686_v47 = vpop.f32.mrb[99].mxu1  ;;  %v11257_v46 = vld [vmem:[#allocation34 + $0x20] sm:$0xff]  }
0x10c9   :  { %v11259_v47 = vld [vmem:[#allocation34 + $0x28] sm:$0xff]  }
0x10cd   :  { %v4107_v48 = vpop.f32.mrb[64].mxu0 }
0x10ce   :  { %v4175_v50 = vadd.f32 %v4174_v44, %v4107_v48  ;;  %v10673_v51 = vpop.f32.mrb[65].mxu0 }
0x10cf   :  { %v4110_v52 = vpop.f32.mrb[66].mxu0 }
0x10d0   :  { %v4187_v53 = vadd.f32 %v9336_v49, %v4175_v50  ;;  %v10674_v54 = vpop.f32.mrb[67].mxu0 }
0x10d1   :  { %v4589_v54 = vld [vmem:[#allocation32] sm:$0x3] }
0x10d2   :  { %v4188_v55 = vmax.f32 %v4187_v53, 0.0 }
0x10d4   :  { %v4189_v56 = vpack.c.bf16 %v4188_v55, %v4188_v55  ;;  %v4646_v55 = vld [vmem:[#allocation32 + $0x2] sm:$0x3] }
0x10d6   :  { %10690 = vmatmul.mubr.msk.bf16.vlgmr.msra.gmra.mrb[68].mxu0 %vm2198_vm3, %v4189_v56  ;;  %10696 = vmatmul.mubr.msk.bf16.vlgmr.msra.gmra.mrb[100].mxu1 %vm2198_vm3, %v4189_v56  ;;  %v11255_v56 = vld [vmem:[#allocation34] sm:$0xff]  }
0x10d7   :  { %10701 = vmatprep.mubr.msk.bf16.mxu0 %vm12439_vm2, %v12438_v12  ;;  %10707 = vmatprep.mubr.msk.bf16.mxu1 %vm12439_vm2, %v12438_v12 }
0x10d8   :  { %10700 = vmatpush3.bf16.msra.mxu0 %v11252_v57  ;;  %10706 = vmatpush3.bf16.msra.mxu1 %v11253_v14  ;;  %v11256_v57 = vld [vmem:[#allocation34 + $0x8] sm:$0xff]   ;;  %v11265_v14 = vld [vmem:[#allocation34 + $0x50] sm:$0xff]  }
0x10d9   :  { %10711 = vmatprep.subr.bf16.mxu0 %v12438_v12  ;;  %10717 = vmatprep.subr.bf16.mxu1 %v12438_v12 }
0x11a9   :  { %v4242_v60 = vpop.f32.mrb[68].mxu0  ;;  %v4297_v61 = vpop.f32.mrb[100].mxu1 }
0x11aa   :  { %v4243_v62 = vadd.f32 %v9337_v58, %v4242_v60  ;;  %v4298_v63 = vadd.f32 %v9340_v59, %v4297_v61  ;;  %v10691_v0 = vpop.f32.mrb[69].mxu0  ;;  %v10697_v1 = vpop.f32.mrb[101].mxu1  ;;  %v11258_v58 = vld [vmem:[#allocation34 + $0x10] sm:$0xff]   ;;  %v11260_v59 = vld [vmem:[#allocation34 + $0x18] sm:$0xff]  }
0x11ab   :  { %v4245_v2 = vpop.f32.mrb[70].mxu0  ;;  %v4300_v3 = vpop.f32.mrb[102].mxu1  ;;  %v11261_v60 = vld [vmem:[#allocation34 + $0x30] sm:$0xff]   ;;  %v11262_v61 = vld [vmem:[#allocation34 + $0x38] sm:$0xff]  }
0x11ac   :  { %v4307_v4 = vmul.f32 1.442695, %v4298_v63  ;;  %v10692_v5 = vpop.f32.mrb[71].mxu0  ;;  %v10698_v6 = vpop.f32.mrb[103].mxu1  ;;  %4304 = vst.msk [vmem:[#allocation46] sm:$0x3] %vm4303_vm9, %v4243_v62 }
0x11ad   :  { %4305 = vst.msk [vmem:[#allocation47] sm:$0x3] %vm4303_vm9, %v4298_v63 }
0x11ae   :  { %11659 = vpow2.f32 %v4307_v4 }
0x11b8   :  { %v11660_v8 = vpop.eup %11659 }
0x11b9   :  { %v4309_v9 = vmul.f32 %v11660_v8, %v4306_v7  ;;  %v4835_v8 = vld [vmem:[#allocation32 + $0x4] sm:$0x3] }
0x11bb   :  { %v4310_v10 = vadd.f32 %v4309_v9, %v4243_v62  ;;  %v4958_v9 = vld [vmem:[#allocation32 + $0x6] sm:$0x3] }
0x11bd   :  { %v4311_v11 = vpack.c.bf16 %v4310_v10, %v4310_v10  ;;  %v11263_v10 = vld [vmem:[#allocation34 + $0x40] sm:$0xff]  }
0x11bf   :  { %10702 = vmatmul.mubr.msk.bf16.vlgmr.msra.gmra.mrb[72].mxu0 %vm2198_vm3, %v4311_v11  ;;  %v11264_v11 = vld [vmem:[#allocation34 + $0x48] sm:$0xff]  }
0x11c0   :  { %10713 = vmatprep.mubr.msk.bf16.mxu0 %vm12439_vm2, %v12438_v12  ;;  %10712 = vmatpush3.bf16.msra.mxu0 %v11254_v17  ;;  %v11266_v17 = vld [vmem:[#allocation34 + $0x60] sm:$0xff]  }
0x11c1   :  { %10729 = vmatprep.subr.bf16.mxu0 %v12438_v12 }
0x1292   :  { %v4364_v19 = vpop.f32.mrb[72].mxu0 }
0x1293   :  { %v4365_v20 = vadd.f32 %v9343_v18, %v4364_v19  ;;  %v10703_v21 = vpop.f32.mrb[73].mxu0  ;;  %v11267_v18 = vld [vmem:[#allocation34 + $0x58] sm:$0xff]   ;;  %v11268_v19 = vld [vmem:[#allocation34 + $0x68] sm:$0xff]  }
0x1294   :  { %v4367_v22 = vpop.f32.mrb[74].mxu0  ;;  %v11270_v21 = vld [vmem:[#allocation34 + $0x78] sm:$0xff]  }
0x1295   :  { %v4370_v23 = vmax.f32 %v4365_v20, 0.0  ;;  %v10704_v24 = vpop.f32.mrb[75].mxu0  ;;  %v11269_v20 = vld [vmem:[#allocation34 + $0x70] sm:$0xff]  }
0x1297   :  { %v4371_v25 = vpack.c.bf16 %v4370_v23, %v4370_v23 }
0x1299   :  { %10708 = vmatmul.mubr.msk.bf16.vlgmr.msra.gmra.mrb[104].mxu1 %vm2198_vm3, %v4371_v25  ;;  %10714 = vmatmul.mubr.msk.bf16.vlgmr.msra.gmra.mrb[76].mxu0 %vm2198_vm3, %v4371_v25 }
0x129a   :  { %10719 = vmatprep.mubr.msk.bf16.mxu1 %vm12439_vm2, %v12438_v12  ;;  %10731 = vmatprep.mubr.msk.bf16.mxu0 %vm12439_vm2, %v12438_v12 }
0x136c   :  { %v4424_v28 = vpop.f32.mrb[104].mxu1  ;;  %v4484_v29 = vpop.f32.mrb[76].mxu0 }
0x136d   :  { %v4425_v30 = vadd.f32 %v9346_v26, %v4424_v28  ;;  %v4485_v31 = vadd.f32 %v9349_v27, %v4484_v29  ;;  %v10709_v32 = vpop.f32.mrb[105].mxu1  ;;  %v10715_v33 = vpop.f32.mrb[77].mxu0 }
0x136e   :  { %v4427_v34 = vpop.f32.mrb[106].mxu1  ;;  %v4487_v35 = vpop.f32.mrb[78].mxu0 }
0x136f   :  { %v4430_v36 = vmax.f32 %v4425_v30, 0.0  ;;  %v4490_v37 = vmax.f32 %v4485_v31, 0.0  ;;  %v10710_v38 = vpop.f32.mrb[107].mxu1  ;;  %v10716_v39 = vpop.f32.mrb[79].mxu0 }
0x1371   :  { %v4491_v40 = vpack.c.bf16 %v4490_v37, %v4490_v37  ;;  %v4431_v41 = vpack.c.bf16 %v4430_v36, %v4430_v36 }
0x1373   :  { %v4500_v42 = vsel %vm4498_vm10, %v4491_v40, 0  ;;  %v4546_v44 = vsel %vm4498_vm10, %v4431_v41, 0  ;;  %v11273_v41 = vld [vmem:[#allocation37 + $0x20] sm:$0xff]  }
0x1374   :  { %10718 = vmatpush3.bf16.msra.mxu1 %v4500_v42  ;;  %v11275_v42 = vld [vmem:[#allocation37 + $0x28] sm:$0xff]  }
0x1375   :  { %10723 = vmatprep.subr.bf16.mxu1 %v12438_v12 }
0x1377   :  { %10720 = vmatmul.mubr.msk.bf16.vlgmr.msra.gmra.mrb[108].mxu1 %vm4494_vm11, %v9352_v43 }
0x1378   :  { %10724 = vmatpush3.bf16.msra.mxu1 %v4546_v44  ;;  %10725 = vmatprep.mubr.msk.bf16.mxu1 %vm12439_vm2, %v12438_v12 }
0x1379   :  { %10741 = vmatprep.subr.bf16.mxu1 %v12438_v12 }
0x1383   :  { %10726 = vmatmul.mubr.msk.bf16.vlgmr.msra.gmra.mrb[108].mxu1 %vm4494_vm11, %v4432_v45 }
0x1384   :  { %10749 = vmatprep.mubr.msk.bf16.mxu1 %vm12439_vm2, %v12438_v12  ;;  %10742 = vmatpush3.bf16.msra.mxu1 %v11257_v46 }
0x1385   :  { %10743 = vmatprep.subr.bf16.mxu1 %v12438_v12 }
0x1388   :  { %10744 = vmatpush3.bf16.msra.mxu1 %v11259_v47 }
0x1389   :  { %10745 = vmatprep.subr.bf16.mxu1 %v12438_v12 }
0x138c   :  { %10746 = vmatpush3.bf16.msra.mxu1 %v11261_v60  ;;  %v11271_v60 = vld [vmem:[#allocation37] sm:$0xff]  }
0x138d   :  { %10747 = vmatprep.subr.bf16.mxu1 %v12438_v12 }
0x1390   :  { %10748 = vmatpush3.bf16.msra.mxu1 %v11262_v61  ;;  %v11272_v61 = vld [vmem:[#allocation37 + $0x8] sm:$0xff]  }
0x1391   :  { %10765 = vmatprep.subr.bf16.mxu1 %v12438_v12 }
0x1456   :  { %v4582_v48 = vpop.f32.mrb[108].mxu1 }
0x1457   :  { %v4588_v49 = vpack.c.bf16 %v4582_v48, %v4582_v48  ;;  %v10727_v50 = vpop.f32.mrb[109].mxu1 }
0x1458   :  { %v4585_v51 = vpop.f32.mrb[110].mxu1 }
0x1459   :  { %v4594_v52 = vsel %vm3436_vm6, %v4588_v49, 0  ;;  %v10728_v53 = vpop.f32.mrb[111].mxu1  ;;  %v9379_v49 = vld [vmem:[#allocation35] ss:$0 sm:$0xff] }
0x145a   :  { %10730 = vmatpush3.bf16.msra.mxu0 %v4594_v52 }
0x145b   :  { %10735 = vmatprep.subr.bf16.mxu0 %v12438_v12 }
0x145d   :  { %10732 = vmatmul.mubr.msk.bf16.vlgmr.msra.gmra.mrb[80].mxu0 %vm3432_vm7, %v4589_v54 }
0x145e   :  { %10736 = vmatpush3.bf16.msra.mxu0 %v4594_v52  ;;  %10737 = vmatprep.mubr.msk.bf16.mxu0 %vm12439_vm2, %v12438_v12 }
0x145f   :  { %10753 = vmatprep.subr.bf16.mxu0 %v12438_v12 }
0x1465   :  { %10738 = vmatmul.mubr.msk.bf16.vlgmr.msra.gmra.mrb[84].mxu0 %vm3432_vm7, %v4646_v55 }
0x1466   :  { %10754 = vmatpush3.bf16.msra.mxu0 %v11255_v56  ;;  %10761 = vmatprep.mubr.msk.bf16.mxu0 %vm12439_vm2, %v12438_v12 }
0x1467   :  { %10755 = vmatprep.subr.bf16.mxu0 %v12438_v12 }
0x146a   :  { %10756 = vmatpush3.bf16.msra.mxu0 %v11256_v57 }
0x146b   :  { %10757 = vmatprep.subr.bf16.mxu0 %v12438_v12 }
0x146e   :  { %10758 = vmatpush3.bf16.msra.mxu0 %v11258_v58  ;;  %v5090_v58 = vld [vmem:[%s13904_s9] sm:$0xf] }
0x146f   :  { %10759 = vmatprep.subr.bf16.mxu0 %v12438_v12 }
0x1472   :  { %10760 = vmatpush3.bf16.msra.mxu0 %v11260_v59  ;;  %v9381_v59 = vld [vmem:[%s13904_s9 + $0x4] sm:$0xf] }
0x1473   :  { %10771 = vmatprep.subr.bf16.mxu0 %v12438_v12 }
0x1530   :  { %v4630_v62 = vpop.f32.mrb[80].mxu0 }
0x1531   :  { %v4636_v63 = vpack.c.bf16 %v4630_v62, %v4630_v62  ;;  %v10733_v0 = vpop.f32.mrb[81].mxu0  ;;  %v11274_v62 = vld [vmem:[#allocation37 + $0x10] sm:$0xff]  }
0x1532   :  { %v4633_v1 = vpop.f32.mrb[82].mxu0  ;;  %v11277_v0 = vld [vmem:[#allocation37 + $0x30] sm:$0xff]  }
0x1533   :  { %v10734_v2 = vpop.f32.mrb[83].mxu0  ;;  %10762 = vmatmul.mubr.msk.bf16.vlgmr.msra.gmra.mrb[88].mxu0 %vm3568_vm8, %v4636_v63  ;;  %v11276_v63 = vld [vmem:[#allocation37 + $0x18] sm:$0xff]  }
0x1534   :  { %10779 = vmatprep.mubr.msk.bf16.mxu0 %vm12439_vm2, %v12438_v12  ;;  %10772 = vmatpush3.bf16.msra.mxu0 %v11263_v10  ;;  %v11278_v1 = vld [vmem:[#allocation37 + $0x38] sm:$0xff]  }
0x1535   :  { %10773 = vmatprep.subr.bf16.mxu0 %v12438_v12 }
0x1538   :  { %v4684_v3 = vpop.f32.mrb[84].mxu0  ;;  %10774 = vmatpush3.bf16.msra.mxu0 %v11264_v11 }
0x1539   :  { %v4690_v4 = vpack.c.bf16 %v4684_v3, %v4684_v3  ;;  %v10739_v5 = vpop.f32.mrb[85].mxu0  ;;  %10775 = vmatprep.subr.bf16.mxu0 %v12438_v12 }
0x153a   :  { %v4687_v6 = vpop.f32.mrb[86].mxu0 }
0x153b   :  { %v10740_v7 = vpop.f32.mrb[87].mxu0  ;;  %10750 = vmatmul.mubr.msk.bf16.vlgmr.msra.gmra.mrb[112].mxu1 %vm3568_vm8, %v4690_v4 }
0x153c   :  { %10766 = vmatpush3.bf16.msra.mxu1 %v4594_v52  ;;  %10767 = vmatprep.mubr.msk.bf16.mxu1 %vm12439_vm2, %v12438_v12 }
0x153d   :  { %10783 = vmatprep.subr.bf16.mxu1 %v12438_v12  ;;  %10776 = vmatpush3.bf16.msra.mxu0 %v11265_v14  ;;  %v9393_v14 = vld [vmem:[%s13904_s9 + $0x8] sm:$0xf] }
0x153e   :  { %10777 = vmatprep.subr.bf16.mxu0 %v12438_v12 }
0x1541   :  { %10778 = vmatpush3.bf16.msra.mxu0 %v11267_v18  ;;  %v11279_v18 = vld [vmem:[#allocation37 + $0x40] sm:$0xff]  }
0x1542   :  { %10801 = vmatprep.subr.bf16.mxu0 %v12438_v12 }
0x1543   :  { %10768 = vmatmul.mubr.msk.bf16.vlgmr.msra.gmra.mrb[116].mxu1 %vm3432_vm7, %v4835_v8 }
0x1544   :  { %10784 = vmatpush3.bf16.msra.mxu1 %v4594_v52  ;;  %10785 = vmatprep.mubr.msk.bf16.mxu1 %vm12439_vm2, %v12438_v12 }
0x1545   :  { %10789 = vmatprep.subr.bf16.mxu1 %v12438_v12 }
0x154b   :  { %10786 = vmatmul.mubr.msk.bf16.vlgmr.msra.gmra.mrb[120].mxu1 %vm3432_vm7, %v4958_v9 }
0x154c   :  { %10797 = vmatprep.mubr.msk.bf16.mxu1 %vm12439_vm2, %v12438_v12  ;;  %10790 = vmatpush3.bf16.msra.mxu1 %v11266_v17  ;;  %v9400_v17 = vld [vmem:[%s13904_s9 + $0xc] sm:$0xf] }
0x154d   :  { %10791 = vmatprep.subr.bf16.mxu1 %v12438_v12 }
0x1550   :  { %10792 = vmatpush3.bf16.msra.mxu1 %v11268_v19  ;;  %v11280_v19 = vld [vmem:[#allocation37 + $0x48] sm:$0xff]  }
0x1551   :  { %10793 = vmatprep.subr.bf16.mxu1 %v12438_v12 }
0x1554   :  { %10794 = vmatpush3.bf16.msra.mxu1 %v11269_v20  ;;  %v11281_v20 = vld [vmem:[#allocation37 + $0x50] sm:$0xff]  }
0x1555   :  { %10795 = vmatprep.subr.bf16.mxu1 %v12438_v12 }
0x1558   :  { %10796 = vmatpush3.bf16.msra.mxu1 %v11270_v21  ;;  %v11282_v21 = vld [vmem:[#allocation37 + $0x60] sm:$0xff]  }
0x1559   :  { %10813 = vmatprep.subr.bf16.mxu1 %v12438_v12 }
0x1606   :  { %v4828_v22 = vpop.f32.mrb[88].mxu0 }
0x1607   :  { %v10763_v23 = vpop.f32.mrb[89].mxu0 }
0x1608   :  { %v4831_v24 = vpop.f32.mrb[90].mxu0  ;;  %v11284_v23 = vld [vmem:[#allocation37 + $0x68] sm:$0xff]  }
0x1609   :  { %v10764_v25 = vpop.f32.mrb[91].mxu0  ;;  %v11285_v24 = vld [vmem:[#allocation37 + $0x70] sm:$0xff]  }
0x160a   :  { %v11286_v25 = vld [vmem:[#allocation37 + $0x78] sm:$0xff]  }
0x160e   :  { %v4761_v26 = vpop.f32.mrb[112].mxu1 }
0x160f   :  { %v4829_v27 = vadd.f32 %v4828_v22, %v4761_v26  ;;  %v10751_v28 = vpop.f32.mrb[113].mxu1  ;;  %v11283_v22 = vld [vmem:[#allocation37 + $0x58] sm:$0xff]  }
0x1610   :  { %v4764_v29 = vpop.f32.mrb[114].mxu1 }
0x1611   :  { %v10752_v30 = vpop.f32.mrb[115].mxu1 }
0x1616   :  { %v4873_v31 = vpop.f32.mrb[116].mxu1 }
0x1617   :  { %v4879_v32 = vpack.c.bf16 %v4873_v31, %v4873_v31  ;;  %v10769_v33 = vpop.f32.mrb[117].mxu1 }
0x1618   :  { %v4876_v34 = vpop.f32.mrb[118].mxu1 }
0x1619   :  { %v10770_v35 = vpop.f32.mrb[119].mxu1  ;;  %10780 = vmatmul.mubr.msk.bf16.vlgmr.msra.gmra.mrb[92].mxu0 %vm3568_vm8, %v4879_v32 }
0x161a   :  { %10803 = vmatprep.mubr.msk.bf16.mxu0 %vm12439_vm2, %v12438_v12 }
0x161e   :  { %v4996_v36 = vpop.f32.mrb[120].mxu1 }
0x161f   :  { %v5002_v37 = vpack.c.bf16 %v4996_v36, %v4996_v36  ;;  %v10787_v38 = vpop.f32.mrb[121].mxu1 }
0x1620   :  { %v4999_v39 = vpop.f32.mrb[122].mxu1 }
0x1621   :  { %v10788_v40 = vpop.f32.mrb[123].mxu1  ;;  %10798 = vmatmul.mubr.msk.bf16.vlgmr.msra.gmra.mrb[124].mxu1 %vm3568_vm8, %v5002_v37 }
0x1622   :  { %10821 = vmatprep.mubr.msk.bf16.mxu1 %vm12439_vm2, %v12438_v12  ;;  %10814 = vmatpush3.bf16.msra.mxu1 %v11273_v41 }
0x1623   :  { %10815 = vmatprep.subr.bf16.mxu1 %v12438_v12 }
0x1626   :  { %10816 = vmatpush3.bf16.msra.mxu1 %v11275_v42 }
0x1627   :  { %10817 = vmatprep.subr.bf16.mxu1 %v12438_v12 }
0x162a   :  { %10818 = vmatpush3.bf16.msra.mxu1 %v11277_v0 }
0x162b   :  { %10819 = vmatprep.subr.bf16.mxu1 %v12438_v12 }
0x162e   :  { %10820 = vmatpush3.bf16.msra.mxu1 %v11278_v1 }
0x162f   :  { %10837 = vmatprep.subr.bf16.mxu1 %v12438_v12 }
0x16ec   :  { %v4950_v43 = vpop.f32.mrb[92].mxu0 }
0x16ed   :  { %v4956_v44 = vadd.f32 %v4950_v43, %v4829_v27  ;;  %v10781_v45 = vpop.f32.mrb[93].mxu0 }
0x16ee   :  { %v4953_v46 = vpop.f32.mrb[94].mxu0  ;;  %v11291_v45 = vld [vmem:[#allocation40 + $0x80] ss:$8 sps:$4 sm:$0xff]  }
0x16ef   :  { %v10782_v47 = vpop.f32.mrb[95].mxu0  ;;  %v11293_v46 = vld [vmem:[#allocation40 + $0x84] ss:$8 sps:$4 sm:$0xff]  }
0x16f0   :  { %v11296_v47 = vld [vmem:[#allocation40 + $0x94] ss:$8 sps:$4 sm:$0xff]  }
0x16f4   :  { %v5073_v48 = vpop.f32.mrb[124].mxu1 }
0x16f5   :  { %v5079_v50 = vadd.f32 %v5073_v48, %v4956_v44  ;;  %v10799_v51 = vpop.f32.mrb[125].mxu1  ;;  %v11294_v48 = vld [vmem:[#allocation40 + $0x90] ss:$8 sps:$4 sm:$0xff]  }
0x16f6   :  { %v5076_v52 = vpop.f32.mrb[126].mxu1  ;;  %v11302_v51 = vld [vmem:[#allocation40 + $0xb4] ss:$8 sps:$4 sm:$0xff]  }
0x16f7   :  { %v5087_v53 = vadd.f32 %v9379_v49, %v5079_v50  ;;  %v10800_v54 = vpop.f32.mrb[127].mxu1  ;;  %v11299_v49 = vld [vmem:[#allocation40 + $0xa4] ss:$8 sps:$4 sm:$0xff]   ;;  %v11297_v50 = vld [vmem:[#allocation40 + $0xa0] ss:$8 sps:$4 sm:$0xff]  }
0x16f8   :  { %v11300_v52 = vld [vmem:[#allocation40 + $0xb0] ss:$8 sps:$4 sm:$0xff]   ;;  %v11303_v54 = vld [vmem:[#allocation40 + $0xc0] ss:$8 sps:$4 sm:$0xff]  }
0x16f9   :  { %v5088_v55 = vmax.f32 %v5087_v53, 0.0  ;;  %v11305_v53 = vld [vmem:[#allocation40 + $0xc4] ss:$8 sps:$4 sm:$0xff]  }
0x16fb   :  { %v5089_v56 = vpack.c.bf16 %v5088_v55, %v5088_v55 }
0x16fd   :  { %v5095_v57 = vsel %vm3436_vm6, %v5089_v56, 0 }
0x16fe   :  { %10802 = vmatpush3.bf16.msra.mxu0 %v5095_v57 }
0x16ff   :  { %10807 = vmatprep.subr.bf16.mxu0 %v12438_v12 }
0x1701   :  { %10804 = vmatmul.mubr.msk.bf16.vlgmr.msra.gmra.mrb[96].mxu0 %vm3432_vm7, %v5090_v58 }
0x1702   :  { %10808 = vmatpush3.bf16.msra.mxu0 %v5095_v57  ;;  %10809 = vmatprep.mubr.msk.bf16.mxu0 %vm12439_vm2, %v12438_v12 }
0x1703   :  { %10825 = vmatprep.subr.bf16.mxu0 %v12438_v12 }
0x1709   :  { %10810 = vmatmul.mubr.msk.bf16.vlgmr.msra.gmra.mrb[100].mxu0 %vm3432_vm7, %v9381_v59 }
0x170a   :  { %10826 = vmatpush3.bf16.msra.mxu0 %v11271_v60  ;;  %10833 = vmatprep.mubr.msk.bf16.mxu0 %vm12439_vm2, %v12438_v12 }
0x170b   :  { %10827 = vmatprep.subr.bf16.mxu0 %v12438_v12 }
0x170e   :  { %10828 = vmatpush3.bf16.msra.mxu0 %v11272_v61  ;;  %v9407_v61 = vld [vmem:[#allocation38] ss:$0 sm:$0xff] }
0x170f   :  { %10829 = vmatprep.subr.bf16.mxu0 %v12438_v12 }
0x1712   :  { %10830 = vmatpush3.bf16.msra.mxu0 %v11274_v62 }
0x1713   :  { %10831 = vmatprep.subr.bf16.mxu0 %v12438_v12 }
0x1716   :  { %10832 = vmatpush3.bf16.msra.mxu0 %v11276_v63 }
0x1717   :  { %10843 = vmatprep.subr.bf16.mxu0 %v12438_v12 }
0x17d4   :  { %v5131_v2 = vpop.f32.mrb[96].mxu0 }
0x17d5   :  { %v5137_v3 = vpack.c.bf16 %v5131_v2, %v5131_v2  ;;  %v10805_v4 = vpop.f32.mrb[97].mxu0 }
0x17d6   :  { %v5134_v5 = vpop.f32.mrb[98].mxu0 }
0x17d7   :  { %v10806_v6 = vpop.f32.mrb[99].mxu0  ;;  %10834 = vmatmul.mubr.msk.bf16.vlgmr.msra.gmra.mrb[104].mxu0 %vm3568_vm8, %v5137_v3 }
0x17d8   :  { %10851 = vmatprep.mubr.msk.bf16.mxu0 %vm12439_vm2, %v12438_v12  ;;  %10844 = vmatpush3.bf16.msra.mxu0 %v11279_v18  ;;  %v11287_v6 = vld [vmem:[%s13905_s25] sm:$0xff]  }
0x17d9   :  { %10845 = vmatprep.subr.bf16.mxu0 %v12438_v12  ;;  %v11314_v18 = vld [vmem:[#allocation40 + $0xf4] ss:$8 sps:$4 sm:$0xff]  }
0x17dc   :  { %v5185_v7 = vpop.f32.mrb[100].mxu0  ;;  %10846 = vmatpush3.bf16.msra.mxu0 %v11280_v19  ;;  %v11312_v19 = vld [vmem:[#allocation40 + $0xf0] ss:$8 sps:$4 sm:$0xff]  }
0x17dd   :  { %v5191_v8 = vpack.c.bf16 %v5185_v7, %v5185_v7  ;;  %v10811_v9 = vpop.f32.mrb[101].mxu0  ;;  %10847 = vmatprep.subr.bf16.mxu0 %v12438_v12  ;;  %v11288_v7 = vld [vmem:[%s13905_s25 + $0x8] sm:$0xff]  }
0x17de   :  { %v5188_v10 = vpop.f32.mrb[102].mxu0  ;;  %v11290_v9 = vld [vmem:[%s13905_s25 + $0x18] sm:$0xff]  }
0x17df   :  { %v10812_v11 = vpop.f32.mrb[103].mxu0  ;;  %10822 = vmatmul.mubr.msk.bf16.vlgmr.msra.gmra.mrb[128].mxu1 %vm3568_vm8, %v5191_v8  ;;  %v11289_v8 = vld [vmem:[%s13905_s25 + $0x10] sm:$0xff]  }
0x17e0   :  { %10838 = vmatpush3.bf16.msra.mxu1 %v5095_v57  ;;  %10839 = vmatprep.mubr.msk.bf16.mxu1 %vm12439_vm2, %v12438_v12  ;;  %v11308_v10 = vld [vmem:[#allocation40 + $0xd4] ss:$8 sps:$4 sm:$0xff]   ;;  %v11306_v11 = vld [vmem:[#allocation40 + $0xd0] ss:$8 sps:$4 sm:$0xff]  }
0x17e1   :  { %10855 = vmatprep.subr.bf16.mxu1 %v12438_v12  ;;  %10848 = vmatpush3.bf16.msra.mxu0 %v11281_v20  ;;  %v11317_v20 = vld [vmem:[#allocation40 + $0x4] ss:$8 sps:$4 sm:$0xff]  }
0x17e2   :  { %10849 = vmatprep.subr.bf16.mxu0 %v12438_v12 }
0x17e5   :  { %10850 = vmatpush3.bf16.msra.mxu0 %v11283_v22 }
0x17e6   :  { %10873 = vmatprep.subr.bf16.mxu0 %v12438_v12 }
0x17e7   :  { %10840 = vmatmul.mubr.msk.bf16.vlgmr.msra.gmra.mrb[132].mxu1 %vm3432_vm7, %v9393_v14  ;;  %v11309_v14 = vld [vmem:[#allocation40 + $0xe0] ss:$8 sps:$4 sm:$0xff]  }
0x17e8   :  { %10856 = vmatpush3.bf16.msra.mxu1 %v5095_v57  ;;  %10857 = vmatprep.mubr.msk.bf16.mxu1 %vm12439_vm2, %v12438_v12 }
0x17e9   :  { %10861 = vmatprep.subr.bf16.mxu1 %v12438_v12 }
0x17ef   :  { %10858 = vmatmul.mubr.msk.bf16.vlgmr.msra.gmra.mrb[136].mxu1 %vm3432_vm7, %v9400_v17  ;;  %v11311_v17 = vld [vmem:[#allocation40 + $0xe4] ss:$8 sps:$4 sm:$0xff]  }
0x17f0   :  { %10869 = vmatprep.mubr.msk.bf16.mxu1 %vm12439_vm2, %v12438_v12  ;;  %10862 = vmatpush3.bf16.msra.mxu1 %v11282_v21 }
0x17f1   :  { %10863 = vmatprep.subr.bf16.mxu1 %v12438_v12 }
0x17f4   :  { %10864 = vmatpush3.bf16.msra.mxu1 %v11284_v23 }
0x17f5   :  { %10865 = vmatprep.subr.bf16.mxu1 %v12438_v12 }
0x17f8   :  { %10866 = vmatpush3.bf16.msra.mxu1 %v11285_v24 }
0x17f9   :  { %10867 = vmatprep.subr.bf16.mxu1 %v12438_v12 }
0x17fc   :  { %10868 = vmatpush3.bf16.msra.mxu1 %v11286_v25 }
0x17fd   :  { %5812 = vmatprep.subr.bf16.mxu1 %v11293_v46 }
0x18aa   :  { %v5329_v26 = vpop.f32.mrb[104].mxu0 }
0x18ab   :  { %v10835_v27 = vpop.f32.mrb[105].mxu0 }
0x18ac   :  { %v5332_v28 = vpop.f32.mrb[106].mxu0 }
0x18ad   :  { %v10836_v29 = vpop.f32.mrb[107].mxu0  ;;  %v11315_v28 = vld [vmem:[#allocation40] ss:$8 sps:$4 sm:$0xff]  }
0x18b2   :  { %v5262_v30 = vpop.f32.mrb[128].mxu1 }
0x18b3   :  { %v5330_v31 = vadd.f32 %v5329_v26, %v5262_v30  ;;  %v10823_v32 = vpop.f32.mrb[129].mxu1 }
0x18b4   :  { %v5265_v33 = vpop.f32.mrb[130].mxu1  ;;  %v11318_v32 = vld [vmem:[#allocation40 + $0x10] ss:$8 sps:$4 sm:$0xff]  }
0x18b5   :  { %v10824_v34 = vpop.f32.mrb[131].mxu1  ;;  %v11323_v33 = vld [vmem:[#allocation40 + $0x24] ss:$8 sps:$4 sm:$0xff]  }
0x18ba   :  { %v5374_v35 = vpop.f32.mrb[132].mxu1 }
0x18bb   :  { %v5380_v36 = vpack.c.bf16 %v5374_v35, %v5374_v35  ;;  %v10841_v37 = vpop.f32.mrb[133].mxu1 }
0x18bc   :  { %v5377_v38 = vpop.f32.mrb[134].mxu1 }
0x18bd   :  { %v10842_v39 = vpop.f32.mrb[135].mxu1  ;;  %10852 = vmatmul.mubr.msk.bf16.vlgmr.msra.gmra.mrb[108].mxu0 %vm3568_vm8, %v5380_v36  ;;  %v11321_v36 = vld [vmem:[#allocation40 + $0x20] ss:$8 sps:$4 sm:$0xff]   ;;  %v11326_v38 = vld [vmem:[#allocation40 + $0x34] ss:$8 sps:$4 sm:$0xff]  }
0x18be   :  { %10875 = vmatprep.mubr.msk.bf16.mxu0 %vm12439_vm2, %v12438_v12 }
0x18c2   :  { %v5497_v40 = vpop.f32.mrb[136].mxu1 }
0x18c3   :  { %v5503_v41 = vpack.c.bf16 %v5497_v40, %v5497_v40  ;;  %v10859_v42 = vpop.f32.mrb[137].mxu1 }
0x18c4   :  { %v5500_v43 = vpop.f32.mrb[138].mxu1  ;;  %v11329_v42 = vld [vmem:[#allocation40 + $0x44] ss:$8 sps:$4 sm:$0xff]  }
0x18c5   :  { %v10860_v44 = vpop.f32.mrb[139].mxu1  ;;  %10870 = vmatmul.mubr.msk.bf16.vlgmr.msra.gmra.mrb[140].mxu1 %vm3568_vm8, %v5503_v41  ;;  %v11324_v41 = vld [vmem:[#allocation40 + $0x30] ss:$8 sps:$4 sm:$0xff]  }
0x18c6   :  { %5844 = vmatprep.mubr.bf16.mxu1 %v12437_v16  ;;  %5813 = vmatpush1.bf16.msra.mxu1 %v11291_v45  ;;  %v11327_v45 = vld [vmem:[#allocation40 + $0x40] ss:$8 sps:$4 sm:$0xff]  }
0x18c7   :  { %5814 = vmatprep.subr.bf16.mxu1 %v11296_v47  ;;  %v11332_v47 = vld [vmem:[#allocation40 + $0x54] ss:$8 sps:$4 sm:$0xff]  }
0x18ca   :  { %5815 = vmatpush1.bf16.msra.mxu1 %v11294_v48 }
0x18cb   :  { %5816 = vmatprep.subr.bf16.mxu1 %v11299_v49 }
0x18ce   :  { %5817 = vmatpush1.bf16.msra.mxu1 %v11297_v50  ;;  %v11330_v50 = vld [vmem:[#allocation40 + $0x50] ss:$8 sps:$4 sm:$0xff]  }
0x18cf   :  { %5818 = vmatprep.subr.bf16.mxu1 %v11302_v51  ;;  %v11335_v51 = vld [vmem:[#allocation40 + $0x64] ss:$8 sps:$4 sm:$0xff]  }
0x18d2   :  { %5819 = vmatpush1.bf16.msra.mxu1 %v11300_v52  ;;  %v11333_v52 = vld [vmem:[#allocation40 + $0x60] ss:$8 sps:$4 sm:$0xff]  }
0x18d3   :  { %5820 = vmatprep.subr.bf16.mxu1 %v11305_v53  ;;  %v11338_v53 = vld [vmem:[#allocation40 + $0x74] ss:$8 sps:$4 sm:$0xff]  }
0x18d6   :  { %5821 = vmatpush1.bf16.msra.mxu1 %v11303_v54  ;;  %v11336_v54 = vld [vmem:[#allocation40 + $0x70] ss:$8 sps:$4 sm:$0xff]  }
0x18d7   :  { %5822 = vmatprep.subr.bf16.mxu1 %v11308_v10  ;;  %v11366_v10 = vld [vmem:[#allocation40 + $0x190] ss:$8 sps:$4 sm:$0xff]  }
0x18da   :  { %5823 = vmatpush1.bf16.msra.mxu1 %v11306_v11  ;;  %v11371_v11 = vld [vmem:[#allocation40 + $0x1a4] ss:$8 sps:$4 sm:$0xff]  }
0x18db   :  { %5824 = vmatprep.subr.bf16.mxu1 %v11311_v17  ;;  %v11374_v17 = vld [vmem:[#allocation40 + $0x1b4] ss:$8 sps:$4 sm:$0xff]  }
0x18de   :  { %5825 = vmatpush1.bf16.msra.mxu1 %v11309_v14  ;;  %v11369_v14 = vld [vmem:[#allocation40 + $0x1a0] ss:$8 sps:$4 sm:$0xff]  }
0x18df   :  { %5826 = vmatprep.subr.bf16.mxu1 %v11314_v18  ;;  %v11372_v18 = vld [vmem:[#allocation40 + $0x1b0] ss:$8 sps:$4 sm:$0xff]  }
0x18e2   :  { %5827 = vmatpush1.bf16.msra.mxu1 %v11312_v19  ;;  %v11377_v19 = vld [vmem:[#allocation40 + $0x1c4] ss:$8 sps:$4 sm:$0xff]  }
0x18e3   :  { %5935 = vmatprep.subr.bf16.mxu1 %v11317_v20  ;;  %v11375_v20 = vld [vmem:[#allocation40 + $0x1c0] ss:$8 sps:$4 sm:$0xff]  }
0x1990   :  { %v5451_v55 = vpop.f32.mrb[108].mxu0 }
0x1991   :  { %v5457_v56 = vadd.f32 %v5451_v55, %v5330_v31  ;;  %v10853_v57 = vpop.f32.mrb[109].mxu0  ;;  %v11320_v31 = vld [vmem:[#allocation40 + $0x14] ss:$8 sps:$4 sm:$0xff]   ;;  %v11341_v55 = vld [vmem:[#allocation40 + $0x104] ss:$8 sps:$4 sm:$0xff]  }
0x1992   :  { %v5454_v58 = vpop.f32.mrb[110].mxu0  ;;  %v11344_v57 = vld [vmem:[#allocation40 + $0x114] ss:$8 sps:$4 sm:$0xff]  }
0x1993   :  { %v10854_v59 = vpop.f32.mrb[111].mxu0  ;;  %v11342_v58 = vld [vmem:[#allocation40 + $0x110] ss:$8 sps:$4 sm:$0xff]  }
0x1994   :  { %v11347_v59 = vld [vmem:[#allocation40 + $0x124] ss:$8 sps:$4 sm:$0xff]  }
0x1998   :  { %v5574_v60 = vpop.f32.mrb[140].mxu1 }
0x1999   :  { %v5580_v62 = vadd.f32 %v5574_v60, %v5457_v56  ;;  %v10871_v63 = vpop.f32.mrb[141].mxu1  ;;  %v11339_v56 = vld [vmem:[#allocation40 + $0x100] ss:$8 sps:$4 sm:$0xff]  }
0x199a   :  { %v5577_v0 = vpop.f32.mrb[142].mxu1  ;;  %v11345_v60 = vld [vmem:[#allocation40 + $0x120] ss:$8 sps:$4 sm:$0xff]   ;;  %v11353_v63 = vld [vmem:[#allocation40 + $0x144] ss:$8 sps:$4 sm:$0xff]  }
0x199b   :  { %v5588_v1 = vadd.f32 %v9407_v61, %v5580_v62  ;;  %v10872_v2 = vpop.f32.mrb[143].mxu1  ;;  %v11350_v61 = vld [vmem:[#allocation40 + $0x134] ss:$8 sps:$4 sm:$0xff]   ;;  %v11348_v62 = vld [vmem:[#allocation40 + $0x130] ss:$8 sps:$4 sm:$0xff]  }
0x199c   :  { %v11351_v0 = vld [vmem:[#allocation40 + $0x140] ss:$8 sps:$4 sm:$0xff]   ;;  %v11354_v2 = vld [vmem:[#allocation40 + $0x150] ss:$8 sps:$4 sm:$0xff]  }
0x199d   :  { %v5589_v3 = vmax.f32 %v5588_v1, 0.0  ;;  %v11356_v1 = vld [vmem:[#allocation40 + $0x154] ss:$8 sps:$4 sm:$0xff]  }
0x199f   :  { %v5590_v4 = vpack.c.bf16 %v5589_v3, %v5589_v3  ;;  %v11359_v3 = vld [vmem:[#allocation40 + $0x164] ss:$8 sps:$4 sm:$0xff]  }
0x19a1   :  { %v5602_v5 = vsel %vm2817_vm4, %v5590_v4, 0  ;;  %v11357_v4 = vld [vmem:[#allocation40 + $0x160] ss:$8 sps:$4 sm:$0xff]  }
0x19a2   :  { %10874 = vmatpush3.bf16.msra.mxu0 %v5602_v5 }
0x19a3   :  { %10879 = vmatprep.subr.bf16.mxu0 %v12438_v12 }
0x19a5   :  { %10876 = vmatmul.mubr.msk.bf16.vlgmr.msra.gmra.mrb[112].mxu0 %vm2813_vm5, %v11287_v6  ;;  %v11360_v6 = vld [vmem:[#allocation40 + $0x170] ss:$8 sps:$4 sm:$0xff]  }
0x19a6   :  { %10880 = vmatpush3.bf16.msra.mxu0 %v5602_v5  ;;  %10881 = vmatprep.mubr.msk.bf16.mxu0 %vm12439_vm2, %v12438_v12 }
0x19a7   :  { %10885 = vmatprep.subr.bf16.mxu0 %v12438_v12 }
0x19ad   :  { %10882 = vmatmul.mubr.msk.bf16.vlgmr.msra.gmra.mrb[116].mxu0 %vm2813_vm5, %v11288_v7  ;;  %v11365_v7 = vld [vmem:[#allocation40 + $0x184] ss:$8 sps:$4 sm:$0xff]  }
0x19ae   :  { %10886 = vmatpush3.bf16.msra.mxu0 %v5602_v5  ;;  %10887 = vmatprep.mubr.msk.bf16.mxu0 %vm12439_vm2, %v12438_v12 }
0x19af   :  { %10891 = vmatprep.subr.bf16.mxu0 %v12438_v12 }
0x19b5   :  { %10888 = vmatmul.mubr.msk.bf16.vlgmr.msra.gmra.mrb[120].mxu0 %vm2813_vm5, %v11289_v8  ;;  %v11363_v8 = vld [vmem:[#allocation40 + $0x180] ss:$8 sps:$4 sm:$0xff]  }
0x19b6   :  { %10892 = vmatpush3.bf16.msra.mxu0 %v5602_v5  ;;  %10893 = vmatprep.mubr.msk.bf16.mxu0 %vm12439_vm2, %v12438_v12  ;;  %v11362_v5 = vld [vmem:[#allocation40 + $0x174] ss:$8 sps:$4 sm:$0xff]  }
0x19bd   :  { %10894 = vmatmul.mubr.msk.bf16.vlgmr.msra.gmra.mrb[124].mxu0 %vm2813_vm5, %v11290_v9  ;;  %v11368_v9 = vld [vmem:[#allocation40 + $0x194] ss:$8 sps:$4 sm:$0xff]  }
0x19be   :  { %6446 = vmatprep.mubr.bf16.mxu0 %v12437_v16 }
0x1a78   :  { %v5638_v12 = vpop.f32.mrb[112].mxu0 }
0x1a79   :  { %v10877_v21 = vpop.f32.mrb[113].mxu0 }
0x1a7a   :  { %v5641_v22 = vpop.f32.mrb[114].mxu0  ;;  %v11378_v21 = vld [vmem:[#allocation40 + $0x1d0] ss:$8 sps:$4 sm:$0xff]  }
0x1a7b   :  { %v5645_v23 = vpack.c.bf16 %v5641_v22, %v5638_v12  ;;  %v10878_v24 = vpop.f32.mrb[115].mxu0  ;;  %v11380_v12 = vld [vmem:[#allocation40 + $0x1d4] ss:$8 sps:$4 sm:$0xff]   ;;  %v11383_v22 = vld [vmem:[#allocation40 + $0x1e4] ss:$8 sps:$4 sm:$0xff]  }
0x1a7c   :  { %v11386_v24 = vld [vmem:[#allocation40 + $0x1f4] ss:$8 sps:$4 sm:$0xff]  }
0x1a80   :  { %v5707_v25 = vpop.f32.mrb[116].mxu0 }
0x1a81   :  { %v10883_v26 = vpop.f32.mrb[117].mxu0 }
0x1a82   :  { %v5710_v27 = vpop.f32.mrb[118].mxu0  ;;  %v6372_v26 = vld [vmem:[#allocation41] sm:$0x3] }
0x1a83   :  { %v5714_v29 = vpack.c.bf16 %v5710_v27, %v5707_v25  ;;  %v10884_v30 = vpop.f32.mrb[119].mxu0  ;;  %v11384_v25 = vld [vmem:[#allocation40 + $0x1f0] ss:$8 sps:$4 sm:$0xff]   ;;  %v6377_v27 = vrot.slane %v6372_v26, %v12910_v13 }
0x1a85   :  { %5845 = vmatmul.mubr.bf16.vlgmr.msra.gmra.mrb[144].mxu1 %v5714_v29 }
0x1a86   :  { %5936 = vmatpush1.bf16.msra.mxu1 %v11315_v28  ;;  %5967 = vmatprep.mubr.bf16.mxu1 %v12437_v16  ;;  %v6381_v28 = vrot.slane %v6372_v26, %v12912_v15 }
0x1a87   :  { %5937 = vmatprep.subr.bf16.mxu1 %v11320_v31 }
0x1a88   :  { %v13403_v34 = vpop.f32.mrb[120].mxu0 }
0x1a89   :  { %v10889_v35 = vpop.f32.mrb[121].mxu0 }
0x1a8a   :  { %5938 = vmatpush1.bf16.msra.mxu1 %v11318_v32  ;;  %v13405_v37 = vpop.f32.mrb[122].mxu0 }
0x1a8b   :  { %5939 = vmatprep.subr.bf16.mxu1 %v11323_v33  ;;  %v6030_v39 = vpack.c.bf16 %v13405_v37, %v13403_v34  ;;  %v10890_v40 = vpop.f32.mrb[123].mxu0 }
0x1a8e   :  { %5940 = vmatpush1.bf16.msra.mxu1 %v11321_v36 }
0x1a8f   :  { %5941 = vmatprep.subr.bf16.mxu1 %v11326_v38 }
0x1a90   :  { %v13409_v43 = vpop.f32.mrb[124].mxu0 }
0x1a91   :  { %v10895_v44 = vpop.f32.mrb[125].mxu0 }
0x1a92   :  { %5942 = vmatpush1.bf16.msra.mxu1 %v11324_v41  ;;  %v13411_v46 = vpop.f32.mrb[126].mxu0  ;;  %v11388_v44 = vld [vmem:[%s13906_s26 + $0x20] sm:$0xff]  }
0x1a93   :  { %5943 = vmatprep.subr.bf16.mxu1 %v11329_v42  ;;  %v6227_v48 = vpack.c.bf16 %v13411_v46, %v13409_v43  ;;  %v10896_v49 = vpop.f32.mrb[127].mxu0  ;;  %v11387_v43 = vld [vmem:[%s13906_s26] sm:$0xff]   ;;  %v11389_v46 = vld [vmem:[%s13906_s26 + $0x8] sm:$0xff]  }
0x1a94   :  { %v11420_v49 = vld [vmem:[%s13906_s26 + $0x30] sm:$0xff]  }
0x1a96   :  { %5944 = vmatpush1.bf16.msra.mxu1 %v11327_v45  ;;  %v11394_v45 = vld [vmem:[%s13907_s29 + $0x104] ss:$8 sps:$4 sm:$0xff]  }
0x1a97   :  { %5945 = vmatprep.subr.bf16.mxu1 %v11332_v47  ;;  %v11413_v47 = vld [vmem:[%s13906_s26 + $0x28] sm:$0xff]  }
0x1a9a   :  { %5946 = vmatpush1.bf16.msra.mxu1 %v11330_v50  ;;  %v11392_v50 = vld [vmem:[%s13907_s29 + $0x100] ss:$8 sps:$4 sm:$0xff]  }
0x1a9b   :  { %5947 = vmatprep.subr.bf16.mxu1 %v11335_v51  ;;  %v11397_v51 = vld [vmem:[%s13907_s29 + $0x114] ss:$8 sps:$4 sm:$0xff]  }
0x1a9e   :  { %5948 = vmatpush1.bf16.msra.mxu1 %v11333_v52  ;;  %v11395_v52 = vld [vmem:[%s13907_s29 + $0x110] ss:$8 sps:$4 sm:$0xff]  }
0x1a9f   :  { %5949 = vmatprep.subr.bf16.mxu1 %v11338_v53  ;;  %v11400_v53 = vld [vmem:[%s13907_s29 + $0x124] ss:$8 sps:$4 sm:$0xff]  }
0x1aa2   :  { %5950 = vmatpush1.bf16.msra.mxu1 %v11336_v54  ;;  %v11391_v54 = vld [vmem:[%s13906_s26 + $0x18] sm:$0xff]  }
0x1aa3   :  { %6128 = vmatprep.subr.bf16.mxu1 %v11341_v55  ;;  %v11398_v55 = vld [vmem:[%s13907_s29 + $0x120] ss:$8 sps:$4 sm:$0xff]  }
0x1aa5   :  { %5968 = vmatmul.mubr.bf16.vlgmr.msra.gmra.mrb[144].mxu1 %v5645_v23  ;;  %v11381_v23 = vld [vmem:[#allocation40 + $0x1e0] ss:$8 sps:$4 sm:$0xff]  }
0x1aa6   :  { %6129 = vmatpush1.bf16.msra.mxu1 %v11339_v56  ;;  %6160 = vmatprep.mubr.bf16.mxu1 %v12437_v16  ;;  %v11403_v56 = vld [vmem:[%s13907_s29 + $0x134] ss:$8 sps:$4 sm:$0xff]  }
0x1aa7   :  { %6130 = vmatprep.subr.bf16.mxu1 %v11344_v57  ;;  %v11401_v57 = vld [vmem:[%s13907_s29 + $0x130] ss:$8 sps:$4 sm:$0xff]  }
0x1aaa   :  { %6131 = vmatpush1.bf16.msra.mxu1 %v11342_v58  ;;  %v11406_v58 = vld [vmem:[%s13907_s29 + $0x144] ss:$8 sps:$4 sm:$0xff]  }
0x1aab   :  { %6132 = vmatprep.subr.bf16.mxu1 %v11347_v59  ;;  %v11404_v59 = vld [vmem:[%s13907_s29 + $0x140] ss:$8 sps:$4 sm:$0xff]  }
0x1aae   :  { %6133 = vmatpush1.bf16.msra.mxu1 %v11345_v60  ;;  %v11409_v60 = vld [vmem:[%s13907_s29 + $0x154] ss:$8 sps:$4 sm:$0xff]  }
0x1aaf   :  { %6134 = vmatprep.subr.bf16.mxu1 %v11350_v61  ;;  %v11407_v61 = vld [vmem:[%s13907_s29 + $0x150] ss:$8 sps:$4 sm:$0xff]  }
0x1ab2   :  { %6135 = vmatpush1.bf16.msra.mxu1 %v11348_v62  ;;  %v11412_v62 = vld [vmem:[%s13907_s29 + $0x164] ss:$8 sps:$4 sm:$0xff]  }
0x1ab3   :  { %6136 = vmatprep.subr.bf16.mxu1 %v11353_v63  ;;  %v11410_v63 = vld [vmem:[%s13907_s29 + $0x160] ss:$8 sps:$4 sm:$0xff]  }
0x1ab6   :  { %6137 = vmatpush1.bf16.msra.mxu1 %v11351_v0  ;;  %v11416_v0 = vld [vmem:[%s13907_s29 + $0x174] ss:$8 sps:$4 sm:$0xff]  }
0x1ab7   :  { %6138 = vmatprep.subr.bf16.mxu1 %v11356_v1  ;;  %v11414_v1 = vld [vmem:[%s13907_s29 + $0x170] ss:$8 sps:$4 sm:$0xff]  }
0x1aba   :  { %6139 = vmatpush1.bf16.msra.mxu1 %v11354_v2  ;;  %v11419_v2 = vld [vmem:[%s13907_s29 + $0x184] ss:$8 sps:$4 sm:$0xff]  }
0x1abb   :  { %6140 = vmatprep.subr.bf16.mxu1 %v11359_v3  ;;  %v11417_v3 = vld [vmem:[%s13907_s29 + $0x180] ss:$8 sps:$4 sm:$0xff]  }
0x1abe   :  { %6141 = vmatpush1.bf16.msra.mxu1 %v11357_v4  ;;  %v11423_v4 = vld [vmem:[%s13907_s29 + $0x194] ss:$8 sps:$4 sm:$0xff]  }
0x1abf   :  { %6142 = vmatprep.subr.bf16.mxu1 %v11362_v5  ;;  %v11421_v5 = vld [vmem:[%s13907_s29 + $0x190] ss:$8 sps:$4 sm:$0xff]  }
0x1ac2   :  { %6143 = vmatpush1.bf16.msra.mxu1 %v11360_v6  ;;  %v11426_v6 = vld [vmem:[%s13907_s29 + $0x1a4] ss:$8 sps:$4 sm:$0xff]  }
0x1ac3   :  { %6325 = vmatprep.subr.bf16.mxu1 %v11365_v7  ;;  %v11424_v7 = vld [vmem:[%s13907_s29 + $0x1a0] ss:$8 sps:$4 sm:$0xff]  }
0x1ac5   :  { %6161 = vmatmul.mubr.bf16.vlgmr.msra.gmra.mrb[144].mxu1 %v6030_v39 }
0x1ac6   :  { %6326 = vmatpush1.bf16.msra.mxu1 %v11363_v8  ;;  %6357 = vmatprep.mubr.bf16.mxu1 %v12437_v16  ;;  %v11427_v8 = vld [vmem:[%s13906_s26 + $0x38] sm:$0xff]  }
0x1ac7   :  { %6327 = vmatprep.subr.bf16.mxu1 %v11368_v9  ;;  %v11430_v9 = vld [vmem:[%s13907_s29 + $0x1b4] ss:$8 sps:$4 sm:$0xff]  }
0x1aca   :  { %6328 = vmatpush1.bf16.msra.mxu1 %v11366_v10  ;;  %v11428_v10 = vld [vmem:[%s13907_s29 + $0x1b0] ss:$8 sps:$4 sm:$0xff]  }
0x1acb   :  { %6329 = vmatprep.subr.bf16.mxu1 %v11371_v11  ;;  %v11431_v11 = vld [vmem:[%s13907_s29 + $0x1c0] ss:$8 sps:$4 sm:$0xff]  }
0x1ace   :  { %6330 = vmatpush1.bf16.msra.mxu1 %v11369_v14  ;;  %v11433_v14 = vld [vmem:[%s13907_s29 + $0x1c4] ss:$8 sps:$4 sm:$0xff]  }
0x1acf   :  { %6331 = vmatprep.subr.bf16.mxu1 %v11374_v17  ;;  %v11436_v17 = vld [vmem:[%s13907_s29 + $0x1d4] ss:$8 sps:$4 sm:$0xff]  }
0x1ad2   :  { %6332 = vmatpush1.bf16.msra.mxu1 %v11372_v18  ;;  %v11434_v18 = vld [vmem:[%s13907_s29 + $0x1d0] ss:$8 sps:$4 sm:$0xff]  }
0x1ad3   :  { %6333 = vmatprep.subr.bf16.mxu1 %v11377_v19  ;;  %v11437_v19 = vld [vmem:[%s13907_s29 + $0x1e0] ss:$8 sps:$4 sm:$0xff]  }
0x1ad6   :  { %6334 = vmatpush1.bf16.msra.mxu1 %v11375_v20  ;;  %v11439_v20 = vld [vmem:[%s13907_s29 + $0x1e4] ss:$8 sps:$4 sm:$0xff]  }
0x1ad7   :  { %6335 = vmatprep.subr.bf16.mxu1 %v11380_v12  ;;  %v11442_v12 = vld [vmem:[%s13907_s29 + $0x1f4] ss:$8 sps:$4 sm:$0xff]  }
0x1ada   :  { %6336 = vmatpush1.bf16.msra.mxu1 %v11378_v21  ;;  %v11440_v21 = vld [vmem:[%s13907_s29 + $0x1f0] ss:$8 sps:$4 sm:$0xff]  }
0x1adb   :  { %6337 = vmatprep.subr.bf16.mxu1 %v11383_v22  ;;  %v11445_v22 = vld [vmem:[%s13907_s29 + $0x4] ss:$8 sps:$4 sm:$0xff]  }
0x1ade   :  { %6338 = vmatpush1.bf16.msra.mxu1 %v11381_v23 }
0x1adf   :  { %6339 = vmatprep.subr.bf16.mxu1 %v11386_v24 }
0x1ae2   :  { %6340 = vmatpush1.bf16.msra.mxu1 %v11384_v25 }
0x1ae5   :  { %6358 = vmatmul.mubr.bf16.vlgmr.msra.gmra.mrb[144].mxu1 %v6227_v48  ;;  %v11390_v48 = vld [vmem:[%s13906_s26 + $0x10] sm:$0xff]  }
0x1ae6   :  { %7093 = vmatprep.mubr.bf16.mxu1 %v12437_v16 }
0x1bb8   :  { %v6359_v29 = vpop.f32.mrb[144].mxu1 }
0x1bb9   :  { %v6384_v30 = vadd.f32 %v6377_v27, %v6359_v29  ;;  %v6361_v31 = vpop.f32.mrb[145].mxu1 }
0x1bba   :  { %v6385_v32 = vadd.f32 %v6381_v28, %v6361_v31  ;;  %v6363_v33 = vpop.f32.mrb[146].mxu1 }
0x1bbb   :  { %v6386_v34 = vadd.f32 %v6377_v27, %v6363_v33  ;;  %v6365_v35 = vpop.f32.mrb[147].mxu1  ;;  %v6388_v37 = vmax.f32 %v6384_v30, 0.0 }
0x1bbc   :  { %v6387_v36 = vadd.f32 %v6381_v28, %v6365_v35  ;;  %v6389_v39 = vmax.f32 %v6385_v32, 0.0 }
0x1bbd   :  { %v6390_v38 = vmax.f32 %v6386_v34, 0.0 }
0x1bbe   :  { %v6391_v40 = vmax.f32 %v6387_v36, 0.0 }
0x1bbf   :  { %v6392_v41 = vpack.c.bf16 %v6390_v38, %v6388_v37 }
0x1bc0   :  { %v6393_v42 = vpack.c.bf16 %v6391_v40, %v6389_v39 }
0x1bc2   :  { %6414 = vmatprep.subr.bf16.mxu0 %v6393_v42  ;;  %7061 = vmatprep.subr.bf16.mxu1 %v6393_v42 }
0x1bc3   :  { %6415 = vmatpush1.bf16.msra.mxu0 %v6392_v41  ;;  %7062 = vmatpush1.bf16.msra.mxu1 %v6392_v41 }
0x1bc4   :  { %6524 = vmatprep.subr.bf16.mxu0 %v6393_v42  ;;  %7393 = vmatprep.subr.bf16.mxu1 %v6393_v42 }
0x1bc6   :  { %9488 = vmatmul.mubr.msk.bf16.vlgmr.msra.gmra.mrb[128].mxu0 %vm2198_vm3, %v11387_v43  ;;  %9600 = vmatmul.mubr.msk.bf16.vlgmr.msra.gmra.mrb[148].mxu1 %vm2198_vm3, %v11388_v44 }
0x1bc7   :  { %6525 = vmatpush1.bf16.msra.mxu0 %v6392_v41  ;;  %7394 = vmatpush1.bf16.msra.mxu1 %v6392_v41 }
0x1bc8   :  { %6456 = vmatprep.mubr.bf16.mxu0 %v12437_v16  ;;  %6774 = vmatprep.subr.bf16.mxu0 %v11394_v45 }
0x1bc9   :  { %7103 = vmatprep.mubr.bf16.mxu1 %v12437_v16 }
0x1bce   :  { %9489 = vmatmul.mubr.msk.bf16.gmra.mrb[132].mxu0 %vm2198_vm3, %v11389_v46  ;;  %9601 = vmatmul.mubr.msk.bf16.gmra.mrb[152].mxu1 %vm2198_vm3, %v11413_v47  ;;  %v11443_v47 = vld [vmem:[%s13907_s29] ss:$8 sps:$4 sm:$0xff]  }
0x1bcf   :  { %6556 = vmatprep.mubr.bf16.mxu0 %v12437_v16  ;;  %7425 = vmatprep.mubr.bf16.mxu1 %v12437_v16 }
0x1bd6   :  { %9496 = vmatmul.mubr.msk.bf16.vlgmr.msra.gmra.mrb[136].mxu0 %vm2198_vm3, %v11390_v48  ;;  %9672 = vmatmul.mubr.msk.bf16.vlgmr.msra.gmra.mrb[156].mxu1 %vm2198_vm3, %v11420_v49  ;;  %v11448_v48 = vld [vmem:[%s13907_s29 + $0x14] ss:$8 sps:$4 sm:$0xff]  }
0x1bd7   :  { %6566 = vmatprep.mubr.bf16.mxu0 %v12437_v16  ;;  %6775 = vmatpush1.bf16.msra.mxu0 %v11392_v50  ;;  %v11446_v50 = vld [vmem:[%s13907_s29 + $0x10] ss:$8 sps:$4 sm:$0xff]  }
0x1bd8   :  { %6776 = vmatprep.subr.bf16.mxu0 %v11397_v51  ;;  %7435 = vmatprep.mubr.bf16.mxu1 %v12437_v16 }
0x1bdb   :  { %6777 = vmatpush1.bf16.msra.mxu0 %v11395_v52  ;;  %v11451_v52 = vld [vmem:[%s13907_s29 + $0x24] ss:$8 sps:$4 sm:$0xff]  }
0x1bdc   :  { %6778 = vmatprep.subr.bf16.mxu0 %v11400_v53 }
0x1bde   :  { %9497 = vmatmul.mubr.msk.bf16.gmra.mrb[140].mxu0 %vm2198_vm3, %v11391_v54  ;;  %9673 = vmatmul.mubr.msk.bf16.gmra.mrb[160].mxu1 %vm2198_vm3, %v11427_v8  ;;  %v11475_v8 = vld [vmem:[%s13907_s29 + $0xa4] ss:$8 sps:$4 sm:$0xff]  }
0x1bdf   :  { %6779 = vmatpush1.bf16.msra.mxu0 %v11398_v55  ;;  %7788 = vmatprep.mubr.bf16.mxu1 %v12437_v16 }
0x1be0   :  { %6780 = vmatprep.subr.bf16.mxu0 %v11403_v56 }
0x1be3   :  { %6781 = vmatpush1.bf16.msra.mxu0 %v11401_v57  ;;  %v11449_v57 = vld [vmem:[%s13907_s29 + $0x20] ss:$8 sps:$4 sm:$0xff]  }
0x1be4   :  { %6782 = vmatprep.subr.bf16.mxu0 %v11406_v58  ;;  %v11454_v58 = vld [vmem:[%s13907_s29 + $0x34] ss:$8 sps:$4 sm:$0xff]  }
0x1be7   :  { %6783 = vmatpush1.bf16.msra.mxu0 %v11404_v59  ;;  %v11452_v59 = vld [vmem:[%s13907_s29 + $0x30] ss:$8 sps:$4 sm:$0xff]  }
0x1be8   :  { %6784 = vmatprep.subr.bf16.mxu0 %v11409_v60  ;;  %v11457_v60 = vld [vmem:[%s13907_s29 + $0x44] ss:$8 sps:$4 sm:$0xff]  }
0x1beb   :  { %6785 = vmatpush1.bf16.msra.mxu0 %v11407_v61  ;;  %v11455_v61 = vld [vmem:[%s13907_s29 + $0x40] ss:$8 sps:$4 sm:$0xff]  }
0x1bec   :  { %6786 = vmatprep.subr.bf16.mxu0 %v11412_v62  ;;  %v11460_v62 = vld [vmem:[%s13907_s29 + $0x54] ss:$8 sps:$4 sm:$0xff]  }
0x1bef   :  { %6787 = vmatpush1.bf16.msra.mxu0 %v11410_v63  ;;  %v11458_v63 = vld [vmem:[%s13907_s29 + $0x50] ss:$8 sps:$4 sm:$0xff]  }
0x1bf0   :  { %6788 = vmatprep.subr.bf16.mxu0 %v11416_v0  ;;  %v11463_v0 = vld [vmem:[%s13907_s29 + $0x64] ss:$8 sps:$4 sm:$0xff]  }
0x1bf3   :  { %6789 = vmatpush1.bf16.msra.mxu0 %v11414_v1  ;;  %v11461_v1 = vld [vmem:[%s13907_s29 + $0x60] ss:$8 sps:$4 sm:$0xff]  }
0x1bf4   :  { %6790 = vmatprep.subr.bf16.mxu0 %v11419_v2  ;;  %v11466_v2 = vld [vmem:[%s13907_s29 + $0x74] ss:$8 sps:$4 sm:$0xff]  }
0x1bf7   :  { %6791 = vmatpush1.bf16.msra.mxu0 %v11417_v3  ;;  %v11464_v3 = vld [vmem:[%s13907_s29 + $0x70] ss:$8 sps:$4 sm:$0xff]  }
0x1bf8   :  { %6792 = vmatprep.subr.bf16.mxu0 %v11423_v4  ;;  %v11469_v4 = vld [vmem:[%s13907_s29 + $0x84] ss:$8 sps:$4 sm:$0xff]  }
0x1bfb   :  { %6793 = vmatpush1.bf16.msra.mxu0 %v11421_v5  ;;  %v11467_v5 = vld [vmem:[%s13907_s29 + $0x80] ss:$8 sps:$4 sm:$0xff]  }
0x1bfc   :  { %6794 = vmatprep.subr.bf16.mxu0 %v11426_v6  ;;  %v11472_v6 = vld [vmem:[%s13907_s29 + $0x94] ss:$8 sps:$4 sm:$0xff]  }
0x1bff   :  { %6795 = vmatpush1.bf16.msra.mxu0 %v11424_v7  ;;  %v11470_v7 = vld [vmem:[%s13907_s29 + $0x90] ss:$8 sps:$4 sm:$0xff]  }
0x1c00   :  { %6796 = vmatprep.subr.bf16.mxu0 %v11430_v9  ;;  %v11473_v9 = vld [vmem:[%s13907_s29 + $0xa0] ss:$8 sps:$4 sm:$0xff]  }
0x1c03   :  { %6797 = vmatpush1.bf16.msra.mxu0 %v11428_v10  ;;  %v11478_v10 = vld [vmem:[%s13907_s29 + $0xb4] ss:$8 sps:$4 sm:$0xff]  }
0x1c04   :  { %6798 = vmatprep.subr.bf16.mxu0 %v11433_v14  ;;  %v11481_v14 = vld [vmem:[%s13907_s29 + $0xc4] ss:$8 sps:$4 sm:$0xff]  }
0x1c07   :  { %6799 = vmatpush1.bf16.msra.mxu0 %v11431_v11  ;;  %v11476_v11 = vld [vmem:[%s13907_s29 + $0xb0] ss:$8 sps:$4 sm:$0xff]  }
0x1c08   :  { %6800 = vmatprep.subr.bf16.mxu0 %v11436_v17 }
0x1c0b   :  { %6801 = vmatpush1.bf16.msra.mxu0 %v11434_v18  ;;  %v11479_v18 = vld [vmem:[%s13907_s29 + $0xc0] ss:$8 sps:$4 sm:$0xff]  }
0x1c0c   :  { %6802 = vmatprep.subr.bf16.mxu0 %v11439_v20  ;;  %v11484_v20 = vld [vmem:[%s13907_s29 + $0xd4] ss:$8 sps:$4 sm:$0xff]  }
0x1c0f   :  { %6803 = vmatpush1.bf16.msra.mxu0 %v11437_v19 }
0x1c10   :  { %6804 = vmatprep.subr.bf16.mxu0 %v11442_v12 }
0x1c13   :  { %6805 = vmatpush1.bf16.msra.mxu0 %v11440_v21 }
0x1c14   :  { %6987 = vmatprep.subr.bf16.mxu0 %v11445_v22 }
0x1c99   :  { %v13482_v23 = vpop.f32.mrb[128].mxu0  ;;  %v13500_v35 = vpop.f32.mrb[148].mxu1 }
0x1c9a   :  { %v6450_v24 = vpop.f32.mrb[129].mxu0  ;;  %v13502_v36 = vpop.f32.mrb[149].mxu1 }
0x1c9b   :  { %v13484_v25 = vpop.f32.mrb[130].mxu0  ;;  %v13504_v37 = vpop.f32.mrb[150].mxu1 }
0x1c9c   :  { %v6467_v26 = vpack.c.bf16 %v13484_v25, %v13482_v23  ;;  %v6454_v27 = vpop.f32.mrb[131].mxu0  ;;  %v7114_v38 = vpack.c.bf16 %v13504_v37, %v13500_v35  ;;  %v13508_v40 = vpop.f32.mrb[151].mxu1  ;;  %v11499_v23 = vld [vmem:[%s13907_s29 + $0x224] ss:$8 sps:$4 sm:$0xff]   ;;  %v11497_v25 = vld [vmem:[%s13907_s29 + $0x220] ss:$8 sps:$4 sm:$0xff]  }
0x1c9d   :  { %v6468_v28 = vpack.c.bf16 %v6454_v27, %v6450_v24  ;;  %v7115_v42 = vpack.c.bf16 %v13508_v40, %v13502_v36  ;;  %v11482_v27 = vld [vmem:[%s13907_s29 + $0xd0] ss:$8 sps:$4 sm:$0xff]   ;;  %v11514_v36 = vld [vmem:[%s13907_s29 + $0x274] ss:$8 sps:$4 sm:$0xff]   ;;  %v11553_v37 = vld [vmem:[%s13907_s29 + $0x344] ss:$8 sps:$4 sm:$0xff]  }
0x1c9e   :  { %v11512_v40 = vld [vmem:[%s13907_s29 + $0x270] ss:$8 sps:$4 sm:$0xff]  }
0x1c9f   :  { %v11548_v35 = vld [vmem:[%s13907_s29 + $0x330] ss:$8 sps:$4 sm:$0xff]  }
0x1ca1   :  { %v13488_v29 = vpop.f32.mrb[132].mxu0  ;;  %v13536_v17 = vpop.f32.mrb[152].mxu1 }
0x1ca2   :  { %v13490_v30 = vpop.f32.mrb[133].mxu0  ;;  %v13539_v19 = vpop.f32.mrb[153].mxu1 }
0x1ca3   :  { %v13492_v31 = vpop.f32.mrb[134].mxu0  ;;  %v13542_v12 = vpop.f32.mrb[154].mxu1 }
0x1ca4   :  { %v6469_v32 = vpack.c.bf16 %v13492_v31, %v13488_v29  ;;  %v13496_v33 = vpop.f32.mrb[135].mxu0  ;;  %v7116_v21 = vpack.c.bf16 %v13542_v12, %v13536_v17  ;;  %v13546_v22 = vpop.f32.mrb[155].mxu1  ;;  %v11506_v29 = vld [vmem:[%s13907_s29 + $0x250] ss:$8 sps:$4 sm:$0xff]   ;;  %v11511_v31 = vld [vmem:[%s13907_s29 + $0x264] ss:$8 sps:$4 sm:$0xff]  }
0x1ca5   :  { %v6470_v34 = vpack.c.bf16 %v13496_v33, %v13490_v30  ;;  %v7117_v24 = vpack.c.bf16 %v13546_v22, %v13539_v19  ;;  %v11500_v30 = vld [vmem:[%s13907_s29 + $0x230] ss:$8 sps:$4 sm:$0xff]   ;;  %v11505_v33 = vld [vmem:[%s13907_s29 + $0x244] ss:$8 sps:$4 sm:$0xff]   ;;  %v11556_v19 = vld [vmem:[%s13907_s29 + $0x354] ss:$8 sps:$4 sm:$0xff]  }
0x1ca6   :  { %v11554_v17 = vld [vmem:[%s13907_s29 + $0x350] ss:$8 sps:$4 sm:$0xff]   ;;  %v11559_v12 = vld [vmem:[%s13907_s29 + $0x364] ss:$8 sps:$4 sm:$0xff]   ;;  %v11562_v22 = vld [vmem:[%s13907_s29 + $0x374] ss:$8 sps:$4 sm:$0xff]  }
0x1ca9   :  { %v6558_v39 = vpop.f32.mrb[136].mxu0 }
0x1caa   :  { %v6560_v41 = vpop.f32.mrb[137].mxu0 }
0x1cab   :  { %v6562_v43 = vpop.f32.mrb[138].mxu0 }
0x1cac   :  { %v6577_v44 = vpack.c.bf16 %v6562_v43, %v6558_v39  ;;  %v6564_v45 = vpop.f32.mrb[139].mxu0  ;;  %v11485_v39 = vld [vmem:[%s13907_s29 + $0xe0] ss:$8 sps:$4 sm:$0xff]   ;;  %v11490_v43 = vld [vmem:[%s13907_s29 + $0xf4] ss:$8 sps:$4 sm:$0xff]  }
0x1cad   :  { %v6578_v46 = vpack.c.bf16 %v6564_v45, %v6560_v41  ;;  %v13553_v41 = vpop.f32.mrb[156].mxu1 }
0x1caf   :  { %6806 = vmatprep.mubr.bf16.mxu0 %v6578_v46 }
0x1cb0   :  { %6807 = vmatmul.mubr.bf16.vlgmr.msra.gmra.mrb[144].mxu0 %v6577_v44  ;;  %v13556_v44 = vpop.f32.mrb[157].mxu1 }
0x1cb1   :  { %6988 = vmatpush1.bf16.msra.mxu0 %v11443_v47  ;;  %v6568_v49 = vpop.f32.mrb[140].mxu0  ;;  %v13558_v45 = vpop.f32.mrb[158].mxu1 }
0x1cb2   :  { %v6570_v51 = vpop.f32.mrb[141].mxu0  ;;  %6989 = vmatprep.subr.bf16.mxu0 %v11448_v48  ;;  %v7446_v46 = vpack.c.bf16 %v13558_v45, %v13553_v41  ;;  %v13562_v47 = vpop.f32.mrb[159].mxu1  ;;  %v11488_v48 = vld [vmem:[%s13907_s29 + $0xf0] ss:$8 sps:$4 sm:$0xff]  }
0x1cb3   :  { %v6572_v53 = vpop.f32.mrb[142].mxu0 }
0x1cb4   :  { %v6579_v54 = vpack.c.bf16 %v6572_v53, %v6568_v49  ;;  %v6574_v55 = vpop.f32.mrb[143].mxu0  ;;  %v7447_v49 = vpack.c.bf16 %v13562_v47, %v13556_v44  ;;  %v11496_v53 = vld [vmem:[%s13907_s29 + $0x214] ss:$8 sps:$4 sm:$0xff]   ;;  %v11565_v44 = vld [vmem:[%s13907_s29 + $0x384] ss:$8 sps:$4 sm:$0xff]  }
0x1cb5   :  { %v6580_v56 = vpack.c.bf16 %v6574_v55, %v6570_v51  ;;  %6990 = vmatpush1.bf16.msra.mxu0 %v11446_v50  ;;  %v11493_v50 = vld [vmem:[%s13907_s29 + $0x204] ss:$8 sps:$4 sm:$0xff]   ;;  %v11491_v51 = vld [vmem:[%s13907_s29 + $0x200] ss:$8 sps:$4 sm:$0xff]  }
0x1cb6   :  { %6991 = vmatprep.subr.bf16.mxu0 %v11451_v52  ;;  %v13569_v52 = vpop.f32.mrb[160].mxu1  ;;  %v11563_v47 = vld [vmem:[%s13907_s29 + $0x380] ss:$8 sps:$4 sm:$0xff]  }
0x1cb7   :  { %6816 = vmatprep.mubr.bf16.mxu0 %v6580_v56 }
0x1cb8   :  { %6817 = vmatmul.mubr.bf16.gmra.mrb[148].mxu0 %v6579_v54  ;;  %v13572_v54 = vpop.f32.mrb[161].mxu1 }
0x1cb9   :  { %6992 = vmatpush1.bf16.msra.mxu0 %v11449_v57  ;;  %7019 = vmatprep.mubr.bf16.mxu0 %v6468_v28  ;;  %v11487_v28 = vld [vmem:[%s13907_s29 + $0xe4] ss:$8 sps:$4 sm:$0xff]   ;;  %v13574_v55 = vpop.f32.mrb[162].mxu1 }
0x1cba   :  { %6993 = vmatprep.subr.bf16.mxu0 %v11454_v58  ;;  %v7448_v56 = vpack.c.bf16 %v13574_v55, %v13569_v52  ;;  %v13581_v57 = vpop.f32.mrb[163].mxu1  ;;  %v11494_v58 = vld [vmem:[%s13907_s29 + $0x210] ss:$8 sps:$4 sm:$0xff]  }
0x1cbd   :  { %6994 = vmatpush1.bf16.msra.mxu0 %v11452_v59  ;;  %v7449_v59 = vpack.c.bf16 %v13581_v57, %v13572_v54 }
0x1cbe   :  { %6995 = vmatprep.subr.bf16.mxu0 %v11457_v60  ;;  %v11508_v60 = vld [vmem:[%s13907_s29 + $0x254] ss:$8 sps:$4 sm:$0xff]  }
0x1cc1   :  { %6996 = vmatpush1.bf16.msra.mxu0 %v11455_v61  ;;  %v11515_v61 = vld [vmem:[%s13907_s29 + $0x280] ss:$8 sps:$4 sm:$0xff]  }
0x1cc2   :  { %6997 = vmatprep.subr.bf16.mxu0 %v11460_v62  ;;  %v11520_v62 = vld [vmem:[%s13907_s29 + $0x294] ss:$8 sps:$4 sm:$0xff]  }
0x1cc5   :  { %6998 = vmatpush1.bf16.msra.mxu0 %v11458_v63  ;;  %v11518_v63 = vld [vmem:[%s13907_s29 + $0x290] ss:$8 sps:$4 sm:$0xff]  }
0x1cc6   :  { %6999 = vmatprep.subr.bf16.mxu0 %v11463_v0  ;;  %v11523_v0 = vld [vmem:[%s13907_s29 + $0x2a4] ss:$8 sps:$4 sm:$0xff]  }
0x1cc9   :  { %7000 = vmatpush1.bf16.msra.mxu0 %v11461_v1  ;;  %v11521_v1 = vld [vmem:[%s13907_s29 + $0x2a0] ss:$8 sps:$4 sm:$0xff]  }
0x1cca   :  { %7001 = vmatprep.subr.bf16.mxu0 %v11466_v2  ;;  %v11526_v2 = vld [vmem:[%s13907_s29 + $0x2b4] ss:$8 sps:$4 sm:$0xff]  }
0x1ccd   :  { %7002 = vmatpush1.bf16.msra.mxu0 %v11464_v3  ;;  %v11524_v3 = vld [vmem:[%s13907_s29 + $0x2b0] ss:$8 sps:$4 sm:$0xff]  }
0x1cce   :  { %7003 = vmatprep.subr.bf16.mxu0 %v11469_v4  ;;  %v11529_v4 = vld [vmem:[%s13907_s29 + $0x2c4] ss:$8 sps:$4 sm:$0xff]  }
0x1cd1   :  { %7004 = vmatpush1.bf16.msra.mxu0 %v11467_v5  ;;  %v11527_v5 = vld [vmem:[%s13907_s29 + $0x2c0] ss:$8 sps:$4 sm:$0xff]  }
0x1cd2   :  { %7005 = vmatprep.subr.bf16.mxu0 %v11472_v6  ;;  %v11532_v6 = vld [vmem:[%s13907_s29 + $0x2d4] ss:$8 sps:$4 sm:$0xff]  }
0x1cd5   :  { %7006 = vmatpush1.bf16.msra.mxu0 %v11470_v7  ;;  %v11530_v7 = vld [vmem:[%s13907_s29 + $0x2d0] ss:$8 sps:$4 sm:$0xff]  }
0x1cd6   :  { %7007 = vmatprep.subr.bf16.mxu0 %v11475_v8  ;;  %v11535_v8 = vld [vmem:[%s13907_s29 + $0x2e4] ss:$8 sps:$4 sm:$0xff]  }
0x1cd9   :  { %7008 = vmatpush1.bf16.msra.mxu0 %v11473_v9  ;;  %v11533_v9 = vld [vmem:[%s13907_s29 + $0x2e0] ss:$8 sps:$4 sm:$0xff]  }
0x1cda   :  { %7009 = vmatprep.subr.bf16.mxu0 %v11478_v10  ;;  %v11538_v10 = vld [vmem:[%s13907_s29 + $0x2f4] ss:$8 sps:$4 sm:$0xff]  }
0x1cdd   :  { %7010 = vmatpush1.bf16.msra.mxu0 %v11476_v11  ;;  %v11536_v11 = vld [vmem:[%s13907_s29 + $0x2f0] ss:$8 sps:$4 sm:$0xff]  }
0x1cde   :  { %7011 = vmatprep.subr.bf16.mxu0 %v11481_v14  ;;  %v11541_v14 = vld [vmem:[%s13907_s29 + $0x304] ss:$8 sps:$4 sm:$0xff]  }
0x1ce1   :  { %7012 = vmatpush1.bf16.msra.mxu0 %v11479_v18  ;;  %v11539_v18 = vld [vmem:[%s13907_s29 + $0x300] ss:$8 sps:$4 sm:$0xff]  }
0x1ce2   :  { %7013 = vmatprep.subr.bf16.mxu0 %v11484_v20  ;;  %v11544_v20 = vld [vmem:[%s13907_s29 + $0x314] ss:$8 sps:$4 sm:$0xff]  }
0x1ce5   :  { %7014 = vmatpush1.bf16.msra.mxu0 %v11482_v27  ;;  %v11542_v27 = vld [vmem:[%s13907_s29 + $0x310] ss:$8 sps:$4 sm:$0xff]  }
0x1ce6   :  { %7015 = vmatprep.subr.bf16.mxu0 %v11487_v28  ;;  %v11547_v28 = vld [vmem:[%s13907_s29 + $0x324] ss:$8 sps:$4 sm:$0xff]  }
0x1ce9   :  { %7016 = vmatpush1.bf16.msra.mxu0 %v11485_v39  ;;  %v11545_v39 = vld [vmem:[%s13907_s29 + $0x320] ss:$8 sps:$4 sm:$0xff]  }
0x1cea   :  { %7017 = vmatprep.subr.bf16.mxu0 %v11490_v43  ;;  %v11550_v43 = vld [vmem:[%s13907_s29 + $0x334] ss:$8 sps:$4 sm:$0xff]  }
0x1ced   :  { %7018 = vmatpush1.bf16.msra.mxu0 %v11488_v48  ;;  %v11568_v48 = vld [vmem:[%s13907_s29 + $0x394] ss:$8 sps:$4 sm:$0xff]  }
0x1cee   :  { %7311 = vmatprep.subr.bf16.mxu0 %v11493_v50  ;;  %v11571_v50 = vld [vmem:[%s13907_s29 + $0x3a4] ss:$8 sps:$4 sm:$0xff]  }
0x1cf0   :  { %7020 = vmatmul.mubr.bf16.vlgmr.msra.gmra.mrb[144].mxu0 %v6467_v26  ;;  %v11502_v26 = vld [vmem:[%s13907_s29 + $0x234] ss:$8 sps:$4 sm:$0xff]  }
0x1cf1   :  { %7029 = vmatprep.mubr.bf16.mxu0 %v6470_v34  ;;  %7312 = vmatpush1.bf16.msra.mxu0 %v11491_v51  ;;  %v11503_v34 = vld [vmem:[%s13907_s29 + $0x240] ss:$8 sps:$4 sm:$0xff]  }
0x1cf2   :  { %7313 = vmatprep.subr.bf16.mxu0 %v11496_v53  ;;  %v11569_v51 = vld [vmem:[%s13907_s29 + $0x3a0] ss:$8 sps:$4 sm:$0xff]   ;;  %v11574_v53 = vld [vmem:[%s13907_s29 + $0x3b4] ss:$8 sps:$4 sm:$0xff]  }
0x1cf5   :  { %7314 = vmatpush1.bf16.msra.mxu0 %v11494_v58  ;;  %v11572_v58 = vld [vmem:[%s13907_s29 + $0x3b0] ss:$8 sps:$4 sm:$0xff]  }
0x1cf6   :  { %7315 = vmatprep.subr.bf16.mxu0 %v11499_v23  ;;  %v11577_v23 = vld [vmem:[%s13907_s29 + $0x3c4] ss:$8 sps:$4 sm:$0xff]  }
0x1cf8   :  { %7030 = vmatmul.mubr.bf16.gmra.mrb[148].mxu0 %v6469_v32  ;;  %v11509_v32 = vld [vmem:[%s13907_s29 + $0x260] ss:$8 sps:$4 sm:$0xff]  }
0x1cf9   :  { %7316 = vmatpush1.bf16.msra.mxu0 %v11497_v25  ;;  %7343 = vmatprep.mubr.bf16.mxu0 %v7115_v42  ;;  %v11517_v42 = vld [vmem:[%s13907_s29 + $0x284] ss:$8 sps:$4 sm:$0xff]   ;;  %v11575_v25 = vld [vmem:[%s13907_s29 + $0x3c0] ss:$8 sps:$4 sm:$0xff]  }
0x1cfa   :  { %7317 = vmatprep.subr.bf16.mxu0 %v11502_v26  ;;  %v11580_v26 = vld [vmem:[%s13907_s29 + $0x3d4] ss:$8 sps:$4 sm:$0xff]  }
0x1cfd   :  { %7318 = vmatpush1.bf16.msra.mxu0 %v11500_v30  ;;  %v11578_v30 = vld [vmem:[%s13907_s29 + $0x3d0] ss:$8 sps:$4 sm:$0xff]  }
0x1cfe   :  { %7319 = vmatprep.subr.bf16.mxu0 %v11505_v33  ;;  %v11583_v33 = vld [vmem:[%s13907_s29 + $0x3e4] ss:$8 sps:$4 sm:$0xff]  }
0x1d01   :  { %7320 = vmatpush1.bf16.msra.mxu0 %v11503_v34  ;;  %v11581_v34 = vld [vmem:[%s13907_s29 + $0x3e0] ss:$8 sps:$4 sm:$0xff]  }
0x1d02   :  { %7321 = vmatprep.subr.bf16.mxu0 %v11508_v60  ;;  %v11586_v60 = vld [vmem:[%s13907_s29 + $0x3f4] ss:$8 sps:$4 sm:$0xff]  }
0x1d05   :  { %7322 = vmatpush1.bf16.msra.mxu0 %v11506_v29  ;;  %v11584_v29 = vld [vmem:[%s13907_s29 + $0x3f0] ss:$8 sps:$4 sm:$0xff]  }
0x1d06   :  { %7323 = vmatprep.subr.bf16.mxu0 %v11511_v31  ;;  %v7704_v31 = vld [vmem:[#allocation43] sm:$0x3] }
0x1d09   :  { %7324 = vmatpush1.bf16.msra.mxu0 %v11509_v32  ;;  %v7709_v32 = vrot.slane %v7704_v31, %v12910_v13 }
0x1d0a   :  { %7325 = vmatprep.subr.bf16.mxu0 %v11514_v36  ;;  %v7713_v36 = vrot.slane %v7704_v31, %v12912_v15 }
0x1d0d   :  { %7326 = vmatpush1.bf16.msra.mxu0 %v11512_v40 }
0x1d0e   :  { %7327 = vmatprep.subr.bf16.mxu0 %v11517_v42 }
0x1d11   :  { %7328 = vmatpush1.bf16.msra.mxu0 %v11515_v61 }
0x1d12   :  { %7329 = vmatprep.subr.bf16.mxu0 %v11520_v62 }
0x1d15   :  { %7330 = vmatpush1.bf16.msra.mxu0 %v11518_v63 }
0x1d16   :  { %7331 = vmatprep.subr.bf16.mxu0 %v11523_v0 }
0x1d19   :  { %7332 = vmatpush1.bf16.msra.mxu0 %v11521_v1 }
0x1d1a   :  { %7333 = vmatprep.subr.bf16.mxu0 %v11526_v2 }
0x1d1d   :  { %7334 = vmatpush1.bf16.msra.mxu0 %v11524_v3 }
0x1d1e   :  { %7335 = vmatprep.subr.bf16.mxu0 %v11529_v4 }
0x1d21   :  { %7336 = vmatpush1.bf16.msra.mxu0 %v11527_v5 }
0x1d22   :  { %7337 = vmatprep.subr.bf16.mxu0 %v11532_v6 }
0x1d25   :  { %7338 = vmatpush1.bf16.msra.mxu0 %v11530_v7 }
0x1d26   :  { %7339 = vmatprep.subr.bf16.mxu0 %v11535_v8 }
0x1d29   :  { %7340 = vmatpush1.bf16.msra.mxu0 %v11533_v9 }
0x1d2a   :  { %7341 = vmatprep.subr.bf16.mxu0 %v11538_v10 }
0x1d2d   :  { %7342 = vmatpush1.bf16.msra.mxu0 %v11536_v11 }
0x1d2e   :  { %7643 = vmatprep.subr.bf16.mxu0 %v11541_v14  ;;  %v11587_v14 = vld [vmem:[#allocation44] sm:$0xff]  }
0x1d30   :  { %7344 = vmatmul.mubr.bf16.vlgmr.msra.gmra.mrb[144].mxu0 %v7114_v38  ;;  %v11551_v38 = vld [vmem:[%s13907_s29 + $0x340] ss:$8 sps:$4 sm:$0xff]  }
0x1d31   :  { %7644 = vmatpush1.bf16.msra.mxu0 %v11539_v18  ;;  %7353 = vmatprep.mubr.bf16.mxu0 %v7117_v24  ;;  %v11560_v24 = vld [vmem:[%s13907_s29 + $0x370] ss:$8 sps:$4 sm:$0xff]   ;;  %v11591_v18 = vld [vmem:[%s13908_s24 + $0xc0] sm:$0xff]  }
0x1d32   :  { %7645 = vmatprep.subr.bf16.mxu0 %v11544_v20  ;;  %v11588_v20 = vld [vmem:[#allocation44 + $0x8] sm:$0xff]  }
0x1d35   :  { %7646 = vmatpush1.bf16.msra.mxu0 %v11542_v27  ;;  %v11589_v27 = vld [vmem:[#allocation44 + $0x10] sm:$0xff]  }
0x1d36   :  { %7647 = vmatprep.subr.bf16.mxu0 %v11547_v28  ;;  %v11592_v28 = vld [vmem:[%s13908_s24 + $0x80] sm:$0xff]  }
0x1d38   :  { %7354 = vmatmul.mubr.bf16.gmra.mrb[148].mxu0 %v7116_v21  ;;  %v11557_v21 = vld [vmem:[%s13907_s29 + $0x360] ss:$8 sps:$4 sm:$0xff]  }
0x1d39   :  { %7648 = vmatpush1.bf16.msra.mxu0 %v11545_v39  ;;  %7675 = vmatprep.mubr.bf16.mxu0 %v7447_v49  ;;  %v11566_v49 = vld [vmem:[%s13907_s29 + $0x390] ss:$8 sps:$4 sm:$0xff]   ;;  %v11593_v39 = vld [vmem:[%s13908_s24 + $0xc8] sm:$0xff]  }
0x1d3a   :  { %7649 = vmatprep.subr.bf16.mxu0 %v11550_v43  ;;  %v11594_v43 = vld [vmem:[%s13908_s24 + $0x88] sm:$0xff]  }
0x1d3d   :  { %7650 = vmatpush1.bf16.msra.mxu0 %v11548_v35  ;;  %v11595_v35 = vld [vmem:[%s13908_s24 + $0xd0] sm:$0xff]  }
0x1d3e   :  { %7651 = vmatprep.subr.bf16.mxu0 %v11553_v37  ;;  %v11590_v37 = vld [vmem:[#allocation44 + $0x18] sm:$0xff]  }
0x1d41   :  { %7652 = vmatpush1.bf16.msra.mxu0 %v11551_v38  ;;  %v11596_v38 = vld [vmem:[%s13908_s24 + $0x90] sm:$0xff]  }
0x1d42   :  { %7653 = vmatprep.subr.bf16.mxu0 %v11556_v19  ;;  %v11597_v19 = vld [vmem:[%s13908_s24 + $0xd8] sm:$0xff]  }
0x1d45   :  { %7654 = vmatpush1.bf16.msra.mxu0 %v11554_v17  ;;  %v11598_v17 = vld [vmem:[%s13908_s24 + $0x98] sm:$0xff]  }
0x1d46   :  { %7655 = vmatprep.subr.bf16.mxu0 %v11559_v12  ;;  %v11599_v12 = vld [vmem:[%s13908_s24 + $0xe0] sm:$0xff]  }
0x1d49   :  { %7656 = vmatpush1.bf16.msra.mxu0 %v11557_v21  ;;  %v11600_v21 = vld [vmem:[%s13908_s24 + $0xa0] sm:$0xff]  }
0x1d4a   :  { %7657 = vmatprep.subr.bf16.mxu0 %v11562_v22  ;;  %v11601_v22 = vld [vmem:[%s13908_s24 + $0xe8] sm:$0xff]  }
0x1d4d   :  { %7658 = vmatpush1.bf16.msra.mxu0 %v11560_v24  ;;  %v11602_v24 = vld [vmem:[%s13908_s24 + $0xa8] sm:$0xff]  }
0x1d4e   :  { %7659 = vmatprep.subr.bf16.mxu0 %v11565_v44  ;;  %v11603_v44 = vld [vmem:[%s13908_s24 + $0xf0] sm:$0xff]  }
0x1d51   :  { %7660 = vmatpush1.bf16.msra.mxu0 %v11563_v47  ;;  %v11604_v47 = vld [vmem:[%s13908_s24 + $0xb0] sm:$0xff]  }
0x1d52   :  { %7661 = vmatprep.subr.bf16.mxu0 %v11568_v48  ;;  %v11605_v48 = vld [vmem:[%s13908_s24 + $0xf8] sm:$0xff]  }
0x1d55   :  { %7662 = vmatpush1.bf16.msra.mxu0 %v11566_v49  ;;  %v11606_v49 = vld [vmem:[%s13908_s24 + $0xb8] sm:$0xff]  }
0x1d56   :  { %7663 = vmatprep.subr.bf16.mxu0 %v11571_v50  ;;  %v11607_v50 = vld [vmem:[%s13908_s24 + $0x40] sm:$0xff]  }
0x1d59   :  { %7664 = vmatpush1.bf16.msra.mxu0 %v11569_v51 }
0x1d5a   :  { %7665 = vmatprep.subr.bf16.mxu0 %v11574_v53 }
0x1d5d   :  { %7666 = vmatpush1.bf16.msra.mxu0 %v11572_v58 }
0x1d5e   :  { %7667 = vmatprep.subr.bf16.mxu0 %v11577_v23 }
0x1d61   :  { %7668 = vmatpush1.bf16.msra.mxu0 %v11575_v25 }
0x1d62   :  { %7669 = vmatprep.subr.bf16.mxu0 %v11580_v26 }
0x1d65   :  { %7670 = vmatpush1.bf16.msra.mxu0 %v11578_v30 }
0x1d66   :  { %7671 = vmatprep.subr.bf16.mxu0 %v11583_v33 }
0x1d69   :  { %7672 = vmatpush1.bf16.msra.mxu0 %v11581_v34 }
0x1d6a   :  { %7673 = vmatprep.subr.bf16.mxu0 %v11586_v60 }
0x1d6d   :  { %7674 = vmatpush1.bf16.msra.mxu0 %v11584_v29 }
0x1d70   :  { %7676 = vmatmul.mubr.bf16.vlgmr.msra.gmra.mrb[144].mxu0 %v7446_v46 }
0x1d71   :  { %7685 = vmatprep.mubr.bf16.mxu0 %v7449_v59 }
0x1d78   :  { %7686 = vmatmul.mubr.bf16.gmra.mrb[148].mxu0 %v7448_v56 }
0x1e43   :  { %v7677_v40 = vpop.f32.mrb[144].mxu0 }
0x1e44   :  { %v7716_v42 = vadd.f32 %v7709_v32, %v7677_v40  ;;  %v7679_v61 = vpop.f32.mrb[145].mxu0 }
0x1e45   :  { %v7717_v62 = vadd.f32 %v7713_v36, %v7679_v61  ;;  %v7681_v63 = vpop.f32.mrb[146].mxu0 }
0x1e46   :  { %v7718_v41 = vadd.f32 %v7709_v32, %v7681_v63  ;;  %v7683_v45 = vpop.f32.mrb[147].mxu0  ;;  %v7724_v0 = vmax.f32 %v7716_v42, 0.0  ;;  %v11608_v63 = vld [vmem:[%s13908_s24] sm:$0xff]  }
0x1e47   :  { %v7719_v46 = vadd.f32 %v7713_v36, %v7683_v45  ;;  %v7725_v57 = vmax.f32 %v7717_v62, 0.0 }
0x1e48   :  { %v7726_v54 = vmax.f32 %v7718_v41, 0.0  ;;  %v11609_v41 = vld [vmem:[%s13908_s24 + $0x48] sm:$0xff]  }
0x1e49   :  { %v7727_v59 = vmax.f32 %v7719_v46, 0.0  ;;  %v11610_v46 = vld [vmem:[%s13908_s24 + $0x8] sm:$0xff]  }
0x1e4a   :  { %v13678_v1 = vpack.c.bf16 %v7726_v54, %v7724_v0  ;;  %v11611_v54 = vld [vmem:[%s13908_s24 + $0x50] sm:$0xff]  }
0x1e4b   :  { %v13680_v52 = vpack.c.bf16 %v7727_v59, %v7725_v57  ;;  %v7687_v55 = vpop.f32.mrb[148].mxu0 }
0x1e4c   :  { %v7720_v13 = vadd.f32 %v7709_v32, %v7687_v55  ;;  %v7689_v56 = vpop.f32.mrb[149].mxu0 }
0x1e4d   :  { %v7721_v15 = vadd.f32 %v7713_v36, %v7689_v56  ;;  %v7691_v2 = vpop.f32.mrb[150].mxu0  ;;  %7756 = vmatprep.subr.bf16.mxu1 %v13680_v52  ;;  %v11612_v56 = vld [vmem:[%s13908_s24 + $0x10] sm:$0xff]  }
0x1e4e   :  { %v7722_v3 = vadd.f32 %v7709_v32, %v7691_v2  ;;  %v7693_v4 = vpop.f32.mrb[151].mxu0  ;;  %7757 = vmatpush1.bf16.msra.mxu1 %v13678_v1  ;;  %v7728_v6 = vmax.f32 %v7720_v13, 0.0  ;;  %v11614_v2 = vld [vmem:[%s13908_s24 + $0x18] sm:$0xff]  }
0x1e4f   :  { %v7723_v5 = vadd.f32 %v7713_v36, %v7693_v4  ;;  %v7729_v8 = vmax.f32 %v7721_v15, 0.0  ;;  %v11613_v15 = vld [vmem:[%s13908_s24 + $0x58] sm:$0xff]   ;;  %v11616_v4 = vld [vmem:[%s13908_s24 + $0x20] sm:$0xff]  }
0x1e50   :  { %v7730_v7 = vmax.f32 %v7722_v3, 0.0  ;;  %v11615_v3 = vld [vmem:[%s13908_s24 + $0x60] sm:$0xff]  }
0x1e51   :  { %v7731_v9 = vmax.f32 %v7723_v5, 0.0  ;;  %v11617_v5 = vld [vmem:[%s13908_s24 + $0x68] sm:$0xff]  }
0x1e52   :  { %v13684_v10 = vpack.c.bf16 %v7730_v7, %v7728_v6  ;;  %v11618_v6 = vld [vmem:[%s13908_s24 + $0x28] sm:$0xff]   ;;  %v11619_v7 = vld [vmem:[%s13908_s24 + $0x70] sm:$0xff]  }
0x1e53   :  { %v13686_v11 = vpack.c.bf16 %v7731_v9, %v7729_v8  ;;  %v11620_v8 = vld [vmem:[%s13908_s24 + $0x30] sm:$0xff]   ;;  %v11621_v9 = vld [vmem:[%s13908_s24 + $0x78] sm:$0xff]  }
0x1e55   :  { %7758 = vmatprep.subr.bf16.mxu1 %v13686_v11 }
0x1e56   :  { %7759 = vmatpush1.bf16.msra.mxu1 %v13684_v10 }
0x1e57   :  { %7866 = vmatprep.subr.bf16.mxu1 %v13680_v52 }
0x1e59   :  { %9740 = vmatmul.mubr.msk.bf16.vlgmr.msra.gmra.mrb[164].mxu1 %vm573_vm0, %v11587_v14  ;;  %v11622_v14 = vld [vmem:[%s13908_s24 + $0x38] sm:$0xff]  }
0x1e5a   :  { %7867 = vmatpush1.bf16.msra.mxu1 %v13678_v1  ;;  %7798 = vmatprep.mubr.bf16.mxu1 %v12437_v16 }
0x1e5b   :  { %7868 = vmatprep.subr.bf16.mxu1 %v13686_v11 }
0x1e5e   :  { %7869 = vmatpush1.bf16.msra.mxu1 %v13684_v10 }
0x1e5f   :  { %10227 = vmatprep.subr.bf16.mxu1 %v11591_v18  ;;  %v11623_v18 = vld [vmem:[%s13908_s24 + $0x140] sm:$0xff]  }
0x1e61   :  { %9741 = vmatmul.mubr.msk.bf16.gmra.mrb[168].mxu1 %vm573_vm0, %v11588_v20  ;;  %v11624_v20 = vld [vmem:[#allocation44 + $0x20] sm:$0xff]  }
0x1e62   :  { %7898 = vmatprep.mubr.bf16.mxu1 %v12437_v16 }
0x1e69   :  { %9744 = vmatmul.mubr.msk.bf16.vlgmr.msra.gmra.mrb[172].mxu1 %vm573_vm0, %v11589_v27  ;;  %v11625_v27 = vld [vmem:[%s13908_s24 + $0x100] sm:$0xff]  }
0x1e6a   :  { %7908 = vmatprep.mubr.bf16.mxu1 %v12437_v16  ;;  %10228 = vmatpush3.bf16.msra.mxu1 %v11592_v28  ;;  %v11626_v28 = vld [vmem:[%s13908_s24 + $0x148] sm:$0xff]  }
0x1e6b   :  { %10229 = vmatprep.subr.bf16.mxu1 %v11593_v39  ;;  %v11627_v39 = vld [vmem:[%s13908_s24 + $0x108] sm:$0xff]  }
0x1e6e   :  { %10230 = vmatpush3.bf16.msra.mxu1 %v11594_v43  ;;  %v11628_v43 = vld [vmem:[%s13908_s24 + $0x150] sm:$0xff]  }
0x1e6f   :  { %10231 = vmatprep.subr.bf16.mxu1 %v11595_v35  ;;  %v11629_v35 = vld [vmem:[#allocation44 + $0x28] sm:$0xff]  }
0x1e71   :  { %9745 = vmatmul.mubr.msk.bf16.gmra.mrb[176].mxu1 %vm573_vm0, %v11590_v37  ;;  %v11630_v37 = vld [vmem:[%s13908_s24 + $0x110] sm:$0xff]  }
0x1e72   :  { %10232 = vmatpush3.bf16.msra.mxu1 %v11596_v38  ;;  %v11631_v38 = vld [vmem:[%s13908_s24 + $0x158] sm:$0xff]  }
0x1e73   :  { %10233 = vmatprep.subr.bf16.mxu1 %v11597_v19  ;;  %v11632_v19 = vld [vmem:[%s13908_s24 + $0x118] sm:$0xff]  }
0x1e76   :  { %10234 = vmatpush3.bf16.msra.mxu1 %v11598_v17  ;;  %v11633_v17 = vld [vmem:[%s13908_s24 + $0x160] sm:$0xff]  }
0x1e77   :  { %10235 = vmatprep.subr.bf16.mxu1 %v11599_v12  ;;  %v11634_v12 = vld [vmem:[%s13908_s24 + $0x120] sm:$0xff]  }
0x1e7a   :  { %10236 = vmatpush3.bf16.msra.mxu1 %v11600_v21  ;;  %v11635_v21 = vld [vmem:[%s13908_s24 + $0x168] sm:$0xff]  }
0x1e7b   :  { %10237 = vmatprep.subr.bf16.mxu1 %v11601_v22  ;;  %v11636_v22 = vld [vmem:[%s13908_s24 + $0x128] sm:$0xff]  }
0x1e7e   :  { %10238 = vmatpush3.bf16.msra.mxu1 %v11602_v24  ;;  %v11637_v24 = vld [vmem:[%s13908_s24 + $0x170] sm:$0xff]  }
0x1e7f   :  { %10239 = vmatprep.subr.bf16.mxu1 %v11603_v44  ;;  %v11638_v44 = vld [vmem:[%s13908_s24 + $0x130] sm:$0xff]  }
0x1e82   :  { %10240 = vmatpush3.bf16.msra.mxu1 %v11604_v47  ;;  %v11639_v47 = vld [vmem:[%s13908_s24 + $0x178] sm:$0xff]  }
0x1e83   :  { %10241 = vmatprep.subr.bf16.mxu1 %v11605_v48  ;;  %v11640_v48 = vld [vmem:[%s13908_s24 + $0x138] sm:$0xff]  }
0x1e86   :  { %10242 = vmatpush3.bf16.msra.mxu1 %v11606_v49  ;;  %v11643_v49 = vld [vmem:[%s13908_s24 + $0x1c0] sm:$0xff]  }
0x1e87   :  { %10255 = vmatprep.subr.bf16.mxu1 %v11607_v50  ;;  %v11644_v50 = vld [vmem:[%s13908_s24 + $0x180] sm:$0xff]   ;;  %10311 = vmatprep.subr.bf16.mxu0 %v11643_v49 }
0x1e88   :  { %10312 = vmatpush3.bf16.msra.mxu0 %v11644_v50 }
0x1f2c   :  { %v7790_v51 = vpop.f32.mrb[164].mxu1 }
0x1f2d   :  { %v7792_v53 = vpop.f32.mrb[165].mxu1 }
0x1f2e   :  { %v7794_v58 = vpop.f32.mrb[166].mxu1 }
0x1f2f   :  { %v7809_v23 = vpack.c.bf16 %v7794_v58, %v7790_v51  ;;  %v7796_v25 = vpop.f32.mrb[167].mxu1  ;;  %v11645_v51 = vld [vmem:[%s13908_s24 + $0x1c8] sm:$0xff]   ;;  %v11647_v58 = vld [vmem:[%s13908_s24 + $0x1d0] sm:$0xff]  }
0x1f30   :  { %v7810_v26 = vpack.c.bf16 %v7796_v25, %v7792_v53  ;;  %v11646_v53 = vld [vmem:[%s13908_s24 + $0x188] sm:$0xff]   ;;  %10313 = vmatprep.subr.bf16.mxu0 %v11645_v51 }
0x1f31   :  { %10314 = vmatpush3.bf16.msra.mxu0 %v11646_v53 }
0x1f32   :  { %10315 = vmatprep.subr.bf16.mxu0 %v11647_v58 }
0x1f34   :  { %v7800_v30 = vpop.f32.mrb[168].mxu1 }
0x1f35   :  { %v7802_v33 = vpop.f32.mrb[169].mxu1 }
0x1f36   :  { %v7804_v34 = vpop.f32.mrb[170].mxu1 }
0x1f37   :  { %v7811_v60 = vpack.c.bf16 %v7804_v34, %v7800_v30  ;;  %v7806_v29 = vpop.f32.mrb[171].mxu1 }
0x1f38   :  { %v7812_v31 = vpack.c.bf16 %v7806_v29, %v7802_v33 }
0x1f3c   :  { %v7900_v32 = vpop.f32.mrb[172].mxu1 }
0x1f3d   :  { %v7902_v36 = vpop.f32.mrb[173].mxu1 }
0x1f3e   :  { %v7904_v40 = vpop.f32.mrb[174].mxu1 }
0x1f3f   :  { %v7919_v42 = vpack.c.bf16 %v7904_v40, %v7900_v32  ;;  %v7906_v61 = vpop.f32.mrb[175].mxu1 }
0x1f40   :  { %v7920_v62 = vpack.c.bf16 %v7906_v61, %v7902_v36 }
0x1f42   :  { %8084 = vmatprep.mubr.bf16.mxu1 %v7920_v62 }
0x1f43   :  { %8085 = vmatmul.mubr.bf16.vlgmr.msra.gmra.mrb[180].mxu1 %v7919_v42 }
0x1f44   :  { %10256 = vmatpush3.bf16.msra.mxu1 %v11608_v63  ;;  %v7910_v45 = vpop.f32.mrb[176].mxu1 }
0x1f45   :  { %v7912_v0 = vpop.f32.mrb[177].mxu1  ;;  %10257 = vmatprep.subr.bf16.mxu1 %v11609_v41 }
0x1f46   :  { %v7914_v57 = vpop.f32.mrb[178].mxu1 }
0x1f47   :  { %v7921_v59 = vpack.c.bf16 %v7914_v57, %v7910_v45  ;;  %v7916_v55 = vpop.f32.mrb[179].mxu1 }
0x1f48   :  { %v7922_v13 = vpack.c.bf16 %v7916_v55, %v7912_v0  ;;  %10258 = vmatpush3.bf16.msra.mxu1 %v11610_v46 }
0x1f49   :  { %10259 = vmatprep.subr.bf16.mxu1 %v11611_v54 }
0x1f4a   :  { %8092 = vmatprep.mubr.bf16.mxu1 %v7922_v13 }
0x1f4b   :  { %8093 = vmatmul.mubr.bf16.gmra.mrb[184].mxu1 %v7921_v59 }
0x1f4c   :  { %10260 = vmatpush3.bf16.msra.mxu1 %v11612_v56  ;;  %8229 = vmatprep.mubr.bf16.mxu1 %v7810_v26 }
0x1f4d   :  { %10261 = vmatprep.subr.bf16.mxu1 %v11613_v15 }
0x1f50   :  { %10262 = vmatpush3.bf16.msra.mxu1 %v11614_v2 }
0x1f51   :  { %10263 = vmatprep.subr.bf16.mxu1 %v11615_v3 }
0x1f54   :  { %10264 = vmatpush3.bf16.msra.mxu1 %v11616_v4 }
0x1f55   :  { %10265 = vmatprep.subr.bf16.mxu1 %v11617_v5 }
0x1f58   :  { %10266 = vmatpush3.bf16.msra.mxu1 %v11618_v6 }
0x1f59   :  { %10267 = vmatprep.subr.bf16.mxu1 %v11619_v7 }
0x1f5c   :  { %10268 = vmatpush3.bf16.msra.mxu1 %v11620_v8 }
0x1f5d   :  { %10269 = vmatprep.subr.bf16.mxu1 %v11621_v9 }
0x1f60   :  { %10270 = vmatpush3.bf16.msra.mxu1 %v11622_v14 }
0x1f61   :  { %8267 = vmatprep.subr.bf16.mxu1 %v13680_v52 }
0x1f63   :  { %8230 = vmatmul.mubr.bf16.vlgmr.msra.gmra.mrb[188].mxu1 %v7809_v23 }
0x1f64   :  { %8237 = vmatprep.mubr.bf16.mxu1 %v7812_v31  ;;  %8268 = vmatpush1.bf16.msra.mxu1 %v13678_v1 }
0x1f65   :  { %8269 = vmatprep.subr.bf16.mxu1 %v13686_v11 }
0x1f68   :  { %8270 = vmatpush1.bf16.msra.mxu1 %v13684_v10 }
0x1f69   :  { %10283 = vmatprep.subr.bf16.mxu1 %v11623_v18 }
0x1f6b   :  { %8238 = vmatmul.mubr.bf16.gmra.mrb[192].mxu1 %v7811_v60 }
0x1f6c   :  { %8299 = vmatprep.mubr.bf16.mxu1 %v12437_v16 }
0x1f73   :  { %9812 = vmatmul.mubr.msk.bf16.vlgmr.msra.gmra.mrb[196].mxu1 %vm573_vm0, %v11624_v20 }
0x1f74   :  { %10284 = vmatpush3.bf16.msra.mxu1 %v11625_v27  ;;  %8309 = vmatprep.mubr.bf16.mxu1 %v12437_v16 }
0x1f75   :  { %10285 = vmatprep.subr.bf16.mxu1 %v11626_v28  ;;  %v11648_v28 = vld [vmem:[%s13908_s24 + $0x190] sm:$0xff]  }
0x1f76   :  { %10316 = vmatpush3.bf16.msra.mxu0 %v11648_v28 }
0x1f78   :  { %10286 = vmatpush3.bf16.msra.mxu1 %v11627_v39  ;;  %v11650_v39 = vld [vmem:[%s13908_s24 + $0x198] sm:$0xff]  }
0x1f79   :  { %10287 = vmatprep.subr.bf16.mxu1 %v11628_v43  ;;  %v11651_v43 = vld [vmem:[%s13908_s24 + $0x1e0] sm:$0xff]  }
0x1f7b   :  { %9813 = vmatmul.mubr.msk.bf16.gmra.mrb[200].mxu1 %vm573_vm0, %v11629_v35  ;;  %v11652_v35 = vld [vmem:[%s13908_s24 + $0x1a0] sm:$0xff]  }
0x1f7c   :  { %10288 = vmatpush3.bf16.msra.mxu1 %v11630_v37  ;;  %v11653_v37 = vld [vmem:[%s13908_s24 + $0x1e8] sm:$0xff]  }
0x1f7d   :  { %10289 = vmatprep.subr.bf16.mxu1 %v11631_v38  ;;  %v11654_v38 = vld [vmem:[%s13908_s24 + $0x1a8] sm:$0xff]  }
0x1f80   :  { %10290 = vmatpush3.bf16.msra.mxu1 %v11632_v19  ;;  %v11656_v19 = vld [vmem:[%s13908_s24 + $0x1b0] sm:$0xff]  }
0x1f81   :  { %10291 = vmatprep.subr.bf16.mxu1 %v11633_v17  ;;  %v11657_v17 = vld [vmem:[%s13908_s24 + $0x1f8] sm:$0xff]  }
0x1f84   :  { %10292 = vmatpush3.bf16.msra.mxu1 %v11634_v12  ;;  %v11658_v12 = vld [vmem:[%s13908_s24 + $0x1b8] sm:$0xff]  }
0x1f85   :  { %10293 = vmatprep.subr.bf16.mxu1 %v11635_v21 }
0x1f88   :  { %10294 = vmatpush3.bf16.msra.mxu1 %v11636_v22 }
0x1f89   :  { %10295 = vmatprep.subr.bf16.mxu1 %v11637_v24 }
0x1f8c   :  { %10296 = vmatpush3.bf16.msra.mxu1 %v11638_v44 }
0x1f8d   :  { %10297 = vmatprep.subr.bf16.mxu1 %v11639_v47 }
0x1f90   :  { %10298 = vmatpush3.bf16.msra.mxu1 %v11640_v48 }
0x1f91   :  { %8527 = vmatprep.subr.bf16.mxu1 %v13680_v52 }
0x2016   :  { %v10243_v23 = vpop.f32.mrb[180].mxu1 }
0x2017   :  { %v10244_v25 = vpop.f32.mrb[181].mxu1 }
0x2018   :  { %v10245_v26 = vadd.f32 %v10244_v25, %v10243_v23  ;;  %v10246_v30 = vpop.f32.mrb[182].mxu1 }
0x2019   :  { %v10247_v33 = vpop.f32.mrb[183].mxu1 }
0x201a   :  { %v10248_v34 = vadd.f32 %v10247_v33, %v10246_v30 }
0x201e   :  { %v10249_v60 = vpop.f32.mrb[184].mxu1 }
0x201f   :  { %v10250_v29 = vpop.f32.mrb[185].mxu1 }
0x2020   :  { %v10251_v31 = vadd.f32 %v10250_v29, %v10249_v60  ;;  %v10252_v52 = vpop.f32.mrb[186].mxu1 }
0x2021   :  { %v10253_v32 = vpop.f32.mrb[187].mxu1 }
0x2022   :  { %v10254_v36 = vadd.f32 %v10253_v32, %v10252_v52 }
0x2036   :  { %v10271_v40 = vpop.f32.mrb[188].mxu1 }
0x2037   :  { %v10272_v42 = vpop.f32.mrb[189].mxu1 }
0x2038   :  { %v10273_v61 = vadd.f32 %v10272_v42, %v10271_v40  ;;  %v10274_v62 = vpop.f32.mrb[190].mxu1 }
0x2039   :  { %v10275_v63 = vpop.f32.mrb[191].mxu1 }
0x203a   :  { %v13763_v41 = vadd.f32 %v10273_v61, %v10245_v26  ;;  %v10276_v45 = vadd.f32 %v10275_v63, %v10274_v62 }
0x203c   :  { %v13765_v46 = vadd.f32 %v10276_v45, %v10248_v34 }
0x203e   :  { %v10277_v0 = vpop.f32.mrb[192].mxu1 }
0x203f   :  { %v10278_v54 = vpop.f32.mrb[193].mxu1 }
0x2040   :  { %v10279_v57 = vadd.f32 %v10278_v54, %v10277_v0  ;;  %v10280_v59 = vpop.f32.mrb[194].mxu1 }
0x2041   :  { %v10281_v55 = vpop.f32.mrb[195].mxu1 }
0x2042   :  { %v13767_v13 = vadd.f32 %v10279_v57, %v10251_v31  ;;  %v10282_v56 = vadd.f32 %v10281_v55, %v10280_v59 }
0x2044   :  { %v13769_v15 = vadd.f32 %v10282_v56, %v10254_v36 }
0x2046   :  { %v8301_v2 = vpop.f32.mrb[196].mxu1 }
0x2047   :  { %v8303_v3 = vpop.f32.mrb[197].mxu1 }
0x2048   :  { %v8305_v4 = vpop.f32.mrb[198].mxu1 }
0x2049   :  { %v8320_v5 = vpack.c.bf16 %v8305_v4, %v8301_v2  ;;  %v8307_v6 = vpop.f32.mrb[199].mxu1 }
0x204a   :  { %v8321_v7 = vpack.c.bf16 %v8307_v6, %v8303_v3 }
0x204c   :  { %8485 = vmatprep.mubr.bf16.mxu1 %v8321_v7 }
0x204d   :  { %8486 = vmatmul.mubr.bf16.vlgmr.msra.gmra.mrb[204].mxu1 %v8320_v5 }
0x204e   :  { %8528 = vmatpush1.bf16.msra.mxu1 %v13678_v1  ;;  %v8311_v8 = vpop.f32.mrb[200].mxu1  ;;  %v11641_v1 = vld [vmem:[#allocation44 + $0x30] sm:$0xff]  }
0x204f   :  { %8529 = vmatprep.subr.bf16.mxu1 %v13686_v11  ;;  %v8313_v9 = vpop.f32.mrb[201].mxu1  ;;  %v11642_v11 = vld [vmem:[#allocation44 + $0x38] sm:$0xff]  }
0x2050   :  { %v8315_v14 = vpop.f32.mrb[202].mxu1 }
0x2051   :  { %v8322_v18 = vpack.c.bf16 %v8315_v14, %v8311_v8  ;;  %v8317_v20 = vpop.f32.mrb[203].mxu1 }
0x2052   :  { %v8323_v27 = vpack.c.bf16 %v8317_v20, %v8313_v9  ;;  %8530 = vmatpush1.bf16.msra.mxu1 %v13684_v10  ;;  %v11649_v10 = vld [vmem:[%s13908_s24 + $0x1d8] sm:$0xff]  }
0x2053   :  { %10317 = vmatprep.subr.bf16.mxu0 %v11649_v10 }
0x2054   :  { %8493 = vmatprep.mubr.bf16.mxu1 %v8323_v27  ;;  %10318 = vmatpush3.bf16.msra.mxu0 %v11650_v39 }
0x2055   :  { %8494 = vmatmul.mubr.bf16.gmra.mrb[208].mxu1 %v8322_v18  ;;  %10319 = vmatprep.subr.bf16.mxu0 %v11651_v43 }
0x2056   :  { %8559 = vmatprep.mubr.bf16.mxu1 %v12437_v16 }
0x2058   :  { %10320 = vmatpush3.bf16.msra.mxu0 %v11652_v35 }
0x2059   :  { %10321 = vmatprep.subr.bf16.mxu0 %v11653_v37 }
0x205c   :  { %10322 = vmatpush3.bf16.msra.mxu0 %v11654_v38 }
0x205d   :  { %9864 = vmatmul.mubr.msk.bf16.vlgmr.msra.gmra.mrb[212].mxu1 %vm573_vm0, %v11641_v1 }
0x205e   :  { %8569 = vmatprep.mubr.bf16.mxu1 %v12437_v16  ;;  %v11655_v16 = vld [vmem:[%s13908_s24 + $0x1f0] sm:$0xff]  }
0x205f   :  { %10323 = vmatprep.subr.bf16.mxu0 %v11655_v16 }
0x2060   :  { %10324 = vmatpush3.bf16.msra.mxu0 %v11656_v19 }
0x2061   :  { %10325 = vmatprep.subr.bf16.mxu0 %v11657_v17 }
0x2064   :  { %10326 = vmatpush3.bf16.msra.mxu0 %v11658_v12 }
0x2065   :  { %9865 = vmatmul.mubr.msk.bf16.gmra.mrb[216].mxu1 %vm573_vm0, %v11642_v11 }
0x2120   :  { %v10299_v21 = vpop.f32.mrb[204].mxu1 }
0x2121   :  { %v10300_v22 = vpop.f32.mrb[205].mxu1 }
0x2122   :  { %v10301_v24 = vadd.f32 %v10300_v22, %v10299_v21  ;;  %v10302_v44 = vpop.f32.mrb[206].mxu1 }
0x2123   :  { %v10303_v47 = vpop.f32.mrb[207].mxu1 }
0x2124   :  { %v13790_v48 = vadd.f32 %v10301_v24, %v13763_v41  ;;  %v10304_v49 = vadd.f32 %v10303_v47, %v10302_v44 }
0x2126   :  { %v13793_v50 = vadd.f32 %v10304_v49, %v13765_v46 }
0x2128   :  { %v10305_v51 = vpop.f32.mrb[208].mxu1 }
0x2129   :  { %v10306_v53 = vpop.f32.mrb[209].mxu1 }
0x212a   :  { %v10307_v58 = vadd.f32 %v10306_v53, %v10305_v51  ;;  %v10308_v23 = vpop.f32.mrb[210].mxu1 }
0x212b   :  { %v10309_v25 = vpop.f32.mrb[211].mxu1 }
0x212c   :  { %v13796_v26 = vadd.f32 %v10307_v58, %v13767_v13  ;;  %v10310_v30 = vadd.f32 %v10309_v25, %v10308_v23 }
0x212e   :  { %v13799_v33 = vadd.f32 %v10310_v30, %v13769_v15 }
0x2130   :  { %v8561_v34 = vpop.f32.mrb[212].mxu1 }
0x2131   :  { %v8563_v60 = vpop.f32.mrb[213].mxu1 }
0x2132   :  { %v8565_v29 = vpop.f32.mrb[214].mxu1 }
0x2133   :  { %v8580_v31 = vpack.c.bf16 %v8565_v29, %v8561_v34  ;;  %v8567_v52 = vpop.f32.mrb[215].mxu1 }
0x2134   :  { %v8581_v32 = vpack.c.bf16 %v8567_v52, %v8563_v60 }
0x2136   :  { %8745 = vmatprep.mubr.bf16.mxu0 %v8581_v32 }
0x2137   :  { %8746 = vmatmul.mubr.bf16.vlgmr.msra.gmra.mrb[152].mxu0 %v8580_v31 }
0x2138   :  { %v8571_v36 = vpop.f32.mrb[216].mxu1 }
0x2139   :  { %v8573_v40 = vpop.f32.mrb[217].mxu1 }
0x213a   :  { %v8575_v42 = vpop.f32.mrb[218].mxu1 }
0x213b   :  { %v8582_v61 = vpack.c.bf16 %v8575_v42, %v8571_v36  ;;  %v8577_v62 = vpop.f32.mrb[219].mxu1 }
0x213c   :  { %v8583_v63 = vpack.c.bf16 %v8577_v62, %v8573_v40 }
0x213e   :  { %8753 = vmatprep.mubr.bf16.mxu0 %v8583_v63 }
0x213f   :  { %8754 = vmatmul.mubr.bf16.gmra.mrb[156].mxu0 %v8582_v61 }
0x2140   :  { %12288 = shalt.err (!%p12285_p4)
}
0x2141   :  { %s12289_s0 = scalar_lea.hbm %s12670_s14, 32 }
0x2142   :  { %p12290_p5 = scmp.ne.s32.totalorder %s12670_s14, %s12289_s0  ;;  %p12293_p6 = scmp.lt.u32.totalorder %s12289_s0, %s12670_s14 }
0x2144   :  { %p12295_p7 = pnand %p12293_p6, %p12290_p5 }
0x2146   :  { %12298 = shalt.err (!%p12295_p7)
}
0x2147   :  { %8791 = dma.vmem_to_hbm [thread:$0]  %s8789_s2, 32, %s12670_s14, [#allocation4]  }
0x2148   :  { %s12299_s8 = scalar_lea.vmem %s8799_s11, 32  ;;  %p12304_p9 = scmp.lt.s32.totalorder %s8799_s11, %s8799_s11 }
0x2149   :  { %p12300_p8 = scmp.ne.s32.totalorder %s8799_s11, %s12299_s8  ;;  %p12305_p10 = scmp.lt.s32.totalorder %s12299_s8, %s12299_s8 }
0x214b   :  { %p12306_p11 = por %p12305_p10, %p12304_p9 }
0x214d   :  { %p12307_p12 = pnand %p12306_p11, %p12300_p8 }
0x214f   :  { %12310 = shalt.err (!%p12307_p12)
}
0x2150   :  { %s12311_s5 = scalar_lea.hbm %s12675_s3, 32 }
0x2151   :  { %p12312_p13 = scmp.ne.s32.totalorder %s12675_s3, %s12311_s5  ;;  %p12315_p0 = scmp.lt.u32.totalorder %s12311_s5, %s12675_s3 }
0x2153   :  { %p12317_p1 = pnand %p12315_p0, %p12312_p13 }
0x2155   :  { %12320 = shalt.err (!%p12317_p1)
}
0x2156   :  { %8801 = dma.vmem_to_hbm [thread:$0]  %s8799_s11, 32, %s12675_s3, [#allocation48]   ;;  %v9914_v54 = vld [vmem:[%s12665_s12] ss:$0 sm:$0xff]  ;;  %vm8777_vm12 = vcmask 785408  }
0x220a   :  { %v10327_v41 = vpop.f32.mrb[152].mxu0 }
0x220b   :  { %v10328_v45 = vpop.f32.mrb[153].mxu0 }
0x220c   :  { %v10329_v46 = vadd.f32 %v10328_v45, %v10327_v41  ;;  %v10330_v0 = vpop.f32.mrb[154].mxu0 }
0x220d   :  { %v10331_v57 = vpop.f32.mrb[155].mxu0 }
0x220e   :  { %v8762_v59 = vadd.f32 %v10329_v46, %v13790_v48  ;;  %v10332_v55 = vadd.f32 %v10331_v57, %v10330_v0 }
0x2210   :  { %v8773_v13 = vadd.f32 %v9914_v54, %v8762_v59  ;;  %v8763_v56 = vadd.f32 %v10332_v55, %v13793_v50 }
0x2212   :  { %8778 = vst.msk [vmem:[%s12680_s19] sm:$0xff] %vm8777_vm12, %v8773_v13  ;;  %v8774_v15 = vadd.f32 %v9914_v54, %v8763_v56  ;;  %v10333_v2 = vpop.f32.mrb[156].mxu0 }
0x2213   :  { %v10334_v3 = vpop.f32.mrb[157].mxu0 }
0x2214   :  { %8779 = vst.msk [vmem:[%s12680_s19 + $0x8] sm:$0xff] %vm8777_vm12, %v8774_v15  ;;  %v10335_v4 = vadd.f32 %v10334_v3, %v10333_v2  ;;  %v10336_v5 = vpop.f32.mrb[158].mxu0 }
0x2215   :  { %v10337_v6 = vpop.f32.mrb[159].mxu0 }
0x2216   :  { %v8764_v7 = vadd.f32 %v10335_v4, %v13796_v26  ;;  %v10338_v8 = vadd.f32 %v10337_v6, %v10336_v5 }
0x2218   :  { %v8775_v9 = vadd.f32 %v9914_v54, %v8764_v7  ;;  %v8765_v14 = vadd.f32 %v10338_v8, %v13799_v33 }
0x221a   :  { %8780 = vst.msk [vmem:[%s12680_s19 + $0x10] sm:$0xff] %vm8777_vm12, %v8775_v9  ;;  %v8776_v18 = vadd.f32 %v9914_v54, %v8765_v14 }
0x221c   :  { %8781 = vst.msk [vmem:[%s12680_s19 + $0x18] sm:$0xff] %vm8777_vm12, %v8776_v18 }
0x221d   :  { %12351 = dma.done.wait [#allocation4], 32  }
0x221e   :  { %12352 = vsyncadd [#allocation4], 4294967264 }
0x221f   :  { %12353 = dma.done.wait [#allocation48], 32  }
0x2220   :  { %12354 = vsyncadd [#allocation48], 4294967264 }
0x2221   :  { %8812 = vsyncpa [#allocation3], 1 }
0x2222   :  { %8813 = vsyncpa [#allocation6], 1 }
0x2223   :  { %8814 = vsyncpa [#allocation9], 1 }
0x2224   :  { %8815 = vsyncpa [#allocation12], 1 }
0x2225   :  { %8816 = vsyncpa [#allocation15], 1 }
0x2226   :  { %8817 = vsyncpa [#allocation18], 1 }
0x2227   :  { %8818 = vsyncpa [#allocation21], 1 }
0x2228   :  { %8819 = vsyncpa [#allocation24], 1 }
0x2229   :  { %8820 = vsyncpa [#allocation27], 1 }
0x222a   :  { %8821 = vsyncpa [#allocation30], 1 }
0x222b   :  { %8822 = vsyncpa [#allocation33], 1 }
0x222c   :  { %8823 = vsyncpa [#allocation36], 1 }
0x222d   :  { %8824 = vsyncpa [#allocation39], 1 }
0x222e   :  { %8825 = vsyncpa [#allocation42], 1 }
0x222f   :  { %8826 = vsyncpa [#allocation45], 1 }
0x2230   :  { %8827 = vsyncpa [#allocation4], 1 }
0x2231   :  { %8828 = vsyncpa [#allocation48], 1 }

</bundles_post_ra>
